<compile_context>
chip_gen: v7x
topology: tpu7x:2x2x1
jax: 0.10.0
libtpu: 0.0.40
codegen_flags: <defaults>
</compile_context>

<pallas_src>
import jax
import jax.numpy as jnp
import numpy as np
from jax.experimental import pallas as pl
from jax.experimental.pallas import tpu as pltpu

# ----------------------------------------------------------------------------
# Static network geometry (small synthetic observation/action spaces).
# ----------------------------------------------------------------------------
FOVEA_C, FOVEA_H, FOVEA_W = 4, 16, 16
PERI_C, PERI_H, PERI_W = 4, 8, 8
POSITION_DIM = 2
MOTOR_DIM = 6
SENSORY_DIM = 4

C1 = 16                      # fovea conv1 out channels
C2 = 32                      # fovea conv2 out channels (stride 2)
CP = 8                       # peripheral conv out channels
HO, WO = FOVEA_H // 2, FOVEA_W // 2        # 8, 8 (stride-2 output)
FOVEA_FEAT = C2 * HO * WO                  # 2048
PERI_FEAT = CP * PERI_H * PERI_W           # 512
POS_FEAT = 32
FUSION_IN = FOVEA_FEAT + PERI_FEAT + POS_FEAT   # 2592
HIDDEN = 256
NHEAD_PAD = 128              # motor(6)+sensory(4)=10 padded to lane-dense 128


# ----------------------------------------------------------------------------
# Kernel 1: fused vision branches (fovea conv1 -> conv2, peripheral conv)
# ----------------------------------------------------------------------------
def _vision_kernel(xf_ref, xp_ref, w1_ref, b1_ref, w2_ref, b2_ref, sel_ref,
                   wp_ref, bp_ref, fov_ref, per_ref, pad_ref):
    # ------------------ fovea conv1: 3x3, stride 1, pad 1 -------------------
    xf = xf_ref[0]                                        # (18, 18, 4) padded NHWC
    acc1 = jnp.zeros((FOVEA_H * FOVEA_W, C1), jnp.float32)
    for kh in range(3):
        for kw in range(3):
            patch = xf[kh:kh + FOVEA_H, kw:kw + FOVEA_W, :]          # (16,16,4)
            acc1 = acc1 + jnp.dot(
                patch.reshape(FOVEA_H * FOVEA_W, FOVEA_C),
                w1_ref[kh * 3 + kw],
                preferred_element_type=jnp.float32)
    a1 = jnp.maximum(acc1 + b1_ref[...], 0.0)             # (256, 16)

    # conv1 activation stays in VMEM (row-padded scratch; columns handled
    # by the stride-2 selection matrices so no column padding is needed).
    pad_ref[0:1, :, :] = jnp.zeros((1, FOVEA_W, C1), jnp.float32)
    pad_ref[FOVEA_H + 1:FOVEA_H + 2, :, :] = jnp.zeros((1, FOVEA_W, C1),
                                                       jnp.float32)
    pad_ref[1:FOVEA_H + 1, :, :] = a1.reshape(FOVEA_H, FOVEA_W, C1)

    # ------------------ fovea conv2: 3x3, stride 2, pad 1 -------------------
    p = pad_ref[...]                                      # (18, 16, 16)
    p_head = p[0:FOVEA_H].reshape(HO, 2, FOVEA_W, C1)     # rows 0..15 paired
    rows = (p_head[:, 0],                                 # padded rows 0,2,...,14 (kh=0)
            p_head[:, 1],                                 # padded rows 1,3,...,15 (kh=1)
            p[2:FOVEA_H + 2].reshape(HO, 2, FOVEA_W, C1)[:, 0])   # 2,4,...,16 (kh=2)
    acc2 = jnp.zeros((HO * WO, C2), jnp.float32)
    for kh in range(3):
        rk = rows[kh].reshape(HO * FOVEA_W, C1)           # (128, 16)
        for kw in range(3):
            # 0/1 selection picks column 2*wo+kw-1 per output row (zeros at pad)
            g = jnp.dot(sel_ref[kw], rk,
                        preferred_element_type=jnp.float32)        # (64, 16)
            acc2 = acc2 + jnp.dot(g, w2_ref[kh * 3 + kw],
                                  preferred_element_type=jnp.float32)
    fov_ref[0] = jnp.maximum(acc2 + b2_ref[...], 0.0)     # (64, 32) NHWC flatten order

    # ------------------ peripheral conv: 3x3, stride 1, pad 1 ----------------
    xp = xp_ref[0]                                        # (10, 10, 4) padded NHWC
    accp = jnp.zeros((PERI_H * PERI_W, CP), jnp.float32)
    for kh in range(3):
        for kw in range(3):
            patch = xp[kh:kh + PERI_H, kw:kw + PERI_W, :]            # (8,8,4)
            accp = accp + jnp.dot(
                patch.reshape(PERI_H * PERI_W, PERI_C),
                wp_ref[kh * 3 + kw],
                preferred_element_type=jnp.float32)
    per_ref[0] = jnp.maximum(accp + bp_ref[...], 0.0)     # (64, 8)


def _vision_pallas(xf_pad, xp_pad, w1, b1, w2, b2, sel2, wp, bp):
    B = xf_pad.shape[0]
    const3 = lambda b: (0, 0, 0)
    const2 = lambda b: (0, 0)
    return pl.pallas_call(
        _vision_kernel,
        out_shape=(jax.ShapeDtypeStruct((B, HO * WO, C2), jnp.float32),
                   jax.ShapeDtypeStruct((B, PERI_H * PERI_W, CP), jnp.float32)),
        grid=(B,),
        in_specs=[
            pl.BlockSpec((1, FOVEA_H + 2, FOVEA_W + 2, FOVEA_C),
                         lambda b: (b, 0, 0, 0)),
            pl.BlockSpec((1, PERI_H + 2, PERI_W + 2, PERI_C),
                         lambda b: (b, 0, 0, 0)),
            pl.BlockSpec((9, FOVEA_C, C1), const3),
            pl.BlockSpec((1, C1), const2),
            pl.BlockSpec((9, C1, C2), const3),
            pl.BlockSpec((1, C2), const2),
            pl.BlockSpec((3, HO * WO, HO * FOVEA_W), const3),
            pl.BlockSpec((9, PERI_C, CP), const3),
            pl.BlockSpec((1, CP), const2),
        ],
        out_specs=(pl.BlockSpec((1, HO * WO, C2), lambda b: (b, 0, 0)),
                   pl.BlockSpec((1, PERI_H * PERI_W, CP), lambda b: (b, 0, 0))),
        scratch_shapes=[pltpu.VMEM((FOVEA_H + 2, FOVEA_W, C1), jnp.float32)],
        compiler_params=pltpu.CompilerParams(
            dimension_semantics=("parallel",)),
    )(xf_pad, xp_pad, w1, b1, w2, b2, sel2, wp, bp)


# ----------------------------------------------------------------------------
# Kernel 2: fused tail (position MLP + fusion + merged motor/sensory heads)
# ----------------------------------------------------------------------------
def _tail_kernel(fov_ref, per_ref, pos_ref,
                 pw1_ref, pb1_ref, pw2_ref, pb2_ref,
                 wf_ref, wp_ref, wpos_ref, fb_ref,
                 hw_ref, hb_ref, out_ref):
    h1 = jnp.maximum(jnp.dot(pos_ref[...], pw1_ref[...],
                             preferred_element_type=jnp.float32) + pb1_ref[...],
                     0.0)                                           # (B, 16)
    h2 = jnp.maximum(jnp.dot(h1, pw2_ref[...],
                             preferred_element_type=jnp.float32) + pb2_ref[...],
                     0.0)                                           # (B, 32)
    feat = (jnp.dot(fov_ref[...], wf_ref[...], preferred_element_type=jnp.float32)
            + jnp.dot(per_ref[...], wp_ref[...], preferred_element_type=jnp.float32)
            + jnp.dot(h2, wpos_ref[...], preferred_element_type=jnp.float32)
            + fb_ref[...])
    feat = jnp.maximum(feat, 0.0)                                   # (B, 256)
    out_ref[...] = jnp.dot(feat, hw_ref[...],
                           preferred_element_type=jnp.float32) + hb_ref[...]


def _tail_pallas(fov_feat, per_feat, pos, p):
    B = fov_feat.shape[0]
    args = (fov_feat, per_feat, pos,
            p["pos_w1"], p["pos_b1"], p["pos_w2"], p["pos_b2"],
            p["fus_wf"], p["fus_wp"], p["fus_wpos"], p["fus_b"],
            p["head_w"], p["head_b"])
    vmem = pl.BlockSpec(memory_space=pltpu.MemorySpace.VMEM)
    return pl.pallas_call(
        _tail_kernel,
        out_shape=jax.ShapeDtypeStruct((B, NHEAD_PAD), jnp.float32),
        in_specs=[vmem] * len(args),
        out_specs=vmem,
    )(*args)


# ----------------------------------------------------------------------------
# Parameter init (synthetic, torch-layout) and trace-time weight preparation.
# ----------------------------------------------------------------------------
def init_params(key):
    ks = jax.random.split(key, 8)

    def w(k, shape, fan_in):
        return jax.random.normal(k, shape, jnp.float32) / np.sqrt(fan_in)

    return {
        "f_w1": w(ks[0], (C1, FOVEA_C, 3, 3), FOVEA_C * 9),
        "f_b1": jnp.zeros((C1,), jnp.float32),
        "f_w2": w(ks[1], (C2, C1, 3, 3), C1 * 9),
        "f_b2": jnp.zeros((C2,), jnp.float32),
        "p_w1": w(ks[2], (CP, PERI_C, 3, 3), PERI_C * 9),
        "p_b1": jnp.zeros((CP,), jnp.float32),
        "pos_w1": w(ks[3], (POSITION_DIM, 16), POSITION_DIM),
        "pos_b1": jnp.zeros((1, 16), jnp.float32),
        "pos_w2": w(ks[4], (16, 32), 16),
        "pos_b2": jnp.zeros((1, 32), jnp.float32),
        # fus_w rows follow torch.nn.Flatten (NCHW) ordering, like the spec.
        "fus_w": w(ks[5], (FUSION_IN, HIDDEN), FUSION_IN),
        "fus_b": jnp.zeros((1, HIDDEN), jnp.float32),
        "mot_w": w(ks[6], (HIDDEN, MOTOR_DIM), HIDDEN),
        "mot_b": jnp.zeros((1, MOTOR_DIM), jnp.float32),
        "sen_w": w(ks[7], (HIDDEN, SENSORY_DIM), HIDDEN),
        "sen_b": jnp.zeros((1, SENSORY_DIM), jnp.float32),
    }


def _conv_w_to_mat(w_oihw):
    # (Cout, Cin, 3, 3) -> (9, Cin, Cout), k = kh*3 + kw (matches kernel loops)
    cout, cin = w_oihw.shape[0], w_oihw.shape[1]
    return jnp.transpose(w_oihw, (2, 3, 1, 0)).reshape(9, cin, cout)


def _make_stride2_selectors():
    # sel[kw, ho*WO+wo, ho*FOVEA_W + (2*wo+kw-1)] = 1 (zero row at column pad)
    sel = np.zeros((3, HO * WO, HO * FOVEA_W), np.float32)
    for kw in range(3):
        for ho in range(HO):
            for wo in range(WO):
                w_in = 2 * wo + kw - 1
                if 0 <= w_in < FOVEA_W:
                    sel[kw, ho * WO + wo, ho * FOVEA_W + w_in] = 1.0
    return jnp.asarray(sel)


def prepare_params(p):
    """Fold Flatten (NCHW) ordering + head merge into the weights once."""
    # fovea: our flatten index j = ho*256 + wo*32 + c  -> torch row c*64+ho*8+wo
    ho, wo, c = np.meshgrid(np.arange(HO), np.arange(WO), np.arange(C2),
                            indexing="ij")
    perm_f = (c * (HO * WO) + ho * WO + wo).reshape(-1)
    # peripheral: j = h*64 + w*8 + c -> torch row c*64 + h*8 + w
    h, w_, cp = np.meshgrid(np.arange(PERI_H), np.arange(PERI_W), np.arange(CP),
                            indexing="ij")
    perm_p = (cp * (PERI_H * PERI_W) + h * PERI_W + w_).reshape(-1)

    fus_w = p["fus_w"]
    head_w = jnp.zeros((HIDDEN, NHEAD_PAD), jnp.float32)
    head_w = head_w.at[:, :MOTOR_DIM].set(p["mot_w"])
    head_w = head_w.at[:, MOTOR_DIM:MOTOR_DIM + SENSORY_DIM].set(p["sen_w"])
    head_b = jnp.zeros((1, NHEAD_PAD), jnp.float32)
    head_b = head_b.at[:, :MOTOR_DIM].set(p["mot_b"])
    head_b = head_b.at[:, MOTOR_DIM:MOTOR_DIM + SENSORY_DIM].set(p["sen_b"])

    return {
        "f_w1": _conv_w_to_mat(p["f_w1"]),
        "f_b1": p["f_b1"].reshape(1, C1),
        "f_w2": _conv_w_to_mat(p["f_w2"]),
        "f_b2": p["f_b2"].reshape(1, C2),
        "p_w1": _conv_w_to_mat(p["p_w1"]),
        "p_b1": p["p_b1"].reshape(1, CP),
        "sel2": _make_stride2_selectors(),
        "pos_w1": p["pos_w1"], "pos_b1": p["pos_b1"],
        "pos_w2": p["pos_w2"], "pos_b2": p["pos_b2"],
        "fus_wf": fus_w[jnp.asarray(perm_f)],                    # (2048, 256)
        "fus_wp": fus_w[FOVEA_FEAT + jnp.asarray(perm_p)],       # (512, 256)
        "fus_wpos": fus_w[FOVEA_FEAT + PERI_FEAT:],              # (32, 256)
        "fus_b": p["fus_b"],
        "head_w": head_w, "head_b": head_b,
    }


# ----------------------------------------------------------------------------
# Forward pass (mirrors SeparatedVisionNetwork.forward)
# ----------------------------------------------------------------------------
def separated_vision_forward(prepped, fovea, peripheral, position):
    if position.ndim == 1:
        position = position[None, :]
    # NCHW -> NHWC once + zero-pad spatial dims for the 3x3 convs (glue only).
    xf = jnp.pad(jnp.transpose(fovea, (0, 2, 3, 1)),
                 ((0, 0), (1, 1), (1, 1), (0, 0)))
    xp = jnp.pad(jnp.transpose(peripheral, (0, 2, 3, 1)),
                 ((0, 0), (1, 1), (1, 1), (0, 0)))

    fov, per = _vision_pallas(xf, xp,
                              prepped["f_w1"], prepped["f_b1"],
                              prepped["f_w2"], prepped["f_b2"], prepped["sel2"],
                              prepped["p_w1"], prepped["p_b1"])
    B = fovea.shape[0]
    fov_feat = fov.reshape(B, FOVEA_FEAT)   # NHWC flatten; fus_wf rows match
    per_feat = per.reshape(B, PERI_FEAT)

    q = _tail_pallas(fov_feat, per_feat, position, prepped)
    motor_q = q[:, :MOTOR_DIM]
    sensory_q = q[:, MOTOR_DIM:MOTOR_DIM + SENSORY_DIM]
    return motor_q, sensory_q


# ----------------------------------------------------------------------------
# Pure-JAX reference (same math as the torch module) for a correctness check.
# ----------------------------------------------------------------------------
def reference_forward(params, fovea, peripheral, position):
    def conv(x, w, b, stride):
        out = jax.lax.conv_general_dilated(
            x, w, window_strides=(stride, stride), padding=((1, 1), (1, 1)),
            dimension_numbers=("NCHW", "OIHW", "NCHW"))
        return jax.nn.relu(out + b[None, :, None, None])

    f = conv(fovea, params["f_w1"], params["f_b1"], 1)
    f = conv(f, params["f_w2"], params["f_b2"], 2)
    fovea_features = f.reshape(f.shape[0], -1)
    pr = conv(peripheral, params["p_w1"], params["p_b1"], 1)
    peripheral_features = pr.reshape(pr.shape[0], -1)
    if position.ndim == 1:
        position = position[None, :]
    pos = jax.nn.relu(position @ params["pos_w1"] + params["pos_b1"])
    pos = jax.nn.relu(pos @ params["pos_w2"] + params["pos_b2"])
    combined = jnp.concatenate([fovea_features, peripheral_features, pos], axis=1)
    feat = jax.nn.relu(combined @ params["fus_w"] + params["fus_b"])
    return (feat @ params["mot_w"] + params["mot_b"],
            feat @ params["sen_w"] + params["sen_b"])


if __name__ == "__main__":
    B = 2
    key = jax.random.PRNGKey(0)
    kp, kf, kper, kpos = jax.random.split(key, 4)

    params = init_params(kp)
    prepped = prepare_params(params)   # trace-time weight folding (done once)

    fovea = jax.random.normal(kf, (B, FOVEA_C, FOVEA_H, FOVEA_W), jnp.float32)
    peripheral = jax.random.normal(kper, (B, PERI_C, PERI_H, PERI_W), jnp.float32)
    position = jax.random.normal(kpos, (B, POSITION_DIM), jnp.float32)

    fwd = jax.jit(separated_vision_forward)
    motor_q, sensory_q = fwd(prepped, fovea, peripheral, position)
    jax.block_until_ready((motor_q, sensory_q))

    ref_m, ref_s = reference_forward(params, fovea, peripheral, position)
    np.testing.assert_allclose(np.asarray(motor_q), np.asarray(ref_m),
                               rtol=1e-2, atol=1e-2)
    np.testing.assert_allclose(np.asarray(sensory_q), np.asarray(ref_s),
                               rtol=1e-2, atol=1e-2)

    assert motor_q.shape == (B, MOTOR_DIM)
    assert sensory_q.shape == (B, SENSORY_DIM)
    print("KERNEL_OK")
</pallas_src>

<mosaic_0001>
module attributes {stable_mosaic.version = 11 : i64} {
  func.func @_tail_kernel(%arg0: memref<2x2048xf32, #tpu.memory_space<vmem>>, %arg1: memref<2x512xf32, #tpu.memory_space<vmem>>, %arg2: memref<2x2xf32, #tpu.memory_space<vmem>>, %arg3: memref<2x16xf32, #tpu.memory_space<vmem>>, %arg4: memref<1x16xf32, #tpu.memory_space<vmem>>, %arg5: memref<16x32xf32, #tpu.memory_space<vmem>>, %arg6: memref<1x32xf32, #tpu.memory_space<vmem>>, %arg7: memref<2048x256xf32, #tpu.memory_space<vmem>>, %arg8: memref<512x256xf32, #tpu.memory_space<vmem>>, %arg9: memref<32x256xf32, #tpu.memory_space<vmem>>, %arg10: memref<1x256xf32, #tpu.memory_space<vmem>>, %arg11: memref<256x128xf32, #tpu.memory_space<vmem>>, %arg12: memref<1x128xf32, #tpu.memory_space<vmem>>, %arg13: memref<2x128xf32, #tpu.memory_space<vmem>>) attributes {dimension_semantics = [], scalar_prefetch = 0 : i64, scratch_operands = 0 : i64, tpu.core_type = #tpu.core_type<tc>} {
    %c0 = arith.constant 0 : index
    %c0_0 = arith.constant 0 : index
    %0 = vector.load %arg2[%c0, %c0_0] : memref<2x2xf32, #tpu.memory_space<vmem>>, vector<2x2xf32>
    %c0_1 = arith.constant 0 : index
    %c0_2 = arith.constant 0 : index
    %1 = vector.load %arg3[%c0_1, %c0_2] : memref<2x16xf32, #tpu.memory_space<vmem>>, vector<2x16xf32>
    %cst = arith.constant dense<0.000000e+00> : vector<2x16xf32>
    %2 = tpu.matmul %0, %1, %cst {dimension_numbers = #tpu.dot_dimension_numbers<[1], [0], [0], [1], [0, 0, 1, 1], [], []>} : vector<2x2xf32>, vector<2x16xf32>, vector<2x16xf32> -> vector<2x16xf32>
    %c0_3 = arith.constant 0 : index
    %c0_4 = arith.constant 0 : index
    %3 = vector.load %arg4[%c0_3, %c0_4] : memref<1x16xf32, #tpu.memory_space<vmem>>, vector<1x16xf32>
    %4 = vector.broadcast %3 : vector<1x16xf32> to vector<2x16xf32>
    %5 = arith.addf %2, %4 : vector<2x16xf32>
    %cst_5 = arith.constant 0.000000e+00 : f32
    %6 = vector.broadcast %cst_5 : f32 to vector<2x16xf32>
    %7 = arith.maximumf %5, %6 : vector<2x16xf32>
    %c0_6 = arith.constant 0 : index
    %c0_7 = arith.constant 0 : index
    %8 = vector.load %arg5[%c0_6, %c0_7] : memref<16x32xf32, #tpu.memory_space<vmem>>, vector<16x32xf32>
    %cst_8 = arith.constant dense<0.000000e+00> : vector<2x32xf32>
    %9 = tpu.matmul %7, %8, %cst_8 {dimension_numbers = #tpu.dot_dimension_numbers<[1], [0], [0], [1], [0, 0, 1, 1], [], []>} : vector<2x16xf32>, vector<16x32xf32>, vector<2x32xf32> -> vector<2x32xf32>
    %c0_9 = arith.constant 0 : index
    %c0_10 = arith.constant 0 : index
    %10 = vector.load %arg6[%c0_9, %c0_10] : memref<1x32xf32, #tpu.memory_space<vmem>>, vector<1x32xf32>
    %11 = vector.broadcast %10 : vector<1x32xf32> to vector<2x32xf32>
    %12 = arith.addf %9, %11 : vector<2x32xf32>
    %cst_11 = arith.constant 0.000000e+00 : f32
    %13 = vector.broadcast %cst_11 : f32 to vector<2x32xf32>
    %14 = arith.maximumf %12, %13 : vector<2x32xf32>
    %c0_12 = arith.constant 0 : index
    %c0_13 = arith.constant 0 : index
    %15 = vector.load %arg0[%c0_12, %c0_13] : memref<2x2048xf32, #tpu.memory_space<vmem>>, vector<2x2048xf32>
    %c0_14 = arith.constant 0 : index
    %c0_15 = arith.constant 0 : index
    %16 = vector.load %arg7[%c0_14, %c0_15] : memref<2048x256xf32, #tpu.memory_space<vmem>>, vector<2048x256xf32>
    %cst_16 = arith.constant dense<0.000000e+00> : vector<2x256xf32>
    %17 = tpu.matmul %15, %16, %cst_16 {dimension_numbers = #tpu.dot_dimension_numbers<[1], [0], [0], [1], [0, 0, 1, 1], [], []>} : vector<2x2048xf32>, vector<2048x256xf32>, vector<2x256xf32> -> vector<2x256xf32>
    %c0_17 = arith.constant 0 : index
    %c0_18 = arith.constant 0 : index
    %18 = vector.load %arg1[%c0_17, %c0_18] : memref<2x512xf32, #tpu.memory_space<vmem>>, vector<2x512xf32>
    %c0_19 = arith.constant 0 : index
    %c0_20 = arith.constant 0 : index
    %19 = vector.load %arg8[%c0_19, %c0_20] : memref<512x256xf32, #tpu.memory_space<vmem>>, vector<512x256xf32>
    %cst_21 = arith.constant dense<0.000000e+00> : vector<2x256xf32>
    %20 = tpu.matmul %18, %19, %cst_21 {dimension_numbers = #tpu.dot_dimension_numbers<[1], [0], [0], [1], [0, 0, 1, 1], [], []>} : vector<2x512xf32>, vector<512x256xf32>, vector<2x256xf32> -> vector<2x256xf32>
    %21 = arith.addf %17, %20 : vector<2x256xf32>
    %c0_22 = arith.constant 0 : index
    %c0_23 = arith.constant 0 : index
    %22 = vector.load %arg9[%c0_22, %c0_23] : memref<32x256xf32, #tpu.memory_space<vmem>>, vector<32x256xf32>
    %cst_24 = arith.constant dense<0.000000e+00> : vector<2x256xf32>
    %23 = tpu.matmul %14, %22, %cst_24 {dimension_numbers = #tpu.dot_dimension_numbers<[1], [0], [0], [1], [0, 0, 1, 1], [], []>} : vector<2x32xf32>, vector<32x256xf32>, vector<2x256xf32> -> vector<2x256xf32>
    %24 = arith.addf %21, %23 : vector<2x256xf32>
    %c0_25 = arith.constant 0 : index
    %c0_26 = arith.constant 0 : index
    %25 = vector.load %arg10[%c0_25, %c0_26] : memref<1x256xf32, #tpu.memory_space<vmem>>, vector<1x256xf32>
    %26 = vector.broadcast %25 : vector<1x256xf32> to vector<2x256xf32>
    %27 = arith.addf %24, %26 : vector<2x256xf32>
    %cst_27 = arith.constant 0.000000e+00 : f32
    %28 = vector.broadcast %cst_27 : f32 to vector<2x256xf32>
    %29 = arith.maximumf %27, %28 : vector<2x256xf32>
    %c0_28 = arith.constant 0 : index
    %c0_29 = arith.constant 0 : index
    %30 = vector.load %arg11[%c0_28, %c0_29] : memref<256x128xf32, #tpu.memory_space<vmem>>, vector<256x128xf32>
    %cst_30 = arith.constant dense<0.000000e+00> : vector<2x128xf32>
    %31 = tpu.matmul %29, %30, %cst_30 {dimension_numbers = #tpu.dot_dimension_numbers<[1], [0], [0], [1], [0, 0, 1, 1], [], []>} : vector<2x256xf32>, vector<256x128xf32>, vector<2x128xf32> -> vector<2x128xf32>
    %c0_31 = arith.constant 0 : index
    %c0_32 = arith.constant 0 : index
    %32 = vector.load %arg12[%c0_31, %c0_32] : memref<1x128xf32, #tpu.memory_space<vmem>>, vector<1x128xf32>
    %33 = vector.broadcast %32 : vector<1x128xf32> to vector<2x128xf32>
    %34 = arith.addf %31, %33 : vector<2x128xf32>
    %c0_33 = arith.constant 0 : index
    %c0_34 = arith.constant 0 : index
    %35 = vector.load %arg13[%c0_33, %c0_34] : memref<2x128xf32, #tpu.memory_space<vmem>>, vector<2x128xf32>
    tpu.vector_store %arg13[%c0_33, %c0_34], %34 {strides = array<i32>} : memref<2x128xf32, #tpu.memory_space<vmem>>, vector<2x128xf32>,
    return
  }
}

module attributes {stable_mosaic.version = 11 : i64} {
  func.func @_vision_kernel(%arg0: i32, %arg1: memref<1x18x18x4xf32, #tpu.memory_space<vmem>>, %arg2: memref<1x10x10x4xf32, #tpu.memory_space<vmem>>, %arg3: memref<9x4x16xf32, #tpu.memory_space<vmem>>, %arg4: memref<1x16xf32, #tpu.memory_space<vmem>>, %arg5: memref<9x16x32xf32, #tpu.memory_space<vmem>>, %arg6: memref<1x32xf32, #tpu.memory_space<vmem>>, %arg7: memref<3x64x128xf32, #tpu.memory_space<vmem>>, %arg8: memref<9x4x8xf32, #tpu.memory_space<vmem>>, %arg9: memref<1x8xf32, #tpu.memory_space<vmem>>, %arg10: memref<1x64x32xf32, #tpu.memory_space<vmem>>, %arg11: memref<1x64x8xf32, #tpu.memory_space<vmem>>, %arg12: memref<18x16x16xf32, #tpu.memory_space<vmem>>) attributes {dimension_semantics = [#tpu.dimension_semantics<parallel>], iteration_bounds = array<i64: 2>, scalar_prefetch = 0 : i64, scratch_operands = 1 : i64, tpu.core_type = #tpu.core_type<tc>, window_params = [{transform_indices = @transform_0, window_bounds = array<i64: 1, 18, 18, 4>}, {transform_indices = @transform_1, window_bounds = array<i64: 1, 10, 10, 4>}, {pipeline_mode = #tpu.pipeline_mode<synchronous>, transform_indices = @transform_2, window_bounds = array<i64: 9, 4, 16>}, {pipeline_mode = #tpu.pipeline_mode<synchronous>, transform_indices = @transform_3, window_bounds = array<i64: 1, 16>}, {pipeline_mode = #tpu.pipeline_mode<synchronous>, transform_indices = @transform_4, window_bounds = array<i64: 9, 16, 32>}, {pipeline_mode = #tpu.pipeline_mode<synchronous>, transform_indices = @transform_5, window_bounds = array<i64: 1, 32>}, {pipeline_mode = #tpu.pipeline_mode<synchronous>, transform_indices = @transform_6, window_bounds = array<i64: 3, 64, 128>}, {pipeline_mode = #tpu.pipeline_mode<synchronous>, transform_indices = @transform_7, window_bounds = array<i64: 9, 4, 8>}, {pipeline_mode = #tpu.pipeline_mode<synchronous>, transform_indices = @transform_8, window_bounds = array<i64: 1, 8>}, {transform_indices = @transform_9, window_bounds = array<i64: 1, 64, 32>}, {transform_indices = @transform_10, window_bounds = array<i64: 1, 64, 8>}]} {
    %c0 = arith.constant 0 : index
    %c0_0 = arith.constant 0 : index
    %c0_1 = arith.constant 0 : index
    %c0_2 = arith.constant 0 : index
    %0 = vector.load %arg1[%c0, %c0_0, %c0_1, %c0_2] : memref<1x18x18x4xf32, #tpu.memory_space<vmem>>, vector<1x18x18x4xf32>
    %1 = vector.shape_cast %0 : vector<1x18x18x4xf32> to vector<18x18x4xf32>
    %cst = arith.constant 0.000000e+00 : f32
    %2 = vector.broadcast %cst : f32 to vector<256x16xf32>
    %3 = vector.extract_strided_slice %1 {offsets = [0, 0, 0], sizes = [16, 16, 4], strides = [1, 1, 1]} : vector<18x18x4xf32> to vector<16x16x4xf32>
    %4 = vector.shape_cast %3 : vector<16x16x4xf32> to vector<256x4xf32>
    %c0_3 = arith.constant 0 : index
    %c0_4 = arith.constant 0 : index
    %c0_5 = arith.constant 0 : index
    %5 = vector.load %arg3[%c0_3, %c0_4, %c0_5] : memref<9x4x16xf32, #tpu.memory_space<vmem>>, vector<1x4x16xf32>
    %6 = vector.shape_cast %5 : vector<1x4x16xf32> to vector<4x16xf32>
    %cst_6 = arith.constant dense<0.000000e+00> : vector<256x16xf32>
    %7 = tpu.matmul %4, %6, %cst_6 {dimension_numbers = #tpu.dot_dimension_numbers<[1], [0], [0], [1], [0, 0, 1, 1], [], []>} : vector<256x4xf32>, vector<4x16xf32>, vector<256x16xf32> -> vector<256x16xf32>
    %8 = arith.addf %2, %7 : vector<256x16xf32>
    %9 = vector.extract_strided_slice %1 {offsets = [0, 1, 0], sizes = [16, 16, 4], strides = [1, 1, 1]} : vector<18x18x4xf32> to vector<16x16x4xf32>
    %10 = vector.shape_cast %9 : vector<16x16x4xf32> to vector<256x4xf32>
    %c1 = arith.constant 1 : index
    %c0_7 = arith.constant 0 : index
    %c0_8 = arith.constant 0 : index
    %11 = vector.load %arg3[%c1, %c0_7, %c0_8] : memref<9x4x16xf32, #tpu.memory_space<vmem>>, vector<1x4x16xf32>
    %12 = vector.shape_cast %11 : vector<1x4x16xf32> to vector<4x16xf32>
    %cst_9 = arith.constant dense<0.000000e+00> : vector<256x16xf32>
    %13 = tpu.matmul %10, %12, %cst_9 {dimension_numbers = #tpu.dot_dimension_numbers<[1], [0], [0], [1], [0, 0, 1, 1], [], []>} : vector<256x4xf32>, vector<4x16xf32>, vector<256x16xf32> -> vector<256x16xf32>
    %14 = arith.addf %8, %13 : vector<256x16xf32>
    %15 = vector.extract_strided_slice %1 {offsets = [0, 2, 0], sizes = [16, 16, 4], strides = [1, 1, 1]} : vector<18x18x4xf32> to vector<16x16x4xf32>
    %16 = vector.shape_cast %15 : vector<16x16x4xf32> to vector<256x4xf32>
    %c2 = arith.constant 2 : index
    %c0_10 = arith.constant 0 : index
    %c0_11 = arith.constant 0 : index
    %17 = vector.load %arg3[%c2, %c0_10, %c0_11] : memref<9x4x16xf32, #tpu.memory_space<vmem>>, vector<1x4x16xf32>
    %18 = vector.shape_cast %17 : vector<1x4x16xf32> to vector<4x16xf32>
    %cst_12 = arith.constant dense<0.000000e+00> : vector<256x16xf32>
    %19 = tpu.matmul %16, %18, %cst_12 {dimension_numbers = #tpu.dot_dimension_numbers<[1], [0], [0], [1], [0, 0, 1, 1], [], []>} : vector<256x4xf32>, vector<4x16xf32>, vector<256x16xf32> -> vector<256x16xf32>
    %20 = arith.addf %14, %19 : vector<256x16xf32>
    %21 = vector.extract_strided_slice %1 {offsets = [1, 0, 0], sizes = [16, 16, 4], strides = [1, 1, 1]} : vector<18x18x4xf32> to vector<16x16x4xf32>
    %22 = vector.shape_cast %21 : vector<16x16x4xf32> to vector<256x4xf32>
    %c3 = arith.constant 3 : index
    %c0_13 = arith.constant 0 : index
    %c0_14 = arith.constant 0 : index
    %23 = vector.load %arg3[%c3, %c0_13, %c0_14] : memref<9x4x16xf32, #tpu.memory_space<vmem>>, vector<1x4x16xf32>
    %24 = vector.shape_cast %23 : vector<1x4x16xf32> to vector<4x16xf32>
    %cst_15 = arith.constant dense<0.000000e+00> : vector<256x16xf32>
    %25 = tpu.matmul %22, %24, %cst_15 {dimension_numbers = #tpu.dot_dimension_numbers<[1], [0], [0], [1], [0, 0, 1, 1], [], []>} : vector<256x4xf32>, vector<4x16xf32>, vector<256x16xf32> -> vector<256x16xf32>
    %26 = arith.addf %20, %25 : vector<256x16xf32>
    %27 = vector.extract_strided_slice %1 {offsets = [1, 1, 0], sizes = [16, 16, 4], strides = [1, 1, 1]} : vector<18x18x4xf32> to vector<16x16x4xf32>
    %28 = vector.shape_cast %27 : vector<16x16x4xf32> to vector<256x4xf32>
    %c4 = arith.constant 4 : index
    %c0_16 = arith.constant 0 : index
    %c0_17 = arith.constant 0 : index
    %29 = vector.load %arg3[%c4, %c0_16, %c0_17] : memref<9x4x16xf32, #tpu.memory_space<vmem>>, vector<1x4x16xf32>
    %30 = vector.shape_cast %29 : vector<1x4x16xf32> to vector<4x16xf32>
    %cst_18 = arith.constant dense<0.000000e+00> : vector<256x16xf32>
    %31 = tpu.matmul %28, %30, %cst_18 {dimension_numbers = #tpu.dot_dimension_numbers<[1], [0], [0], [1], [0, 0, 1, 1], [], []>} : vector<256x4xf32>, vector<4x16xf32>, vector<256x16xf32> -> vector<256x16xf32>
    %32 = arith.addf %26, %31 : vector<256x16xf32>
    %33 = vector.extract_strided_slice %1 {offsets = [1, 2, 0], sizes = [16, 16, 4], strides = [1, 1, 1]} : vector<18x18x4xf32> to vector<16x16x4xf32>
    %34 = vector.shape_cast %33 : vector<16x16x4xf32> to vector<256x4xf32>
    %c5 = arith.constant 5 : index
    %c0_19 = arith.constant 0 : index
    %c0_20 = arith.constant 0 : index
    %35 = vector.load %arg3[%c5, %c0_19, %c0_20] : memref<9x4x16xf32, #tpu.memory_space<vmem>>, vector<1x4x16xf32>
    %36 = vector.shape_cast %35 : vector<1x4x16xf32> to vector<4x16xf32>
    %cst_21 = arith.constant dense<0.000000e+00> : vector<256x16xf32>
    %37 = tpu.matmul %34, %36, %cst_21 {dimension_numbers = #tpu.dot_dimension_numbers<[1], [0], [0], [1], [0, 0, 1, 1], [], []>} : vector<256x4xf32>, vector<4x16xf32>, vector<256x16xf32> -> vector<256x16xf32>
    %38 = arith.addf %32, %37 : vector<256x16xf32>
    %39 = vector.extract_strided_slice %1 {offsets = [2, 0, 0], sizes = [16, 16, 4], strides = [1, 1, 1]} : vector<18x18x4xf32> to vector<16x16x4xf32>
    %40 = vector.shape_cast %39 : vector<16x16x4xf32> to vector<256x4xf32>
    %c6 = arith.constant 6 : index
    %c0_22 = arith.constant 0 : index
    %c0_23 = arith.constant 0 : index
    %41 = vector.load %arg3[%c6, %c0_22, %c0_23] : memref<9x4x16xf32, #tpu.memory_space<vmem>>, vector<1x4x16xf32>
    %42 = vector.shape_cast %41 : vector<1x4x16xf32> to vector<4x16xf32>
    %cst_24 = arith.constant dense<0.000000e+00> : vector<256x16xf32>
    %43 = tpu.matmul %40, %42, %cst_24 {dimension_numbers = #tpu.dot_dimension_numbers<[1], [0], [0], [1], [0, 0, 1, 1], [], []>} : vector<256x4xf32>, vector<4x16xf32>, vector<256x16xf32> -> vector<256x16xf32>
    %44 = arith.addf %38, %43 : vector<256x16xf32>
    %45 = vector.extract_strided_slice %1 {offsets = [2, 1, 0], sizes = [16, 16, 4], strides = [1, 1, 1]} : vector<18x18x4xf32> to vector<16x16x4xf32>
    %46 = vector.shape_cast %45 : vector<16x16x4xf32> to vector<256x4xf32>
    %c7 = arith.constant 7 : index
    %c0_25 = arith.constant 0 : index
    %c0_26 = arith.constant 0 : index
    %47 = vector.load %arg3[%c7, %c0_25, %c0_26] : memref<9x4x16xf32, #tpu.memory_space<vmem>>, vector<1x4x16xf32>
    %48 = vector.shape_cast %47 : vector<1x4x16xf32> to vector<4x16xf32>
    %cst_27 = arith.constant dense<0.000000e+00> : vector<256x16xf32>
    %49 = tpu.matmul %46, %48, %cst_27 {dimension_numbers = #tpu.dot_dimension_numbers<[1], [0], [0], [1], [0, 0, 1, 1], [], []>} : vector<256x4xf32>, vector<4x16xf32>, vector<256x16xf32> -> vector<256x16xf32>
    %50 = arith.addf %44, %49 : vector<256x16xf32>
    %51 = vector.extract_strided_slice %1 {offsets = [2, 2, 0], sizes = [16, 16, 4], strides = [1, 1, 1]} : vector<18x18x4xf32> to vector<16x16x4xf32>
    %52 = vector.shape_cast %51 : vector<16x16x4xf32> to vector<256x4xf32>
    %c8 = arith.constant 8 : index
    %c0_28 = arith.constant 0 : index
    %c0_29 = arith.constant 0 : index
    %53 = vector.load %arg3[%c8, %c0_28, %c0_29] : memref<9x4x16xf32, #tpu.memory_space<vmem>>, vector<1x4x16xf32>
    %54 = vector.shape_cast %53 : vector<1x4x16xf32> to vector<4x16xf32>
    %cst_30 = arith.constant dense<0.000000e+00> : vector<256x16xf32>
    %55 = tpu.matmul %52, %54, %cst_30 {dimension_numbers = #tpu.dot_dimension_numbers<[1], [0], [0], [1], [0, 0, 1, 1], [], []>} : vector<256x4xf32>, vector<4x16xf32>, vector<256x16xf32> -> vector<256x16xf32>
    %56 = arith.addf %50, %55 : vector<256x16xf32>
    %c0_31 = arith.constant 0 : index
    %c0_32 = arith.constant 0 : index
    %57 = vector.load %arg4[%c0_31, %c0_32] : memref<1x16xf32, #tpu.memory_space<vmem>>, vector<1x16xf32>
    %58 = vector.broadcast %57 : vector<1x16xf32> to vector<256x16xf32>
    %59 = arith.addf %56, %58 : vector<256x16xf32>
    %cst_33 = arith.constant 0.000000e+00 : f32
    %60 = vector.broadcast %cst_33 : f32 to vector<256x16xf32>
    %61 = arith.maximumf %59, %60 : vector<256x16xf32>
    %cst_34 = arith.constant 0.000000e+00 : f32
    %62 = vector.broadcast %cst_34 : f32 to vector<1x16x16xf32>
    %c0_35 = arith.constant 0 : index
    %c0_36 = arith.constant 0 : index
    %c0_37 = arith.constant 0 : index
    %63 = vector.load %arg12[%c0_35, %c0_36, %c0_37] : memref<18x16x16xf32, #tpu.memory_space<vmem>>, vector<1x16x16xf32>
    tpu.vector_store %arg12[%c0_35, %c0_36, %c0_37], %62 {strides = array<i32>} : memref<18x16x16xf32, #tpu.memory_space<vmem>>, vector<1x16x16xf32>,
    %cst_38 = arith.constant 0.000000e+00 : f32
    %64 = vector.broadcast %cst_38 : f32 to vector<1x16x16xf32>
    %c17 = arith.constant 17 : index
    %c0_39 = arith.constant 0 : index
    %c0_40 = arith.constant 0 : index
    %65 = vector.load %arg12[%c17, %c0_39, %c0_40] : memref<18x16x16xf32, #tpu.memory_space<vmem>>, vector<1x16x16xf32>
    tpu.vector_store %arg12[%c17, %c0_39, %c0_40], %64 {strides = array<i32>} : memref<18x16x16xf32, #tpu.memory_space<vmem>>, vector<1x16x16xf32>,
    %66 = vector.shape_cast %61 : vector<256x16xf32> to vector<16x16x16xf32>
    %c1_41 = arith.constant 1 : index
    %c0_42 = arith.constant 0 : index
    %c0_43 = arith.constant 0 : index
    %67 = vector.load %arg12[%c1_41, %c0_42, %c0_43] : memref<18x16x16xf32, #tpu.memory_space<vmem>>, vector<16x16x16xf32>
    tpu.vector_store %arg12[%c1_41, %c0_42, %c0_43], %66 {strides = array<i32>} : memref<18x16x16xf32, #tpu.memory_space<vmem>>, vector<16x16x16xf32>,
    %c0_44 = arith.constant 0 : index
    %c0_45 = arith.constant 0 : index
    %c0_46 = arith.constant 0 : index
    %68 = vector.load %arg12[%c0_44, %c0_45, %c0_46] : memref<18x16x16xf32, #tpu.memory_space<vmem>>, vector<18x16x16xf32>
    %69 = vector.extract_strided_slice %68 {offsets = [0, 0, 0], sizes = [16, 16, 16], strides = [1, 1, 1]} : vector<18x16x16xf32> to vector<16x16x16xf32>
    %70 = vector.shape_cast %69 : vector<16x16x16xf32> to vector<8x2x16x16xf32>
    %71 = vector.extract_strided_slice %70 {offsets = [0, 0, 0, 0], sizes = [8, 1, 16, 16], strides = [1, 1, 1, 1]} : vector<8x2x16x16xf32> to vector<8x1x16x16xf32>
    %72 = vector.shape_cast %71 : vector<8x1x16x16xf32> to vector<8x16x16xf32>
    %73 = vector.extract_strided_slice %70 {offsets = [0, 1, 0, 0], sizes = [8, 1, 16, 16], strides = [1, 1, 1, 1]} : vector<8x2x16x16xf32> to vector<8x1x16x16xf32>
    %74 = vector.shape_cast %73 : vector<8x1x16x16xf32> to vector<8x16x16xf32>
    %75 = vector.extract_strided_slice %68 {offsets = [2, 0, 0], sizes = [16, 16, 16], strides = [1, 1, 1]} : vector<18x16x16xf32> to vector<16x16x16xf32>
    %76 = vector.shape_cast %75 : vector<16x16x16xf32> to vector<8x2x16x16xf32>
    %77 = vector.extract_strided_slice %76 {offsets = [0, 0, 0, 0], sizes = [8, 1, 16, 16], strides = [1, 1, 1, 1]} : vector<8x2x16x16xf32> to vector<8x1x16x16xf32>
    %78 = vector.shape_cast %77 : vector<8x1x16x16xf32> to vector<8x16x16xf32>
    %cst_47 = arith.constant 0.000000e+00 : f32
    %79 = vector.broadcast %cst_47 : f32 to vector<64x32xf32>
    %80 = vector.shape_cast %72 : vector<8x16x16xf32> to vector<128x16xf32>
    %c0_48 = arith.constant 0 : index
    %c0_49 = arith.constant 0 : index
    %c0_50 = arith.constant 0 : index
    %81 = vector.load %arg7[%c0_48, %c0_49, %c0_50] : memref<3x64x128xf32, #tpu.memory_space<vmem>>, vector<1x64x128xf32>
    %82 = vector.shape_cast %81 : vector<1x64x128xf32> to vector<64x128xf32>
    %cst_51 = arith.constant dense<0.000000e+00> : vector<64x16xf32>
    %83 = tpu.matmul %82, %80, %cst_51 {dimension_numbers = #tpu.dot_dimension_numbers<[1], [0], [0], [1], [0, 0, 1, 1], [], []>} : vector<64x128xf32>, vector<128x16xf32>, vector<64x16xf32> -> vector<64x16xf32>
    %c0_52 = arith.constant 0 : index
    %c0_53 = arith.constant 0 : index
    %c0_54 = arith.constant 0 : index
    %84 = vector.load %arg5[%c0_52, %c0_53, %c0_54] : memref<9x16x32xf32, #tpu.memory_space<vmem>>, vector<1x16x32xf32>
    %85 = vector.shape_cast %84 : vector<1x16x32xf32> to vector<16x32xf32>
    %cst_55 = arith.constant dense<0.000000e+00> : vector<64x32xf32>
    %86 = tpu.matmul %83, %85, %cst_55 {dimension_numbers = #tpu.dot_dimension_numbers<[1], [0], [0], [1], [0, 0, 1, 1], [], []>} : vector<64x16xf32>, vector<16x32xf32>, vector<64x32xf32> -> vector<64x32xf32>
    %87 = arith.addf %79, %86 : vector<64x32xf32>
    %c1_56 = arith.constant 1 : index
    %c0_57 = arith.constant 0 : index
    %c0_58 = arith.constant 0 : index
    %88 = vector.load %arg7[%c1_56, %c0_57, %c0_58] : memref<3x64x128xf32, #tpu.memory_space<vmem>>, vector<1x64x128xf32>
    %89 = vector.shape_cast %88 : vector<1x64x128xf32> to vector<64x128xf32>
    %cst_59 = arith.constant dense<0.000000e+00> : vector<64x16xf32>
    %90 = tpu.matmul %89, %80, %cst_59 {dimension_numbers = #tpu.dot_dimension_numbers<[1], [0], [0], [1], [0, 0, 1, 1], [], []>} : vector<64x128xf32>, vector<128x16xf32>, vector<64x16xf32> -> vector<64x16xf32>
    %c1_60 = arith.constant 1 : index
    %c0_61 = arith.constant 0 : index
    %c0_62 = arith.constant 0 : index
    %91 = vector.load %arg5[%c1_60, %c0_61, %c0_62] : memref<9x16x32xf32, #tpu.memory_space<vmem>>, vector<1x16x32xf32>
    %92 = vector.shape_cast %91 : vector<1x16x32xf32> to vector<16x32xf32>
    %cst_63 = arith.constant dense<0.000000e+00> : vector<64x32xf32>
    %93 = tpu.matmul %90, %92, %cst_63 {dimension_numbers = #tpu.dot_dimension_numbers<[1], [0], [0], [1], [0, 0, 1, 1], [], []>} : vector<64x16xf32>, vector<16x32xf32>, vector<64x32xf32> -> vector<64x32xf32>
    %94 = arith.addf %87, %93 : vector<64x32xf32>
    %c2_64 = arith.constant 2 : index
    %c0_65 = arith.constant 0 : index
    %c0_66 = arith.constant 0 : index
    %95 = vector.load %arg7[%c2_64, %c0_65, %c0_66] : memref<3x64x128xf32, #tpu.memory_space<vmem>>, vector<1x64x128xf32>
    %96 = vector.shape_cast %95 : vector<1x64x128xf32> to vector<64x128xf32>
    %cst_67 = arith.constant dense<0.000000e+00> : vector<64x16xf32>
    %97 = tpu.matmul %96, %80, %cst_67 {dimension_numbers = #tpu.dot_dimension_numbers<[1], [0], [0], [1], [0, 0, 1, 1], [], []>} : vector<64x128xf32>, vector<128x16xf32>, vector<64x16xf32> -> vector<64x16xf32>
    %c2_68 = arith.constant 2 : index
    %c0_69 = arith.constant 0 : index
    %c0_70 = arith.constant 0 : index
    %98 = vector.load %arg5[%c2_68, %c0_69, %c0_70] : memref<9x16x32xf32, #tpu.memory_space<vmem>>, vector<1x16x32xf32>
    %99 = vector.shape_cast %98 : vector<1x16x32xf32> to vector<16x32xf32>
    %cst_71 = arith.constant dense<0.000000e+00> : vector<64x32xf32>
    %100 = tpu.matmul %97, %99, %cst_71 {dimension_numbers = #tpu.dot_dimension_numbers<[1], [0], [0], [1], [0, 0, 1, 1], [], []>} : vector<64x16xf32>, vector<16x32xf32>, vector<64x32xf32> -> vector<64x32xf32>
    %101 = arith.addf %94, %100 : vector<64x32xf32>
    %102 = vector.shape_cast %74 : vector<8x16x16xf32> to vector<128x16xf32>
    %c0_72 = arith.constant 0 : index
    %c0_73 = arith.constant 0 : index
    %c0_74 = arith.constant 0 : index
    %103 = vector.load %arg7[%c0_72, %c0_73, %c0_74] : memref<3x64x128xf32, #tpu.memory_space<vmem>>, vector<1x64x128xf32>
    %104 = vector.shape_cast %103 : vector<1x64x128xf32> to vector<64x128xf32>
    %cst_75 = arith.constant dense<0.000000e+00> : vector<64x16xf32>
    %105 = tpu.matmul %104, %102, %cst_75 {dimension_numbers = #tpu.dot_dimension_numbers<[1], [0], [0], [1], [0, 0, 1, 1], [], []>} : vector<64x128xf32>, vector<128x16xf32>, vector<64x16xf32> -> vector<64x16xf32>
    %c3_76 = arith.constant 3 : index
    %c0_77 = arith.constant 0 : index
    %c0_78 = arith.constant 0 : index
    %106 = vector.load %arg5[%c3_76, %c0_77, %c0_78] : memref<9x16x32xf32, #tpu.memory_space<vmem>>, vector<1x16x32xf32>
    %107 = vector.shape_cast %106 : vector<1x16x32xf32> to vector<16x32xf32>
    %cst_79 = arith.constant dense<0.000000e+00> : vector<64x32xf32>
    %108 = tpu.matmul %105, %107, %cst_79 {dimension_numbers = #tpu.dot_dimension_numbers<[1], [0], [0], [1], [0, 0, 1, 1], [], []>} : vector<64x16xf32>, vector<16x32xf32>, vector<64x32xf32> -> vector<64x32xf32>
    %109 = arith.addf %101, %108 : vector<64x32xf32>
    %c1_80 = arith.constant 1 : index
    %c0_81 = arith.constant 0 : index
    %c0_82 = arith.constant 0 : index
    %110 = vector.load %arg7[%c1_80, %c0_81, %c0_82] : memref<3x64x128xf32, #tpu.memory_space<vmem>>, vector<1x64x128xf32>
    %111 = vector.shape_cast %110 : vector<1x64x128xf32> to vector<64x128xf32>
    %cst_83 = arith.constant dense<0.000000e+00> : vector<64x16xf32>
    %112 = tpu.matmul %111, %102, %cst_83 {dimension_numbers = #tpu.dot_dimension_numbers<[1], [0], [0], [1], [0, 0, 1, 1], [], []>} : vector<64x128xf32>, vector<128x16xf32>, vector<64x16xf32> -> vector<64x16xf32>
    %c4_84 = arith.constant 4 : index
    %c0_85 = arith.constant 0 : index
    %c0_86 = arith.constant 0 : index
    %113 = vector.load %arg5[%c4_84, %c0_85, %c0_86] : memref<9x16x32xf32, #tpu.memory_space<vmem>>, vector<1x16x32xf32>
    %114 = vector.shape_cast %113 : vector<1x16x32xf32> to vector<16x32xf32>
    %cst_87 = arith.constant dense<0.000000e+00> : vector<64x32xf32>
    %115 = tpu.matmul %112, %114, %cst_87 {dimension_numbers = #tpu.dot_dimension_numbers<[1], [0], [0], [1], [0, 0, 1, 1], [], []>} : vector<64x16xf32>, vector<16x32xf32>, vector<64x32xf32> -> vector<64x32xf32>
    %116 = arith.addf %109, %115 : vector<64x32xf32>
    %c2_88 = arith.constant 2 : index
    %c0_89 = arith.constant 0 : index
    %c0_90 = arith.constant 0 : index
    %117 = vector.load %arg7[%c2_88, %c0_89, %c0_90] : memref<3x64x128xf32, #tpu.memory_space<vmem>>, vector<1x64x128xf32>
    %118 = vector.shape_cast %117 : vector<1x64x128xf32> to vector<64x128xf32>
    %cst_91 = arith.constant dense<0.000000e+00> : vector<64x16xf32>
    %119 = tpu.matmul %118, %102, %cst_91 {dimension_numbers = #tpu.dot_dimension_numbers<[1], [0], [0], [1], [0, 0, 1, 1], [], []>} : vector<64x128xf32>, vector<128x16xf32>, vector<64x16xf32> -> vector<64x16xf32>
    %c5_92 = arith.constant 5 : index
    %c0_93 = arith.constant 0 : index
    %c0_94 = arith.constant 0 : index
    %120 = vector.load %arg5[%c5_92, %c0_93, %c0_94] : memref<9x16x32xf32, #tpu.memory_space<vmem>>, vector<1x16x32xf32>
    %121 = vector.shape_cast %120 : vector<1x16x32xf32> to vector<16x32xf32>
    %cst_95 = arith.constant dense<0.000000e+00> : vector<64x32xf32>
    %122 = tpu.matmul %119, %121, %cst_95 {dimension_numbers = #tpu.dot_dimension_numbers<[1], [0], [0], [1], [0, 0, 1, 1], [], []>} : vector<64x16xf32>, vector<16x32xf32>, vector<64x32xf32> -> vector<64x32xf32>
    %123 = arith.addf %116, %122 : vector<64x32xf32>
    %124 = vector.shape_cast %78 : vector<8x16x16xf32> to vector<128x16xf32>
    %c0_96 = arith.constant 0 : index
    %c0_97 = arith.constant 0 : index
    %c0_98 = arith.constant 0 : index
    %125 = vector.load %arg7[%c0_96, %c0_97, %c0_98] : memref<3x64x128xf32, #tpu.memory_space<vmem>>, vector<1x64x128xf32>
    %126 = vector.shape_cast %125 : vector<1x64x128xf32> to vector<64x128xf32>
    %cst_99 = arith.constant dense<0.000000e+00> : vector<64x16xf32>
    %127 = tpu.matmul %126, %124, %cst_99 {dimension_numbers = #tpu.dot_dimension_numbers<[1], [0], [0], [1], [0, 0, 1, 1], [], []>} : vector<64x128xf32>, vector<128x16xf32>, vector<64x16xf32> -> vector<64x16xf32>
    %c6_100 = arith.constant 6 : index
    %c0_101 = arith.constant 0 : index
    %c0_102 = arith.constant 0 : index
    %128 = vector.load %arg5[%c6_100, %c0_101, %c0_102] : memref<9x16x32xf32, #tpu.memory_space<vmem>>, vector<1x16x32xf32>
    %129 = vector.shape_cast %128 : vector<1x16x32xf32> to vector<16x32xf32>
    %cst_103 = arith.constant dense<0.000000e+00> : vector<64x32xf32>
    %130 = tpu.matmul %127, %129, %cst_103 {dimension_numbers = #tpu.dot_dimension_numbers<[1], [0], [0], [1], [0, 0, 1, 1], [], []>} : vector<64x16xf32>, vector<16x32xf32>, vector<64x32xf32> -> vector<64x32xf32>
    %131 = arith.addf %123, %130 : vector<64x32xf32>
    %c1_104 = arith.constant 1 : index
    %c0_105 = arith.constant 0 : index
    %c0_106 = arith.constant 0 : index
    %132 = vector.load %arg7[%c1_104, %c0_105, %c0_106] : memref<3x64x128xf32, #tpu.memory_space<vmem>>, vector<1x64x128xf32>
    %133 = vector.shape_cast %132 : vector<1x64x128xf32> to vector<64x128xf32>
    %cst_107 = arith.constant dense<0.000000e+00> : vector<64x16xf32>
    %134 = tpu.matmul %133, %124, %cst_107 {dimension_numbers = #tpu.dot_dimension_numbers<[1], [0], [0], [1], [0, 0, 1, 1], [], []>} : vector<64x128xf32>, vector<128x16xf32>, vector<64x16xf32> -> vector<64x16xf32>
    %c7_108 = arith.constant 7 : index
    %c0_109 = arith.constant 0 : index
    %c0_110 = arith.constant 0 : index
    %135 = vector.load %arg5[%c7_108, %c0_109, %c0_110] : memref<9x16x32xf32, #tpu.memory_space<vmem>>, vector<1x16x32xf32>
    %136 = vector.shape_cast %135 : vector<1x16x32xf32> to vector<16x32xf32>
    %cst_111 = arith.constant dense<0.000000e+00> : vector<64x32xf32>
    %137 = tpu.matmul %134, %136, %cst_111 {dimension_numbers = #tpu.dot_dimension_numbers<[1], [0], [0], [1], [0, 0, 1, 1], [], []>} : vector<64x16xf32>, vector<16x32xf32>, vector<64x32xf32> -> vector<64x32xf32>
    %138 = arith.addf %131, %137 : vector<64x32xf32>
    %c2_112 = arith.constant 2 : index
    %c0_113 = arith.constant 0 : index
    %c0_114 = arith.constant 0 : index
    %139 = vector.load %arg7[%c2_112, %c0_113, %c0_114] : memref<3x64x128xf32, #tpu.memory_space<vmem>>, vector<1x64x128xf32>
    %140 = vector.shape_cast %139 : vector<1x64x128xf32> to vector<64x128xf32>
    %cst_115 = arith.constant dense<0.000000e+00> : vector<64x16xf32>
    %141 = tpu.matmul %140, %124, %cst_115 {dimension_numbers = #tpu.dot_dimension_numbers<[1], [0], [0], [1], [0, 0, 1, 1], [], []>} : vector<64x128xf32>, vector<128x16xf32>, vector<64x16xf32> -> vector<64x16xf32>
    %c8_116 = arith.constant 8 : index
    %c0_117 = arith.constant 0 : index
    %c0_118 = arith.constant 0 : index
    %142 = vector.load %arg5[%c8_116, %c0_117, %c0_118] : memref<9x16x32xf32, #tpu.memory_space<vmem>>, vector<1x16x32xf32>
    %143 = vector.shape_cast %142 : vector<1x16x32xf32> to vector<16x32xf32>
    %cst_119 = arith.constant dense<0.000000e+00> : vector<64x32xf32>
    %144 = tpu.matmul %141, %143, %cst_119 {dimension_numbers = #tpu.dot_dimension_numbers<[1], [0], [0], [1], [0, 0, 1, 1], [], []>} : vector<64x16xf32>, vector<16x32xf32>, vector<64x32xf32> -> vector<64x32xf32>
    %145 = arith.addf %138, %144 : vector<64x32xf32>
    %c0_120 = arith.constant 0 : index
    %c0_121 = arith.constant 0 : index
    %146 = vector.load %arg6[%c0_120, %c0_121] : memref<1x32xf32, #tpu.memory_space<vmem>>, vector<1x32xf32>
    %147 = vector.broadcast %146 : vector<1x32xf32> to vector<64x32xf32>
    %148 = arith.addf %145, %147 : vector<64x32xf32>
    %cst_122 = arith.constant 0.000000e+00 : f32
    %149 = vector.broadcast %cst_122 : f32 to vector<64x32xf32>
    %150 = arith.maximumf %148, %149 : vector<64x32xf32>
    %c0_123 = arith.constant 0 : index
    %c0_124 = arith.constant 0 : index
    %c0_125 = arith.constant 0 : index
    %151 = vector.load %arg10[%c0_123, %c0_124, %c0_125] : memref<1x64x32xf32, #tpu.memory_space<vmem>>, vector<1x64x32xf32>
    %152 = vector.shape_cast %151 : vector<1x64x32xf32> to vector<64x32xf32>
    %153 = vector.shape_cast %150 : vector<64x32xf32> to vector<1x64x32xf32>
    tpu.vector_store %arg10[%c0_123, %c0_124, %c0_125], %153 {strides = array<i32>} : memref<1x64x32xf32, #tpu.memory_space<vmem>>, vector<1x64x32xf32>,
    %c0_126 = arith.constant 0 : index
    %c0_127 = arith.constant 0 : index
    %c0_128 = arith.constant 0 : index
    %c0_129 = arith.constant 0 : index
    %154 = vector.load %arg2[%c0_126, %c0_127, %c0_128, %c0_129] : memref<1x10x10x4xf32, #tpu.memory_space<vmem>>, vector<1x10x10x4xf32>
    %155 = vector.shape_cast %154 : vector<1x10x10x4xf32> to vector<10x10x4xf32>
    %cst_130 = arith.constant 0.000000e+00 : f32
    %156 = vector.broadcast %cst_130 : f32 to vector<64x8xf32>
    %157 = vector.extract_strided_slice %155 {offsets = [0, 0, 0], sizes = [8, 8, 4], strides = [1, 1, 1]} : vector<10x10x4xf32> to vector<8x8x4xf32>
    %158 = vector.shape_cast %157 : vector<8x8x4xf32> to vector<64x4xf32>
    %c0_131 = arith.constant 0 : index
    %c0_132 = arith.constant 0 : index
    %c0_133 = arith.constant 0 : index
    %159 = vector.load %arg8[%c0_131, %c0_132, %c0_133] : memref<9x4x8xf32, #tpu.memory_space<vmem>>, vector<1x4x8xf32>
    %160 = vector.shape_cast %159 : vector<1x4x8xf32> to vector<4x8xf32>
    %cst_134 = arith.constant dense<0.000000e+00> : vector<64x8xf32>
    %161 = tpu.matmul %158, %160, %cst_134 {dimension_numbers = #tpu.dot_dimension_numbers<[1], [0], [0], [1], [0, 0, 1, 1], [], []>} : vector<64x4xf32>, vector<4x8xf32>, vector<64x8xf32> -> vector<64x8xf32>
    %162 = arith.addf %156, %161 : vector<64x8xf32>
    %163 = vector.extract_strided_slice %155 {offsets = [0, 1, 0], sizes = [8, 8, 4], strides = [1, 1, 1]} : vector<10x10x4xf32> to vector<8x8x4xf32>
    %164 = vector.shape_cast %163 : vector<8x8x4xf32> to vector<64x4xf32>
    %c1_135 = arith.constant 1 : index
    %c0_136 = arith.constant 0 : index
    %c0_137 = arith.constant 0 : index
    %165 = vector.load %arg8[%c1_135, %c0_136, %c0_137] : memref<9x4x8xf32, #tpu.memory_space<vmem>>, vector<1x4x8xf32>
    %166 = vector.shape_cast %165 : vector<1x4x8xf32> to vector<4x8xf32>
    %cst_138 = arith.constant dense<0.000000e+00> : vector<64x8xf32>
    %167 = tpu.matmul %164, %166, %cst_138 {dimension_numbers = #tpu.dot_dimension_numbers<[1], [0], [0], [1], [0, 0, 1, 1], [], []>} : vector<64x4xf32>, vector<4x8xf32>, vector<64x8xf32> -> vector<64x8xf32>
    %168 = arith.addf %162, %167 : vector<64x8xf32>
    %169 = vector.extract_strided_slice %155 {offsets = [0, 2, 0], sizes = [8, 8, 4], strides = [1, 1, 1]} : vector<10x10x4xf32> to vector<8x8x4xf32>
    %170 = vector.shape_cast %169 : vector<8x8x4xf32> to vector<64x4xf32>
    %c2_139 = arith.constant 2 : index
    %c0_140 = arith.constant 0 : index
    %c0_141 = arith.constant 0 : index
    %171 = vector.load %arg8[%c2_139, %c0_140, %c0_141] : memref<9x4x8xf32, #tpu.memory_space<vmem>>, vector<1x4x8xf32>
    %172 = vector.shape_cast %171 : vector<1x4x8xf32> to vector<4x8xf32>
    %cst_142 = arith.constant dense<0.000000e+00> : vector<64x8xf32>
    %173 = tpu.matmul %170, %172, %cst_142 {dimension_numbers = #tpu.dot_dimension_numbers<[1], [0], [0], [1], [0, 0, 1, 1], [], []>} : vector<64x4xf32>, vector<4x8xf32>, vector<64x8xf32> -> vector<64x8xf32>
    %174 = arith.addf %168, %173 : vector<64x8xf32>
    %175 = vector.extract_strided_slice %155 {offsets = [1, 0, 0], sizes = [8, 8, 4], strides = [1, 1, 1]} : vector<10x10x4xf32> to vector<8x8x4xf32>
    %176 = vector.shape_cast %175 : vector<8x8x4xf32> to vector<64x4xf32>
    %c3_143 = arith.constant 3 : index
    %c0_144 = arith.constant 0 : index
    %c0_145 = arith.constant 0 : index
    %177 = vector.load %arg8[%c3_143, %c0_144, %c0_145] : memref<9x4x8xf32, #tpu.memory_space<vmem>>, vector<1x4x8xf32>
    %178 = vector.shape_cast %177 : vector<1x4x8xf32> to vector<4x8xf32>
    %cst_146 = arith.constant dense<0.000000e+00> : vector<64x8xf32>
    %179 = tpu.matmul %176, %178, %cst_146 {dimension_numbers = #tpu.dot_dimension_numbers<[1], [0], [0], [1], [0, 0, 1, 1], [], []>} : vector<64x4xf32>, vector<4x8xf32>, vector<64x8xf32> -> vector<64x8xf32>
    %180 = arith.addf %174, %179 : vector<64x8xf32>
    %181 = vector.extract_strided_slice %155 {offsets = [1, 1, 0], sizes = [8, 8, 4], strides = [1, 1, 1]} : vector<10x10x4xf32> to vector<8x8x4xf32>
    %182 = vector.shape_cast %181 : vector<8x8x4xf32> to vector<64x4xf32>
    %c4_147 = arith.constant 4 : index
    %c0_148 = arith.constant 0 : index
    %c0_149 = arith.constant 0 : index
    %183 = vector.load %arg8[%c4_147, %c0_148, %c0_149] : memref<9x4x8xf32, #tpu.memory_space<vmem>>, vector<1x4x8xf32>
    %184 = vector.shape_cast %183 : vector<1x4x8xf32> to vector<4x8xf32>
    %cst_150 = arith.constant dense<0.000000e+00> : vector<64x8xf32>
    %185 = tpu.matmul %182, %184, %cst_150 {dimension_numbers = #tpu.dot_dimension_numbers<[1], [0], [0], [1], [0, 0, 1, 1], [], []>} : vector<64x4xf32>, vector<4x8xf32>, vector<64x8xf32> -> vector<64x8xf32>
    %186 = arith.addf %180, %185 : vector<64x8xf32>
    %187 = vector.extract_strided_slice %155 {offsets = [1, 2, 0], sizes = [8, 8, 4], strides = [1, 1, 1]} : vector<10x10x4xf32> to vector<8x8x4xf32>
    %188 = vector.shape_cast %187 : vector<8x8x4xf32> to vector<64x4xf32>
    %c5_151 = arith.constant 5 : index
    %c0_152 = arith.constant 0 : index
    %c0_153 = arith.constant 0 : index
    %189 = vector.load %arg8[%c5_151, %c0_152, %c0_153] : memref<9x4x8xf32, #tpu.memory_space<vmem>>, vector<1x4x8xf32>
    %190 = vector.shape_cast %189 : vector<1x4x8xf32> to vector<4x8xf32>
    %cst_154 = arith.constant dense<0.000000e+00> : vector<64x8xf32>
    %191 = tpu.matmul %188, %190, %cst_154 {dimension_numbers = #tpu.dot_dimension_numbers<[1], [0], [0], [1], [0, 0, 1, 1], [], []>} : vector<64x4xf32>, vector<4x8xf32>, vector<64x8xf32> -> vector<64x8xf32>
    %192 = arith.addf %186, %191 : vector<64x8xf32>
    %193 = vector.extract_strided_slice %155 {offsets = [2, 0, 0], sizes = [8, 8, 4], strides = [1, 1, 1]} : vector<10x10x4xf32> to vector<8x8x4xf32>
    %194 = vector.shape_cast %193 : vector<8x8x4xf32> to vector<64x4xf32>
    %c6_155 = arith.constant 6 : index
    %c0_156 = arith.constant 0 : index
    %c0_157 = arith.constant 0 : index
    %195 = vector.load %arg8[%c6_155, %c0_156, %c0_157] : memref<9x4x8xf32, #tpu.memory_space<vmem>>, vector<1x4x8xf32>
    %196 = vector.shape_cast %195 : vector<1x4x8xf32> to vector<4x8xf32>
    %cst_158 = arith.constant dense<0.000000e+00> : vector<64x8xf32>
    %197 = tpu.matmul %194, %196, %cst_158 {dimension_numbers = #tpu.dot_dimension_numbers<[1], [0], [0], [1], [0, 0, 1, 1], [], []>} : vector<64x4xf32>, vector<4x8xf32>, vector<64x8xf32> -> vector<64x8xf32>
    %198 = arith.addf %192, %197 : vector<64x8xf32>
    %199 = vector.extract_strided_slice %155 {offsets = [2, 1, 0], sizes = [8, 8, 4], strides = [1, 1, 1]} : vector<10x10x4xf32> to vector<8x8x4xf32>
    %200 = vector.shape_cast %199 : vector<8x8x4xf32> to vector<64x4xf32>
    %c7_159 = arith.constant 7 : index
    %c0_160 = arith.constant 0 : index
    %c0_161 = arith.constant 0 : index
    %201 = vector.load %arg8[%c7_159, %c0_160, %c0_161] : memref<9x4x8xf32, #tpu.memory_space<vmem>>, vector<1x4x8xf32>
    %202 = vector.shape_cast %201 : vector<1x4x8xf32> to vector<4x8xf32>
    %cst_162 = arith.constant dense<0.000000e+00> : vector<64x8xf32>
    %203 = tpu.matmul %200, %202, %cst_162 {dimension_numbers = #tpu.dot_dimension_numbers<[1], [0], [0], [1], [0, 0, 1, 1], [], []>} : vector<64x4xf32>, vector<4x8xf32>, vector<64x8xf32> -> vector<64x8xf32>
    %204 = arith.addf %198, %203 : vector<64x8xf32>
    %205 = vector.extract_strided_slice %155 {offsets = [2, 2, 0], sizes = [8, 8, 4], strides = [1, 1, 1]} : vector<10x10x4xf32> to vector<8x8x4xf32>
    %206 = vector.shape_cast %205 : vector<8x8x4xf32> to vector<64x4xf32>
    %c8_163 = arith.constant 8 : index
    %c0_164 = arith.constant 0 : index
    %c0_165 = arith.constant 0 : index
    %207 = vector.load %arg8[%c8_163, %c0_164, %c0_165] : memref<9x4x8xf32, #tpu.memory_space<vmem>>, vector<1x4x8xf32>
    %208 = vector.shape_cast %207 : vector<1x4x8xf32> to vector<4x8xf32>
    %cst_166 = arith.constant dense<0.000000e+00> : vector<64x8xf32>
    %209 = tpu.matmul %206, %208, %cst_166 {dimension_numbers = #tpu.dot_dimension_numbers<[1], [0], [0], [1], [0, 0, 1, 1], [], []>} : vector<64x4xf32>, vector<4x8xf32>, vector<64x8xf32> -> vector<64x8xf32>
    %210 = arith.addf %204, %209 : vector<64x8xf32>
    %c0_167 = arith.constant 0 : index
    %c0_168 = arith.constant 0 : index
    %211 = vector.load %arg9[%c0_167, %c0_168] : memref<1x8xf32, #tpu.memory_space<vmem>>, vector<1x8xf32>
    %212 = vector.broadcast %211 : vector<1x8xf32> to vector<64x8xf32>
    %213 = arith.addf %210, %212 : vector<64x8xf32>
    %cst_169 = arith.constant 0.000000e+00 : f32
    %214 = vector.broadcast %cst_169 : f32 to vector<64x8xf32>
    %215 = arith.maximumf %213, %214 : vector<64x8xf32>
    %c0_170 = arith.constant 0 : index
    %c0_171 = arith.constant 0 : index
    %c0_172 = arith.constant 0 : index
    %216 = vector.load %arg11[%c0_170, %c0_171, %c0_172] : memref<1x64x8xf32, #tpu.memory_space<vmem>>, vector<1x64x8xf32>
    %217 = vector.shape_cast %216 : vector<1x64x8xf32> to vector<64x8xf32>
    %218 = vector.shape_cast %215 : vector<64x8xf32> to vector<1x64x8xf32>
    tpu.vector_store %arg11[%c0_170, %c0_171, %c0_172], %218 {strides = array<i32>} : memref<1x64x8xf32, #tpu.memory_space<vmem>>, vector<1x64x8xf32>,
    return
  }
  func.func @transform_0(%arg0: i32) -> (i32, i32, i32, i32) {
    %c0_i32 = arith.constant 0 : i32
    %c0_i32_0 = arith.constant 0 : i32
    %c0_i32_1 = arith.constant 0 : i32
    %c0_i32_2 = arith.constant 0 : i32
    return %arg0, %c0_i32, %c0_i32_0, %c0_i32_1 : i32, i32, i32, i32
  }
  func.func @transform_1(%arg0: i32) -> (i32, i32, i32, i32) {
    %c0_i32 = arith.constant 0 : i32
    %c0_i32_0 = arith.constant 0 : i32
    %c0_i32_1 = arith.constant 0 : i32
    %c0_i32_2 = arith.constant 0 : i32
    return %arg0, %c0_i32, %c0_i32_0, %c0_i32_1 : i32, i32, i32, i32
  }
  func.func @transform_2(%arg0: i32) -> (i32, i32, i32) {
    %c0_i32 = arith.constant 0 : i32
    %c0_i32_0 = arith.constant 0 : i32
    %c0_i32_1 = arith.constant 0 : i32
    %c0_i32_2 = arith.constant 0 : i32
    return %c0_i32, %c0_i32_0, %c0_i32_1 : i32, i32, i32
  }
  func.func @transform_3(%arg0: i32) -> (i32, i32) {
    %c0_i32 = arith.constant 0 : i32
    %c0_i32_0 = arith.constant 0 : i32
    %c0_i32_1 = arith.constant 0 : i32
    return %c0_i32, %c0_i32_0 : i32, i32
  }
  func.func @transform_4(%arg0: i32) -> (i32, i32, i32) {
    %c0_i32 = arith.constant 0 : i32
    %c0_i32_0 = arith.constant 0 : i32
    %c0_i32_1 = arith.constant 0 : i32
    %c0_i32_2 = arith.constant 0 : i32
    return %c0_i32, %c0_i32_0, %c0_i32_1 : i32, i32, i32
  }
  func.func @transform_5(%arg0: i32) -> (i32, i32) {
    %c0_i32 = arith.constant 0 : i32
    %c0_i32_0 = arith.constant 0 : i32
    %c0_i32_1 = arith.constant 0 : i32
    return %c0_i32, %c0_i32_0 : i32, i32
  }
  func.func @transform_6(%arg0: i32) -> (i32, i32, i32) {
    %c0_i32 = arith.constant 0 : i32
    %c0_i32_0 = arith.constant 0 : i32
    %c0_i32_1 = arith.constant 0 : i32
    %c0_i32_2 = arith.constant 0 : i32
    return %c0_i32, %c0_i32_0, %c0_i32_1 : i32, i32, i32
  }
  func.func @transform_7(%arg0: i32) -> (i32, i32, i32) {
    %c0_i32 = arith.constant 0 : i32
    %c0_i32_0 = arith.constant 0 : i32
    %c0_i32_1 = arith.constant 0 : i32
    %c0_i32_2 = arith.constant 0 : i32
    return %c0_i32, %c0_i32_0, %c0_i32_1 : i32, i32, i32
  }
  func.func @transform_8(%arg0: i32) -> (i32, i32) {
    %c0_i32 = arith.constant 0 : i32
    %c0_i32_0 = arith.constant 0 : i32
    %c0_i32_1 = arith.constant 0 : i32
    return %c0_i32, %c0_i32_0 : i32, i32
  }
  func.func @transform_9(%arg0: i32) -> (i32, i32, i32) {
    %c0_i32 = arith.constant 0 : i32
    %c0_i32_0 = arith.constant 0 : i32
    %c0_i32_1 = arith.constant 0 : i32
    return %arg0, %c0_i32, %c0_i32_0 : i32, i32, i32
  }
  func.func @transform_10(%arg0: i32) -> (i32, i32, i32) {
    %c0_i32 = arith.constant 0 : i32
    %c0_i32_0 = arith.constant 0 : i32
    %c0_i32_1 = arith.constant 0 : i32
    return %arg0, %c0_i32, %c0_i32_0 : i32, i32, i32
  }
}

</mosaic_0001>

<bundles_post_ra>
// kernel: separated_vision_forward.3
= control target key start
LH: loop header
LB: loop body
LE: loop exit
PB: predicated region body
PF: predicated region fallthrough
CT: control target
= control target key end

     0   :  { %18 = vsyncpa [#allocation3], 0  ;;  %s2709_s25 = smov [#allocation2]   ;;  %s4597_s0 = inlined_call_operand.vmem [shape: f32[2,2048], index: 0, kind: input, shape index: {}]   ;;  %s4598_s1 = inlined_call_operand.vmem [shape: f32[2,512], index: 1, kind: input, shape index: {}]   ;;  %s4599_s2 = inlined_call_operand.vmem [shape: f32[2,2], index: 2, kind: input, shape index: {}]   ;;  %s4600_s3 = inlined_call_operand.vmem [shape: f32[2,16], index: 3, kind: input, shape index: {}]   ;;  %s4601_s4 = inlined_call_operand.vmem [shape: f32[1,16], index: 4, kind: input, shape index: {}]   ;;  %s4602_s5 = inlined_call_operand.vmem [shape: f32[16,32], index: 5, kind: input, shape index: {}]   ;;  %s4603_s6 = inlined_call_operand.vmem [shape: f32[1,32], index: 6, kind: input, shape index: {}]   ;;  %s4604_s7 = inlined_call_operand.vmem [shape: f32[2048,256], index: 7, kind: input, shape index: {}]   ;;  %s4605_s8 = inlined_call_operand.hbm [shape: f32[512,256], index: 8, kind: input, shape index: {}]   ;;  %s4606_s9 = inlined_call_operand.vmem [shape: f32[32,256], index: 9, kind: input, shape index: {}]   ;;  %s4607_s10 = inlined_call_operand.vmem [shape: f32[1,256], index: 10, kind: input, shape index: {}]   ;;  %s4608_s11 = inlined_call_operand.vmem [shape: f32[256,128], index: 11, kind: input, shape index: {}]   ;;  %s4609_s12 = inlined_call_operand.vmem [shape: f32[1,128], index: 12, kind: input, shape index: {}]   ;;  %s4610_s13 = inlined_call_operand.vmem [shape: f32[2,128], index: 13, kind: output, shape index: {}]  }
   0x1   :  { %s40_s26 = sshll.u32 %s2709_s25, 4  ;;  %s2685_s29 = scalar_lea.hbm %s4605_s8, 16384  ;;  %s41_s26 = int_to_ptr.vmem [resolvable:$true] %s40_s26 }
   0x2   :  { %p2686_p0 = scmp.ne.s32.totalorder %s4605_s8, %s2685_s29  ;;  %p2689_p1 = scmp.lt.u32.totalorder %s2685_s29, %s4605_s8 }
   0x4   :  { %p2691_p2 = pnand %p2689_p1, %p2686_p0 }
   0x6   :  { %2694 = shalt.err (!%p2691_p2)
}
   0x7   :  { %s2695_s17 = scalar_lea.vmem %s41_s26, 16384  ;;  %p2700_p4 = scmp.lt.s32.totalorder %s41_s26, %s41_s26 }
   0x8   :  { %p2696_p3 = scmp.ne.s32.totalorder %s41_s26, %s2695_s17  ;;  %p2701_p5 = scmp.lt.s32.totalorder %s2695_s17, %s2695_s17 }
   0xa   :  { %p2702_p6 = por %p2701_p5, %p2700_p4 }
   0xc   :  { %p2703_p7 = pnand %p2702_p6, %p2696_p3 }
   0xe   :  { %2706 = shalt.err (!%p2703_p7)
}
   0xf   :  { %s2710_s18 = smov 256   ;;  %s2711_s19 = smov 16  }
  0x10   :  { %46 = dma.hbm_to_vmem [thread:$0]  %s4605_s8, 16384, %s41_s26, [#allocation3], %s2710_s18, %s2710_s18, %s2711_s19  }
  0x11   :  { %2707 = dma.done.wait [#allocation3], 16384  }
  0x12   :  { %2708 = vsyncadd [#allocation3], 4294950912  ;;  %v2712_v0 = vmov 0.0   ;;  %vm2713_vm0 = vmmov 0   ;;  %vm71_vm1 = vcmask 1041408   ;;  %vm67_vm2 = vcmask 15360  }
  0x13   :  { %1958 = vmatprep.subr.mxu0 %v2712_v0  ;;  %1960 = vmatprep.mubr.msk.f32.mxu0 %vm2713_vm0, %v2712_v0  ;;  %v59_v1 = vld [vmem:[%s4600_s3] sm:$0x3]  ;;  %v748_v3 = vld [vmem:[#allocation2 + $0x8] sm:$0xff]  ;;  %v750_v4 = vld [vmem:[#allocation2 + $0x18] sm:$0xff]  ;;  %v2714_v28 = vmov 1983009808   ;;  %v880_v30 = vlaneseq }
  0x14   :  { %v58_v2 = vld [vmem:[%s4599_s2] sm:$0x3]  ;;  %1959 = vmatpush3.msk.msra.mxu0 %vm71_vm1, %v59_v1  ;;  %v749_v6 = vld [vmem:[#allocation2 + $0x10] sm:$0xff]  ;;  %v1973_v7 = vpack.c.bf16 %v750_v4, %v748_v3  ;;  %v752_v9 = vld [vmem:[#allocation2 + $0x28] sm:$0xff]  ;;  %v878_v29 = vunpack.c.l.s4 %v2714_v28  ;;  %vm155_vm3 = vcmask 130048   ;;  %vm1703_vm4 = vcmask 261120  }
  0x15   :  { %v747_v5 = vld [vmem:[#allocation2] sm:$0xff]  ;;  %1961 = vmatmul.mubr.msk.f32.vlgmr.msra.gmra.mrb[0].mxu0 %vm67_vm2, %v58_v2  ;;  %v754_v10 = vld [vmem:[#allocation2 + $0x38] sm:$0xff]  ;;  %v753_v13 = vld [vmem:[#allocation2 + $0x30] sm:$0xff]  ;;  %v2809_v38 = vshrl.u32 %v880_v30, 7 }
  0x16   :  { %v1975_v8 = vpack.c.bf16 %v749_v6, %v747_v5  ;;  %v751_v11 = vld [vmem:[#allocation2 + $0x20] sm:$0xff]  ;;  %v1977_v12 = vpack.c.bf16 %v754_v10, %v752_v9  ;;  %v756_v14 = vld [vmem:[#allocation2 + $0x48] sm:$0xff]  ;;  %v758_v15 = vld [vmem:[#allocation2 + $0x58] sm:$0xff]  ;;  %1967 = vmatprep.mubr.msk.f32.mxu0 %vm2713_vm0, %v2712_v0  ;;  %1974 = vmatprep.subr.bf16.mxu1 %v1973_v7  ;;  %v879_v37 = vunpack.c.0.s8 %v878_v29 }
  0x17   :  { %v1979_v16 = vpack.c.bf16 %v753_v13, %v751_v11  ;;  %v1981_v17 = vpack.c.bf16 %v758_v15, %v756_v14  ;;  %v755_v18 = vld [vmem:[#allocation2 + $0x40] sm:$0xff]  ;;  %v757_v19 = vld [vmem:[#allocation2 + $0x50] sm:$0xff]  ;;  %v760_v20 = vld [vmem:[#allocation2 + $0x68] sm:$0xff] }
  0x18   :  { %1976 = vmatpush1.bf16.msra.mxu1 %v1975_v8  ;;  %v762_v21 = vld [vmem:[#allocation2 + $0x78] sm:$0xff]  ;;  %v1983_v22 = vpack.c.bf16 %v757_v19, %v755_v18  ;;  %v759_v24 = vld [vmem:[#allocation2 + $0x60] sm:$0xff]  ;;  %v761_v25 = vld [vmem:[#allocation2 + $0x70] sm:$0xff]  ;;  %v2812_v45 = vsub.s32 %v879_v37, %v2809_v38 }
  0x19   :  { %1978 = vmatprep.subr.bf16.mxu1 %v1977_v12  ;;  %v1985_v23 = vpack.c.bf16 %v762_v21, %v760_v20  ;;  %v764_v26 = vld [vmem:[#allocation2 + $0x88] sm:$0xff]  ;;  %v766_v27 = vld [vmem:[#allocation2 + $0x98] sm:$0xff]  ;;  %v1987_v31 = vpack.c.bf16 %v761_v25, %v759_v24  ;;  %v763_v33 = vld [vmem:[#allocation2 + $0x80] sm:$0xff] }
  0x1a   :  { %v1989_v32 = vpack.c.bf16 %v766_v27, %v764_v26  ;;  %v765_v34 = vld [vmem:[#allocation2 + $0x90] sm:$0xff]  ;;  %v768_v35 = vld [vmem:[#allocation2 + $0xa8] sm:$0xff]  ;;  %v770_v36 = vld [vmem:[#allocation2 + $0xb8] sm:$0xff] }
  0x1b   :  { %v1991_v39 = vpack.c.bf16 %v765_v34, %v763_v33  ;;  %v1993_v40 = vpack.c.bf16 %v770_v36, %v768_v35  ;;  %v767_v41 = vld [vmem:[#allocation2 + $0xa0] sm:$0xff]  ;;  %v769_v42 = vld [vmem:[#allocation2 + $0xb0] sm:$0xff]  ;;  %v772_v43 = vld [vmem:[#allocation2 + $0xc8] sm:$0xff] }
  0x1c   :  { %1980 = vmatpush1.bf16.msra.mxu1 %v1979_v16  ;;  %v774_v44 = vld [vmem:[#allocation2 + $0xd8] sm:$0xff]  ;;  %v1995_v46 = vpack.c.bf16 %v769_v42, %v767_v41  ;;  %v771_v48 = vld [vmem:[#allocation2 + $0xc0] sm:$0xff]  ;;  %v773_v49 = vld [vmem:[#allocation2 + $0xd0] sm:$0xff] }
  0x1d   :  { %1982 = vmatprep.subr.bf16.mxu1 %v1981_v17  ;;  %v1997_v47 = vpack.c.bf16 %v774_v44, %v772_v43  ;;  %v2817_v50 = vld [vmem:[%s4598_s1] sm:$0xff]  ;;  %v776_v51 = vld [vmem:[#allocation2 + $0xe8] sm:$0xff]  ;;  %v778_v52 = vld [vmem:[#allocation2 + $0xf8] sm:$0xff]  ;;  %v1999_v54 = vpack.c.bf16 %v773_v49, %v771_v48 }
  0x1e   :  { %v2821_v53 = vrot.slane %v2817_v50, %v2812_v45  ;;  %v2001_v56 = vpack.c.bf16 %v778_v52, %v776_v51  ;;  %v775_v57 = vld [vmem:[#allocation2 + $0xe0] sm:$0xff]  ;;  %v777_v58 = vld [vmem:[#allocation2 + $0xf0] sm:$0xff]  ;;  %v780_v59 = vld [vmem:[#allocation2 + $0x108] sm:$0xff]  ;;  %v876_v42 = vcombine.high %v2817_v50, %v2817_v50 }
  0x1f   :  { %v782_v60 = vld [vmem:[#allocation2 + $0x118] sm:$0xff]  ;;  %v2003_v61 = vpack.c.bf16 %v777_v58, %v775_v57  ;;  %v779_v63 = vld [vmem:[#allocation2 + $0x100] sm:$0xff]  ;;  %v781_v1 = vld [vmem:[#allocation2 + $0x110] sm:$0xff] }
  0x20   :  { %1984 = vmatpush1.bf16.msra.mxu1 %v1983_v22  ;;  %v891_v55 = vcombine.high %v2821_v53, %v2821_v53  ;;  %v2005_v62 = vpack.c.bf16 %v782_v60, %v780_v59  ;;  %v784_v2 = vld [vmem:[#allocation2 + $0x128] sm:$0xff]  ;;  %v786_v3 = vld [vmem:[#allocation2 + $0x138] sm:$0xff]  ;;  %v2007_v4 = vpack.c.bf16 %v781_v1, %v779_v63  ;;  %v783_v6 = vld [vmem:[#allocation2 + $0x120] sm:$0xff]  ;;  %v2828_v51 = vrot.slane %v876_v42, %v2812_v45 }
  0x21   :  { %1986 = vmatprep.subr.bf16.mxu1 %v1985_v23  ;;  %v2009_v5 = vpack.c.bf16 %v786_v3, %v784_v2  ;;  %v785_v7 = vld [vmem:[#allocation2 + $0x130] sm:$0xff]  ;;  %v788_v8 = vld [vmem:[#allocation2 + $0x148] sm:$0xff]  ;;  %v790_v9 = vld [vmem:[#allocation2 + $0x158] sm:$0xff] }
  0x22   :  { %961 = vmatprep.mubr.f32.mxu1 %v891_v55  ;;  %v2011_v10 = vpack.c.bf16 %v785_v7, %v783_v6  ;;  %v2013_v11 = vpack.c.bf16 %v790_v9, %v788_v8  ;;  %v787_v12 = vld [vmem:[#allocation2 + $0x140] sm:$0xff]  ;;  %v789_v13 = vld [vmem:[#allocation2 + $0x150] sm:$0xff]  ;;  %v792_v14 = vld [vmem:[#allocation2 + $0x168] sm:$0xff]  ;;  %v892_v50 = vcombine.high %v2828_v51, %v2828_v51 }
  0x23   :  { %v794_v15 = vld [vmem:[#allocation2 + $0x178] sm:$0xff]  ;;  %v2015_v16 = vpack.c.bf16 %v789_v13, %v787_v12  ;;  %v791_v18 = vld [vmem:[#allocation2 + $0x160] sm:$0xff]  ;;  %v793_v19 = vld [vmem:[#allocation2 + $0x170] sm:$0xff] }
  0x24   :  { %1988 = vmatpush1.bf16.msra.mxu1 %v1987_v31  ;;  %v2017_v17 = vpack.c.bf16 %v794_v15, %v792_v14  ;;  %v796_v20 = vld [vmem:[#allocation2 + $0x188] sm:$0xff]  ;;  %v798_v21 = vld [vmem:[#allocation2 + $0x198] sm:$0xff]  ;;  %v2019_v22 = vpack.c.bf16 %v793_v19, %v791_v18  ;;  %v795_v24 = vld [vmem:[#allocation2 + $0x180] sm:$0xff] }
  0x25   :  { %1990 = vmatprep.subr.bf16.mxu1 %v1989_v32  ;;  %v2021_v23 = vpack.c.bf16 %v798_v21, %v796_v20  ;;  %v797_v25 = vld [vmem:[#allocation2 + $0x190] sm:$0xff]  ;;  %v800_v26 = vld [vmem:[#allocation2 + $0x1a8] sm:$0xff]  ;;  %v802_v27 = vld [vmem:[#allocation2 + $0x1b8] sm:$0xff] }
  0x26   :  { %v2023_v28 = vpack.c.bf16 %v797_v25, %v795_v24  ;;  %v2025_v29 = vpack.c.bf16 %v802_v27, %v800_v26  ;;  %v799_v30 = vld [vmem:[#allocation2 + $0x1a0] sm:$0xff]  ;;  %v801_v31 = vld [vmem:[#allocation2 + $0x1b0] sm:$0xff]  ;;  %v804_v32 = vld [vmem:[#allocation2 + $0x1c8] sm:$0xff] }
  0x27   :  { %v806_v33 = vld [vmem:[#allocation2 + $0x1d8] sm:$0xff]  ;;  %v2027_v34 = vpack.c.bf16 %v801_v31, %v799_v30  ;;  %v803_v36 = vld [vmem:[#allocation2 + $0x1c0] sm:$0xff]  ;;  %v805_v37 = vld [vmem:[#allocation2 + $0x1d0] sm:$0xff] }
  0x28   :  { %1992 = vmatpush1.bf16.msra.mxu1 %v1991_v39  ;;  %v2029_v35 = vpack.c.bf16 %v806_v33, %v804_v32  ;;  %v808_v39 = vld [vmem:[#allocation2 + $0x1e8] sm:$0xff]  ;;  %v2031_v41 = vpack.c.bf16 %v805_v37, %v803_v36  ;;  %v807_v44 = vld [vmem:[#allocation2 + $0x1e0] sm:$0xff]  ;;  %v814_v48 = vld [vmem:[#allocation2 + $0x218] sm:$0xff]  ;;  %v2715_v32 = vmov 0.0|0.0  }
  0x29   :  { %1994 = vmatprep.subr.bf16.mxu1 %v1993_v40  ;;  %v810_v40 = vld [vmem:[#allocation2 + $0x1f8] sm:$0xff]  ;;  %v813_v55 = vld [vmem:[#allocation2 + $0x210] sm:$0xff]  ;;  %v815_v60 = vld [vmem:[#allocation2 + $0x220] sm:$0xff]  ;;  %1970 = vmatprep.subr.bf16.mxu0 %v2715_v32 }
  0x2a   :  { %v2033_v43 = vpack.c.bf16 %v810_v40, %v808_v39  ;;  %v818_v57 = vld [vmem:[#allocation2 + $0x238] sm:$0xff]  ;;  %v819_v3 = vld [vmem:[#allocation2 + $0x240] sm:$0xff]  ;;  %v829_v15 = vld [vmem:[#allocation2 + $0x290] sm:$0xff] }
  0x2b   :  { %v822_v63 = vld [vmem:[#allocation2 + $0x258] sm:$0xff]  ;;  %v823_v9 = vld [vmem:[#allocation2 + $0x260] sm:$0xff]  ;;  %v833_v21 = vld [vmem:[#allocation2 + $0x2b0] sm:$0xff] }
  0x2c   :  { %1996 = vmatpush1.bf16.msra.mxu1 %v1995_v46  ;;  %v809_v46 = vld [vmem:[#allocation2 + $0x1f0] sm:$0xff]  ;;  %v826_v6 = vld [vmem:[#allocation2 + $0x278] sm:$0xff]  ;;  %v827_v14 = vld [vmem:[#allocation2 + $0x280] sm:$0xff] }
  0x2d   :  { %1998 = vmatprep.subr.bf16.mxu1 %v1997_v47  ;;  %v812_v47 = vld [vmem:[#allocation2 + $0x208] sm:$0xff]  ;;  %v2035_v49 = vpack.c.bf16 %v809_v46, %v807_v44  ;;  %v830_v12 = vld [vmem:[#allocation2 + $0x298] sm:$0xff]  ;;  %v2055_v18 = vpack.c.bf16 %v829_v15, %v827_v14  ;;  %v831_v20 = vld [vmem:[#allocation2 + $0x2a0] sm:$0xff] }
  0x2e   :  { %v2037_v52 = vpack.c.bf16 %v814_v48, %v812_v47  ;;  %v146_v24 = vld [vmem:[%s4602_s5] sm:$0xff]  ;;  %v147_v25 = vld [vmem:[%s4602_s5 + $0x8] sm:$0xff]  ;;  %v2059_v26 = vpack.c.bf16 %v833_v21, %v831_v20  ;;  %v837_v30 = vld [vmem:[#allocation2 + $0x2d0] sm:$0xff] }
  0x2f   :  { %v1971_v27 = vpack.c.bf16 %v147_v25, %v146_v24  ;;  %v840_v31 = vld [vmem:[#allocation2 + $0x2e8] sm:$0xff]  ;;  %v842_v33 = vld [vmem:[#allocation2 + $0x2f8] sm:$0xff]  ;;  %v839_v40 = vld [vmem:[#allocation2 + $0x2e0] sm:$0xff] }
  0x30   :  { %2000 = vmatpush1.bf16.msra.mxu1 %v1999_v54  ;;  %v811_v54 = vld [vmem:[#allocation2 + $0x200] sm:$0xff]  ;;  %v2065_v39 = vpack.c.bf16 %v842_v33, %v840_v31  ;;  %v844_v42 = vld [vmem:[#allocation2 + $0x308] sm:$0xff]  ;;  %v845_v48 = vld [vmem:[#allocation2 + $0x310] sm:$0xff] }
  0x31   :  { %2002 = vmatprep.subr.bf16.mxu1 %v2001_v56  ;;  %v816_v56 = vld [vmem:[#allocation2 + $0x228] sm:$0xff]  ;;  %v2039_v58 = vpack.c.bf16 %v813_v55, %v811_v54  ;;  %1972 = vmatpush3.bf16.msra.mxu0 %v1971_v27  ;;  %v843_v47 = vld [vmem:[#allocation2 + $0x300] sm:$0xff]  ;;  %v874_v24 = vld [vmem:[#allocation2 + $0x3f8] sm:$0xff] }
  0x32   :  { %v2041_v59 = vpack.c.bf16 %v818_v57, %v816_v56  ;;  %v2071_v54 = vpack.c.bf16 %v845_v48, %v843_v47  ;;  %v847_v56 = vld [vmem:[#allocation2 + $0x320] sm:$0xff]  ;;  %v849_v57 = vld [vmem:[#allocation2 + $0x330] sm:$0xff]  ;;  %v237_v31 = vld [vmem:[%s4604_s7 + $0x18] sm:$0xff] }
  0x33   :  { %v863_v15 = vld [vmem:[#allocation2 + $0x3a0] sm:$0xff]  ;;  %v245_v47 = vld [vmem:[%s4604_s7 + $0x58] sm:$0xff] }
  0x34   :  { %2004 = vmatpush1.bf16.msra.mxu1 %v2003_v61  ;;  %v817_v61 = vld [vmem:[#allocation2 + $0x230] sm:$0xff]  ;;  %v867_v21 = vld [vmem:[#allocation2 + $0x3c0] sm:$0xff] }
  0x35   :  { %2006 = vmatprep.subr.bf16.mxu1 %v2005_v62  ;;  %v820_v62 = vld [vmem:[#allocation2 + $0x248] sm:$0xff]  ;;  %v2043_v1 = vpack.c.bf16 %v817_v61, %v815_v60  ;;  %v851_v61 = vld [vmem:[#allocation2 + $0x340] sm:$0xff] }
  0x36   :  { %v2045_v2 = vpack.c.bf16 %v822_v63, %v820_v62  ;;  %v853_v62 = vld [vmem:[#allocation2 + $0x350] sm:$0xff]  ;;  %v856_v63 = vld [vmem:[#allocation2 + $0x368] sm:$0xff]  ;;  %v871_v27 = vld [vmem:[#allocation2 + $0x3e0] sm:$0xff] }
  0x38   :  { %2008 = vmatpush1.bf16.msra.mxu1 %v2007_v4  ;;  %v821_v4 = vld [vmem:[#allocation2 + $0x250] sm:$0xff] }
  0x39   :  { %2010 = vmatprep.subr.bf16.mxu1 %v2009_v5  ;;  %v824_v5 = vld [vmem:[#allocation2 + $0x268] sm:$0xff]  ;;  %v2047_v7 = vpack.c.bf16 %v821_v4, %v819_v3  ;;  %v855_v4 = vld [vmem:[#allocation2 + $0x360] sm:$0xff] }
  0x3a   :  { %v2049_v8 = vpack.c.bf16 %v826_v6, %v824_v5  ;;  %v857_v5 = vld [vmem:[#allocation2 + $0x370] sm:$0xff]  ;;  %v860_v6 = vld [vmem:[#allocation2 + $0x388] sm:$0xff] }
  0x3c   :  { %2012 = vmatpush1.bf16.msra.mxu1 %v2011_v10  ;;  %v825_v10 = vld [vmem:[#allocation2 + $0x270] sm:$0xff] }
  0x3d   :  { %2014 = vmatprep.subr.bf16.mxu1 %v2013_v11  ;;  %v828_v11 = vld [vmem:[#allocation2 + $0x288] sm:$0xff]  ;;  %v2051_v13 = vpack.c.bf16 %v825_v10, %v823_v9  ;;  %v859_v10 = vld [vmem:[#allocation2 + $0x380] sm:$0xff] }
  0x40   :  { %2016 = vmatpush1.bf16.msra.mxu1 %v2015_v16  ;;  %v832_v16 = vld [vmem:[#allocation2 + $0x2a8] sm:$0xff] }
  0x41   :  { %2018 = vmatprep.subr.bf16.mxu1 %v2017_v17  ;;  %v834_v17 = vld [vmem:[#allocation2 + $0x2b8] sm:$0xff] }
  0x42   :  { %v2057_v19 = vpack.c.bf16 %v834_v17, %v832_v16  ;;  %v865_v16 = vld [vmem:[#allocation2 + $0x3b0] sm:$0xff]  ;;  %v868_v17 = vld [vmem:[#allocation2 + $0x3c8] sm:$0xff] }
  0x44   :  { %2020 = vmatpush1.bf16.msra.mxu1 %v2019_v22  ;;  %v836_v22 = vld [vmem:[#allocation2 + $0x2c8] sm:$0xff] }
  0x45   :  { %2022 = vmatprep.subr.bf16.mxu1 %v2021_v23  ;;  %v838_v23 = vld [vmem:[#allocation2 + $0x2d8] sm:$0xff] }
  0x48   :  { %2024 = vmatpush1.bf16.msra.mxu1 %v2023_v28  ;;  %v2061_v28 = vpack.c.bf16 %v838_v23, %v836_v22  ;;  %v869_v22 = vld [vmem:[#allocation2 + $0x3d0] sm:$0xff]  ;;  %v872_v23 = vld [vmem:[#allocation2 + $0x3e8] sm:$0xff] }
  0x49   :  { %2026 = vmatprep.subr.bf16.mxu1 %v2025_v29  ;;  %v835_v29 = vld [vmem:[#allocation2 + $0x2c0] sm:$0xff]  ;;  %v2095_v25 = vpack.c.bf16 %v869_v22, %v867_v21 }
  0x4a   :  { %v2063_v37 = vpack.c.bf16 %v837_v30, %v835_v29  ;;  %v2848_v29 = vld [vmem:[%s4597_s0] sm:$0xff]  ;;  %v235_v30 = vld [vmem:[%s4604_s7 + $0x8] sm:$0xff] }
  0x4b   :  { %v2858_v33 = vrot.slane %v2848_v29, %v2812_v45 }
  0x4c   :  { %2028 = vmatpush1.bf16.msra.mxu1 %v2027_v34  ;;  %v427_v34 = vld [vmem:[%s4604_s7 + $0x608] sm:$0xff] }
  0x4d   :  { %2030 = vmatprep.subr.bf16.mxu1 %v2029_v35  ;;  %v429_v35 = vld [vmem:[%s4604_s7 + $0x618] sm:$0xff] }
  0x4e   :  { %v2293_v36 = vpack.c.bf16 %v429_v35, %v427_v34  ;;  %v2101_v34 = vpack.c.bf16 %v237_v31, %v235_v30  ;;  %v234_v35 = vld [vmem:[%s4604_s7] sm:$0xff]  ;;  %v272_v31 = vld [vmem:[%s4604_s7 + $0x130] sm:$0xff] }
  0x4f   :  { %v270_v30 = vld [vmem:[%s4604_s7 + $0x120] sm:$0xff] }
  0x50   :  { %2032 = vmatpush1.bf16.msra.mxu1 %v2031_v41  ;;  %v841_v41 = vld [vmem:[#allocation2 + $0x2f0] sm:$0xff]  ;;  %2294 = vmatprep.subr.bf16.mxu0 %v2293_v36 }
  0x51   :  { %2034 = vmatprep.subr.bf16.mxu1 %v2033_v43  ;;  %v846_v43 = vld [vmem:[#allocation2 + $0x318] sm:$0xff]  ;;  %v2067_v44 = vpack.c.bf16 %v841_v41, %v839_v40  ;;  %v236_v36 = vld [vmem:[%s4604_s7 + $0x10] sm:$0xff]  ;;  %v1058_v41 = vcombine.high %v2858_v33, %v2858_v33 }
  0x52   :  { %v2069_v46 = vpack.c.bf16 %v846_v43, %v844_v42  ;;  %v2103_v40 = vpack.c.bf16 %v236_v36, %v234_v35  ;;  %v238_v43 = vld [vmem:[%s4604_s7 + $0x20] sm:$0xff]  ;;  %v2139_v35 = vpack.c.bf16 %v272_v31, %v270_v30 }
  0x54   :  { %2036 = vmatpush1.bf16.msra.mxu1 %v2035_v49  ;;  %v848_v49 = vld [vmem:[#allocation2 + $0x328] sm:$0xff] }
  0x55   :  { %2038 = vmatprep.subr.bf16.mxu1 %v2037_v52  ;;  %v850_v52 = vld [vmem:[#allocation2 + $0x338] sm:$0xff] }
  0x56   :  { %v2073_v55 = vpack.c.bf16 %v850_v52, %v848_v49  ;;  %v242_v52 = vld [vmem:[%s4604_s7 + $0x40] sm:$0xff] }
  0x57   :  { %962 = vmatmul.mubr.f32.vlgmr.msra.gmra.mrb[0].mxu1 %v2821_v53  ;;  %v2053_v53 = vpack.c.bf16 %v830_v12, %v828_v11  ;;  %v861_v11 = vld [vmem:[#allocation2 + $0x390] sm:$0xff]  ;;  %v864_v12 = vld [vmem:[#allocation2 + $0x3a8] sm:$0xff] }
  0x58   :  { %2040 = vmatpush1.bf16.msra.mxu1 %v2039_v58  ;;  %1032 = vmatprep.mubr.f32.mxu1 %v892_v50  ;;  %v852_v58 = vld [vmem:[#allocation2 + $0x348] sm:$0xff]  ;;  %v854_v50 = vld [vmem:[#allocation2 + $0x358] sm:$0xff] }
  0x59   :  { %2042 = vmatprep.subr.bf16.mxu1 %v2041_v59  ;;  %v2075_v59 = vpack.c.bf16 %v849_v57, %v847_v56  ;;  %v2077_v60 = vpack.c.bf16 %v854_v50, %v852_v58  ;;  %v246_v58 = vld [vmem:[%s4604_s7 + $0x60] sm:$0xff]  ;;  %v248_v50 = vld [vmem:[%s4604_s7 + $0x70] sm:$0xff] }
  0x5c   :  { %2044 = vmatpush1.bf16.msra.mxu1 %v2043_v1  ;;  %v858_v1 = vld [vmem:[#allocation2 + $0x378] sm:$0xff] }
  0x5d   :  { %2046 = vmatprep.subr.bf16.mxu1 %v2045_v2  ;;  %v2079_v2 = vpack.c.bf16 %v853_v62, %v851_v61  ;;  %v2081_v3 = vpack.c.bf16 %v858_v1, %v856_v63  ;;  %v2115_v61 = vpack.c.bf16 %v248_v50, %v246_v58  ;;  %v250_v63 = vld [vmem:[%s4604_s7 + $0x80] sm:$0xff]  ;;  %v252_v1 = vld [vmem:[%s4604_s7 + $0x90] sm:$0xff] }
  0x5e   :  { %v286_v50 = vld [vmem:[%s4604_s7 + $0x1a0] sm:$0xff] }
  0x60   :  { %2048 = vmatpush1.bf16.msra.mxu1 %v2047_v7  ;;  %v862_v7 = vld [vmem:[#allocation2 + $0x398] sm:$0xff] }
  0x61   :  { %2050 = vmatprep.subr.bf16.mxu1 %v2049_v8  ;;  %v2083_v8 = vpack.c.bf16 %v857_v5, %v855_v4  ;;  %v2085_v9 = vpack.c.bf16 %v862_v7, %v860_v6  ;;  %v2119_v4 = vpack.c.bf16 %v252_v1, %v250_v63  ;;  %v254_v6 = vld [vmem:[%s4604_s7 + $0xa0] sm:$0xff]  ;;  %v256_v7 = vld [vmem:[%s4604_s7 + $0xb0] sm:$0xff] }
  0x62   :  { %v290_v1 = vld [vmem:[%s4604_s7 + $0x1c0] sm:$0xff] }
  0x64   :  { %2052 = vmatpush1.bf16.msra.mxu1 %v2051_v13  ;;  %v866_v13 = vld [vmem:[#allocation2 + $0x3b8] sm:$0xff] }
  0x65   :  { %2054 = vmatprep.subr.bf16.mxu1 %v2053_v53  ;;  %v2087_v53 = vpack.c.bf16 %v861_v11, %v859_v10  ;;  %v2089_v14 = vpack.c.bf16 %v866_v13, %v864_v12  ;;  %v2123_v10 = vpack.c.bf16 %v256_v7, %v254_v6  ;;  %v258_v12 = vld [vmem:[%s4604_s7 + $0xc0] sm:$0xff]  ;;  %v260_v13 = vld [vmem:[%s4604_s7 + $0xd0] sm:$0xff]  ;;  %v1043_v6 = vcombine.high %v2848_v29, %v2848_v29 }
  0x68   :  { %2056 = vmatpush1.bf16.msra.mxu1 %v2055_v18  ;;  %v870_v18 = vld [vmem:[#allocation2 + $0x3d8] sm:$0xff] }
  0x69   :  { %2058 = vmatprep.subr.bf16.mxu1 %v2057_v19  ;;  %v2091_v19 = vpack.c.bf16 %v865_v16, %v863_v15  ;;  %v2093_v20 = vpack.c.bf16 %v870_v18, %v868_v17  ;;  %v2127_v15 = vpack.c.bf16 %v260_v13, %v258_v12  ;;  %v262_v17 = vld [vmem:[%s4604_s7 + $0xe0] sm:$0xff]  ;;  %v264_v18 = vld [vmem:[%s4604_s7 + $0xf0] sm:$0xff]  ;;  %v3058_v12 = vrot.slane %v1043_v6, %v2812_v45  ;;  %v329_v6 = vld [vmem:[%s4604_s7 + $0x2f8] sm:$0xff] }
  0x6a   :  { %v2131_v21 = vpack.c.bf16 %v264_v18, %v262_v17 }
  0x6b   :  { %v1059_v18 = vcombine.high %v3058_v12, %v3058_v12 }
  0x6c   :  { %2060 = vmatpush1.bf16.msra.mxu1 %v2059_v26  ;;  %v2097_v26 = vpack.c.bf16 %v874_v24, %v872_v23  ;;  %v266_v23 = vld [vmem:[%s4604_s7 + $0x100] sm:$0xff]  ;;  %v268_v24 = vld [vmem:[%s4604_s7 + $0x110] sm:$0xff] }
  0x6d   :  { %2062 = vmatprep.subr.bf16.mxu1 %v2061_v28  ;;  %v873_v28 = vld [vmem:[#allocation2 + $0x3f0] sm:$0xff] }
  0x6e   :  { %v2099_v32 = vpack.c.bf16 %v873_v28, %v871_v27  ;;  %v2135_v27 = vpack.c.bf16 %v268_v24, %v266_v23  ;;  %v309_v23 = vld [vmem:[%s4604_s7 + $0x258] sm:$0xff] }
  0x70   :  { %2064 = vmatpush1.bf16.msra.mxu1 %v2063_v37  ;;  %v239_v37 = vld [vmem:[%s4604_s7 + $0x28] sm:$0xff] }
  0x71   :  { %2066 = vmatprep.subr.bf16.mxu1 %v2065_v39  ;;  %v241_v39 = vld [vmem:[%s4604_s7 + $0x38] sm:$0xff] }
  0x72   :  { %v2105_v42 = vpack.c.bf16 %v241_v39, %v239_v37  ;;  %v274_v37 = vld [vmem:[%s4604_s7 + $0x140] sm:$0xff]  ;;  %v276_v39 = vld [vmem:[%s4604_s7 + $0x150] sm:$0xff] }
  0x74   :  { %2068 = vmatpush1.bf16.msra.mxu1 %v2067_v44  ;;  %v240_v44 = vld [vmem:[%s4604_s7 + $0x30] sm:$0xff] }
  0x75   :  { %2070 = vmatprep.subr.bf16.mxu1 %v2069_v46  ;;  %v243_v46 = vld [vmem:[%s4604_s7 + $0x48] sm:$0xff]  ;;  %v2107_v48 = vpack.c.bf16 %v240_v44, %v238_v43  ;;  %v278_v44 = vld [vmem:[%s4604_s7 + $0x160] sm:$0xff] }
  0x76   :  { %v2109_v49 = vpack.c.bf16 %v245_v47, %v243_v46  ;;  %v280_v46 = vld [vmem:[%s4604_s7 + $0x170] sm:$0xff]  ;;  %v283_v47 = vld [vmem:[%s4604_s7 + $0x188] sm:$0xff] }
  0x78   :  { %2072 = vmatpush1.bf16.msra.mxu1 %v2071_v54  ;;  %v244_v54 = vld [vmem:[%s4604_s7 + $0x50] sm:$0xff] }
  0x79   :  { %2074 = vmatprep.subr.bf16.mxu1 %v2073_v55  ;;  %v247_v55 = vld [vmem:[%s4604_s7 + $0x68] sm:$0xff]  ;;  %v2111_v56 = vpack.c.bf16 %v244_v54, %v242_v52  ;;  %v282_v54 = vld [vmem:[%s4604_s7 + $0x180] sm:$0xff] }
  0x7c   :  { %2076 = vmatpush1.bf16.msra.mxu1 %v2075_v59  ;;  %v251_v59 = vld [vmem:[%s4604_s7 + $0x88] sm:$0xff] }
  0x7d   :  { %2078 = vmatprep.subr.bf16.mxu1 %v2077_v60  ;;  %v253_v60 = vld [vmem:[%s4604_s7 + $0x98] sm:$0xff] }
  0x7e   :  { %v2117_v62 = vpack.c.bf16 %v253_v60, %v251_v59  ;;  %v288_v59 = vld [vmem:[%s4604_s7 + $0x1b0] sm:$0xff]  ;;  %v291_v60 = vld [vmem:[%s4604_s7 + $0x1c8] sm:$0xff] }
  0x80   :  { %2080 = vmatpush1.bf16.msra.mxu1 %v2079_v2  ;;  %v255_v2 = vld [vmem:[%s4604_s7 + $0xa8] sm:$0xff] }
  0x81   :  { %2082 = vmatprep.subr.bf16.mxu1 %v2081_v3  ;;  %v257_v3 = vld [vmem:[%s4604_s7 + $0xb8] sm:$0xff] }
  0x82   :  { %v2121_v5 = vpack.c.bf16 %v257_v3, %v255_v2  ;;  %v292_v2 = vld [vmem:[%s4604_s7 + $0x1d0] sm:$0xff]  ;;  %v295_v3 = vld [vmem:[%s4604_s7 + $0x1e8] sm:$0xff] }
  0x84   :  { %2084 = vmatpush1.bf16.msra.mxu1 %v2083_v8  ;;  %v259_v8 = vld [vmem:[%s4604_s7 + $0xc8] sm:$0xff] }
  0x85   :  { %2086 = vmatprep.subr.bf16.mxu1 %v2085_v9  ;;  %v261_v9 = vld [vmem:[%s4604_s7 + $0xd8] sm:$0xff] }
  0x86   :  { %v2125_v11 = vpack.c.bf16 %v261_v9, %v259_v8  ;;  %v294_v8 = vld [vmem:[%s4604_s7 + $0x1e0] sm:$0xff]  ;;  %v296_v9 = vld [vmem:[%s4604_s7 + $0x1f0] sm:$0xff] }
  0x87   :  { %v2163_v29 = vpack.c.bf16 %v296_v9, %v294_v8 }
  0x88   :  { %2088 = vmatpush1.bf16.msra.mxu1 %v2087_v53  ;;  %v263_v53 = vld [vmem:[%s4604_s7 + $0xe8] sm:$0xff] }
  0x89   :  { %2090 = vmatprep.subr.bf16.mxu1 %v2089_v14  ;;  %v265_v14 = vld [vmem:[%s4604_s7 + $0xf8] sm:$0xff] }
  0x8a   :  { %v2129_v16 = vpack.c.bf16 %v265_v14, %v263_v53  ;;  %v298_v53 = vld [vmem:[%s4604_s7 + $0x200] sm:$0xff]  ;;  %v300_v14 = vld [vmem:[%s4604_s7 + $0x210] sm:$0xff] }
  0x8b   :  { %v2167_v17 = vpack.c.bf16 %v300_v14, %v298_v53  ;;  %v437_v53 = vld [vmem:[%s4604_s7 + $0x658] sm:$0xff] }
  0x8c   :  { %2092 = vmatpush1.bf16.msra.mxu1 %v2091_v19  ;;  %v267_v19 = vld [vmem:[%s4604_s7 + $0x108] sm:$0xff] }
  0x8d   :  { %2094 = vmatprep.subr.bf16.mxu1 %v2093_v20  ;;  %v269_v20 = vld [vmem:[%s4604_s7 + $0x118] sm:$0xff] }
  0x8e   :  { %v2133_v22 = vpack.c.bf16 %v269_v20, %v267_v19  ;;  %v302_v20 = vld [vmem:[%s4604_s7 + $0x220] sm:$0xff] }
  0x90   :  { %2096 = vmatpush1.bf16.msra.mxu1 %v2095_v25  ;;  %v271_v25 = vld [vmem:[%s4604_s7 + $0x128] sm:$0xff] }
  0x91   :  { %2098 = vmatprep.subr.bf16.mxu1 %v2097_v26  ;;  %v273_v26 = vld [vmem:[%s4604_s7 + $0x138] sm:$0xff] }
  0x92   :  { %v2137_v28 = vpack.c.bf16 %v273_v26, %v271_v25  ;;  %v306_v26 = vld [vmem:[%s4604_s7 + $0x240] sm:$0xff] }
  0x94   :  { %2100 = vmatpush1.bf16.msra.mxu1 %v2099_v32  ;;  %v275_v32 = vld [vmem:[%s4604_s7 + $0x148] sm:$0xff] }
  0x95   :  { %2102 = vmatprep.subr.bf16.mxu1 %v2101_v34  ;;  %v277_v34 = vld [vmem:[%s4604_s7 + $0x158] sm:$0xff] }
  0x96   :  { %v2141_v36 = vpack.c.bf16 %v277_v34, %v275_v32  ;;  %v310_v32 = vld [vmem:[%s4604_s7 + $0x260] sm:$0xff]  ;;  %v312_v34 = vld [vmem:[%s4604_s7 + $0x270] sm:$0xff] }
  0x97   :  { %1033 = vmatmul.mubr.f32.vlgmr.msra.gmra.mrb[0].mxu1 %v2828_v51  ;;  %v249_v51 = vld [vmem:[%s4604_s7 + $0x78] sm:$0xff] }
  0x98   :  { %2104 = vmatpush1.bf16.msra.mxu1 %v2103_v40  ;;  %1191 = vmatprep.mubr.f32.mxu1 %v1058_v41  ;;  %v2113_v57 = vpack.c.bf16 %v249_v51, %v247_v55  ;;  %v279_v40 = vld [vmem:[%s4604_s7 + $0x168] sm:$0xff]  ;;  %v281_v41 = vld [vmem:[%s4604_s7 + $0x178] sm:$0xff]  ;;  %v284_v55 = vld [vmem:[%s4604_s7 + $0x190] sm:$0xff] }
  0x99   :  { %2106 = vmatprep.subr.bf16.mxu1 %v2105_v42  ;;  %v2143_v42 = vpack.c.bf16 %v276_v39, %v274_v37  ;;  %v2145_v43 = vpack.c.bf16 %v281_v41, %v279_v40  ;;  %v287_v51 = vld [vmem:[%s4604_s7 + $0x1a8] sm:$0xff]  ;;  %v2179_v39 = vpack.c.bf16 %v312_v34, %v310_v32  ;;  %v314_v41 = vld [vmem:[%s4604_s7 + $0x280] sm:$0xff] }
  0x9a   :  { %v3114_v37 = vld [vmem:[%s4597_s0 + $0x8] sm:$0xff]  ;;  %v438_v34 = vld [vmem:[%s4604_s7 + $0x660] sm:$0xff] }
  0x9c   :  { %2108 = vmatpush1.bf16.msra.mxu1 %v2107_v48  ;;  %v285_v48 = vld [vmem:[%s4604_s7 + $0x198] sm:$0xff] }
  0x9d   :  { %2110 = vmatprep.subr.bf16.mxu1 %v2109_v49  ;;  %v2147_v49 = vpack.c.bf16 %v280_v46, %v278_v44  ;;  %v2149_v52 = vpack.c.bf16 %v285_v48, %v283_v47  ;;  %v321_v44 = vld [vmem:[%s4604_s7 + $0x2b8] sm:$0xff]  ;;  %v1060_v46 = vcombine.high %v3114_v37, %v3114_v37 }
  0xa0   :  { %2112 = vmatpush1.bf16.msra.mxu1 %v2111_v56  ;;  %v289_v56 = vld [vmem:[%s4604_s7 + $0x1b8] sm:$0xff] }
  0xa1   :  { %2114 = vmatprep.subr.bf16.mxu1 %v2113_v57  ;;  %v2151_v57 = vpack.c.bf16 %v284_v55, %v282_v54  ;;  %v2153_v58 = vpack.c.bf16 %v289_v56, %v287_v51  ;;  %v1911_v54 = vld [vmem:[%s4601_s4] ss:$0 sm:$0xff]  ;;  %v323_v55 = vld [vmem:[%s4604_s7 + $0x2c8] sm:$0xff]  ;;  %v325_v51 = vld [vmem:[%s4604_s7 + $0x2d8] sm:$0xff]  ;;  %v3146_v56 = vrot.slane %v1060_v46, %v2812_v45 }
  0xa2   :  { %v339_v46 = vld [vmem:[%s4604_s7 + $0x348] sm:$0xff] }
  0xa4   :  { %2116 = vmatpush1.bf16.msra.mxu1 %v2115_v61  ;;  %v293_v61 = vld [vmem:[%s4604_s7 + $0x1d8] sm:$0xff] }
  0xa5   :  { %2118 = vmatprep.subr.bf16.mxu1 %v2117_v62  ;;  %v2155_v62 = vpack.c.bf16 %v288_v59, %v286_v50  ;;  %v2157_v63 = vpack.c.bf16 %v293_v61, %v291_v60  ;;  %v431_v60 = vld [vmem:[%s4604_s7 + $0x628] sm:$0xff]  ;;  %v433_v61 = vld [vmem:[%s4604_s7 + $0x638] sm:$0xff] }
  0xa6   :  { %v2297_v9 = vpack.c.bf16 %v433_v61, %v431_v60  ;;  %v343_v60 = vld [vmem:[%s4604_s7 + $0x368] sm:$0xff]  ;;  %v345_v61 = vld [vmem:[%s4604_s7 + $0x378] sm:$0xff] }
  0xa8   :  { %2120 = vmatpush1.bf16.msra.mxu1 %v2119_v4  ;;  %v297_v4 = vld [vmem:[%s4604_s7 + $0x1f8] sm:$0xff] }
  0xa9   :  { %2122 = vmatprep.subr.bf16.mxu1 %v2121_v5  ;;  %v2159_v5 = vpack.c.bf16 %v292_v2, %v290_v1  ;;  %v2161_v7 = vpack.c.bf16 %v297_v4, %v295_v3  ;;  %v2189_v1 = vpack.c.bf16 %v325_v51, %v323_v55  ;;  %v322_v2 = vld [vmem:[%s4604_s7 + $0x2c0] sm:$0xff]  ;;  %v324_v3 = vld [vmem:[%s4604_s7 + $0x2d0] sm:$0xff]  ;;  %v447_v55 = vld [vmem:[%s4604_s7 + $0x6a8] sm:$0xff] }
  0xaa   :  { %v449_v51 = vld [vmem:[%s4604_s7 + $0x6b8] sm:$0xff] }
  0xac   :  { %2124 = vmatpush1.bf16.msra.mxu1 %v2123_v10  ;;  %v299_v10 = vld [vmem:[%s4604_s7 + $0x208] sm:$0xff] }
  0xad   :  { %2126 = vmatprep.subr.bf16.mxu1 %v2125_v11  ;;  %v301_v11 = vld [vmem:[%s4604_s7 + $0x218] sm:$0xff] }
  0xae   :  { %v2165_v13 = vpack.c.bf16 %v301_v11, %v299_v10  ;;  %v430_v10 = vld [vmem:[%s4604_s7 + $0x620] sm:$0xff]  ;;  %v432_v11 = vld [vmem:[%s4604_s7 + $0x630] sm:$0xff] }
  0xb0   :  { %2128 = vmatpush1.bf16.msra.mxu1 %v2127_v15  ;;  %v303_v15 = vld [vmem:[%s4604_s7 + $0x228] sm:$0xff] }
  0xb1   :  { %2130 = vmatprep.subr.bf16.mxu1 %v2129_v16  ;;  %v305_v16 = vld [vmem:[%s4604_s7 + $0x238] sm:$0xff] }
  0xb2   :  { %v2169_v19 = vpack.c.bf16 %v305_v16, %v303_v15  ;;  %v326_v15 = vld [vmem:[%s4604_s7 + $0x2e0] sm:$0xff]  ;;  %v328_v16 = vld [vmem:[%s4604_s7 + $0x2f0] sm:$0xff] }
  0xb4   :  { %2132 = vmatpush1.bf16.msra.mxu1 %v2131_v21  ;;  %v304_v21 = vld [vmem:[%s4604_s7 + $0x230] sm:$0xff] }
  0xb5   :  { %2134 = vmatprep.subr.bf16.mxu1 %v2133_v22  ;;  %v307_v22 = vld [vmem:[%s4604_s7 + $0x248] sm:$0xff]  ;;  %v2171_v24 = vpack.c.bf16 %v304_v21, %v302_v20  ;;  %v434_v21 = vld [vmem:[%s4604_s7 + $0x640] sm:$0xff] }
  0xb6   :  { %v2173_v25 = vpack.c.bf16 %v309_v23, %v307_v22  ;;  %v436_v22 = vld [vmem:[%s4604_s7 + $0x650] sm:$0xff]  ;;  %v2195_v23 = vpack.c.bf16 %v328_v16, %v326_v15  ;;  %v457_v15 = vld [vmem:[%s4604_s7 + $0x6f8] sm:$0xff] }
  0xb8   :  { %2136 = vmatpush1.bf16.msra.mxu1 %v2135_v27  ;;  %v308_v27 = vld [vmem:[%s4604_s7 + $0x250] sm:$0xff] }
  0xb9   :  { %2138 = vmatprep.subr.bf16.mxu1 %v2137_v28  ;;  %v311_v28 = vld [vmem:[%s4604_s7 + $0x268] sm:$0xff]  ;;  %v2175_v30 = vpack.c.bf16 %v308_v27, %v306_v26  ;;  %v330_v27 = vld [vmem:[%s4604_s7 + $0x300] sm:$0xff] }
  0xbc   :  { %2140 = vmatpush1.bf16.msra.mxu1 %v2139_v35  ;;  %v315_v35 = vld [vmem:[%s4604_s7 + $0x288] sm:$0xff] }
  0xbd   :  { %2142 = vmatprep.subr.bf16.mxu1 %v2141_v36  ;;  %v317_v36 = vld [vmem:[%s4604_s7 + $0x298] sm:$0xff] }
  0xbe   :  { %v2181_v40 = vpack.c.bf16 %v317_v36, %v315_v35  ;;  %v440_v35 = vld [vmem:[%s4604_s7 + $0x670] sm:$0xff] }
  0xc0   :  { %2144 = vmatpush1.bf16.msra.mxu1 %v2143_v42  ;;  %v316_v42 = vld [vmem:[%s4604_s7 + $0x290] sm:$0xff] }
  0xc1   :  { %2146 = vmatprep.subr.bf16.mxu1 %v2145_v43  ;;  %v319_v43 = vld [vmem:[%s4604_s7 + $0x2a8] sm:$0xff]  ;;  %v2183_v47 = vpack.c.bf16 %v316_v42, %v314_v41  ;;  %v334_v42 = vld [vmem:[%s4604_s7 + $0x320] sm:$0xff] }
  0xc2   :  { %v2185_v48 = vpack.c.bf16 %v321_v44, %v319_v43  ;;  %v336_v43 = vld [vmem:[%s4604_s7 + $0x330] sm:$0xff]  ;;  %v2307_v44 = vpack.c.bf16 %v440_v35, %v438_v34  ;;  %v357_v34 = vld [vmem:[%s4604_s7 + $0x3d8] sm:$0xff] }
  0xc4   :  { %2148 = vmatpush1.bf16.msra.mxu1 %v2147_v49  ;;  %v318_v49 = vld [vmem:[%s4604_s7 + $0x2a0] sm:$0xff] }
  0xc5   :  { %2150 = vmatprep.subr.bf16.mxu1 %v2149_v52  ;;  %v320_v52 = vld [vmem:[%s4604_s7 + $0x2b0] sm:$0xff] }
  0xc6   :  { %v2187_v59 = vpack.c.bf16 %v320_v52, %v318_v49  ;;  %v442_v49 = vld [vmem:[%s4604_s7 + $0x680] sm:$0xff]  ;;  %v444_v52 = vld [vmem:[%s4604_s7 + $0x690] sm:$0xff] }
  0xc8   :  { %2152 = vmatpush1.bf16.msra.mxu1 %v2151_v57  ;;  %v426_v57 = vld [vmem:[%s4604_s7 + $0x600] sm:$0xff] }
  0xc9   :  { %2154 = vmatprep.subr.bf16.mxu1 %v2153_v58  ;;  %v428_v58 = vld [vmem:[%s4604_s7 + $0x610] sm:$0xff] }
  0xca   :  { %v2295_v4 = vpack.c.bf16 %v428_v58, %v426_v57  ;;  %v338_v58 = vld [vmem:[%s4604_s7 + $0x340] sm:$0xff] }
  0xcc   :  { %2156 = vmatpush1.bf16.msra.mxu1 %v2155_v62 }
  0xcd   :  { %2158 = vmatprep.subr.bf16.mxu1 %v2157_v63 }
  0xd0   :  { %2160 = vmatpush1.bf16.msra.mxu1 %v2159_v5  ;;  %v327_v5 = vld [vmem:[%s4604_s7 + $0x2e8] sm:$0xff] }
  0xd1   :  { %2162 = vmatprep.subr.bf16.mxu1 %v2161_v7  ;;  %v1076_v7 = vcombine.high %v3146_v56, %v3146_v56  ;;  %v2193_v14 = vpack.c.bf16 %v329_v6, %v327_v5  ;;  %v2209_v5 = vpack.c.bf16 %v345_v61, %v343_v60  ;;  %v342_v6 = vld [vmem:[%s4604_s7 + $0x360] sm:$0xff]  ;;  %v360_v60 = vld [vmem:[%s4604_s7 + $0x3f0] sm:$0xff] }
  0xd4   :  { %2164 = vmatpush1.bf16.msra.mxu1 %v2163_v29  ;;  %v2191_v29 = vpack.c.bf16 %v324_v3, %v322_v2  ;;  %v451_v3 = vld [vmem:[%s4604_s7 + $0x6c8] sm:$0xff] }
  0xd5   :  { %2166 = vmatprep.subr.bf16.mxu1 %v2165_v13  ;;  %v435_v13 = vld [vmem:[%s4604_s7 + $0x648] sm:$0xff] }
  0xd6   :  { %v2301_v20 = vpack.c.bf16 %v437_v53, %v435_v13  ;;  %v452_v13 = vld [vmem:[%s4604_s7 + $0x6d0] sm:$0xff] }
  0xd7   :  { %1192 = vmatmul.mubr.f32.vlgmr.msra.gmra.mrb[0].mxu1 %v2858_v33  ;;  %v313_v33 = vld [vmem:[%s4604_s7 + $0x278] sm:$0xff] }
  0xd8   :  { %2168 = vmatpush1.bf16.msra.mxu1 %v2167_v17  ;;  %1262 = vmatprep.mubr.f32.mxu1 %v1059_v18  ;;  %v2177_v31 = vpack.c.bf16 %v313_v33, %v311_v28  ;;  %v2299_v17 = vpack.c.bf16 %v432_v11, %v430_v10  ;;  %v331_v18 = vld [vmem:[%s4604_s7 + $0x308] sm:$0xff]  ;;  %v332_v28 = vld [vmem:[%s4604_s7 + $0x310] sm:$0xff]  ;;  %v2303_v33 = vpack.c.bf16 %v436_v22, %v434_v21  ;;  %v349_v10 = vld [vmem:[%s4604_s7 + $0x398] sm:$0xff] }
  0xd9   :  { %2170 = vmatprep.subr.bf16.mxu1 %v2169_v19  ;;  %v333_v19 = vld [vmem:[%s4604_s7 + $0x318] sm:$0xff]  ;;  %v2199_v36 = vpack.c.bf16 %v332_v28, %v330_v27 }
  0xda   :  { %v2197_v26 = vpack.c.bf16 %v333_v19, %v331_v18  ;;  %v348_v18 = vld [vmem:[%s4604_s7 + $0x390] sm:$0xff]  ;;  %v353_v21 = vld [vmem:[%s4604_s7 + $0x3b8] sm:$0xff] }
  0xdb   :  { %v461_v27 = vld [vmem:[%s4604_s7 + $0x718] sm:$0xff] }
  0xdc   :  { %2172 = vmatpush1.bf16.msra.mxu1 %v2171_v24  ;;  %v439_v24 = vld [vmem:[%s4604_s7 + $0x668] sm:$0xff] }
  0xdd   :  { %2174 = vmatprep.subr.bf16.mxu1 %v2173_v25  ;;  %v441_v25 = vld [vmem:[%s4604_s7 + $0x678] sm:$0xff] }
  0xde   :  { %v2305_v32 = vpack.c.bf16 %v441_v25, %v439_v24  ;;  %v456_v24 = vld [vmem:[%s4604_s7 + $0x6f0] sm:$0xff] }
  0xe0   :  { %2176 = vmatpush1.bf16.msra.mxu1 %v2175_v30  ;;  %v335_v30 = vld [vmem:[%s4604_s7 + $0x328] sm:$0xff] }
  0xe1   :  { %2178 = vmatprep.subr.bf16.mxu1 %v2177_v31  ;;  %v337_v31 = vld [vmem:[%s4604_s7 + $0x338] sm:$0xff] }
  0xe2   :  { %v2201_v41 = vpack.c.bf16 %v337_v31, %v335_v30  ;;  %v352_v30 = vld [vmem:[%s4604_s7 + $0x3b0] sm:$0xff] }
  0xe4   :  { %2180 = vmatpush1.bf16.msra.mxu1 %v2179_v39  ;;  %v443_v39 = vld [vmem:[%s4604_s7 + $0x688] sm:$0xff] }
  0xe5   :  { %2182 = vmatprep.subr.bf16.mxu1 %v2181_v40  ;;  %v445_v40 = vld [vmem:[%s4604_s7 + $0x698] sm:$0xff] }
  0xe8   :  { %2184 = vmatpush1.bf16.msra.mxu1 %v2183_v47  ;;  %v141_v50 = vpop.f32.mrb[0].mxu0  ;;  %v341_v47 = vld [vmem:[%s4604_s7 + $0x358] sm:$0xff] }
  0xe9   :  { %v142_v62 = vadd.f32 %v1911_v54, %v141_v50  ;;  %v1962_v63 = vpop.f32.mrb[1].mxu0  ;;  %2186 = vmatprep.subr.bf16.mxu1 %v2185_v48  ;;  %v2309_v48 = vpack.c.bf16 %v445_v40, %v443_v39  ;;  %v2203_v54 = vpack.c.bf16 %v336_v43, %v334_v42  ;;  %v2205_v57 = vpack.c.bf16 %v341_v47, %v339_v46  ;;  %v340_v50 = vld [vmem:[%s4604_s7 + $0x350] sm:$0xff]  ;;  %v465_v42 = vld [vmem:[%s4604_s7 + $0x738] sm:$0xff] }
  0xea   :  { %v446_v63 = vld [vmem:[%s4604_s7 + $0x6a0] sm:$0xff]  ;;  %v2207_v2 = vpack.c.bf16 %v340_v50, %v338_v58  ;;  %v460_v39 = vld [vmem:[%s4604_s7 + $0x710] sm:$0xff]  ;;  %v469_v58 = vld [vmem:[%s4604_s7 + $0x758] sm:$0xff] }
  0xeb   :  { %v145_v8 = vmax.f32 %v142_v62, 0.0  ;;  %v2313_v62 = vpack.c.bf16 %v449_v51, %v447_v55  ;;  %v356_v46 = vld [vmem:[%s4604_s7 + $0x3d0] sm:$0xff] }
  0xec   :  { %2188 = vmatpush1.bf16.msra.mxu1 %v2187_v59  ;;  %v2311_v59 = vpack.c.bf16 %v444_v52, %v442_v49  ;;  %v361_v49 = vld [vmem:[%s4604_s7 + $0x3f8] sm:$0xff]  ;;  %v464_v55 = vld [vmem:[%s4604_s7 + $0x730] sm:$0xff] }
  0xed   :  { %1968 = vmatmul.mubr.msk.f32.vlgmr.msra.gmra.mrb[2].mxu0 %vm155_vm3, %v145_v8  ;;  %2190 = vmatprep.subr.bf16.mxu1 %v2189_v1  ;;  %v448_v1 = vld [vmem:[%s4604_s7 + $0x6b0] sm:$0xff] }
  0xee   :  { %2296 = vmatpush1.bf16.msra.mxu0 %v2295_v4  ;;  %1404 = vmatprep.mubr.f32.mxu0 %v1076_v7  ;;  %v453_v4 = vld [vmem:[%s4604_s7 + $0x6d8] sm:$0xff]  ;;  %v344_v7 = vld [vmem:[%s4604_s7 + $0x370] sm:$0xff]  ;;  %v2315_v8 = vpack.c.bf16 %v448_v1, %v446_v63 }
  0xef   :  { %2298 = vmatprep.subr.bf16.mxu0 %v2297_v9  ;;  %v347_v9 = vld [vmem:[%s4604_s7 + $0x388] sm:$0xff]  ;;  %v2317_v11 = vpack.c.bf16 %v453_v4, %v451_v3  ;;  %v2211_v53 = vpack.c.bf16 %v344_v7, %v342_v6  ;;  %v365_v63 = vld [vmem:[%s4604_s7 + $0x418] sm:$0xff]  ;;  %v468_v3 = vld [vmem:[%s4604_s7 + $0x750] sm:$0xff]  ;;  %v3404_v7 = vrot.slane %v3114_v37, %v2812_v45 }
  0xf0   :  { %2192 = vmatpush1.bf16.msra.mxu1 %v2191_v29  ;;  %v450_v29 = vld [vmem:[%s4604_s7 + $0x6c0] sm:$0xff]  ;;  %v2213_v16 = vpack.c.bf16 %v349_v10, %v347_v9  ;;  %v473_v6 = vld [vmem:[%s4604_s7 + $0x778] sm:$0xff]  ;;  %v364_v10 = vld [vmem:[%s4604_s7 + $0x410] sm:$0xff] }
  0xf1   :  { %2194 = vmatprep.subr.bf16.mxu1 %v2193_v14  ;;  %v455_v14 = vld [vmem:[%s4604_s7 + $0x6e8] sm:$0xff]  ;;  %v2319_v19 = vpack.c.bf16 %v452_v13, %v450_v29  ;;  %v362_v9 = vld [vmem:[%s4604_s7 + $0x400] sm:$0xff]  ;;  %v369_v37 = vld [vmem:[%s4604_s7 + $0x438] sm:$0xff] }
  0xf2   :  { %2300 = vmatpush1.bf16.msra.mxu0 %v2299_v17  ;;  %v346_v17 = vld [vmem:[%s4604_s7 + $0x380] sm:$0xff]  ;;  %v2321_v22 = vpack.c.bf16 %v457_v15, %v455_v14  ;;  %v367_v29 = vld [vmem:[%s4604_s7 + $0x428] sm:$0xff]  ;;  %v472_v14 = vld [vmem:[%s4604_s7 + $0x770] sm:$0xff]  ;;  %v2231_v15 = vpack.c.bf16 %v364_v10, %v362_v9 }
  0xf3   :  { %2302 = vmatprep.subr.bf16.mxu0 %v2301_v20  ;;  %v351_v20 = vld [vmem:[%s4604_s7 + $0x3a8] sm:$0xff]  ;;  %v2215_v25 = vpack.c.bf16 %v348_v18, %v346_v17  ;;  %v477_v17 = vld [vmem:[%s4604_s7 + $0x798] sm:$0xff]  ;;  %v1075_v18 = vcombine.high %v3404_v7, %v3404_v7 }
  0xf4   :  { %2196 = vmatpush1.bf16.msra.mxu1 %v2195_v23  ;;  %v454_v23 = vld [vmem:[%s4604_s7 + $0x6e0] sm:$0xff]  ;;  %v2217_v28 = vpack.c.bf16 %v353_v21, %v351_v20  ;;  %v368_v21 = vld [vmem:[%s4604_s7 + $0x430] sm:$0xff]  ;;  %v491_v9 = vld [vmem:[%s4604_s7 + $0x808] sm:$0xff] }
  0xf5   :  { %2198 = vmatprep.subr.bf16.mxu1 %v2197_v26  ;;  %v459_v26 = vld [vmem:[%s4604_s7 + $0x708] sm:$0xff]  ;;  %v2323_v31 = vpack.c.bf16 %v456_v24, %v454_v23  ;;  %v366_v20 = vld [vmem:[%s4604_s7 + $0x420] sm:$0xff]  ;;  %v373_v24 = vld [vmem:[%s4604_s7 + $0x458] sm:$0xff] }
  0xf6   :  { %2304 = vmatpush1.bf16.msra.mxu0 %v2303_v33  ;;  %v350_v33 = vld [vmem:[%s4604_s7 + $0x3a0] sm:$0xff]  ;;  %v2325_v35 = vpack.c.bf16 %v461_v27, %v459_v26  ;;  %v371_v23 = vld [vmem:[%s4604_s7 + $0x448] sm:$0xff]  ;;  %v476_v27 = vld [vmem:[%s4604_s7 + $0x790] sm:$0xff] }
  0xf7   :  { %2306 = vmatprep.subr.bf16.mxu0 %v2305_v32  ;;  %v355_v32 = vld [vmem:[%s4604_s7 + $0x3c8] sm:$0xff]  ;;  %v2219_v40 = vpack.c.bf16 %v352_v30, %v350_v33  ;;  %v474_v26 = vld [vmem:[%s4604_s7 + $0x780] sm:$0xff]  ;;  %v2237_v30 = vpack.c.bf16 %v373_v24, %v371_v23  ;;  %v493_v10 = vld [vmem:[%s4604_s7 + $0x818] sm:$0xff] }
  0xf8   :  { %2200 = vmatpush1.bf16.msra.mxu1 %v2199_v36  ;;  %v458_v36 = vld [vmem:[%s4604_s7 + $0x700] sm:$0xff]  ;;  %v2221_v43 = vpack.c.bf16 %v357_v34, %v355_v32  ;;  %v479_v33 = vld [vmem:[%s4604_s7 + $0x7a8] sm:$0xff]  ;;  %v372_v32 = vld [vmem:[%s4604_s7 + $0x450] sm:$0xff]  ;;  %v2343_v34 = vpack.c.bf16 %v476_v27, %v474_v26 }
  0xf9   :  { %2202 = vmatprep.subr.bf16.mxu1 %v2201_v41  ;;  %v463_v41 = vld [vmem:[%s4604_s7 + $0x728] sm:$0xff]  ;;  %v2327_v47 = vpack.c.bf16 %v460_v39, %v458_v36  ;;  %v377_v36 = vld [vmem:[%s4604_s7 + $0x478] sm:$0xff]  ;;  %v386_v23 = vld [vmem:[%s4604_s7 + $0x4c0] sm:$0xff] }
  0xfa   :  { %2308 = vmatpush1.bf16.msra.mxu0 %v2307_v44  ;;  %v354_v44 = vld [vmem:[%s4604_s7 + $0x3c0] sm:$0xff]  ;;  %v2329_v52 = vpack.c.bf16 %v465_v42, %v463_v41  ;;  %v480_v41 = vld [vmem:[%s4604_s7 + $0x7b0] sm:$0xff]  ;;  %v391_v26 = vld [vmem:[%s4604_s7 + $0x4e8] sm:$0xff] }
  0xfb   :  { %2310 = vmatprep.subr.bf16.mxu0 %v2309_v48  ;;  %v359_v48 = vld [vmem:[%s4604_s7 + $0x3e8] sm:$0xff]  ;;  %v2223_v51 = vpack.c.bf16 %v356_v46, %v354_v44  ;;  %v485_v44 = vld [vmem:[%s4604_s7 + $0x7d8] sm:$0xff]  ;;  %v388_v24 = vld [vmem:[%s4604_s7 + $0x4d0] sm:$0xff] }
  0xfc   :  { %2204 = vmatpush1.bf16.msra.mxu1 %v2203_v54  ;;  %v462_v54 = vld [vmem:[%s4604_s7 + $0x720] sm:$0xff]  ;;  %v2225_v50 = vpack.c.bf16 %v361_v49, %v359_v48  ;;  %v376_v48 = vld [vmem:[%s4604_s7 + $0x470] sm:$0xff]  ;;  %v393_v27 = vld [vmem:[%s4604_s7 + $0x4f8] sm:$0xff] }
  0xfd   :  { %2206 = vmatprep.subr.bf16.mxu1 %v2205_v57  ;;  %v467_v57 = vld [vmem:[%s4604_s7 + $0x748] sm:$0xff]  ;;  %v2331_v61 = vpack.c.bf16 %v464_v55, %v462_v54  ;;  %v381_v54 = vld [vmem:[%s4604_s7 + $0x498] sm:$0xff] }
  0xfe   :  { %2312 = vmatpush1.bf16.msra.mxu0 %v2311_v59  ;;  %v358_v59 = vld [vmem:[%s4604_s7 + $0x3e0] sm:$0xff]  ;;  %v2333_v1 = vpack.c.bf16 %v469_v58, %v467_v57  ;;  %v484_v57 = vld [vmem:[%s4604_s7 + $0x7d0] sm:$0xff] }
  0xff   :  { %2314 = vmatprep.subr.bf16.mxu0 %v2313_v62  ;;  %v363_v62 = vld [vmem:[%s4604_s7 + $0x408] sm:$0xff]  ;;  %v2227_v4 = vpack.c.bf16 %v360_v60, %v358_v59  ;;  %v489_v59 = vld [vmem:[%s4604_s7 + $0x7f8] sm:$0xff] }
 0x100   :  { %2208 = vmatpush1.bf16.msra.mxu1 %v2207_v2  ;;  %v466_v2 = vld [vmem:[%s4604_s7 + $0x740] sm:$0xff] }
 0x101   :  { %2210 = vmatprep.subr.bf16.mxu1 %v2209_v5  ;;  %v471_v5 = vld [vmem:[%s4604_s7 + $0x768] sm:$0xff] }
 0x102   :  { %2316 = vmatpush1.bf16.msra.mxu0 %v2315_v8  ;;  %v2229_v8 = vpack.c.bf16 %v365_v63, %v363_v62  ;;  %v2337_v13 = vpack.c.bf16 %v473_v6, %v471_v5  ;;  %v380_v62 = vld [vmem:[%s4604_s7 + $0x490] sm:$0xff] }
 0x103   :  { %2318 = vmatprep.subr.bf16.mxu0 %v2317_v11  ;;  %v2335_v11 = vpack.c.bf16 %v468_v3, %v466_v2  ;;  %v385_v2 = vld [vmem:[%s4604_s7 + $0x4b8] sm:$0xff]  ;;  %v488_v5 = vld [vmem:[%s4604_s7 + $0x7f0] sm:$0xff] }
 0x104   :  { %2212 = vmatpush1.bf16.msra.mxu1 %v2211_v53  ;;  %v470_v53 = vld [vmem:[%s4604_s7 + $0x760] sm:$0xff]  ;;  %v3526_v6 = vld [vmem:[%s4597_s0 + $0x10] sm:$0xff] }
 0x105   :  { %2214 = vmatprep.subr.bf16.mxu1 %v2213_v16  ;;  %v475_v16 = vld [vmem:[%s4604_s7 + $0x788] sm:$0xff] }
 0x106   :  { %2320 = vmatpush1.bf16.msra.mxu0 %v2319_v19  ;;  %v2233_v19 = vpack.c.bf16 %v369_v37, %v367_v29  ;;  %v382_v29 = vld [vmem:[%s4604_s7 + $0x4a0] sm:$0xff]  ;;  %v384_v37 = vld [vmem:[%s4604_s7 + $0x4b0] sm:$0xff] }
 0x107   :  { %2322 = vmatprep.subr.bf16.mxu0 %v2321_v22  ;;  %v2339_v22 = vpack.c.bf16 %v472_v14, %v470_v53  ;;  %v387_v53 = vld [vmem:[%s4604_s7 + $0x4c8] sm:$0xff]  ;;  %v389_v14 = vld [vmem:[%s4604_s7 + $0x4d8] sm:$0xff] }
 0x108   :  { %2216 = vmatpush1.bf16.msra.mxu1 %v2215_v25  ;;  %v2341_v25 = vpack.c.bf16 %v477_v17, %v475_v16  ;;  %v2357_v16 = vpack.c.bf16 %v493_v10, %v491_v9  ;;  %v490_v17 = vld [vmem:[%s4604_s7 + $0x800] sm:$0xff]  ;;  %v508_v10 = vld [vmem:[%s4604_s7 + $0x890] sm:$0xff] }
 0x109   :  { %2218 = vmatprep.subr.bf16.mxu1 %v2217_v28  ;;  %v2235_v28 = vpack.c.bf16 %v368_v21, %v366_v20  ;;  %v495_v20 = vld [vmem:[%s4604_s7 + $0x828] sm:$0xff]  ;;  %v497_v21 = vld [vmem:[%s4604_s7 + $0x838] sm:$0xff]  ;;  %v506_v9 = vld [vmem:[%s4604_s7 + $0x880] sm:$0xff] }
 0x10a   :  { %2324 = vmatpush1.bf16.msra.mxu0 %v2323_v31  ;;  %v370_v31 = vld [vmem:[%s4604_s7 + $0x440] sm:$0xff] }
 0x10b   :  { %2326 = vmatprep.subr.bf16.mxu0 %v2325_v35  ;;  %v375_v35 = vld [vmem:[%s4604_s7 + $0x468] sm:$0xff]  ;;  %v2239_v42 = vpack.c.bf16 %v372_v32, %v370_v31  ;;  %v2255_v31 = vpack.c.bf16 %v388_v24, %v386_v23  ;;  %v517_v24 = vld [vmem:[%s4604_s7 + $0x8d8] sm:$0xff] }
 0x10c   :  { %2220 = vmatpush1.bf16.msra.mxu1 %v2219_v40  ;;  %v478_v40 = vld [vmem:[%s4604_s7 + $0x7a0] sm:$0xff]  ;;  %v2241_v46 = vpack.c.bf16 %v377_v36, %v375_v35  ;;  %v499_v32 = vld [vmem:[%s4604_s7 + $0x848] sm:$0xff]  ;;  %v2257_v35 = vpack.c.bf16 %v393_v27, %v391_v26  ;;  %v408_v27 = vld [vmem:[%s4604_s7 + $0x570] sm:$0xff] }
 0x10d   :  { %2222 = vmatprep.subr.bf16.mxu1 %v2221_v43  ;;  %v483_v43 = vld [vmem:[%s4604_s7 + $0x7c8] sm:$0xff]  ;;  %v2347_v49 = vpack.c.bf16 %v480_v41, %v478_v40  ;;  %v390_v36 = vld [vmem:[%s4604_s7 + $0x4e0] sm:$0xff] }
 0x10e   :  { %2328 = vmatpush1.bf16.msra.mxu0 %v2327_v47  ;;  %v374_v47 = vld [vmem:[%s4604_s7 + $0x460] sm:$0xff]  ;;  %v2349_v55 = vpack.c.bf16 %v485_v44, %v483_v43  ;;  %v395_v41 = vld [vmem:[%s4604_s7 + $0x508] sm:$0xff]  ;;  %v500_v44 = vld [vmem:[%s4604_s7 + $0x850] sm:$0xff] }
 0x10f   :  { %2330 = vmatprep.subr.bf16.mxu0 %v2329_v52  ;;  %v379_v52 = vld [vmem:[%s4604_s7 + $0x488] sm:$0xff]  ;;  %v2243_v58 = vpack.c.bf16 %v376_v48, %v374_v47  ;;  %v498_v43 = vld [vmem:[%s4604_s7 + $0x840] sm:$0xff]  ;;  %v505_v48 = vld [vmem:[%s4604_s7 + $0x878] sm:$0xff] }
 0x110   :  { %2224 = vmatpush1.bf16.msra.mxu1 %v2223_v51  ;;  %v482_v51 = vld [vmem:[%s4604_s7 + $0x7c0] sm:$0xff]  ;;  %v2245_v60 = vpack.c.bf16 %v381_v54, %v379_v52  ;;  %v503_v47 = vld [vmem:[%s4604_s7 + $0x868] sm:$0xff]  ;;  %v396_v54 = vld [vmem:[%s4604_s7 + $0x510] sm:$0xff] }
 0x111   :  { %2226 = vmatprep.subr.bf16.mxu1 %v2225_v50  ;;  %v487_v50 = vld [vmem:[%s4604_s7 + $0x7e8] sm:$0xff]  ;;  %v2351_v63 = vpack.c.bf16 %v484_v57, %v482_v51  ;;  %v394_v52 = vld [vmem:[%s4604_s7 + $0x500] sm:$0xff]  ;;  %v401_v57 = vld [vmem:[%s4604_s7 + $0x538] sm:$0xff] }
 0x112   :  { %2332 = vmatpush1.bf16.msra.mxu0 %v2331_v61  ;;  %v378_v61 = vld [vmem:[%s4604_s7 + $0x480] sm:$0xff]  ;;  %v2353_v3 = vpack.c.bf16 %v489_v59, %v487_v50  ;;  %v399_v51 = vld [vmem:[%s4604_s7 + $0x528] sm:$0xff]  ;;  %v504_v59 = vld [vmem:[%s4604_s7 + $0x870] sm:$0xff] }
 0x113   :  { %2334 = vmatprep.subr.bf16.mxu0 %v2333_v1  ;;  %v383_v1 = vld [vmem:[%s4604_s7 + $0x4a8] sm:$0xff]  ;;  %v502_v50 = vld [vmem:[%s4604_s7 + $0x860] sm:$0xff] }
 0x114   :  { %2228 = vmatpush1.bf16.msra.mxu1 %v2227_v4  ;;  %v486_v4 = vld [vmem:[%s4604_s7 + $0x7e0] sm:$0xff]  ;;  %v515_v23 = vld [vmem:[%s4604_s7 + $0x8c8] sm:$0xff] }
 0x115   :  { %2230 = vmatprep.subr.bf16.mxu1 %v2229_v8  ;;  %v2247_v8 = vpack.c.bf16 %v380_v62, %v378_v61  ;;  %v507_v61 = vld [vmem:[%s4604_s7 + $0x888] sm:$0xff]  ;;  %v509_v62 = vld [vmem:[%s4604_s7 + $0x898] sm:$0xff]  ;;  %v406_v26 = vld [vmem:[%s4604_s7 + $0x560] sm:$0xff] }
 0x116   :  { %2336 = vmatpush1.bf16.msra.mxu0 %v2335_v11  ;;  %v2249_v11 = vpack.c.bf16 %v385_v2, %v383_v1  ;;  %v398_v1 = vld [vmem:[%s4604_s7 + $0x520] sm:$0xff]  ;;  %v400_v2 = vld [vmem:[%s4604_s7 + $0x530] sm:$0xff] }
 0x117   :  { %1263 = vmatmul.mubr.f32.vlgmr.msra.gmra.mrb[0].mxu1 %v3058_v12  ;;  %2338 = vmatprep.subr.bf16.mxu0 %v2337_v13  ;;  %v481_v12 = vld [vmem:[%s4604_s7 + $0x7b8] sm:$0xff]  ;;  %v2355_v13 = vpack.c.bf16 %v488_v5, %v486_v4  ;;  %v403_v4 = vld [vmem:[%s4604_s7 + $0x548] sm:$0xff] }
 0x118   :  { %2232 = vmatpush1.bf16.msra.mxu1 %v2231_v15  ;;  %1333 = vmatprep.mubr.f32.mxu1 %v1075_v18  ;;  %v2345_v39 = vpack.c.bf16 %v481_v12, %v479_v33  ;;  %v3548_v15 = vrot.slane %v3526_v6, %v2812_v45  ;;  %v492_v18 = vld [vmem:[%s4604_s7 + $0x810] sm:$0xff]  ;;  %v2361_v33 = vpack.c.bf16 %v497_v21, %v495_v20  ;;  %v494_v12 = vld [vmem:[%s4604_s7 + $0x820] sm:$0xff]  ;;  %v405_v5 = vld [vmem:[%s4604_s7 + $0x558] sm:$0xff] }
 0x119   :  { %2234 = vmatprep.subr.bf16.mxu1 %v2233_v19  ;;  %v2251_v19 = vpack.c.bf16 %v384_v37, %v382_v29  ;;  %v511_v29 = vld [vmem:[%s4604_s7 + $0x8a8] sm:$0xff]  ;;  %v513_v37 = vld [vmem:[%s4604_s7 + $0x8b8] sm:$0xff]  ;;  %v510_v20 = vld [vmem:[%s4604_s7 + $0x8a0] sm:$0xff] }
 0x11a   :  { %2340 = vmatpush1.bf16.msra.mxu0 %v2339_v22  ;;  %v2253_v22 = vpack.c.bf16 %v389_v14, %v387_v53  ;;  %v402_v53 = vld [vmem:[%s4604_s7 + $0x540] sm:$0xff]  ;;  %v404_v14 = vld [vmem:[%s4604_s7 + $0x550] sm:$0xff] }
 0x11b   :  { %2342 = vmatprep.subr.bf16.mxu0 %v2341_v25  ;;  %v2359_v25 = vpack.c.bf16 %v492_v18, %v490_v17  ;;  %v407_v17 = vld [vmem:[%s4604_s7 + $0x568] sm:$0xff]  ;;  %v409_v18 = vld [vmem:[%s4604_s7 + $0x578] sm:$0xff]  ;;  %v512_v21 = vld [vmem:[%s4604_s7 + $0x8b0] sm:$0xff] }
 0x11c   :  { %2236 = vmatpush1.bf16.msra.mxu1 %v2235_v28  ;;  %v1092_v28 = vcombine.high %v3548_v15, %v3548_v15 }
 0x11d   :  { %2238 = vmatprep.subr.bf16.mxu1 %v2237_v30  ;;  %v496_v30 = vld [vmem:[%s4604_s7 + $0x830] sm:$0xff] }
 0x11e   :  { %2344 = vmatpush1.bf16.msra.mxu0 %v2343_v34  ;;  %v501_v34 = vld [vmem:[%s4604_s7 + $0x858] sm:$0xff]  ;;  %v2363_v40 = vpack.c.bf16 %v496_v30, %v494_v12  ;;  %v2381_v30 = vpack.c.bf16 %v517_v24, %v515_v23  ;;  %v535_v23 = vld [vmem:[%s4604_s7 + $0x968] sm:$0xff] }
 0x11f   :  { %2346 = vmatprep.subr.bf16.mxu0 %v2345_v39  ;;  %v392_v39 = vld [vmem:[%s4604_s7 + $0x4f0] sm:$0xff]  ;;  %v413_v12 = vld [vmem:[%s4604_s7 + $0x598] sm:$0xff] }
 0x120   :  { %2240 = vmatpush1.bf16.msra.mxu1 %v2239_v42  ;;  %v2365_v42 = vpack.c.bf16 %v501_v34, %v499_v32  ;;  %v516_v32 = vld [vmem:[%s4604_s7 + $0x8d0] sm:$0xff]  ;;  %v2275_v34 = vpack.c.bf16 %v408_v27, %v406_v26  ;;  %v537_v24 = vld [vmem:[%s4604_s7 + $0x978] sm:$0xff]  ;;  %v534_v27 = vld [vmem:[%s4604_s7 + $0x960] sm:$0xff] }
 0x121   :  { %2242 = vmatprep.subr.bf16.mxu1 %v2241_v46  ;;  %v2259_v46 = vpack.c.bf16 %v392_v39, %v390_v36  ;;  %v521_v36 = vld [vmem:[%s4604_s7 + $0x8f8] sm:$0xff]  ;;  %v2401_v26 = vpack.c.bf16 %v537_v24, %v535_v23  ;;  %v570_v23 = vld [vmem:[%s4604_s7 + $0xa80] sm:$0xff]  ;;  %v572_v24 = vld [vmem:[%s4604_s7 + $0xa90] sm:$0xff] }
 0x122   :  { %2348 = vmatpush1.bf16.msra.mxu0 %v2347_v49 }
 0x123   :  { %2350 = vmatprep.subr.bf16.mxu0 %v2349_v55  ;;  %v2367_v55 = vpack.c.bf16 %v500_v44, %v498_v43  ;;  %v417_v43 = vld [vmem:[%s4604_s7 + $0x5b8] sm:$0xff] }
 0x124   :  { %2244 = vmatpush1.bf16.msra.mxu1 %v2243_v58  ;;  %v2369_v58 = vpack.c.bf16 %v505_v48, %v503_v47  ;;  %v520_v47 = vld [vmem:[%s4604_s7 + $0x8f0] sm:$0xff] }
 0x125   :  { %2246 = vmatprep.subr.bf16.mxu1 %v2245_v60  ;;  %v2263_v60 = vpack.c.bf16 %v396_v54, %v394_v52  ;;  %v525_v52 = vld [vmem:[%s4604_s7 + $0x918] sm:$0xff] }
 0x126   :  { %2352 = vmatpush1.bf16.msra.mxu0 %v2351_v63  ;;  %v2265_v63 = vpack.c.bf16 %v401_v57, %v399_v51  ;;  %v416_v51 = vld [vmem:[%s4604_s7 + $0x5b0] sm:$0xff] }
 0x127   :  { %2354 = vmatprep.subr.bf16.mxu0 %v2353_v3  ;;  %v2371_v3 = vpack.c.bf16 %v504_v59, %v502_v50  ;;  %v421_v50 = vld [vmem:[%s4604_s7 + $0x5d8] sm:$0xff] }
 0x128   :  { %2248 = vmatpush1.bf16.msra.mxu1 %v2247_v8  ;;  %v2373_v8 = vpack.c.bf16 %v509_v62, %v507_v61  ;;  %v524_v61 = vld [vmem:[%s4604_s7 + $0x910] sm:$0xff] }
 0x129   :  { %2250 = vmatprep.subr.bf16.mxu1 %v2249_v11  ;;  %v2267_v11 = vpack.c.bf16 %v400_v2, %v398_v1  ;;  %v529_v1 = vld [vmem:[%s4604_s7 + $0x938] sm:$0xff] }
 0x12a   :  { %2356 = vmatpush1.bf16.msra.mxu0 %v2355_v13  ;;  %v2269_v13 = vpack.c.bf16 %v405_v5, %v403_v4  ;;  %v420_v4 = vld [vmem:[%s4604_s7 + $0x5d0] sm:$0xff] }
 0x12b   :  { %2358 = vmatprep.subr.bf16.mxu0 %v2357_v16  ;;  %v2375_v16 = vpack.c.bf16 %v508_v10, %v506_v9  ;;  %v425_v9 = vld [vmem:[%s4604_s7 + $0x5f8] sm:$0xff] }
 0x12c   :  { %2252 = vmatpush1.bf16.msra.mxu1 %v2251_v19  ;;  %v2377_v19 = vpack.c.bf16 %v513_v37, %v511_v29  ;;  %v528_v29 = vld [vmem:[%s4604_s7 + $0x930] sm:$0xff] }
 0x12d   :  { %1405 = vmatmul.mubr.f32.vlgmr.msra.gmra.mrb[4].mxu0 %v3146_v56  ;;  %2254 = vmatprep.subr.bf16.mxu1 %v2253_v22  ;;  %v397_v56 = vld [vmem:[%s4604_s7 + $0x518] sm:$0xff]  ;;  %v2271_v22 = vpack.c.bf16 %v404_v14, %v402_v53 }
 0x12e   :  { %2360 = vmatpush1.bf16.msra.mxu0 %v2359_v25  ;;  %1475 = vmatprep.mubr.f32.mxu0 %v1092_v28  ;;  %v2261_v49 = vpack.c.bf16 %v397_v56, %v395_v41  ;;  %v2273_v25 = vpack.c.bf16 %v409_v18, %v407_v17  ;;  %v2379_v28 = vpack.c.bf16 %v512_v21, %v510_v20  ;;  %v412_v41 = vld [vmem:[%s4604_s7 + $0x590] sm:$0xff]  ;;  %v533_v53 = vld [vmem:[%s4604_s7 + $0x958] sm:$0xff]  ;;  %v530_v20 = vld [vmem:[%s4604_s7 + $0x940] sm:$0xff] }
 0x12f   :  { %2362 = vmatprep.subr.bf16.mxu0 %v2361_v33  ;;  %v411_v33 = vld [vmem:[%s4604_s7 + $0x588] sm:$0xff]  ;;  %v424_v17 = vld [vmem:[%s4604_s7 + $0x5f0] sm:$0xff] }
 0x130   :  { %2256 = vmatpush1.bf16.msra.mxu1 %v2255_v31  ;;  %v514_v31 = vld [vmem:[%s4604_s7 + $0x8c0] sm:$0xff]  ;;  %v2277_v39 = vpack.c.bf16 %v413_v12, %v411_v33  ;;  %v532_v21 = vld [vmem:[%s4604_s7 + $0x950] sm:$0xff]  ;;  %v539_v33 = vld [vmem:[%s4604_s7 + $0x988] sm:$0xff] }
 0x131   :  { %2258 = vmatprep.subr.bf16.mxu1 %v2257_v35  ;;  %v519_v35 = vld [vmem:[%s4604_s7 + $0x8e8] sm:$0xff]  ;;  %v2383_v56 = vpack.c.bf16 %v516_v32, %v514_v31  ;;  %v541_v12 = vld [vmem:[%s4604_s7 + $0x998] sm:$0xff]  ;;  %v538_v32 = vld [vmem:[%s4604_s7 + $0x980] sm:$0xff] }
 0x132   :  { %2364 = vmatpush1.bf16.msra.mxu0 %v2363_v40  ;;  %v410_v40 = vld [vmem:[%s4604_s7 + $0x580] sm:$0xff]  ;;  %v2385_v44 = vpack.c.bf16 %v521_v36, %v519_v35  ;;  %v2405_v31 = vpack.c.bf16 %v541_v12, %v539_v33  ;;  %v543_v35 = vld [vmem:[%s4604_s7 + $0x9a8] sm:$0xff]  ;;  %v545_v36 = vld [vmem:[%s4604_s7 + $0x9b8] sm:$0xff] }
 0x133   :  { %2366 = vmatprep.subr.bf16.mxu0 %v2365_v42  ;;  %v415_v42 = vld [vmem:[%s4604_s7 + $0x5a8] sm:$0xff]  ;;  %v2279_v48 = vpack.c.bf16 %v412_v41, %v410_v40  ;;  %v542_v40 = vld [vmem:[%s4604_s7 + $0x9a0] sm:$0xff]  ;;  %v544_v41 = vld [vmem:[%s4604_s7 + $0x9b0] sm:$0xff] }
 0x134   :  { %2260 = vmatpush1.bf16.msra.mxu1 %v2259_v46  ;;  %v518_v46 = vld [vmem:[%s4604_s7 + $0x8e0] sm:$0xff]  ;;  %v2281_v54 = vpack.c.bf16 %v417_v43, %v415_v42  ;;  %v549_v42 = vld [vmem:[%s4604_s7 + $0x9d8] sm:$0xff]  ;;  %v2411_v43 = vpack.c.bf16 %v544_v41, %v542_v40  ;;  %v576_v12 = vld [vmem:[%s4604_s7 + $0xab0] sm:$0xff] }
 0x135   :  { %2262 = vmatprep.subr.bf16.mxu1 %v2261_v49  ;;  %v523_v49 = vld [vmem:[%s4604_s7 + $0x908] sm:$0xff]  ;;  %v2387_v57 = vpack.c.bf16 %v520_v47, %v518_v46  ;;  %v546_v46 = vld [vmem:[%s4604_s7 + $0x9c0] sm:$0xff]  ;;  %v548_v47 = vld [vmem:[%s4604_s7 + $0x9d0] sm:$0xff] }
 0x136   :  { %2368 = vmatpush1.bf16.msra.mxu0 %v2367_v55  ;;  %v414_v55 = vld [vmem:[%s4604_s7 + $0x5a0] sm:$0xff]  ;;  %v2389_v59 = vpack.c.bf16 %v525_v52, %v523_v49  ;;  %v553_v49 = vld [vmem:[%s4604_s7 + $0x9f8] sm:$0xff]  ;;  %v2415_v52 = vpack.c.bf16 %v548_v47, %v546_v46 }
 0x137   :  { %2370 = vmatprep.subr.bf16.mxu0 %v2369_v58  ;;  %v419_v58 = vld [vmem:[%s4604_s7 + $0x5c8] sm:$0xff]  ;;  %v2283_v62 = vpack.c.bf16 %v416_v51, %v414_v55  ;;  %v550_v51 = vld [vmem:[%s4604_s7 + $0x9e0] sm:$0xff] }
 0x138   :  { %2264 = vmatpush1.bf16.msra.mxu1 %v2263_v60  ;;  %v522_v60 = vld [vmem:[%s4604_s7 + $0x900] sm:$0xff]  ;;  %v2285_v2 = vpack.c.bf16 %v421_v50, %v419_v58  ;;  %v555_v58 = vld [vmem:[%s4604_s7 + $0xa08] sm:$0xff]  ;;  %v557_v50 = vld [vmem:[%s4604_s7 + $0xa18] sm:$0xff] }
 0x139   :  { %2266 = vmatprep.subr.bf16.mxu1 %v2265_v63  ;;  %v527_v63 = vld [vmem:[%s4604_s7 + $0x928] sm:$0xff]  ;;  %v2391_v5 = vpack.c.bf16 %v524_v61, %v522_v60  ;;  %v2421_v60 = vpack.c.bf16 %v557_v50, %v555_v58  ;;  %v554_v61 = vld [vmem:[%s4604_s7 + $0xa00] sm:$0xff]  ;;  %v592_v58 = vld [vmem:[%s4604_s7 + $0xb30] sm:$0xff] }
 0x13a   :  { %2372 = vmatpush1.bf16.msra.mxu0 %v2371_v3  ;;  %v418_v3 = vld [vmem:[%s4604_s7 + $0x5c0] sm:$0xff]  ;;  %v2393_v10 = vpack.c.bf16 %v529_v1, %v527_v63  ;;  %v559_v63 = vld [vmem:[%s4604_s7 + $0xa28] sm:$0xff]  ;;  %v561_v1 = vld [vmem:[%s4604_s7 + $0xa38] sm:$0xff] }
 0x13b   :  { %2374 = vmatprep.subr.bf16.mxu0 %v2373_v8  ;;  %v423_v8 = vld [vmem:[%s4604_s7 + $0x5e8] sm:$0xff]  ;;  %v2287_v37 = vpack.c.bf16 %v420_v4, %v418_v3  ;;  %v2425_v4 = vpack.c.bf16 %v561_v1, %v559_v63  ;;  %v574_v33 = vld [vmem:[%s4604_s7 + $0xaa0] sm:$0xff]  ;;  %v596_v63 = vld [vmem:[%s4604_s7 + $0xb50] sm:$0xff] }
 0x13c   :  { %2268 = vmatpush1.bf16.msra.mxu1 %v2267_v11  ;;  %v526_v11 = vld [vmem:[%s4604_s7 + $0x920] sm:$0xff]  ;;  %v2289_v14 = vpack.c.bf16 %v425_v9, %v423_v8  ;;  %v560_v8 = vld [vmem:[%s4604_s7 + $0xa30] sm:$0xff]  ;;  %v563_v9 = vld [vmem:[%s4604_s7 + $0xa48] sm:$0xff] }
 0x13d   :  { %2270 = vmatprep.subr.bf16.mxu1 %v2269_v13  ;;  %v531_v13 = vld [vmem:[%s4604_s7 + $0x948] sm:$0xff]  ;;  %v2395_v18 = vpack.c.bf16 %v528_v29, %v526_v11 }
 0x13e   :  { %2376 = vmatpush1.bf16.msra.mxu0 %v2375_v16  ;;  %v422_v16 = vld [vmem:[%s4604_s7 + $0x5e0] sm:$0xff]  ;;  %v595_v50 = vld [vmem:[%s4604_s7 + $0xb48] sm:$0xff] }
 0x13f   :  { %2378 = vmatprep.subr.bf16.mxu0 %v2377_v19  ;;  %v2397_v19 = vpack.c.bf16 %v533_v53, %v531_v13  ;;  %v564_v13 = vld [vmem:[%s4604_s7 + $0xa50] sm:$0xff]  ;;  %v567_v53 = vld [vmem:[%s4604_s7 + $0xa68] sm:$0xff] }
 0x140   :  { %2272 = vmatpush1.bf16.msra.mxu1 %v2271_v22  ;;  %v2291_v22 = vpack.c.bf16 %v424_v17, %v422_v16  ;;  %v566_v17 = vld [vmem:[%s4604_s7 + $0xa60] sm:$0xff]  ;;  %v599_v1 = vld [vmem:[%s4604_s7 + $0xb68] sm:$0xff] }
 0x141   :  { %2274 = vmatprep.subr.bf16.mxu1 %v2273_v25  ;;  %v2399_v25 = vpack.c.bf16 %v532_v21, %v530_v20  ;;  %v573_v20 = vld [vmem:[%s4604_s7 + $0xa98] sm:$0xff] }
 0x142   :  { %2380 = vmatpush1.bf16.msra.mxu0 %v2379_v28  ;;  %v536_v28 = vld [vmem:[%s4604_s7 + $0x970] sm:$0xff] }
 0x143   :  { %2382 = vmatprep.subr.bf16.mxu0 %v2381_v30  ;;  %v2403_v30 = vpack.c.bf16 %v536_v28, %v534_v27  ;;  %v2439_v27 = vpack.c.bf16 %v572_v24, %v570_v23  ;;  %v610_v23 = vld [vmem:[%s4604_s7 + $0xbc0] sm:$0xff]  ;;  %v612_v24 = vld [vmem:[%s4604_s7 + $0xbd0] sm:$0xff] }
 0x144   :  { %2276 = vmatpush1.bf16.msra.mxu1 %v2275_v34  ;;  %v540_v34 = vld [vmem:[%s4604_s7 + $0x990] sm:$0xff] }
 0x145   :  { %2278 = vmatprep.subr.bf16.mxu1 %v2277_v39  ;;  %v2409_v39 = vpack.c.bf16 %v545_v36, %v543_v35  ;;  %v578_v35 = vld [vmem:[%s4604_s7 + $0xac0] sm:$0xff]  ;;  %v580_v36 = vld [vmem:[%s4604_s7 + $0xad0] sm:$0xff] }
 0x146   :  { %2384 = vmatpush1.bf16.msra.mxu0 %v2383_v56  ;;  %v547_v56 = vld [vmem:[%s4604_s7 + $0x9c8] sm:$0xff]  ;;  %v2447_v40 = vpack.c.bf16 %v580_v36, %v578_v35 }
 0x147   :  { %2386 = vmatprep.subr.bf16.mxu0 %v2385_v44  ;;  %v2413_v44 = vpack.c.bf16 %v549_v42, %v547_v56  ;;  %v582_v56 = vld [vmem:[%s4604_s7 + $0xae0] sm:$0xff]  ;;  %v584_v42 = vld [vmem:[%s4604_s7 + $0xaf0] sm:$0xff] }
 0x148   :  { %2280 = vmatpush1.bf16.msra.mxu1 %v2279_v48  ;;  %v551_v48 = vld [vmem:[%s4604_s7 + $0x9e8] sm:$0xff]  ;;  %v2451_v46 = vpack.c.bf16 %v584_v42, %v582_v56 }
 0x149   :  { %2282 = vmatprep.subr.bf16.mxu1 %v2281_v54  ;;  %v1077_v54 = vcombine.high %v3526_v6, %v3526_v6  ;;  %v2417_v55 = vpack.c.bf16 %v553_v49, %v551_v48  ;;  %v586_v48 = vld [vmem:[%s4604_s7 + $0xb00] sm:$0xff]  ;;  %v588_v49 = vld [vmem:[%s4604_s7 + $0xb10] sm:$0xff] }
 0x14a   :  { %2388 = vmatpush1.bf16.msra.mxu0 %v2387_v57  ;;  %v552_v57 = vld [vmem:[%s4604_s7 + $0x9f0] sm:$0xff] }
 0x14b   :  { %2390 = vmatprep.subr.bf16.mxu0 %v2389_v59  ;;  %v2419_v6 = vpack.c.bf16 %v552_v57, %v550_v51  ;;  %v3863_v59 = vrot.slane %v1077_v54, %v2812_v45  ;;  %v593_v54 = vld [vmem:[%s4604_s7 + $0xb38] sm:$0xff]  ;;  %v590_v57 = vld [vmem:[%s4604_s7 + $0xb20] sm:$0xff] }
 0x14c   :  { %2284 = vmatpush1.bf16.msra.mxu1 %v2283_v62  ;;  %v556_v62 = vld [vmem:[%s4604_s7 + $0xa10] sm:$0xff] }
 0x14d   :  { %2286 = vmatprep.subr.bf16.mxu1 %v2285_v2  ;;  %v2423_v2 = vpack.c.bf16 %v556_v62, %v554_v61  ;;  %v1093_v3 = vcombine.high %v3863_v59, %v3863_v59  ;;  %v594_v62 = vld [vmem:[%s4604_s7 + $0xb40] sm:$0xff] }
 0x14e   :  { %2392 = vmatpush1.bf16.msra.mxu0 %v2391_v5  ;;  %v558_v5 = vld [vmem:[%s4604_s7 + $0xa20] sm:$0xff] }
 0x14f   :  { %2394 = vmatprep.subr.bf16.mxu0 %v2393_v10  ;;  %v565_v10 = vld [vmem:[%s4604_s7 + $0xa58] sm:$0xff]  ;;  %v2427_v11 = vpack.c.bf16 %v560_v8, %v558_v5  ;;  %v598_v5 = vld [vmem:[%s4604_s7 + $0xb60] sm:$0xff]  ;;  %v600_v8 = vld [vmem:[%s4604_s7 + $0xb70] sm:$0xff] }
 0x150   :  { %2288 = vmatpush1.bf16.msra.mxu1 %v2287_v37  ;;  %v2429_v29 = vpack.c.bf16 %v565_v10, %v563_v9  ;;  %v562_v37 = vld [vmem:[%s4604_s7 + $0xa40] sm:$0xff]  ;;  %v603_v9 = vld [vmem:[%s4604_s7 + $0xb88] sm:$0xff]  ;;  %v605_v10 = vld [vmem:[%s4604_s7 + $0xb98] sm:$0xff] }
 0x151   :  { %2290 = vmatprep.subr.bf16.mxu1 %v2289_v14  ;;  %v2431_v14 = vpack.c.bf16 %v564_v13, %v562_v37  ;;  %v602_v37 = vld [vmem:[%s4604_s7 + $0xb80] sm:$0xff]  ;;  %v604_v13 = vld [vmem:[%s4604_s7 + $0xb90] sm:$0xff] }
 0x152   :  { %2396 = vmatpush1.bf16.msra.mxu0 %v2395_v18  ;;  %v568_v18 = vld [vmem:[%s4604_s7 + $0xa70] sm:$0xff] }
 0x153   :  { %2398 = vmatprep.subr.bf16.mxu0 %v2397_v19  ;;  %v571_v19 = vld [vmem:[%s4604_s7 + $0xa88] sm:$0xff]  ;;  %v2435_v21 = vpack.c.bf16 %v568_v18, %v566_v17  ;;  %v606_v17 = vld [vmem:[%s4604_s7 + $0xba0] sm:$0xff]  ;;  %v608_v18 = vld [vmem:[%s4604_s7 + $0xbb0] sm:$0xff] }
 0x154   :  { %2292 = vmatpush1.bf16.msra.mxu1 %v2291_v22  ;;  %v2437_v22 = vpack.c.bf16 %v573_v20, %v571_v19  ;;  %v611_v19 = vld [vmem:[%s4604_s7 + $0xbc8] sm:$0xff]  ;;  %v613_v20 = vld [vmem:[%s4604_s7 + $0xbd8] sm:$0xff] }
 0x156   :  { %2400 = vmatpush1.bf16.msra.mxu0 %v2399_v25  ;;  %v575_v25 = vld [vmem:[%s4604_s7 + $0xaa8] sm:$0xff] }
 0x157   :  { %1334 = vmatmul.mubr.f32.vlgmr.msra.gmra.mrb[0].mxu1 %v3404_v7  ;;  %2402 = vmatprep.subr.bf16.mxu0 %v2401_v26  ;;  %v2407_v7 = vpack.c.bf16 %v540_v34, %v538_v32  ;;  %v577_v26 = vld [vmem:[%s4604_s7 + $0xab8] sm:$0xff]  ;;  %v2443_v32 = vpack.c.bf16 %v576_v12, %v574_v33  ;;  %v614_v33 = vld [vmem:[%s4604_s7 + $0xbe0] sm:$0xff]  ;;  %v616_v12 = vld [vmem:[%s4604_s7 + $0xbf0] sm:$0xff] }
 0x158   :  { %v2441_v28 = vpack.c.bf16 %v577_v26, %v575_v25  ;;  %v615_v25 = vld [vmem:[%s4604_s7 + $0xbe8] sm:$0xff]  ;;  %v617_v26 = vld [vmem:[%s4604_s7 + $0xbf8] sm:$0xff] }
 0x15a   :  { %2404 = vmatpush1.bf16.msra.mxu0 %v2403_v30  ;;  %v579_v30 = vld [vmem:[%s4604_s7 + $0xac8] sm:$0xff] }
 0x15b   :  { %2406 = vmatprep.subr.bf16.mxu0 %v2405_v31  ;;  %v581_v31 = vld [vmem:[%s4604_s7 + $0xad8] sm:$0xff] }
 0x15c   :  { %v2445_v34 = vpack.c.bf16 %v581_v31, %v579_v30  ;;  %v4057_v30 = vld [vmem:[%s4597_s0 + $0x18] sm:$0xff]  ;;  %v619_v31 = vld [vmem:[%s4604_s7 + $0xc08] sm:$0xff] }
 0x15d   :  { %v4067_v35 = vrot.slane %v4057_v30, %v2812_v45 }
 0x15e   :  { %2408 = vmatpush1.bf16.msra.mxu0 %v2407_v7  ;;  %v583_v7 = vld [vmem:[%s4604_s7 + $0xae8] sm:$0xff] }
 0x15f   :  { %2410 = vmatprep.subr.bf16.mxu0 %v2409_v39  ;;  %v585_v39 = vld [vmem:[%s4604_s7 + $0xaf8] sm:$0xff]  ;;  %v1109_v42 = vcombine.high %v4067_v35, %v4067_v35 }
 0x160   :  { %v2449_v41 = vpack.c.bf16 %v585_v39, %v583_v7  ;;  %v618_v7 = vld [vmem:[%s4604_s7 + $0xc00] sm:$0xff]  ;;  %v620_v39 = vld [vmem:[%s4604_s7 + $0xc10] sm:$0xff] }
 0x161   :  { %v2487_v56 = vpack.c.bf16 %v620_v39, %v618_v7  ;;  %v1803_v7 = vld [vmem:[%s4608_s11 + $0x38] sm:$0xff] }
 0x162   :  { %2412 = vmatpush1.bf16.msra.mxu0 %v2411_v43  ;;  %v587_v43 = vld [vmem:[%s4604_s7 + $0xb08] sm:$0xff] }
 0x163   :  { %2414 = vmatprep.subr.bf16.mxu0 %v2413_v44  ;;  %v589_v44 = vld [vmem:[%s4604_s7 + $0xb18] sm:$0xff] }
 0x164   :  { %v2453_v47 = vpack.c.bf16 %v589_v44, %v587_v43  ;;  %v622_v44 = vld [vmem:[%s4604_s7 + $0xc20] sm:$0xff] }
 0x166   :  { %2416 = vmatpush1.bf16.msra.mxu0 %v2415_v52  ;;  %v591_v52 = vld [vmem:[%s4604_s7 + $0xb28] sm:$0xff] }
 0x167   :  { %2418 = vmatprep.subr.bf16.mxu0 %v2417_v55  ;;  %v2455_v55 = vpack.c.bf16 %v588_v49, %v586_v48  ;;  %v2457_v51 = vpack.c.bf16 %v593_v54, %v591_v52  ;;  %v629_v48 = vld [vmem:[%s4604_s7 + $0xc58] sm:$0xff]  ;;  %v626_v54 = vld [vmem:[%s4604_s7 + $0xc40] sm:$0xff] }
 0x16a   :  { %2420 = vmatpush1.bf16.msra.mxu0 %v2419_v6  ;;  %v597_v6 = vld [vmem:[%s4604_s7 + $0xb58] sm:$0xff] }
 0x16b   :  { %2422 = vmatprep.subr.bf16.mxu0 %v2421_v60  ;;  %v2459_v60 = vpack.c.bf16 %v592_v58, %v590_v57  ;;  %v2461_v61 = vpack.c.bf16 %v597_v6, %v595_v50  ;;  %v630_v50 = vld [vmem:[%s4604_s7 + $0xc60] sm:$0xff]  ;;  %v632_v6 = vld [vmem:[%s4604_s7 + $0xc70] sm:$0xff] }
 0x16d   :  { %1476 = vmatmul.mubr.f32.vlgmr.msra.gmra.mrb[4].mxu0 %v3548_v15  ;;  %v569_v15 = vld [vmem:[%s4604_s7 + $0xa78] sm:$0xff] }
 0x16e   :  { %2424 = vmatpush1.bf16.msra.mxu0 %v2423_v2  ;;  %1546 = vmatprep.mubr.f32.mxu0 %v1093_v3  ;;  %v2433_v16 = vpack.c.bf16 %v569_v15, %v567_v53  ;;  %v601_v2 = vld [vmem:[%s4604_s7 + $0xb78] sm:$0xff]  ;;  %v2463_v3 = vpack.c.bf16 %v596_v63, %v594_v62  ;;  %v607_v53 = vld [vmem:[%s4604_s7 + $0xba8] sm:$0xff]  ;;  %v634_v62 = vld [vmem:[%s4604_s7 + $0xc80] sm:$0xff] }
 0x16f   :  { %2426 = vmatprep.subr.bf16.mxu0 %v2425_v4  ;;  %v2465_v4 = vpack.c.bf16 %v601_v2, %v599_v1  ;;  %v609_v15 = vld [vmem:[%s4604_s7 + $0xbb8] sm:$0xff]  ;;  %v636_v63 = vld [vmem:[%s4604_s7 + $0xc90] sm:$0xff]  ;;  %v1812_v1 = vld [vmem:[%s4608_s11 + $0x80] sm:$0xff] }
 0x170   :  { %v1813_v2 = vld [vmem:[%s4608_s11 + $0x88] sm:$0xff] }
 0x172   :  { %2428 = vmatpush1.bf16.msra.mxu0 %v2427_v11  ;;  %v2467_v11 = vpack.c.bf16 %v600_v8, %v598_v5  ;;  %v2621_v5 = vpack.c.bf16 %v1813_v2, %v1812_v1  ;;  %v1797_v8 = vld [vmem:[%s4608_s11 + $0x8] sm:$0xff]  ;;  %v1807_v1 = vld [vmem:[%s4608_s11 + $0x58] sm:$0xff] }
 0x173   :  { %2430 = vmatprep.subr.bf16.mxu0 %v2429_v29  ;;  %v2469_v29 = vpack.c.bf16 %v605_v10, %v603_v9  ;;  %v1814_v9 = vld [vmem:[%s4608_s11 + $0x90] sm:$0xff]  ;;  %v1815_v10 = vld [vmem:[%s4608_s11 + $0x98] sm:$0xff] }
 0x174   :  { %2622 = vmatprep.subr.bf16.mxu1 %v2621_v5  ;;  %v655_v5 = vld [vmem:[%s4604_s7 + $0xd28] sm:$0xff] }
 0x176   :  { %2432 = vmatpush1.bf16.msra.mxu0 %v2431_v14  ;;  %v2471_v14 = vpack.c.bf16 %v604_v13, %v602_v37  ;;  %v2625_v37 = vpack.c.bf16 %v1815_v10, %v1814_v9  ;;  %v1798_v13 = vld [vmem:[%s4608_s11 + $0x10] sm:$0xff] }
 0x177   :  { %2434 = vmatprep.subr.bf16.mxu0 %v2433_v16  ;;  %v2473_v16 = vpack.c.bf16 %v609_v15, %v607_v53  ;;  %v1799_v53 = vld [vmem:[%s4608_s11 + $0x18] sm:$0xff]  ;;  %v1816_v15 = vld [vmem:[%s4608_s11 + $0xa0] sm:$0xff] }
 0x17a   :  { %2436 = vmatpush1.bf16.msra.mxu0 %v2435_v21  ;;  %v2475_v21 = vpack.c.bf16 %v608_v18, %v606_v17  ;;  %v1817_v17 = vld [vmem:[%s4608_s11 + $0xa8] sm:$0xff]  ;;  %v2627_v18 = vpack.c.bf16 %v1799_v53, %v1798_v13  ;;  %v661_v53 = vld [vmem:[%s4604_s7 + $0xd58] sm:$0xff] }
 0x17b   :  { %2438 = vmatprep.subr.bf16.mxu0 %v2437_v22  ;;  %v2477_v22 = vpack.c.bf16 %v613_v20, %v611_v19  ;;  %v2503_v19 = vpack.c.bf16 %v636_v63, %v634_v62  ;;  %v638_v20 = vld [vmem:[%s4604_s7 + $0xca0] sm:$0xff]  ;;  %v1806_v63 = vld [vmem:[%s4608_s11 + $0x50] sm:$0xff]  ;;  %v659_v13 = vld [vmem:[%s4604_s7 + $0xd48] sm:$0xff] }
 0x17c   :  { %v2643_v9 = vpack.c.bf16 %v1807_v1, %v1806_v63  ;;  %v686_v1 = vld [vmem:[%s4604_s7 + $0xe20] sm:$0xff] }
 0x17e   :  { %2440 = vmatpush1.bf16.msra.mxu0 %v2439_v27  ;;  %v2479_v27 = vpack.c.bf16 %v612_v24, %v610_v23  ;;  %v1801_v23 = vld [vmem:[%s4608_s11 + $0x28] sm:$0xff] }
 0x17f   :  { %2442 = vmatprep.subr.bf16.mxu0 %v2441_v28  ;;  %v2481_v28 = vpack.c.bf16 %v617_v26, %v615_v25  ;;  %v640_v25 = vld [vmem:[%s4604_s7 + $0xcb0] sm:$0xff] }
 0x180   :  { %v1818_v26 = vld [vmem:[%s4608_s11 + $0xb0] sm:$0xff] }
 0x182   :  { %2444 = vmatpush1.bf16.msra.mxu0 %v2443_v32  ;;  %v621_v32 = vld [vmem:[%s4604_s7 + $0xc18] sm:$0xff] }
 0x183   :  { %2446 = vmatprep.subr.bf16.mxu0 %v2445_v34  ;;  %v2483_v34 = vpack.c.bf16 %v616_v12, %v614_v33  ;;  %v2485_v36 = vpack.c.bf16 %v621_v32, %v619_v31  ;;  %v645_v33 = vld [vmem:[%s4604_s7 + $0xcd8] sm:$0xff]  ;;  %v2507_v31 = vpack.c.bf16 %v640_v25, %v638_v20  ;;  %v642_v32 = vld [vmem:[%s4604_s7 + $0xcc0] sm:$0xff] }
 0x184   :  { %v669_v25 = vld [vmem:[%s4604_s7 + $0xd98] sm:$0xff] }
 0x186   :  { %2448 = vmatpush1.bf16.msra.mxu0 %v2447_v40  ;;  %v623_v40 = vld [vmem:[%s4604_s7 + $0xc28] sm:$0xff] }
 0x187   :  { %2450 = vmatprep.subr.bf16.mxu0 %v2449_v41  ;;  %v625_v41 = vld [vmem:[%s4604_s7 + $0xc38] sm:$0xff] }
 0x188   :  { %v2489_v43 = vpack.c.bf16 %v625_v41, %v623_v40  ;;  %v644_v40 = vld [vmem:[%s4604_s7 + $0xcd0] sm:$0xff]  ;;  %v1820_v41 = vld [vmem:[%s4608_s11 + $0xc0] sm:$0xff] }
 0x18a   :  { %2452 = vmatpush1.bf16.msra.mxu0 %v2451_v46  ;;  %v624_v46 = vld [vmem:[%s4604_s7 + $0xc30] sm:$0xff] }
 0x18b   :  { %2454 = vmatprep.subr.bf16.mxu0 %v2453_v47  ;;  %v627_v47 = vld [vmem:[%s4604_s7 + $0xc48] sm:$0xff]  ;;  %v2491_v49 = vpack.c.bf16 %v624_v46, %v622_v44  ;;  %v649_v44 = vld [vmem:[%s4604_s7 + $0xcf8] sm:$0xff] }
 0x18c   :  { %v2493_v52 = vpack.c.bf16 %v629_v48, %v627_v47  ;;  %v2511_v48 = vpack.c.bf16 %v644_v40, %v642_v32  ;;  %v677_v40 = vld [vmem:[%s4604_s7 + $0xdd8] sm:$0xff] }
 0x18e   :  { %2456 = vmatpush1.bf16.msra.mxu0 %v2455_v55  ;;  %v628_v55 = vld [vmem:[%s4604_s7 + $0xc50] sm:$0xff] }
 0x18f   :  { %2458 = vmatprep.subr.bf16.mxu0 %v2457_v51  ;;  %v631_v51 = vld [vmem:[%s4604_s7 + $0xc68] sm:$0xff]  ;;  %v2495_v57 = vpack.c.bf16 %v628_v55, %v626_v54  ;;  %v1804_v54 = vld [vmem:[%s4608_s11 + $0x40] sm:$0xff] }
 0x190   :  { %v1805_v55 = vld [vmem:[%s4608_s11 + $0x48] sm:$0xff] }
 0x192   :  { %2460 = vmatpush1.bf16.msra.mxu0 %v2459_v60  ;;  %v635_v60 = vld [vmem:[%s4604_s7 + $0xc88] sm:$0xff] }
 0x193   :  { %2462 = vmatprep.subr.bf16.mxu0 %v2461_v61  ;;  %v637_v61 = vld [vmem:[%s4604_s7 + $0xc98] sm:$0xff] }
 0x196   :  { %2464 = vmatpush1.bf16.msra.mxu0 %v2463_v3  ;;  %v1796_v3 = vld [vmem:[%s4608_s11] sm:$0xff] }
 0x197   :  { %2466 = vmatprep.subr.bf16.mxu0 %v2465_v4  ;;  %v2499_v4 = vpack.c.bf16 %v632_v6, %v630_v50  ;;  %v651_v50 = vld [vmem:[%s4604_s7 + $0xd08] sm:$0xff]  ;;  %v653_v6 = vld [vmem:[%s4604_s7 + $0xd18] sm:$0xff] }
 0x198   :  { %v2517_v2 = vpack.c.bf16 %v653_v6, %v651_v50  ;;  %v682_v50 = vld [vmem:[%s4604_s7 + $0xe00] sm:$0xff]  ;;  %v684_v6 = vld [vmem:[%s4604_s7 + $0xe10] sm:$0xff] }
 0x19a   :  { %2468 = vmatpush1.bf16.msra.mxu0 %v2467_v11  ;;  %v2501_v11 = vpack.c.bf16 %v637_v61, %v635_v60  ;;  %v2639_v60 = vpack.c.bf16 %v1805_v55, %v1804_v54  ;;  %v678_v54 = vld [vmem:[%s4604_s7 + $0xde0] sm:$0xff]  ;;  %v680_v55 = vld [vmem:[%s4604_s7 + $0xdf0] sm:$0xff] }
 0x19b   :  { %2470 = vmatprep.subr.bf16.mxu0 %v2469_v29  ;;  %v2623_v29 = vpack.c.bf16 %v1797_v8, %v1796_v3  ;;  %v650_v3 = vld [vmem:[%s4604_s7 + $0xd00] sm:$0xff]  ;;  %v657_v8 = vld [vmem:[%s4604_s7 + $0xd38] sm:$0xff] }
 0x19d   :  { %2624 = vmatpush3.bf16.msra.mxu1 %v2623_v29  ;;  %v654_v29 = vld [vmem:[%s4604_s7 + $0xd20] sm:$0xff] }
 0x19e   :  { %2472 = vmatpush1.bf16.msra.mxu0 %v2471_v14  ;;  %v639_v14 = vld [vmem:[%s4604_s7 + $0xca8] sm:$0xff]  ;;  %2626 = vmatprep.subr.bf16.mxu1 %v2625_v37  ;;  %v656_v37 = vld [vmem:[%s4604_s7 + $0xd30] sm:$0xff] }
 0x19f   :  { %2474 = vmatprep.subr.bf16.mxu0 %v2473_v16  ;;  %v641_v16 = vld [vmem:[%s4604_s7 + $0xcb8] sm:$0xff] }
 0x1a0   :  { %v2505_v24 = vpack.c.bf16 %v641_v16, %v639_v14  ;;  %v2525_v14 = vpack.c.bf16 %v661_v53, %v659_v13  ;;  %v658_v16 = vld [vmem:[%s4604_s7 + $0xd40] sm:$0xff]  ;;  %v696_v53 = vld [vmem:[%s4604_s7 + $0xe70] sm:$0xff] }
 0x1a1   :  { %2628 = vmatpush3.bf16.msra.mxu1 %v2627_v18  ;;  %v663_v18 = vld [vmem:[%s4604_s7 + $0xd68] sm:$0xff]  ;;  %v694_v13 = vld [vmem:[%s4604_s7 + $0xe60] sm:$0xff] }
 0x1a2   :  { %2476 = vmatpush1.bf16.msra.mxu0 %v2475_v21  ;;  %v2629_v21 = vpack.c.bf16 %v1817_v17, %v1816_v15  ;;  %v2523_v15 = vpack.c.bf16 %v656_v37, %v654_v29  ;;  %v660_v17 = vld [vmem:[%s4604_s7 + $0xd50] sm:$0xff] }
 0x1a3   :  { %2478 = vmatprep.subr.bf16.mxu0 %v2477_v22  ;;  %v1800_v22 = vld [vmem:[%s4608_s11 + $0x20] sm:$0xff]  ;;  %v2527_v20 = vpack.c.bf16 %v660_v17, %v658_v16  ;;  %v2563_v16 = vpack.c.bf16 %v696_v53, %v694_v13  ;;  %v736_v53 = vld [vmem:[%s4604_s7 + $0xfb0] sm:$0xff] }
 0x1a4   :  { %v2631_v12 = vpack.c.bf16 %v1801_v23, %v1800_v22  ;;  %2630 = vmatprep.subr.bf16.mxu1 %v2629_v21  ;;  %v662_v22 = vld [vmem:[%s4604_s7 + $0xd60] sm:$0xff]  ;;  %v664_v23 = vld [vmem:[%s4604_s7 + $0xd70] sm:$0xff] }
 0x1a5   :  { %v734_v13 = vld [vmem:[%s4604_s7 + $0xfa0] sm:$0xff] }
 0x1a6   :  { %2480 = vmatpush1.bf16.msra.mxu0 %v2479_v27  ;;  %v1819_v27 = vld [vmem:[%s4608_s11 + $0xb8] sm:$0xff]  ;;  %2632 = vmatpush3.bf16.msra.mxu1 %v2631_v12  ;;  %v671_v12 = vld [vmem:[%s4604_s7 + $0xda8] sm:$0xff] }
 0x1a7   :  { %2482 = vmatprep.subr.bf16.mxu0 %v2481_v28  ;;  %v643_v28 = vld [vmem:[%s4604_s7 + $0xcc8] sm:$0xff] }
 0x1a8   :  { %v2509_v39 = vpack.c.bf16 %v645_v33, %v643_v28  ;;  %v666_v28 = vld [vmem:[%s4604_s7 + $0xd80] sm:$0xff]  ;;  %v668_v33 = vld [vmem:[%s4604_s7 + $0xd90] sm:$0xff] }
 0x1a9   :  { %v2535_v32 = vpack.c.bf16 %v668_v33, %v666_v28 }
 0x1aa   :  { %2484 = vmatpush1.bf16.msra.mxu0 %v2483_v34  ;;  %v2633_v34 = vpack.c.bf16 %v1819_v27, %v1818_v26  ;;  %v2531_v26 = vpack.c.bf16 %v664_v23, %v662_v22 }
 0x1ab   :  { %2486 = vmatprep.subr.bf16.mxu0 %v2485_v36  ;;  %v1802_v36 = vld [vmem:[%s4608_s11 + $0x30] sm:$0xff] }
 0x1ac   :  { %v2635_v47 = vpack.c.bf16 %v1803_v7, %v1802_v36  ;;  %2634 = vmatprep.subr.bf16.mxu1 %v2633_v34  ;;  %v670_v36 = vld [vmem:[%s4604_s7 + $0xda0] sm:$0xff]  ;;  %v672_v7 = vld [vmem:[%s4604_s7 + $0xdb0] sm:$0xff] }
 0x1ad   :  { %1547 = vmatmul.mubr.f32.vlgmr.msra.gmra.mrb[4].mxu0 %v3863_v59  ;;  %v633_v59 = vld [vmem:[%s4604_s7 + $0xc78] sm:$0xff] }
 0x1ae   :  { %2488 = vmatpush1.bf16.msra.mxu0 %v2487_v56  ;;  %1617 = vmatprep.mubr.f32.mxu0 %v1109_v42  ;;  %v2497_v58 = vpack.c.bf16 %v633_v59, %v631_v51  ;;  %v1821_v56 = vld [vmem:[%s4608_s11 + $0xc8] sm:$0xff]  ;;  %v648_v59 = vld [vmem:[%s4604_s7 + $0xcf0] sm:$0xff] }
 0x1af   :  { %2490 = vmatprep.subr.bf16.mxu0 %v2489_v43  ;;  %v647_v43 = vld [vmem:[%s4604_s7 + $0xce8] sm:$0xff]  ;;  %2636 = vmatpush3.bf16.msra.mxu1 %v2635_v47  ;;  %v681_v47 = vld [vmem:[%s4604_s7 + $0xdf8] sm:$0xff] }
 0x1b0   :  { %v2513_v51 = vpack.c.bf16 %v649_v44, %v647_v43  ;;  %v674_v43 = vld [vmem:[%s4604_s7 + $0xdc0] sm:$0xff]  ;;  %v676_v44 = vld [vmem:[%s4604_s7 + $0xdd0] sm:$0xff] }
 0x1b2   :  { %2492 = vmatpush1.bf16.msra.mxu0 %v2491_v49  ;;  %v646_v49 = vld [vmem:[%s4604_s7 + $0xce0] sm:$0xff] }
 0x1b3   :  { %2494 = vmatprep.subr.bf16.mxu0 %v2493_v52  ;;  %v2637_v52 = vpack.c.bf16 %v1821_v56, %v1820_v41  ;;  %v2515_v61 = vpack.c.bf16 %v648_v59, %v646_v49  ;;  %v2539_v41 = vpack.c.bf16 %v672_v7, %v670_v36  ;;  %v1094_v49 = vcombine.high %v4057_v30, %v4057_v30  ;;  %v685_v59 = vld [vmem:[%s4604_s7 + $0xe18] sm:$0xff] }
 0x1b4   :  { %v2547_v30 = vpack.c.bf16 %v680_v55, %v678_v54  ;;  %v718_v55 = vld [vmem:[%s4604_s7 + $0xf20] sm:$0xff] }
 0x1b5   :  { %2638 = vmatprep.subr.bf16.mxu1 %v2637_v52 }
 0x1b6   :  { %2496 = vmatpush1.bf16.msra.mxu0 %v2495_v57  ;;  %v1822_v57 = vld [vmem:[%s4608_s11 + $0xd0] sm:$0xff]  ;;  %2640 = vmatpush3.bf16.msra.mxu1 %v2639_v60  ;;  %v687_v60 = vld [vmem:[%s4604_s7 + $0xe28] sm:$0xff] }
 0x1b7   :  { %2498 = vmatprep.subr.bf16.mxu0 %v2497_v58  ;;  %v1823_v58 = vld [vmem:[%s4608_s11 + $0xd8] sm:$0xff] }
 0x1b8   :  { %v2641_v62 = vpack.c.bf16 %v1823_v58, %v1822_v57  ;;  %v4341_v57 = vrot.slane %v1094_v49, %v2812_v45  ;;  %v2551_v45 = vpack.c.bf16 %v684_v6, %v682_v50  ;;  %v721_v49 = vld [vmem:[%s4604_s7 + $0xf38] sm:$0xff]  ;;  %v722_v6 = vld [vmem:[%s4604_s7 + $0xf40] sm:$0xff] }
 0x1ba   :  { %2500 = vmatpush1.bf16.msra.mxu0 %v2499_v4  ;;  %v652_v4 = vld [vmem:[%s4604_s7 + $0xd10] sm:$0xff]  ;;  %2642 = vmatprep.subr.bf16.mxu1 %v2641_v62  ;;  %v1110_v62 = vcombine.high %v4341_v57, %v4341_v57 }
 0x1bb   :  { %2502 = vmatprep.subr.bf16.mxu0 %v2501_v11  ;;  %v2519_v10 = vpack.c.bf16 %v652_v4, %v650_v3  ;;  %v2521_v11 = vpack.c.bf16 %v657_v8, %v655_v5  ;;  %2644 = vmatpush3.bf16.msra.mxu1 %v2643_v9  ;;  %v691_v3 = vld [vmem:[%s4604_s7 + $0xe48] sm:$0xff]  ;;  %v693_v4 = vld [vmem:[%s4604_s7 + $0xe58] sm:$0xff]  ;;  %v690_v9 = vld [vmem:[%s4604_s7 + $0xe40] sm:$0xff] }
 0x1bc   :  { %v2557_v8 = vpack.c.bf16 %v693_v4, %v691_v3  ;;  %v731_v3 = vld [vmem:[%s4604_s7 + $0xf88] sm:$0xff]  ;;  %v733_v4 = vld [vmem:[%s4604_s7 + $0xf98] sm:$0xff] }
 0x1be   :  { %2504 = vmatpush1.bf16.msra.mxu0 %v2503_v19  ;;  %v665_v19 = vld [vmem:[%s4604_s7 + $0xd78] sm:$0xff] }
 0x1bf   :  { %2506 = vmatprep.subr.bf16.mxu0 %v2505_v24  ;;  %v2529_v21 = vpack.c.bf16 %v665_v19, %v663_v18  ;;  %v667_v24 = vld [vmem:[%s4604_s7 + $0xd88] sm:$0xff]  ;;  %v698_v18 = vld [vmem:[%s4604_s7 + $0xe80] sm:$0xff]  ;;  %v700_v19 = vld [vmem:[%s4604_s7 + $0xe90] sm:$0xff] }
 0x1c0   :  { %v4204_v42 = vpop.f32.mrb[2].mxu0  ;;  %v2533_v27 = vpack.c.bf16 %v669_v25, %v667_v24  ;;  %v2567_v22 = vpack.c.bf16 %v700_v19, %v698_v18  ;;  %v702_v24 = vld [vmem:[%s4604_s7 + $0xea0] sm:$0xff]  ;;  %v704_v25 = vld [vmem:[%s4604_s7 + $0xeb0] sm:$0xff] }
 0x1c1   :  { %v1969_v46 = vpop.f32.mrb[3].mxu0  ;;  %v2571_v28 = vpack.c.bf16 %v704_v25, %v702_v24  ;;  %v738_v18 = vld [vmem:[%s4604_s7 + $0xfc0] sm:$0xff]  ;;  %v740_v19 = vld [vmem:[%s4604_s7 + $0xfd0] sm:$0xff] }
 0x1c2   :  { %2508 = vmatpush1.bf16.msra.mxu0 %v2507_v31  ;;  %v673_v31 = vld [vmem:[%s4604_s7 + $0xdb8] sm:$0xff]  ;;  %v679_v46 = vld [vmem:[%s4604_s7 + $0xde8] sm:$0xff]  ;;  %v742_v24 = vld [vmem:[%s4604_s7 + $0xfe0] sm:$0xff] }
 0x1c3   :  { %2510 = vmatprep.subr.bf16.mxu0 %v2509_v39  ;;  %v2537_v34 = vpack.c.bf16 %v673_v31, %v671_v12  ;;  %v675_v39 = vld [vmem:[%s4604_s7 + $0xdc8] sm:$0xff]  ;;  %v2545_v52 = vpack.c.bf16 %v681_v47, %v679_v46  ;;  %v706_v12 = vld [vmem:[%s4604_s7 + $0xec0] sm:$0xff]  ;;  %v708_v31 = vld [vmem:[%s4604_s7 + $0xed0] sm:$0xff] }
 0x1c4   :  { %v2541_v56 = vpack.c.bf16 %v677_v40, %v675_v39  ;;  %v2575_v36 = vpack.c.bf16 %v708_v31, %v706_v12  ;;  %v710_v39 = vld [vmem:[%s4604_s7 + $0xee0] sm:$0xff]  ;;  %v712_v40 = vld [vmem:[%s4604_s7 + $0xef0] sm:$0xff] }
 0x1c5   :  { %v714_v46 = vld [vmem:[%s4604_s7 + $0xf00] sm:$0xff]  ;;  %v716_v47 = vld [vmem:[%s4604_s7 + $0xf10] sm:$0xff] }
 0x1c6   :  { %2512 = vmatpush1.bf16.msra.mxu0 %v2511_v48  ;;  %v2543_v48 = vpack.c.bf16 %v676_v44, %v674_v43  ;;  %v2579_v43 = vpack.c.bf16 %v712_v40, %v710_v39  ;;  %v744_v25 = vld [vmem:[%s4604_s7 + $0xff0] sm:$0xff]  ;;  %v1695_v12 = vld [vmem:[%s4606_s9] sm:$0xff] }
 0x1c7   :  { %2514 = vmatprep.subr.bf16.mxu0 %v2513_v51  ;;  %v683_v51 = vld [vmem:[%s4604_s7 + $0xe08] sm:$0xff]  ;;  %v1697_v31 = vld [vmem:[%s4606_s9 + $0x10] sm:$0xff] }
 0x1c8   :  { %v2549_v58 = vpack.c.bf16 %v685_v59, %v683_v51  ;;  %v720_v51 = vld [vmem:[%s4604_s7 + $0xf30] sm:$0xff]  ;;  %v723_v59 = vld [vmem:[%s4604_s7 + $0xf48] sm:$0xff] }
 0x1ca   :  { %2516 = vmatpush1.bf16.msra.mxu0 %v2515_v61  ;;  %v689_v61 = vld [vmem:[%s4604_s7 + $0xe38] sm:$0xff] }
 0x1cb   :  { %2518 = vmatprep.subr.bf16.mxu0 %v2517_v2  ;;  %v2553_v63 = vpack.c.bf16 %v689_v61, %v687_v60  ;;  %v688_v2 = vld [vmem:[%s4604_s7 + $0xe30] sm:$0xff]  ;;  %v727_v61 = vld [vmem:[%s4604_s7 + $0xf68] sm:$0xff] }
 0x1cc   :  { %v2555_v5 = vpack.c.bf16 %v688_v2, %v686_v1  ;;  %v724_v60 = vld [vmem:[%s4604_s7 + $0xf50] sm:$0xff]  ;;  %v726_v1 = vld [vmem:[%s4604_s7 + $0xf60] sm:$0xff] }
 0x1cd   :  { %v728_v2 = vld [vmem:[%s4604_s7 + $0xf70] sm:$0xff] }
 0x1ce   :  { %2520 = vmatpush1.bf16.msra.mxu0 %v2519_v10  ;;  %v692_v10 = vld [vmem:[%s4604_s7 + $0xe50] sm:$0xff] }
 0x1cf   :  { %2522 = vmatprep.subr.bf16.mxu0 %v2521_v11  ;;  %v695_v11 = vld [vmem:[%s4604_s7 + $0xe68] sm:$0xff]  ;;  %v2559_v29 = vpack.c.bf16 %v692_v10, %v690_v9  ;;  %v730_v9 = vld [vmem:[%s4604_s7 + $0xf80] sm:$0xff]  ;;  %v732_v10 = vld [vmem:[%s4604_s7 + $0xf90] sm:$0xff] }
 0x1d2   :  { %2524 = vmatpush1.bf16.msra.mxu0 %v2523_v15  ;;  %v699_v15 = vld [vmem:[%s4604_s7 + $0xe88] sm:$0xff] }
 0x1d3   :  { %2526 = vmatprep.subr.bf16.mxu0 %v2525_v14  ;;  %v701_v14 = vld [vmem:[%s4604_s7 + $0xe98] sm:$0xff] }
 0x1d4   :  { %v2565_v17 = vpack.c.bf16 %v701_v14, %v699_v15  ;;  %v739_v15 = vld [vmem:[%s4604_s7 + $0xfc8] sm:$0xff]  ;;  %v741_v14 = vld [vmem:[%s4604_s7 + $0xfd8] sm:$0xff] }
 0x1d6   :  { %2528 = vmatpush1.bf16.msra.mxu0 %v2527_v20  ;;  %v703_v20 = vld [vmem:[%s4604_s7 + $0xea8] sm:$0xff] }
 0x1d7   :  { %2530 = vmatprep.subr.bf16.mxu0 %v2529_v21  ;;  %v705_v21 = vld [vmem:[%s4604_s7 + $0xeb8] sm:$0xff] }
 0x1d8   :  { %v2569_v23 = vpack.c.bf16 %v705_v21, %v703_v20  ;;  %v743_v20 = vld [vmem:[%s4604_s7 + $0xfe8] sm:$0xff]  ;;  %v745_v21 = vld [vmem:[%s4604_s7 + $0xff8] sm:$0xff] }
 0x1da   :  { %2532 = vmatpush1.bf16.msra.mxu0 %v2531_v26  ;;  %v707_v26 = vld [vmem:[%s4604_s7 + $0xec8] sm:$0xff] }
 0x1db   :  { %2534 = vmatprep.subr.bf16.mxu0 %v2533_v27  ;;  %v709_v27 = vld [vmem:[%s4604_s7 + $0xed8] sm:$0xff] }
 0x1dc   :  { %v2573_v33 = vpack.c.bf16 %v709_v27, %v707_v26  ;;  %v1696_v26 = vld [vmem:[%s4606_s9 + $0x8] sm:$0xff]  ;;  %v1698_v27 = vld [vmem:[%s4606_s9 + $0x18] sm:$0xff] }
 0x1de   :  { %2536 = vmatpush1.bf16.msra.mxu0 %v2535_v32  ;;  %v711_v32 = vld [vmem:[%s4604_s7 + $0xee8] sm:$0xff] }
 0x1df   :  { %2538 = vmatprep.subr.bf16.mxu0 %v2537_v34  ;;  %v713_v34 = vld [vmem:[%s4604_s7 + $0xef8] sm:$0xff] }
 0x1e0   :  { %v2577_v7 = vpack.c.bf16 %v713_v34, %v711_v32  ;;  %v1700_v32 = vld [vmem:[%s4606_s9 + $0x28] sm:$0xff]  ;;  %v1702_v34 = vld [vmem:[%s4606_s9 + $0x38] sm:$0xff] }
 0x1e1   :  { %v2617_v40 = vpack.c.bf16 %v1702_v34, %v1700_v32 }
 0x1e2   :  { %2540 = vmatpush1.bf16.msra.mxu0 %v2539_v41  ;;  %v715_v41 = vld [vmem:[%s4604_s7 + $0xf08] sm:$0xff] }
 0x1e3   :  { %2542 = vmatprep.subr.bf16.mxu0 %v2541_v56  ;;  %v717_v56 = vld [vmem:[%s4604_s7 + $0xf18] sm:$0xff] }
 0x1e4   :  { %v2581_v44 = vpack.c.bf16 %v717_v56, %v715_v41  ;;  %v1699_v41 = vld [vmem:[%s4606_s9 + $0x20] sm:$0xff]  ;;  %v1701_v56 = vld [vmem:[%s4606_s9 + $0x30] sm:$0xff] }
 0x1e6   :  { %2544 = vmatpush1.bf16.msra.mxu0 %v2543_v48  ;;  %v719_v48 = vld [vmem:[%s4604_s7 + $0xf28] sm:$0xff] }
 0x1e7   :  { %2546 = vmatprep.subr.bf16.mxu0 %v2545_v52  ;;  %v2583_v52 = vpack.c.bf16 %v716_v47, %v714_v46  ;;  %v2585_v54 = vpack.c.bf16 %v721_v49, %v719_v48  ;;  %v1824_v48 = vld [vmem:[%s4608_s11 + $0xe0] sm:$0xff]  ;;  %v1825_v49 = vld [vmem:[%s4608_s11 + $0xe8] sm:$0xff] }
 0x1ea   :  { %2548 = vmatpush1.bf16.msra.mxu0 %v2547_v30  ;;  %v725_v30 = vld [vmem:[%s4604_s7 + $0xf58] sm:$0xff] }
 0x1eb   :  { %2550 = vmatprep.subr.bf16.mxu0 %v2549_v58  ;;  %v2587_v58 = vpack.c.bf16 %v720_v51, %v718_v55  ;;  %v2589_v50 = vpack.c.bf16 %v725_v30, %v723_v59  ;;  %v1827_v55 = vld [vmem:[%s4608_s11 + $0xf8] sm:$0xff]  ;;  %v1810_v59 = vld [vmem:[%s4608_s11 + $0x70] sm:$0xff] }
 0x1ec   :  { %v1811_v30 = vld [vmem:[%s4608_s11 + $0x78] sm:$0xff] }
 0x1ed   :  { %1618 = vmatmul.mubr.f32.vlgmr.msra.gmra.mrb[4].mxu0 %v4067_v35  ;;  %v697_v35 = vld [vmem:[%s4604_s7 + $0xe78] sm:$0xff] }
 0x1ee   :  { %2552 = vmatpush1.bf16.msra.mxu0 %v2551_v45  ;;  %1688 = vmatprep.mubr.f32.mxu0 %v1110_v62  ;;  %v2561_v37 = vpack.c.bf16 %v697_v35, %v695_v11  ;;  %v729_v45 = vld [vmem:[%s4604_s7 + $0xf78] sm:$0xff]  ;;  %v2591_v62 = vpack.c.bf16 %v724_v60, %v722_v6  ;;  %v735_v11 = vld [vmem:[%s4604_s7 + $0xfa8] sm:$0xff]  ;;  %v1780_v6 = vld [vmem:[%s4607_s10] sm:$0x3]  ;;  %v1788_v60 = vsub.s32 1, %v2809_v38 }
 0x1ef   :  { %2554 = vmatprep.subr.bf16.mxu0 %v2553_v63  ;;  %v2593_v63 = vpack.c.bf16 %v729_v45, %v727_v61  ;;  %v737_v35 = vld [vmem:[%s4604_s7 + $0xfb8] sm:$0xff] }
 0x1f2   :  { %2556 = vmatpush1.bf16.msra.mxu0 %v2555_v5  ;;  %v2595_v5 = vpack.c.bf16 %v728_v2, %v726_v1 }
 0x1f3   :  { %2558 = vmatprep.subr.bf16.mxu0 %v2557_v8  ;;  %v2597_v8 = vpack.c.bf16 %v733_v4, %v731_v3 }
 0x1f6   :  { %2560 = vmatpush1.bf16.msra.mxu0 %v2559_v29  ;;  %v2599_v29 = vpack.c.bf16 %v732_v10, %v730_v9  ;;  %v1917_v10 = vld [vmem:[%s4609_s12] ss:$0 sm:$0xff] }
 0x1f7   :  { %2562 = vmatprep.subr.bf16.mxu0 %v2561_v37  ;;  %v2601_v37 = vpack.c.bf16 %v737_v35, %v735_v11 }
 0x1fa   :  { %2564 = vmatpush1.bf16.msra.mxu0 %v2563_v16  ;;  %v2603_v16 = vpack.c.bf16 %v736_v53, %v734_v13 }
 0x1fb   :  { %2566 = vmatprep.subr.bf16.mxu0 %v2565_v17  ;;  %v2605_v17 = vpack.c.bf16 %v741_v14, %v739_v15 }
 0x1fe   :  { %2568 = vmatpush1.bf16.msra.mxu0 %v2567_v22  ;;  %v2607_v22 = vpack.c.bf16 %v740_v19, %v738_v18 }
 0x1ff   :  { %2570 = vmatprep.subr.bf16.mxu0 %v2569_v23  ;;  %v2609_v23 = vpack.c.bf16 %v745_v21, %v743_v20 }
 0x202   :  { %2572 = vmatpush1.bf16.msra.mxu0 %v2571_v28  ;;  %v2611_v28 = vpack.c.bf16 %v744_v25, %v742_v24 }
 0x203   :  { %2574 = vmatprep.subr.bf16.mxu0 %v2573_v33  ;;  %v2613_v33 = vpack.c.bf16 %v1698_v27, %v1696_v26 }
 0x206   :  { %2576 = vmatpush1.bf16.msra.mxu0 %v2575_v36 }
 0x207   :  { %2578 = vmatprep.subr.bf16.mxu0 %v2577_v7  ;;  %v2615_v7 = vpack.c.bf16 %v1697_v31, %v1695_v12 }
 0x20a   :  { %2580 = vmatpush1.bf16.msra.mxu0 %v2579_v43  ;;  %v1914_v43 = vld [vmem:[%s4603_s6] ss:$0 sm:$0xff] }
 0x20b   :  { %2582 = vmatprep.subr.bf16.mxu0 %v2581_v44  ;;  %v2619_v44 = vpack.c.bf16 %v1701_v56, %v1699_v41  ;;  %v226_v46 = vadd.f32 %v1914_v43, %v4204_v42  ;;  %v1809_v42 = vld [vmem:[%s4608_s11 + $0x68] sm:$0xff] }
 0x20d   :  { %v229_v47 = vmax.f32 %v226_v46, 0.0 }
 0x20e   :  { %2584 = vmatpush1.bf16.msra.mxu0 %v2583_v52 }
 0x20f   :  { %2586 = vmatprep.subr.bf16.mxu0 %v2585_v54  ;;  %v1826_v54 = vld [vmem:[%s4608_s11 + $0xf0] sm:$0xff] }
 0x210   :  { %v2649_v51 = vpack.c.bf16 %v1827_v55, %v1826_v54 }
 0x212   :  { %2588 = vmatpush1.bf16.msra.mxu0 %v2587_v58  ;;  %v2651_v58 = vpack.c.bf16 %v1811_v30, %v1810_v59 }
 0x213   :  { %2590 = vmatprep.subr.bf16.mxu0 %v2589_v50  ;;  %v1784_v50 = vsub.s32 0, %v2809_v38 }
 0x215   :  { %v1785_v61 = vrot.slane %v1780_v6, %v1784_v50 }
 0x216   :  { %2592 = vmatpush1.bf16.msra.mxu0 %v2591_v62  ;;  %v1789_v62 = vrot.slane %v1780_v6, %v1788_v60 }
 0x217   :  { %2594 = vmatprep.subr.bf16.mxu0 %v2593_v63 }
 0x21a   :  { %2596 = vmatpush1.bf16.msra.mxu0 %v2595_v5 }
 0x21b   :  { %2598 = vmatprep.subr.bf16.mxu0 %v2597_v8 }
 0x21e   :  { %2600 = vmatpush1.bf16.msra.mxu0 %v2599_v29 }
 0x21f   :  { %2602 = vmatprep.subr.bf16.mxu0 %v2601_v37 }
 0x222   :  { %2604 = vmatpush1.bf16.msra.mxu0 %v2603_v16 }
 0x223   :  { %2606 = vmatprep.subr.bf16.mxu0 %v2605_v17 }
 0x226   :  { %2608 = vmatpush1.bf16.msra.mxu0 %v2607_v22 }
 0x227   :  { %2610 = vmatprep.subr.bf16.mxu0 %v2609_v23 }
 0x22a   :  { %v1335_v36 = vpop.f32.mrb[0].mxu1  ;;  %2612 = vmatpush1.bf16.msra.mxu0 %v2611_v28 }
 0x22b   :  { %v1337_v39 = vpop.f32.mrb[1].mxu1  ;;  %2614 = vmatprep.subr.bf16.mxu0 %v2613_v33 }
 0x22d   :  { %1689 = vmatmul.mubr.f32.vlgmr.msra.gmra.mrb[4].mxu0 %v4341_v57  ;;  %v2645_v57 = vpack.c.bf16 %v1825_v49, %v1824_v48 }
 0x22e   :  { %2616 = vmatpush1.bf16.msra.mxu0 %v2615_v7  ;;  %1771 = vmatprep.mubr.f32.mxu0 %v2712_v0  ;;  %v1808_v0 = vld [vmem:[%s4608_s11 + $0x60] sm:$0xff] }
 0x22f   :  { %2618 = vmatprep.subr.bf16.mxu0 %v2617_v40  ;;  %v2647_v52 = vpack.c.bf16 %v1809_v42, %v1808_v0  ;;  %2646 = vmatprep.subr.bf16.mxu1 %v2645_v57 }
 0x231   :  { %2648 = vmatpush3.bf16.msra.mxu1 %v2647_v52 }
 0x232   :  { %2620 = vmatpush1.bf16.msra.mxu0 %v2619_v44  ;;  %2650 = vmatprep.subr.bf16.mxu1 %v2649_v51 }
 0x235   :  { %1916 = vmatmul.mubr.msk.f32.vlgmr.msra.gmra.mrb[4].mxu0 %vm1703_vm4, %v229_v47  ;;  %2652 = vmatpush3.bf16.msra.mxu1 %v2651_v58 }
 0x308   :  { %v1773_v45 = vpop.f32.mrb[4].mxu0 }
 0x309   :  { %v2653_v63 = vadd.f32 %v1773_v45, %v1335_v36  ;;  %v1775_v1 = vpop.f32.mrb[5].mxu0 }
 0x30a   :  { %v2654_v2 = vadd.f32 %v1775_v1, %v1337_v39 }
 0x30b   :  { %v1792_v3 = vadd.f32 %v2653_v63, %v1785_v61 }
 0x30c   :  { %v1793_v4 = vadd.f32 %v2654_v2, %v1789_v62 }
 0x30d   :  { %v1794_v8 = vmax.f32 %v1792_v3, 0.0 }
 0x30e   :  { %v1795_v5 = vmax.f32 %v1793_v4, 0.0 }
 0x310   :  { %1899 = vmatprep.mubr.f32.mxu1 %v1795_v5 }
 0x311   :  { %1900 = vmatmul.mubr.f32.vlgmr.msra.gmra.mrb[2].mxu1 %v1794_v8 }
 0x3e4   :  { %v1955_v9 = vpop.f32.mrb[2].mxu1 }
 0x3e5   :  { %v1956_v11 = vpop.f32.mrb[3].mxu1 }
 0x3e6   :  { %v1957_v35 = vadd.f32 %v1956_v11, %v1955_v9 }
 0x3e8   :  { %v1902_v38 = vadd.f32 %v1957_v35, %v1917_v10 }
 0x3ea   :  { %1905 = vst [vmem:[%s4610_s13] sm:$0x3] %v1902_v38 }
 0x3eb   :  { %1910 = vsyncpa [#allocation3], 1 }

// kernel: separated_vision_forward.2
= control target key start
LH: loop header
LB: loop body
LE: loop exit
PB: predicated region body
PF: predicated region fallthrough
CT: control target
= control target key end

     0   :  { %s12448_s0 = inlined_call_operand.vmem [shape: f32[2,18,18,4], index: 0, kind: input, shape index: {}]   ;;  %s12449_s1 = inlined_call_operand.vmem [shape: f32[2,10,10,4], index: 1, kind: input, shape index: {}]   ;;  %s12450_s2 = inlined_call_operand.hbm [shape: f32[9,4,16], index: 2, kind: input, shape index: {}]   ;;  %s12451_s3 = inlined_call_operand.hbm [shape: f32[1,16], index: 3, kind: input, shape index: {}]   ;;  %s12452_s4 = inlined_call_operand.hbm [shape: f32[9,16,32], index: 4, kind: input, shape index: {}]   ;;  %s12453_s5 = inlined_call_operand.hbm [shape: f32[1,32], index: 5, kind: input, shape index: {}]   ;;  %s12454_s6 = inlined_call_operand.hbm [shape: f32[3,64,128], index: 6, kind: input, shape index: {}]   ;;  %s12455_s7 = inlined_call_operand.vmem [shape: f32[9,4,8], index: 7, kind: input, shape index: {}]   ;;  %s12456_s8 = inlined_call_operand.hbm [shape: f32[1,8], index: 8, kind: input, shape index: {}]   ;;  %s12457_s9 = inlined_call_operand.vmem [shape: f32[2,64,32], index: 9, kind: output, shape index: {0}]   ;;  %s12458_s10 = inlined_call_operand.vmem [shape: f32[2,64,8], index: 10, kind: output, shape index: {1}]  }
   0x1   :  { %12535 = sst [smem:[#allocation57_spill]] %s12450_s2 }
   0x2   :  { %16 = vsyncpa [#allocation4], 0 }
   0x3   :  { %17 = vsyncpa [#allocation6], 0 }
   0x4   :  { %18 = vsyncpa [#allocation9], 0 }
   0x5   :  { %19 = vsyncpa [#allocation12], 0  ;;  %s10410_s13 = smov 0  }
   0x6 LB: > { %s10344_s14 = smov [#allocation5]   ;;  %s10416_s16 = sadd.s32 4294967295, %s10342_s13   ;;  %s10342_s13 = sphi %s10410_s13, %s25_s13  }
   0x7   : > { %s307_s15 = sshll.u32 %s10344_s14, 4  ;;  %p7065_p0 = scmp.ge.s32.totalorder %s10342_s13, 1  ;;  %s10421_s15 = int_to_ptr.vmem [resolvable:$true] %s307_s15 }
   0x8   : > { %p281_p1 = scmp.lt.s32.totalorder %s10342_s13, 3  ;;  %p12459_p2 = scmp.eq.s32.totalorder %s10416_s16, 0 }
   0x9   : > { %s10345_s18 = smov [#allocation8]   ;;  %s10346_s20 = smov [#allocation3]  }
   0xa   : > { %p10423_p3 = pnand %p7065_p0, %p281_p1  ;;  %s331_s19 = sshll.u32 %s10345_s18, 4  ;;  %s10429_s19 = int_to_ptr.vmem [resolvable:$true] %s331_s19 }
   0xb   : > { %s293_s21 = sshll.u32 %s10346_s20, 4  ;;  %s10347_s23 = smov [#allocation7]   ;;  %s10437_s21 = int_to_ptr.vmem [resolvable:$true] %s293_s21 }
   0xc   : > { %s12536_s17 = scalar_select %p10423_p3, 1, 0 }
   0xd   : > { %p10101_p4 = pneg %p10423_p3  ;;  %s10439_s24 = sshll.u32 %s10347_s23, 4  ;;  %s318_s24 = int_to_ptr.vmem [resolvable:$true] %s10439_s24 }
   0xe   : > { %s10152_s27 = scalar_lea.hbm %s12451_s3, 16 }
   0xf   : > { %p10433_p5 = pnand %p12459_p2, %p10101_p4  ;;  %p10153_p6 = scmp.ne.s32.totalorder %s12451_s3, %s10152_s27 }
  0x10   : > { %p10159_p10 = scmp.lt.u32.totalorder %s10152_s27, %s12451_s3 }
  0x11   : > { %p10449_p7 = pneg %p10433_p5 }
  0x13   : > { %p10155_p8 = pnand %p10449_p7, %p10153_p6 }
  0x15   : > { %p10156_p9 = pneg %p10155_p8 }
  0x17   : > { %p10161_p11 = pnand %p10159_p10, %p10156_p9 }
  0x19   : > { %10164 = shalt.err (!%p10161_p11)
}
  0x1a   : > { %s10165_s14 = scalar_lea.vmem %s10421_s15, 16  ;;  %s10172_s18 = scalar_lea.vmem %s10421_s15, 32 }
  0x1b   : > { %p10166_p12 = scmp.ne.s32.totalorder %s10421_s15, %s10165_s14  ;;  %p10173_p1 = scmp.lt.s32.totalorder %s10421_s15, %s10421_s15 }
  0x1c   : > { %p10174_p4 = scmp.lt.s32.totalorder %s10172_s18, %s10165_s14 }
  0x1d   : > { %p10168_p13 = pnand %p10166_p12, %p10449_p7 }
  0x1e   : > { %p10175_p6 = por %p10174_p4, %p10173_p1 }
  0x1f   : > { %p10169_p0 = pneg %p10168_p13 }
  0x21   : > { %p10176_p8 = pnand %p10175_p6, %p10169_p0 }
  0x23   : > { %10179 = shalt.err (!%p10176_p8)
}
  0x24   : > { %10107 = dma.hbm_to_vmem [thread:$0]  (!%p10433_p5), %s12451_s3, 16, %s10421_s15, [#allocation6]  }
  0x25   : > { %s10180_s27 = scalar_lea.hbm %s12453_s5, 16 }
  0x26   : > { %p10181_p9 = scmp.ne.s32.totalorder %s12453_s5, %s10180_s27  ;;  %p10187_p12 = scmp.lt.u32.totalorder %s10180_s27, %s12453_s5 }
  0x28   : > { %p10183_p10 = pnand %p10181_p9, %p10449_p7 }
  0x2a   : > { %p10184_p11 = pneg %p10183_p10 }
  0x2c   : > { %p10189_p13 = pnand %p10187_p12, %p10184_p11 }
  0x2e   : > { %10192 = shalt.err (!%p10189_p13)
}
  0x2f   : > { %s10193_s15 = scalar_lea.vmem %s10429_s19, 16  ;;  %s10200_s14 = scalar_lea.vmem %s10429_s19, 32 }
  0x30   : > { %p10194_p0 = scmp.ne.s32.totalorder %s10429_s19, %s10193_s15  ;;  %p10201_p6 = scmp.lt.s32.totalorder %s10429_s19, %s10429_s19 }
  0x31   : > { %p10202_p8 = scmp.lt.s32.totalorder %s10200_s14, %s10193_s15 }
  0x32   : > { %p10196_p1 = pnand %p10194_p0, %p10449_p7 }
  0x33   : > { %p10203_p9 = por %p10202_p8, %p10201_p6 }
  0x34   : > { %p10197_p4 = pneg %p10196_p1 }
  0x36   : > { %p10204_p10 = pnand %p10203_p9, %p10197_p4 }
  0x38   : > { %10207 = shalt.err (!%p10204_p10)
}
  0x39   : > { %10113 = dma.hbm_to_vmem [thread:$0]  (!%p10433_p5), %s12453_s5, 16, %s10429_s19, [#allocation9]  }
  0x3a   : > { %s12539_s2 = sld [smem:[#allocation57_spill]] }
  0x40   : > { %s10208_s26 = scalar_lea.hbm %s12539_s2, 576 }
  0x41   : > { %p10209_p11 = scmp.ne.s32.totalorder %s12539_s2, %s10208_s26  ;;  %p10215_p0 = scmp.lt.u32.totalorder %s10208_s26, %s12539_s2 }
  0x43   : > { %p10211_p12 = pnand %p10209_p11, %p10449_p7 }
  0x45   : > { %p10212_p13 = pneg %p10211_p12 }
  0x47   : > { %p10217_p1 = pnand %p10215_p0, %p10212_p13 }
  0x49   : > { %10220 = shalt.err (!%p10217_p1)
}
  0x4a   : > { %s10221_s19 = scalar_lea.vmem %s10437_s21, 576  ;;  %p10229_p9 = scmp.lt.s32.totalorder %s10437_s21, %s10437_s21 }
  0x4b   : > { %p10222_p4 = scmp.ne.s32.totalorder %s10437_s21, %s10221_s19  ;;  %p10230_p10 = scmp.lt.s32.totalorder %s10221_s19, %s10221_s19 }
  0x4d   : > { %p10224_p6 = pnand %p10222_p4, %p10449_p7  ;;  %p10231_p11 = por %p10230_p10, %p10229_p9 }
  0x4f   : > { %p10225_p8 = pneg %p10224_p6 }
  0x51   : > { %p10232_p12 = pnand %p10231_p11, %p10225_p8 }
  0x53   : > { %10235 = shalt.err (!%p10232_p12)
}
  0x54   : > { %s10348_s12 = smov 64   ;;  %s10349_s15 = smov 4  }
  0x55   : > { %10104 = dma.hbm_to_vmem [thread:$0]  (!%p10433_p5), %s12539_s2, 576, %s10437_s21, [#allocation4], %s10348_s12, %s10348_s12, %s10349_s15  }
  0x56   : > { %s10236_s25 = scalar_lea.hbm %s12452_s4, 2304 }
  0x57   : > { %p10237_p13 = scmp.ne.s32.totalorder %s12452_s4, %s10236_s25  ;;  %p10243_p4 = scmp.lt.u32.totalorder %s10236_s25, %s12452_s4 }
  0x59   : > { %p10239_p0 = pnand %p10237_p13, %p10449_p7 }
  0x5b   : > { %p10240_p1 = pneg %p10239_p0 }
  0x5d   : > { %p10245_p6 = pnand %p10243_p4, %p10240_p1 }
  0x5f   : > { %10248 = shalt.err (!%p10245_p6)
}
  0x60   : > { %s10249_s11 = scalar_lea.vmem %s318_s24, 2304  ;;  %p10257_p11 = scmp.lt.s32.totalorder %s318_s24, %s318_s24 }
  0x61   : > { %p10250_p8 = scmp.ne.s32.totalorder %s318_s24, %s10249_s11  ;;  %p10258_p12 = scmp.lt.s32.totalorder %s10249_s11, %s10249_s11 }
  0x63   : > { %p10252_p9 = pnand %p10250_p8, %p10449_p7  ;;  %p10259_p2 = por %p10258_p12, %p10257_p11 }
  0x65   : > { %p10253_p10 = pneg %p10252_p9 }
  0x67   : > { %p10260_p3 = pnand %p10259_p2, %p10253_p10 }
  0x69   : > { %10263 = shalt.err (!%p10260_p3)
}
  0x6a   : > { %s10350_s21 = smov 128   ;;  %s10351_s19 = smov 8  }
  0x6b   : > { %10110 = dma.hbm_to_vmem [thread:$0]  (!%p10433_p5), %s12452_s4, 2304, %s318_s24, [#allocation6], %s10350_s21, %s10350_s21, %s10351_s19  }
  0x6c   : > { %s10352_s14 = smov [#allocation10]   ;;  %s10353_s20 = smov [#allocation11]  }
  0x6d   : > { %s341_s18 = sshll.u32 %s10352_s14, 4  ;;  %s358_s23 = sshll.u32 %s10353_s20, 4  ;;  %s342_s18 = int_to_ptr.vmem [resolvable:$true] %s341_s18  ;;  %s359_s23 = int_to_ptr.vmem [resolvable:$true] %s358_s23 }
  0x6e   : > { %s10264_s27 = scalar_lea.hbm %s12454_s6, 3072 }
  0x6f   : > { %p10265_p2 = scmp.ne.s32.totalorder %s12454_s6, %s10264_s27  ;;  %p10271_p0 = scmp.lt.u32.totalorder %s10264_s27, %s12454_s6 }
  0x71   : > { %p10267_p3 = pnand %p10265_p2, %p10449_p7 }
  0x73   : > { %p10268_p13 = pneg %p10267_p3 }
  0x75   : > { %p10273_p1 = pnand %p10271_p0, %p10268_p13 }
  0x77   : > { %10276 = shalt.err (!%p10273_p1)
}
  0x78   : > { %s10277_s24 = scalar_lea.vmem %s342_s18, 3072  ;;  %p10285_p9 = scmp.lt.s32.totalorder %s342_s18, %s342_s18 }
  0x79   : > { %p10278_p4 = scmp.ne.s32.totalorder %s342_s18, %s10277_s24  ;;  %p10286_p10 = scmp.lt.s32.totalorder %s10277_s24, %s10277_s24 }
  0x7b   : > { %p10280_p6 = pnand %p10278_p4, %p10449_p7  ;;  %p10287_p11 = por %p10286_p10, %p10285_p9 }
  0x7d   : > { %p10281_p8 = pneg %p10280_p6 }
  0x7f   : > { %p10288_p12 = pnand %p10287_p11, %p10281_p8 }
  0x81   : > { %10291 = shalt.err (!%p10288_p12)
}
  0x82   : > { %10116 = dma.hbm_to_vmem [thread:$0]  (!%p10433_p5), %s12454_s6, 3072, %s342_s18, [#allocation9], %s10350_s21, %s10350_s21, %s10351_s19  }
  0x83   : > { %s10292_s20 = scalar_lea.hbm %s12456_s8, 16 }
  0x84   : > { %p10293_p2 = scmp.ne.s32.totalorder %s12456_s8, %s10292_s20  ;;  %p10299_p0 = scmp.lt.u32.totalorder %s10292_s20, %s12456_s8 }
  0x86   : > { %p10295_p3 = pnand %p10293_p2, %p10449_p7 }
  0x88   : > { %p10296_p13 = pneg %p10295_p3 }
  0x8a   : > { %p10301_p1 = pnand %p10299_p0, %p10296_p13 }
  0x8c   : > { %10304 = shalt.err (!%p10301_p1)
}
  0x8d   : > { %s10305_s29 = scalar_lea.vmem %s359_s23, 16  ;;  %s10312_s21 = scalar_lea.vmem %s359_s23, 32 }
  0x8e   : > { %p10306_p4 = scmp.ne.s32.totalorder %s359_s23, %s10305_s29  ;;  %p10313_p9 = scmp.lt.s32.totalorder %s359_s23, %s359_s23 }
  0x8f   : > { %p10314_p10 = scmp.lt.s32.totalorder %s10312_s21, %s10305_s29 }
  0x90   : > { %p10308_p6 = pnand %p10306_p4, %p10449_p7 }
  0x91   : > { %p10315_p11 = por %p10314_p10, %p10313_p9 }
  0x92   : > { %p10309_p8 = pneg %p10308_p6 }
  0x94   : > { %p10316_p12 = pnand %p10315_p11, %p10309_p8 }
  0x96   : > { %10319 = shalt.err (!%p10316_p12)
}
  0x97   : > { %10119 = dma.hbm_to_vmem [thread:$0]  (!%p10433_p5), %s12456_s8, 16, %s359_s23, [#allocation12]  }
  0x98   : > { %p12540_p2 = scmp.ne.s32.totalorder %s12536_s17, 0 }
  0x9a   : > { %387 = sbr.rel (%p12540_p2) target bundleno = 3334 (0xd06), region = 56 }
  0xa1   : > { %p12541_p3 = scmp.eq.s32.totalorder %s10416_s16, 0 }
  0xa3   : > { %10325 = dma.done.wait (%p12541_p3), [#allocation4], 576   ;;  %p12542_p7 = pmov %p12541_p3 }
  0xa4   : > { %p12543_p13 = pmov %p12541_p3 }
  0xa5   : > { %10327 = vsyncadd (%p12542_p7), [#allocation4], 4294966720 }
  0xa6   : > { %10329 = dma.done.wait (%p12543_p13), [#allocation6], 2320   ;;  %p12544_p0 = pmov %p12541_p3 }
  0xa8   : > { %10331 = vsyncadd (%p12544_p0), [#allocation6], 4294964976  ;;  %p12545_p1 = pmov %p12544_p0 }
  0xa9   : > { %p12546_p5 = pmov %p12544_p0 }
  0xaa   : > { %10333 = dma.done.wait (%p12545_p1), [#allocation9], 3088  }
  0xab   : > { %10335 = vsyncadd (%p12546_p5), [#allocation9], 4294964208  ;;  %p12547_p4 = pmov %p12544_p0 }
  0xac   : > { %p12548_p6 = pmov %p12544_p0 }
  0xad   : > { %10337 = dma.done.wait (%p12547_p4), [#allocation12], 16  }
  0xae   : > { %10339 = vsyncadd (%p12548_p6), [#allocation12], 4294967280  ;;  %p455_p8 = scmp.lt.s32.totalorder %s10416_s16, 1  ;;  %vm726_vm0 = vcmask 1043456   ;;  %v660_v0 = vld [vmem:[#allocation3 + $0x4] sm:$0xf] }
  0xaf   : > { %vm578_vm1 = vcmask 1046528   ;;  %vm661_vm2 = vcmask 31744   ;;  %8235 = vmatprep.subr.msk.mxu0 %vm726_vm0, %v660_v0  ;;  %v529_v5 = vld [vmem:[#allocation3] sm:$0xf]  ;;  %v10733_v54 = vld [vmem:[#allocation3 + $0x8] sm:$0xf] }
  0xb0   : > { %s12656_s16 = smov (!%p455_p8, %s10416_s16), 1  ;;  %8236 = vmatpush3.msk.msra.mxu0 %vm726_vm0, %v660_v0  ;;  %vm1247_vm3 = vcmask 1045504   ;;  %vm3347_vm4 = vcmask 130048   ;;  %vm5657_vm5 = vcmask 261120   ;;  %vm6894_vm6 = vcmask 64512  }
  0xb1   : > { %s10075_s17 = smul.u32 432, %s12656_s16  ;;  %8285 = vmatprep.subr.msk.mxu0 %vm726_vm0, %v529_v5  ;;  %s7549_s15 = sshll.u32 %s12656_s16, 6 }
  0xb2   : > { %s10076_s12 = smul.u32 160, %s12656_s16  ;;  %s469_s20 = scalar_lea.vmem %s12457_s9, %s7549_s15 }
  0xb3   : > { %s10599_s23 = scalar_lea.vmem %s12448_s0, %s10075_s17  ;;  %s474_s27 = scalar_lea.vmem %s12458_s10, %s7549_s15 }
  0xb4   : > { %v10602_v1 = vld [vmem:[%s10599_s23] sm:$0xff]  ;;  %v10605_v2 = vld [vmem:[%s10599_s23 + $0x8] sm:$0xff]  ;;  %v10611_v6 = vld [vmem:[%s10599_s23 + $0x10] sm:$0x3]  ;;  %s12115_s25 = scalar_lea.vmem %s12449_s1, %s10076_s12 }
  0xb5   : > { %v579_v3 = vrot.slane %v10602_v1, 1  ;;  %v580_v4 = vrot.slane %v10605_v2, 1  ;;  %v582_v7 = vrot.slane %v10611_v6, 1  ;;  %v10616_v8 = vld [vmem:[%s10599_s23 + $0x18] sm:$0xff]  ;;  %v10619_v9 = vld [vmem:[%s10599_s23 + $0x20] sm:$0xff]  ;;  %v10630_v15 = vld [vmem:[%s10599_s23 + $0x30] sm:$0xff] }
  0xb6   : > { %v10622_v10 = vld [vmem:[%s10599_s23 + $0x28] sm:$0x3]  ;;  %v584_v12 = vrot.slane %v10616_v8, 1  ;;  %v585_v13 = vrot.slane %v10619_v9, 1  ;;  %v10633_v16 = vld [vmem:[%s10599_s23 + $0x38] sm:$0xff]  ;;  %v589_v18 = vrot.slane %v10630_v15, 1 }
  0xb7   : > { %v581_v11 = vsel %vm578_vm1, %v579_v3, %v580_v4  ;;  %v587_v14 = vrot.slane %v10622_v10, 1  ;;  %v583_v17 = vsel %vm578_vm1, %v580_v4, %v582_v7  ;;  %v590_v19 = vrot.slane %v10633_v16, 1  ;;  %v10640_v20 = vld [vmem:[%s10599_s23 + $0x40] sm:$0x3]  ;;  %v10643_v21 = vld [vmem:[%s10599_s23 + $0x48] sm:$0xff]  ;;  %v10646_v22 = vld [vmem:[%s10599_s23 + $0x50] sm:$0xff] }
  0xb8   : > { %8237 = vmatprep.mubr.msk.f32.mxu0 %vm661_vm2, %v581_v11  ;;  %v10650_v23 = vsel %vm578_vm1, %v584_v12, %v585_v13  ;;  %v592_v25 = vrot.slane %v10640_v20, 1  ;;  %v594_v27 = vrot.slane %v10643_v21, 1  ;;  %v595_v28 = vrot.slane %v10646_v22, 1  ;;  %v10665_v29 = vld [vmem:[%s10599_s23 + $0x58] sm:$0x3]  ;;  %v10668_v30 = vld [vmem:[%s10599_s23 + $0x60] sm:$0xff] }
  0xb9   : > { %8238 = vmatmul.mubr.msk.f32.vlgmr.msra.gmra.mrb[0].mxu0 %vm661_vm2, %v583_v17  ;;  %v10656_v24 = vsel %vm578_vm1, %v585_v13, %v587_v14  ;;  %v10660_v26 = vsel %vm578_vm1, %v589_v18, %v590_v19  ;;  %v10671_v31 = vld [vmem:[%s10599_s23 + $0x68] sm:$0xff]  ;;  %v597_v33 = vrot.slane %v10665_v29, 1  ;;  %v599_v35 = vrot.slane %v10668_v30, 1  ;;  %v10687_v37 = vld [vmem:[%s10599_s23 + $0x70] sm:$0x3]  ;;  %v10690_v38 = vld [vmem:[%s10599_s23 + $0x78] sm:$0xff] }
  0xba   : > { %8286 = vmatpush3.msk.msra.mxu0 %vm726_vm0, %v529_v5  ;;  %8240 = vmatprep.mubr.msk.f32.mxu0 %vm661_vm2, %v10650_v23  ;;  %v10678_v32 = vsel %vm578_vm1, %v590_v19, %v592_v25  ;;  %v10682_v34 = vsel %vm578_vm1, %v594_v27, %v595_v28  ;;  %v600_v36 = vrot.slane %v10671_v31, 1  ;;  %v10693_v39 = vld [vmem:[%s10599_s23 + $0x80] sm:$0xff]  ;;  %v602_v41 = vrot.slane %v10687_v37, 1  ;;  %v10709_v45 = vld [vmem:[%s10599_s23 + $0x88] sm:$0x3]  ;;  %v10712_v46 = vld [vmem:[%s10599_s23 + $0x90] sm:$0xff] }
  0xbb   : > { %12549 = vst [vmem:[#allocation17_spill] sm:$0xff] %v10682_v34  ;;  %v10700_v40 = vsel %vm578_vm1, %v595_v28, %v597_v33  ;;  %v604_v43 = vrot.slane %v10690_v38, 1  ;;  %v605_v44 = vrot.slane %v10693_v39, 1  ;;  %v10715_v47 = vld [vmem:[%s10599_s23 + $0x98] sm:$0xff]  ;;  %v607_v49 = vrot.slane %v10709_v45, 1  ;;  %v10736_v55 = vld [vmem:[%s10599_s23 + $0xa8] sm:$0xff]  ;;  %8335 = vmatprep.subr.msk.mxu0 %vm726_vm0, %v10733_v54 }
  0xbc   : > { %12550 = vst [vmem:[#allocation18_spill] sm:$0xff] %v10700_v40  ;;  %v10704_v42 = vsel %vm578_vm1, %v599_v35, %v600_v36  ;;  %v10722_v48 = vsel %vm578_vm1, %v600_v36, %v602_v41  ;;  %v609_v51 = vrot.slane %v10712_v46, 1  ;;  %v610_v52 = vrot.slane %v10715_v47, 1  ;;  %v10731_v53 = vld [vmem:[%s10599_s23 + $0xa0] sm:$0x3]  ;;  %v10739_v56 = vld [vmem:[%s10599_s23 + $0xb0] sm:$0xff] }
  0xbd   : > { %8241 = vmatmul.mubr.msk.f32.gmra.mrb[2].mxu0 %vm661_vm2, %v10656_v24  ;;  %12551 = vst [vmem:[#allocation19_spill] sm:$0xff] %v10704_v42  ;;  %12552 = vst [vmem:[#allocation20_spill] sm:$0xff] %v10722_v48  ;;  %v10726_v50 = vsel %vm578_vm1, %v604_v43, %v605_v44  ;;  %v10748_v57 = vsel %vm578_vm1, %v605_v44, %v607_v49  ;;  %v612_v58 = vrot.slane %v10731_v53, 1  ;;  %v614_v60 = vrot.slane %v10736_v55, 1  ;;  %v10757_v62 = vld [vmem:[%s10599_s23 + $0xb8] sm:$0x3] }
  0xbe   : > { %8243 = vmatprep.mubr.msk.f32.mxu0 %vm661_vm2, %v10660_v26  ;;  %12553 = vst [vmem:[#allocation21_spill] sm:$0xff] %v10726_v50  ;;  %12554 = vst [vmem:[#allocation22_spill] sm:$0xff] %v10748_v57  ;;  %v10752_v59 = vsel %vm578_vm1, %v609_v51, %v610_v52  ;;  %v615_v61 = vrot.slane %v10739_v56, 1  ;;  %v10760_v63 = vld [vmem:[%s10599_s23 + $0xc0] sm:$0xff]  ;;  %v10763_v0 = vld [vmem:[%s10599_s23 + $0xc8] sm:$0xff]  ;;  %v617_v4 = vrot.slane %v10757_v62, 1 }
  0xbf   : > { %12555 = vst [vmem:[#allocation23_spill] sm:$0xff] %v10752_v59  ;;  %v10770_v3 = vsel %vm578_vm1, %v610_v52, %v612_v58  ;;  %v619_v7 = vrot.slane %v10760_v63, 1  ;;  %v620_v11 = vrot.slane %v10763_v0, 1  ;;  %v10779_v12 = vld [vmem:[%s10599_s23 + $0xd0] sm:$0x3]  ;;  %v10782_v13 = vld [vmem:[%s10599_s23 + $0xd8] sm:$0xff] }
  0xc0   : > { %12556 = vst [vmem:[#allocation24_spill] sm:$0xff] %v10770_v3  ;;  %v10774_v5 = vsel %vm578_vm1, %v614_v60, %v615_v61  ;;  %v10785_v14 = vld [vmem:[%s10599_s23 + $0xe0] sm:$0xff]  ;;  %v10792_v17 = vsel %vm578_vm1, %v615_v61, %v617_v4  ;;  %v622_v18 = vrot.slane %v10779_v12, 1  ;;  %v624_v25 = vrot.slane %v10782_v13, 1  ;;  %v10801_v28 = vld [vmem:[%s10599_s23 + $0xe8] sm:$0x3] }
  0xc1   : > { %8244 = vmatmul.mubr.msk.f32.gmra.mrb[4].mxu0 %vm661_vm2, %v10678_v32  ;;  %12557 = vst [vmem:[#allocation25_spill] sm:$0xff] %v10774_v5  ;;  %12558 = vst [vmem:[#allocation26_spill] sm:$0xff] %v10792_v17  ;;  %v10796_v19 = vsel %vm578_vm1, %v619_v7, %v620_v11  ;;  %v625_v27 = vrot.slane %v10785_v14, 1  ;;  %v10804_v33 = vld [vmem:[%s10599_s23 + $0xf0] sm:$0xff]  ;;  %v10807_v35 = vld [vmem:[%s10599_s23 + $0xf8] sm:$0xff]  ;;  %v627_v41 = vrot.slane %v10801_v28, 1 }
  0xc2   : > { %8246 = vmatprep.mubr.msk.f32.mxu0 %vm661_vm2, %v10682_v34  ;;  %12559 = vst [vmem:[#allocation27_spill] sm:$0xff] %v10796_v19  ;;  %v10814_v36 = vsel %vm578_vm1, %v620_v11, %v622_v18  ;;  %v629_v44 = vrot.slane %v10804_v33, 1  ;;  %v630_v49 = vrot.slane %v10807_v35, 1  ;;  %v10823_v51 = vld [vmem:[%s10599_s23 + $0x100] sm:$0x3]  ;;  %v10826_v52 = vld [vmem:[%s10599_s23 + $0x108] sm:$0xff] }
  0xc3   : > { %12560 = vst [vmem:[#allocation28_spill] sm:$0xff] %v10814_v36  ;;  %v10818_v43 = vsel %vm578_vm1, %v624_v25, %v625_v27  ;;  %v10829_v58 = vld [vmem:[%s10599_s23 + $0x110] sm:$0xff]  ;;  %v10836_v60 = vsel %vm578_vm1, %v625_v27, %v627_v41  ;;  %v632_v61 = vrot.slane %v10823_v51, 1  ;;  %v634_v7 = vrot.slane %v10826_v52, 1  ;;  %v10845_v18 = vld [vmem:[%s10599_s23 + $0x118] sm:$0x3] }
  0xc4   : > { %12561 = vst [vmem:[#allocation29_spill] sm:$0xff] %v10818_v43  ;;  %12562 = vst [vmem:[#allocation30_spill] sm:$0xff] %v10836_v60  ;;  %v10840_v4 = vsel %vm578_vm1, %v629_v44, %v630_v49  ;;  %v635_v11 = vrot.slane %v10829_v58, 1  ;;  %v10848_v25 = vld [vmem:[%s10599_s23 + $0x120] sm:$0xff]  ;;  %v637_v41 = vrot.slane %v10845_v18, 1 }
  0xc5   : > { %8247 = vmatmul.mubr.msk.f32.gmra.mrb[6].mxu0 %vm661_vm2, %v10700_v40  ;;  %12563 = vst [vmem:[#allocation31_spill] sm:$0xff] %v10840_v4  ;;  %v10858_v27 = vsel %vm578_vm1, %v630_v49, %v632_v61  ;;  %v10933_v34 = vld [vmem:[%s10599_s23 + $0x178] sm:$0x3] }
  0xc6   : > { %8249 = vmatprep.mubr.msk.f32.mxu0 %vm661_vm2, %v10704_v42  ;;  %12564 = vst [vmem:[#allocation32_spill] sm:$0xff] %v10858_v27  ;;  %v10862_v44 = vsel %vm578_vm1, %v634_v7, %v635_v11  ;;  %v10880_v49 = vsel %vm578_vm1, %v635_v11, %v637_v41  ;;  %v10914_v42 = vld [vmem:[%s10599_s23 + $0x168] sm:$0xff] }
  0xc7   : > { %12565 = vst [vmem:[#allocation33_spill] sm:$0xff] %v10862_v44  ;;  %12566 = vst [vmem:[#allocation34_spill] sm:$0xff] %v10880_v49 }
  0xc9   : > { %8250 = vmatmul.mubr.msk.f32.gmra.mrb[8].mxu0 %vm661_vm2, %v10722_v48  ;;  %v10911_v48 = vld [vmem:[%s10599_s23 + $0x160] sm:$0x3] }
  0xca   : > { %8252 = vmatprep.mubr.msk.f32.mxu0 %vm661_vm2, %v10726_v50 }
  0xcd   : > { %8253 = vmatmul.mubr.msk.f32.gmra.mrb[10].mxu0 %vm661_vm2, %v10748_v57 }
  0xce   : > { %8255 = vmatprep.mubr.msk.f32.mxu0 %vm661_vm2, %v10752_v59  ;;  %v10889_v59 = vld [vmem:[%s10599_s23 + $0x148] sm:$0x3] }
  0xcf   : > { %v647_v11 = vrot.slane %v10889_v59, 1 }
  0xd1   : > { %8256 = vmatmul.mubr.msk.f32.gmra.mrb[12].mxu0 %vm661_vm2, %v10770_v3 }
  0xd2   : > { %8258 = vmatprep.mubr.msk.f32.mxu0 %vm661_vm2, %v10774_v5 }
  0xd5   : > { %8259 = vmatmul.mubr.msk.f32.gmra.mrb[14].mxu0 %vm661_vm2, %v10792_v17  ;;  %v10867_v17 = vld [vmem:[%s10599_s23 + $0x130] sm:$0x3] }
  0xd6   : > { %8261 = vmatprep.mubr.msk.f32.mxu0 %vm661_vm2, %v10796_v19  ;;  %v642_v61 = vrot.slane %v10867_v17, 1 }
  0xd9   : > { %8262 = vmatmul.mubr.msk.f32.gmra.mrb[16].mxu0 %vm661_vm2, %v10814_v36  ;;  %v639_v36 = vrot.slane %v10848_v25, 1 }
  0xda   : > { %8264 = vmatprep.mubr.msk.f32.mxu0 %vm661_vm2, %v10818_v43  ;;  %v10851_v43 = vld [vmem:[%s10599_s23 + $0x128] sm:$0xff] }
  0xdb   : > { %v640_v19 = vrot.slane %v10851_v43, 1 }
  0xdd   : > { %8265 = vmatmul.mubr.msk.f32.gmra.mrb[18].mxu0 %vm661_vm2, %v10836_v60  ;;  %v10870_v60 = vld [vmem:[%s10599_s23 + $0x138] sm:$0xff]  ;;  %v10884_v7 = vsel %vm578_vm1, %v639_v36, %v640_v19  ;;  %v10902_v36 = vsel %vm578_vm1, %v640_v19, %v642_v61 }
  0xde   : > { %8267 = vmatprep.mubr.msk.f32.mxu0 %vm661_vm2, %v10840_v4  ;;  %v10873_v4 = vld [vmem:[%s10599_s23 + $0x140] sm:$0xff]  ;;  %12567 = vst [vmem:[#allocation35_spill] sm:$0xff] %v10884_v7  ;;  %v644_v5 = vrot.slane %v10870_v60, 1  ;;  %12568 = vst [vmem:[#allocation36_spill] sm:$0xff] %v10902_v36 }
  0xdf   : > { %v645_v3 = vrot.slane %v10873_v4, 1 }
  0xe1   : > { %8268 = vmatmul.mubr.msk.f32.gmra.mrb[20].mxu0 %vm661_vm2, %v10858_v27  ;;  %v10892_v27 = vld [vmem:[%s10599_s23 + $0x150] sm:$0xff]  ;;  %v10906_v41 = vsel %vm578_vm1, %v644_v5, %v645_v3  ;;  %v10924_v19 = vsel %vm578_vm1, %v645_v3, %v647_v11  ;;  %v652_v5 = vrot.slane %v10911_v48, 1  ;;  %v657_v11 = vrot.slane %v10933_v34, 1 }
  0xe2   : > { %8270 = vmatprep.mubr.msk.f32.mxu0 %vm661_vm2, %v10862_v44  ;;  %v10895_v44 = vld [vmem:[%s10599_s23 + $0x158] sm:$0xff]  ;;  %12569 = vst [vmem:[#allocation37_spill] sm:$0xff] %v10906_v41  ;;  %v649_v57 = vrot.slane %v10892_v27, 1 }
  0xe3   : > { %v650_v50 = vrot.slane %v10895_v44, 1 }
  0xe5   : > { %8271 = vmatmul.mubr.msk.f32.gmra.mrb[22].mxu0 %vm661_vm2, %v10880_v49  ;;  %v10917_v49 = vld [vmem:[%s10599_s23 + $0x170] sm:$0xff]  ;;  %v10928_v61 = vsel %vm578_vm1, %v649_v57, %v650_v50  ;;  %v10940_v3 = vsel %vm578_vm1, %v650_v50, %v652_v5  ;;  %v1655_v50 = vld [vmem:[#allocation3 + $0xc] sm:$0xf] }
  0xe6   : > { %8273 = vmatprep.mubr.msk.f32.mxu0 %vm661_vm2, %v10884_v7  ;;  %12570 = vst [vmem:[#allocation38_spill] sm:$0xff] %v10928_v61  ;;  %v654_v7 = vrot.slane %v10914_v42, 1  ;;  %v655_v40 = vrot.slane %v10917_v49, 1  ;;  %12571 = vst [vmem:[#allocation39_spill] sm:$0xff] %v10940_v3 }
  0xe8   : > { %v10944_v57 = vsel %vm578_vm1, %v654_v7, %v655_v40  ;;  %v1251_v7 = vrot.slane %v10611_v6, 2 }
  0xe9   : > { %8274 = vmatmul.mubr.msk.f32.gmra.mrb[24].mxu0 %vm661_vm2, %v10902_v36  ;;  %12572 = vst [vmem:[#allocation40_spill] sm:$0xff] %v10944_v57 }
  0xea   : > { %8276 = vmatprep.mubr.msk.f32.mxu0 %vm661_vm2, %v10906_v41  ;;  %v10951_v41 = vsel %vm578_vm1, %v655_v40, %v657_v11  ;;  %v1248_v40 = vrot.slane %v10602_v1, 2  ;;  %v1253_v11 = vrot.slane %v10616_v8, 2 }
  0xeb   : > { %12573 = vst [vmem:[#allocation41_spill] sm:$0xff] %v10951_v41 }
  0xed   : > { %8277 = vmatmul.mubr.msk.f32.gmra.mrb[26].mxu0 %vm661_vm2, %v10924_v19 }
  0xee   : > { %8279 = vmatprep.mubr.msk.f32.mxu0 %vm661_vm2, %v10928_v61 }
  0xf1   : > { %8280 = vmatmul.mubr.msk.f32.gmra.mrb[28].mxu0 %vm661_vm2, %v10940_v3  ;;  %v11036_v3 = vld [vmem:[#allocation3 + $0x10] sm:$0xf] }
  0xf2   : > { %8282 = vmatprep.mubr.msk.f32.mxu0 %vm661_vm2, %v10944_v57  ;;  %v1258_v57 = vrot.slane %v10630_v15, 2 }
  0xf5   : > { %8283 = vmatmul.mubr.msk.f32.gmra.mrb[30].mxu0 %vm661_vm2, %v10951_v41  ;;  %v1254_v41 = vrot.slane %v10619_v9, 2 }
  0xf6   : > { %8287 = vmatprep.mubr.msk.f32.mxu0 %vm661_vm2, %v10602_v1 }
  0xf7   : > { %v11032_v6 = vsel %vm1247_vm3, %v1253_v11, %v1254_v41  ;;  %v1264_v11 = vrot.slane %v10646_v22, 2 }
  0xf9   : > { %8288 = vmatmul.mubr.msk.f32.vlgmr.msra.gmra.mrb[0].mxu0 %vm661_vm2, %v10605_v2 }
  0xfa   : > { %8336 = vmatpush3.msk.msra.mxu0 %vm726_vm0, %v10733_v54  ;;  %8290 = vmatprep.mubr.msk.f32.mxu0 %vm661_vm2, %v10616_v8  ;;  %v1249_v54 = vrot.slane %v10605_v2, 2  ;;  %v1256_v2 = vrot.slane %v10622_v10, 2  ;;  %v1261_v10 = vrot.slane %v10640_v20, 2  ;;  %v1266_v20 = vrot.slane %v10665_v29, 2 }
  0xfb   : > { %8385 = vmatprep.subr.msk.mxu0 %vm726_vm0, %v1655_v50 }
  0xfc   : > { %v1250_v5 = vsel %vm1247_vm3, %v1248_v40, %v1249_v54  ;;  %v1252_v1 = vsel %vm1247_vm3, %v1249_v54, %v1251_v7  ;;  %v1259_v40 = vrot.slane %v10633_v16, 2  ;;  %v11043_v54 = vsel %vm1247_vm3, %v1254_v41, %v1256_v2 }
  0xfd   : > { %8291 = vmatmul.mubr.msk.f32.gmra.mrb[2].mxu0 %vm661_vm2, %v10619_v9  ;;  %v11071_v2 = vsel %vm1247_vm3, %v1264_v11, %v1266_v20  ;;  %v1278_v20 = vrot.slane %v10712_v46, 2 }
  0xfe   : > { %8293 = vmatprep.mubr.msk.f32.mxu0 %vm661_vm2, %v10630_v15  ;;  %v11047_v7 = vsel %vm1247_vm3, %v1258_v57, %v1259_v40  ;;  %v11058_v41 = vsel %vm1247_vm3, %v1259_v40, %v1261_v10  ;;  %v1271_v40 = vrot.slane %v10687_v37, 2  ;;  %v1273_v10 = vrot.slane %v10690_v38, 2 }
 0x101   : > { %8294 = vmatmul.mubr.msk.f32.gmra.mrb[4].mxu0 %vm661_vm2, %v10633_v16 }
 0x102   : > { %8296 = vmatprep.mubr.msk.f32.mxu0 %vm661_vm2, %v10643_v21 }
 0x105   : > { %8297 = vmatmul.mubr.msk.f32.gmra.mrb[6].mxu0 %vm661_vm2, %v10646_v22 }
 0x106   : > { %8299 = vmatprep.mubr.msk.f32.mxu0 %vm661_vm2, %v10668_v30 }
 0x109   : > { %8300 = vmatmul.mubr.msk.f32.gmra.mrb[8].mxu0 %vm661_vm2, %v10671_v31 }
 0x10a   : > { %8302 = vmatprep.mubr.msk.f32.mxu0 %vm661_vm2, %v10690_v38 }
 0x10d   : > { %8303 = vmatmul.mubr.msk.f32.gmra.mrb[10].mxu0 %vm661_vm2, %v10693_v39 }
 0x10e   : > { %8305 = vmatprep.mubr.msk.f32.mxu0 %vm661_vm2, %v10712_v46 }
 0x111   : > { %8306 = vmatmul.mubr.msk.f32.gmra.mrb[12].mxu0 %vm661_vm2, %v10715_v47 }
 0x112   : > { %8308 = vmatprep.mubr.msk.f32.mxu0 %vm661_vm2, %v10736_v55 }
 0x115   : > { %8309 = vmatmul.mubr.msk.f32.gmra.mrb[14].mxu0 %vm661_vm2, %v10739_v56 }
 0x116   : > { %8311 = vmatprep.mubr.msk.f32.mxu0 %vm661_vm2, %v10760_v63 }
 0x119   : > { %8312 = vmatmul.mubr.msk.f32.gmra.mrb[16].mxu0 %vm661_vm2, %v10763_v0 }
 0x11a   : > { %8314 = vmatprep.mubr.msk.f32.mxu0 %vm661_vm2, %v10782_v13 }
 0x11d   : > { %8315 = vmatmul.mubr.msk.f32.gmra.mrb[18].mxu0 %vm661_vm2, %v10785_v14 }
 0x11e   : > { %8317 = vmatprep.mubr.msk.f32.mxu0 %vm661_vm2, %v10804_v33 }
 0x121   : > { %8318 = vmatmul.mubr.msk.f32.gmra.mrb[20].mxu0 %vm661_vm2, %v10807_v35 }
 0x122   : > { %8320 = vmatprep.mubr.msk.f32.mxu0 %vm661_vm2, %v10826_v52 }
 0x125   : > { %8321 = vmatmul.mubr.msk.f32.gmra.mrb[22].mxu0 %vm661_vm2, %v10829_v58 }
 0x126   : > { %8323 = vmatprep.mubr.msk.f32.mxu0 %vm661_vm2, %v10848_v25 }
 0x129   : > { %8324 = vmatmul.mubr.msk.f32.gmra.mrb[24].mxu0 %vm661_vm2, %v10851_v43 }
 0x12a   : > { %8326 = vmatprep.mubr.msk.f32.mxu0 %vm661_vm2, %v10870_v60 }
 0x12d   : > { %8327 = vmatmul.mubr.msk.f32.gmra.mrb[26].mxu0 %vm661_vm2, %v10873_v4 }
 0x12e   : > { %8329 = vmatprep.mubr.msk.f32.mxu0 %vm661_vm2, %v10892_v27 }
 0x131   : > { %8330 = vmatmul.mubr.msk.f32.gmra.mrb[28].mxu0 %vm661_vm2, %v10895_v44 }
 0x132   : > { %8332 = vmatprep.mubr.msk.f32.mxu0 %vm661_vm2, %v10914_v42 }
 0x135   : > { %8333 = vmatmul.mubr.msk.f32.gmra.mrb[30].mxu0 %vm661_vm2, %v10917_v49 }
 0x136   : > { %8337 = vmatprep.mubr.msk.f32.mxu0 %vm661_vm2, %v1250_v5  ;;  %v1263_v5 = vrot.slane %v10643_v21, 2 }
 0x138   : > { %v11062_v57 = vsel %vm1247_vm3, %v1263_v5, %v1264_v11  ;;  %v1274_v5 = vrot.slane %v10693_v39, 2  ;;  %v1276_v11 = vrot.slane %v10709_v45, 2 }
 0x139   : > { %8338 = vmatmul.mubr.msk.f32.vlgmr.msra.gmra.mrb[0].mxu0 %vm661_vm2, %v1252_v1  ;;  %12574 = vst [vmem:[#allocation42_spill] sm:$0xff] %v11062_v57  ;;  %v1269_v1 = vrot.slane %v10671_v31, 2 }
 0x13a   : > { %8386 = vmatpush3.msk.msra.mxu0 %vm726_vm0, %v1655_v50  ;;  %8340 = vmatprep.mubr.msk.f32.mxu0 %vm661_vm2, %v11032_v6  ;;  %v1268_v50 = vrot.slane %v10668_v30, 2  ;;  %v11088_v37 = vsel %vm1247_vm3, %v1273_v10, %v1274_v5  ;;  %v1284_v10 = vrot.slane %v10739_v56, 2 }
 0x13b   : > { %8435 = vmatprep.subr.msk.mxu0 %vm726_vm0, %v11036_v3  ;;  %12576 = vst [vmem:[#allocation44_spill] sm:$0xff] %v11088_v37 }
 0x13c   : > { %v11075_v29 = vsel %vm1247_vm3, %v1268_v50, %v1269_v1  ;;  %v1279_v50 = vrot.slane %v10715_v47, 2 }
 0x13d   : > { %8341 = vmatmul.mubr.msk.f32.gmra.mrb[2].mxu0 %vm661_vm2, %v11043_v54  ;;  %12575 = vst [vmem:[#allocation43_spill] sm:$0xff] %v11075_v29 }
 0x13e   : > { %8343 = vmatprep.mubr.msk.f32.mxu0 %vm661_vm2, %v11047_v7  ;;  %v11101_v45 = vsel %vm1247_vm3, %v1278_v20, %v1279_v50  ;;  %v1289_v20 = vrot.slane %v10763_v0, 2 }
 0x13f   : > { %12577 = vst [vmem:[#allocation45_spill] sm:$0xff] %v11101_v45 }
 0x141   : > { %8344 = vmatmul.mubr.msk.f32.gmra.mrb[4].mxu0 %vm661_vm2, %v11058_v41 }
 0x142   : > { %8346 = vmatprep.mubr.msk.f32.mxu0 %vm661_vm2, %v11062_v57  ;;  %v11084_v57 = vsel %vm1247_vm3, %v1269_v1, %v1271_v40  ;;  %v1281_v1 = vrot.slane %v10731_v53, 2  ;;  %v1283_v40 = vrot.slane %v10736_v55, 2 }
 0x144   : > { %v11114_v53 = vsel %vm1247_vm3, %v1283_v40, %v1284_v10  ;;  %v1294_v40 = vrot.slane %v10785_v14, 2 }
 0x145   : > { %8347 = vmatmul.mubr.msk.f32.gmra.mrb[6].mxu0 %vm661_vm2, %v11071_v2  ;;  %12578 = vst [vmem:[#allocation46_spill] sm:$0xff] %v11114_v53 }
 0x146   : > { %8349 = vmatprep.mubr.msk.f32.mxu0 %vm661_vm2, %v11075_v29  ;;  %v11097_v29 = vsel %vm1247_vm3, %v1274_v5, %v1276_v11  ;;  %v1286_v5 = vrot.slane %v10757_v62, 2  ;;  %v1288_v11 = vrot.slane %v10760_v63, 2 }
 0x148   : > { %v11127_v62 = vsel %vm1247_vm3, %v1288_v11, %v1289_v20  ;;  %v1299_v11 = vrot.slane %v10807_v35, 2 }
 0x149   : > { %8350 = vmatmul.mubr.msk.f32.gmra.mrb[8].mxu0 %vm661_vm2, %v11084_v57  ;;  %12579 = vst [vmem:[#allocation47_spill] sm:$0xff] %v11127_v62 }
 0x14a   : > { %8352 = vmatprep.mubr.msk.f32.mxu0 %vm661_vm2, %v11088_v37  ;;  %v11110_v37 = vsel %vm1247_vm3, %v1279_v50, %v1281_v1  ;;  %v1291_v50 = vrot.slane %v10779_v12, 2  ;;  %v1293_v1 = vrot.slane %v10782_v13, 2 }
 0x14c   : > { %v11140_v12 = vsel %vm1247_vm3, %v1293_v1, %v1294_v40  ;;  %v1304_v1 = vrot.slane %v10829_v58, 2 }
 0x14d   : > { %8353 = vmatmul.mubr.msk.f32.gmra.mrb[10].mxu0 %vm661_vm2, %v11097_v29  ;;  %12580 = vst [vmem:[#allocation48_spill] sm:$0xff] %v11140_v12 }
 0x14e   : > { %8355 = vmatprep.mubr.msk.f32.mxu0 %vm661_vm2, %v11101_v45  ;;  %v11123_v45 = vsel %vm1247_vm3, %v1284_v10, %v1286_v5  ;;  %v1296_v10 = vrot.slane %v10801_v28, 2  ;;  %v1298_v5 = vrot.slane %v10804_v33, 2 }
 0x150   : > { %v11153_v28 = vsel %vm1247_vm3, %v1298_v5, %v1299_v11  ;;  %v1309_v5 = vrot.slane %v10851_v43, 2 }
 0x151   : > { %8356 = vmatmul.mubr.msk.f32.gmra.mrb[12].mxu0 %vm661_vm2, %v11110_v37  ;;  %12581 = vst [vmem:[#allocation49_spill] sm:$0xff] %v11153_v28 }
 0x152   : > { %8358 = vmatprep.mubr.msk.f32.mxu0 %vm661_vm2, %v11114_v53  ;;  %v11136_v53 = vsel %vm1247_vm3, %v1289_v20, %v1291_v50  ;;  %v1301_v20 = vrot.slane %v10823_v51, 2  ;;  %v1303_v50 = vrot.slane %v10826_v52, 2 }
 0x154   : > { %v11166_v51 = vsel %vm1247_vm3, %v1303_v50, %v1304_v1  ;;  %v1314_v50 = vrot.slane %v10873_v4, 2 }
 0x155   : > { %8359 = vmatmul.mubr.msk.f32.gmra.mrb[14].mxu0 %vm661_vm2, %v11123_v45  ;;  %12583 = vst [vmem:[#allocation51_spill] sm:$0xff] %v11166_v51 }
 0x156   : > { %8361 = vmatprep.mubr.msk.f32.mxu0 %vm661_vm2, %v11127_v62  ;;  %v11149_v62 = vsel %vm1247_vm3, %v1294_v40, %v1296_v10  ;;  %v1306_v40 = vrot.slane %v10845_v18, 2  ;;  %v1308_v10 = vrot.slane %v10848_v25, 2 }
 0x158   : > { %v11179_v18 = vsel %vm1247_vm3, %v1308_v10, %v1309_v5  ;;  %v1319_v10 = vrot.slane %v10895_v44, 2 }
 0x159   : > { %8362 = vmatmul.mubr.msk.f32.gmra.mrb[16].mxu0 %vm661_vm2, %v11136_v53  ;;  %12584 = vst [vmem:[#allocation52_spill] sm:$0xff] %v11179_v18 }
 0x15a   : > { %8364 = vmatprep.mubr.msk.f32.mxu0 %vm661_vm2, %v11140_v12  ;;  %v11162_v12 = vsel %vm1247_vm3, %v1299_v11, %v1301_v20  ;;  %v1311_v11 = vrot.slane %v10867_v17, 2  ;;  %v1313_v20 = vrot.slane %v10870_v60, 2 }
 0x15b   : > { %12582 = vst [vmem:[#allocation50_spill] sm:$0xff] %v11162_v12 }
 0x15c   : > { %v11192_v17 = vsel %vm1247_vm3, %v1313_v20, %v1314_v50  ;;  %v1324_v20 = vrot.slane %v10917_v49, 2 }
 0x15d   : > { %8365 = vmatmul.mubr.msk.f32.gmra.mrb[18].mxu0 %vm661_vm2, %v11149_v62  ;;  %12586 = vst [vmem:[#allocation54_spill] sm:$0xff] %v11192_v17 }
 0x15e   : > { %8367 = vmatprep.mubr.msk.f32.mxu0 %vm661_vm2, %v11153_v28  ;;  %v11175_v28 = vsel %vm1247_vm3, %v1304_v1, %v1306_v40  ;;  %v1316_v1 = vrot.slane %v10889_v59, 2  ;;  %v1318_v40 = vrot.slane %v10892_v27, 2 }
 0x160   : > { %v11205_v59 = vsel %vm1247_vm3, %v1318_v40, %v1319_v10  ;;  %v2200_v40 = vld [vmem:[#allocation3 + $0x14] sm:$0xf] }
 0x161   : > { %8368 = vmatmul.mubr.msk.f32.gmra.mrb[20].mxu0 %vm661_vm2, %v11162_v12  ;;  %12587 = vst [vmem:[#allocation55_spill] sm:$0xff] %v11205_v59 }
 0x162   : > { %8370 = vmatprep.mubr.msk.f32.mxu0 %vm661_vm2, %v11166_v51  ;;  %v11188_v51 = vsel %vm1247_vm3, %v1309_v5, %v1311_v11  ;;  %v1321_v5 = vrot.slane %v10911_v48, 2  ;;  %v1323_v11 = vrot.slane %v10914_v42, 2 }
 0x163   : > { %12585 = vst [vmem:[#allocation53_spill] sm:$0xff] %v11188_v51 }
 0x164   : > { %v11218_v48 = vsel %vm1247_vm3, %v1323_v11, %v1324_v20  ;;  %v12594_v11 = vld [vmem:[#allocation22_spill] sm:$0xff] }
 0x165   : > { %8371 = vmatmul.mubr.msk.f32.gmra.mrb[22].mxu0 %vm661_vm2, %v11175_v28  ;;  %12588 = vst [vmem:[#allocation56_spill] sm:$0xff] %v11218_v48 }
 0x166   : > { %8373 = vmatprep.mubr.msk.f32.mxu0 %vm661_vm2, %v11179_v18  ;;  %v11201_v18 = vsel %vm1247_vm3, %v1314_v50, %v1316_v1  ;;  %v1326_v50 = vrot.slane %v10933_v34, 2  ;;  %v2466_v34 = vld [vmem:[#allocation3 + $0x18] sm:$0xf] }
 0x168   : > { %v11225_v1 = vsel %vm1247_vm3, %v1324_v20, %v1326_v50  ;;  %v12595_v20 = vld [vmem:[#allocation23_spill] sm:$0xff]  ;;  %v12596_v50 = vld [vmem:[#allocation24_spill] sm:$0xff] }
 0x169   : > { %8374 = vmatmul.mubr.msk.f32.gmra.mrb[24].mxu0 %vm661_vm2, %v11188_v51 }
 0x16a   : > { %8376 = vmatprep.mubr.msk.f32.mxu0 %vm661_vm2, %v11192_v17  ;;  %v11214_v17 = vsel %vm1247_vm3, %v1319_v10, %v1321_v5  ;;  %v12590_v10 = vld [vmem:[#allocation18_spill] sm:$0xff]  ;;  %v12593_v5 = vld [vmem:[#allocation21_spill] sm:$0xff] }
 0x16d   : > { %8377 = vmatmul.mubr.msk.f32.gmra.mrb[26].mxu0 %vm661_vm2, %v11201_v18 }
 0x16e   : > { %8379 = vmatprep.mubr.msk.f32.mxu0 %vm661_vm2, %v11205_v59 }
 0x171   : > { %8380 = vmatmul.mubr.msk.f32.gmra.mrb[28].mxu0 %vm661_vm2, %v11214_v17 }
 0x172   : > { %8382 = vmatprep.mubr.msk.f32.mxu0 %vm661_vm2, %v11218_v48 }
 0x175   : > { %8383 = vmatmul.mubr.msk.f32.gmra.mrb[30].mxu0 %vm661_vm2, %v11225_v1 }
 0x176   : > { %8387 = vmatprep.mubr.msk.f32.mxu0 %vm661_vm2, %v10616_v8  ;;  %v11291_v8 = vld [vmem:[%s10599_s23 + $0x180] sm:$0xff] }
 0x179   : > { %8388 = vmatmul.mubr.msk.f32.vlgmr.msra.gmra.mrb[0].mxu0 %vm661_vm2, %v10619_v9  ;;  %v11298_v9 = vld [vmem:[%s10599_s23 + $0x188] sm:$0xff] }
 0x17a   : > { %8436 = vmatpush3.msk.msra.mxu0 %vm726_vm0, %v11036_v3  ;;  %8390 = vmatprep.mubr.msk.f32.mxu0 %vm661_vm2, %v10630_v15  ;;  %v12589_v3 = vld [vmem:[#allocation17_spill] sm:$0xff] }
 0x17b   : > { %8485 = vmatprep.subr.msk.mxu0 %vm726_vm0, %v2200_v40 }
 0x17d   : > { %8391 = vmatmul.mubr.msk.f32.gmra.mrb[2].mxu0 %vm661_vm2, %v10633_v16 }
 0x17e   : > { %8393 = vmatprep.mubr.msk.f32.mxu0 %vm661_vm2, %v10643_v21 }
 0x181   : > { %8394 = vmatmul.mubr.msk.f32.gmra.mrb[4].mxu0 %vm661_vm2, %v10646_v22 }
 0x182   : > { %8396 = vmatprep.mubr.msk.f32.mxu0 %vm661_vm2, %v10668_v30 }
 0x185   : > { %8397 = vmatmul.mubr.msk.f32.gmra.mrb[6].mxu0 %vm661_vm2, %v10671_v31 }
 0x186   : > { %8399 = vmatprep.mubr.msk.f32.mxu0 %vm661_vm2, %v10690_v38 }
 0x189   : > { %8400 = vmatmul.mubr.msk.f32.gmra.mrb[8].mxu0 %vm661_vm2, %v10693_v39 }
 0x18a   : > { %8402 = vmatprep.mubr.msk.f32.mxu0 %vm661_vm2, %v10712_v46 }
 0x18d   : > { %8403 = vmatmul.mubr.msk.f32.gmra.mrb[10].mxu0 %vm661_vm2, %v10715_v47 }
 0x18e   : > { %8405 = vmatprep.mubr.msk.f32.mxu0 %vm661_vm2, %v10736_v55 }
 0x191   : > { %8406 = vmatmul.mubr.msk.f32.gmra.mrb[12].mxu0 %vm661_vm2, %v10739_v56 }
 0x192   : > { %8408 = vmatprep.mubr.msk.f32.mxu0 %vm661_vm2, %v10760_v63 }
 0x195   : > { %8409 = vmatmul.mubr.msk.f32.gmra.mrb[14].mxu0 %vm661_vm2, %v10763_v0 }
 0x196   : > { %8411 = vmatprep.mubr.msk.f32.mxu0 %vm661_vm2, %v10782_v13 }
 0x199   : > { %8412 = vmatmul.mubr.msk.f32.gmra.mrb[16].mxu0 %vm661_vm2, %v10785_v14 }
 0x19a   : > { %8414 = vmatprep.mubr.msk.f32.mxu0 %vm661_vm2, %v10804_v33 }
 0x19d   : > { %8415 = vmatmul.mubr.msk.f32.gmra.mrb[18].mxu0 %vm661_vm2, %v10807_v35 }
 0x19e   : > { %8417 = vmatprep.mubr.msk.f32.mxu0 %vm661_vm2, %v10826_v52 }
 0x1a1   : > { %8418 = vmatmul.mubr.msk.f32.gmra.mrb[20].mxu0 %vm661_vm2, %v10829_v58 }
 0x1a2   : > { %8420 = vmatprep.mubr.msk.f32.mxu0 %vm661_vm2, %v10848_v25 }
 0x1a5   : > { %8421 = vmatmul.mubr.msk.f32.gmra.mrb[22].mxu0 %vm661_vm2, %v10851_v43 }
 0x1a6   : > { %8423 = vmatprep.mubr.msk.f32.mxu0 %vm661_vm2, %v10870_v60 }
 0x1a9   : > { %8424 = vmatmul.mubr.msk.f32.gmra.mrb[24].mxu0 %vm661_vm2, %v10873_v4 }
 0x1aa   : > { %8426 = vmatprep.mubr.msk.f32.mxu0 %vm661_vm2, %v10892_v27 }
 0x1ad   : > { %8427 = vmatmul.mubr.msk.f32.gmra.mrb[26].mxu0 %vm661_vm2, %v10895_v44 }
 0x1ae   : > { %8429 = vmatprep.mubr.msk.f32.mxu0 %vm661_vm2, %v10914_v42 }
 0x1b1   : > { %8430 = vmatmul.mubr.msk.f32.gmra.mrb[28].mxu0 %vm661_vm2, %v10917_v49 }
 0x1b2   : > { %8432 = vmatprep.mubr.msk.f32.mxu0 %vm661_vm2, %v11291_v8 }
 0x1b5   : > { %8433 = vmatmul.mubr.msk.f32.gmra.mrb[30].mxu0 %vm661_vm2, %v11298_v9 }
 0x1b6   : > { %8437 = vmatprep.mubr.msk.f32.mxu0 %vm661_vm2, %v10650_v23  ;;  %v12591_v23 = vld [vmem:[#allocation19_spill] sm:$0xff] }
 0x1b9   : > { %8438 = vmatmul.mubr.msk.f32.vlgmr.msra.gmra.mrb[0].mxu0 %vm661_vm2, %v10656_v24  ;;  %v12592_v24 = vld [vmem:[#allocation20_spill] sm:$0xff] }
 0x1ba   : > { %8486 = vmatpush3.msk.msra.mxu0 %vm726_vm0, %v2200_v40  ;;  %8440 = vmatprep.mubr.msk.f32.mxu0 %vm661_vm2, %v10660_v26  ;;  %v12597_v40 = vld [vmem:[#allocation25_spill] sm:$0xff] }
 0x1bb   : > { %8535 = vmatprep.subr.msk.mxu0 %vm726_vm0, %v2466_v34 }
 0x1bd   : > { %8441 = vmatmul.mubr.msk.f32.gmra.mrb[2].mxu0 %vm661_vm2, %v10678_v32 }
 0x1be   : > { %8443 = vmatprep.mubr.msk.f32.mxu0 %vm661_vm2, %v12589_v3 }
 0x1c1   : > { %8444 = vmatmul.mubr.msk.f32.gmra.mrb[4].mxu0 %vm661_vm2, %v12590_v10  ;;  %v12598_v10 = vld [vmem:[#allocation26_spill] sm:$0xff] }
 0x1c2   : > { %8446 = vmatprep.mubr.msk.f32.mxu0 %vm661_vm2, %v12591_v23  ;;  %v12599_v23 = vld [vmem:[#allocation27_spill] sm:$0xff] }
 0x1c5   : > { %8447 = vmatmul.mubr.msk.f32.gmra.mrb[6].mxu0 %vm661_vm2, %v12592_v24  ;;  %v12606_v24 = vld [vmem:[#allocation34_spill] sm:$0xff] }
 0x1c6   : > { %8449 = vmatprep.mubr.msk.f32.mxu0 %vm661_vm2, %v12593_v5  ;;  %v12600_v5 = vld [vmem:[#allocation28_spill] sm:$0xff] }
 0x1c9   : > { %8450 = vmatmul.mubr.msk.f32.gmra.mrb[8].mxu0 %vm661_vm2, %v12594_v11  ;;  %v12601_v11 = vld [vmem:[#allocation29_spill] sm:$0xff] }
 0x1ca   : > { %8452 = vmatprep.mubr.msk.f32.mxu0 %vm661_vm2, %v12595_v20  ;;  %v12602_v20 = vld [vmem:[#allocation30_spill] sm:$0xff] }
 0x1cd   : > { %8453 = vmatmul.mubr.msk.f32.gmra.mrb[10].mxu0 %vm661_vm2, %v12596_v50  ;;  %v12603_v50 = vld [vmem:[#allocation31_spill] sm:$0xff] }
 0x1ce   : > { %8455 = vmatprep.mubr.msk.f32.mxu0 %vm661_vm2, %v12597_v40  ;;  %v12604_v40 = vld [vmem:[#allocation32_spill] sm:$0xff] }
 0x1d1   : > { %8456 = vmatmul.mubr.msk.f32.gmra.mrb[12].mxu0 %vm661_vm2, %v12598_v10  ;;  %v12605_v10 = vld [vmem:[#allocation33_spill] sm:$0xff] }
 0x1d2   : > { %8458 = vmatprep.mubr.msk.f32.mxu0 %vm661_vm2, %v12599_v23  ;;  %v12607_v23 = vld [vmem:[#allocation35_spill] sm:$0xff] }
 0x1d5   : > { %8459 = vmatmul.mubr.msk.f32.gmra.mrb[14].mxu0 %vm661_vm2, %v12600_v5 }
 0x1d6   : > { %8461 = vmatprep.mubr.msk.f32.mxu0 %vm661_vm2, %v12601_v11  ;;  %v12608_v11 = vld [vmem:[#allocation37_spill] sm:$0xff] }
 0x1d9   : > { %8462 = vmatmul.mubr.msk.f32.gmra.mrb[16].mxu0 %vm661_vm2, %v12602_v20  ;;  %v12611_v20 = vld [vmem:[#allocation41_spill] sm:$0xff] }
 0x1da   : > { %8464 = vmatprep.mubr.msk.f32.mxu0 %vm661_vm2, %v12603_v50  ;;  %v12609_v50 = vld [vmem:[#allocation39_spill] sm:$0xff] }
 0x1dd   : > { %8465 = vmatmul.mubr.msk.f32.gmra.mrb[18].mxu0 %vm661_vm2, %v12604_v40  ;;  %v1924_v40 = vrot.slane %v11298_v9, 1 }
 0x1de   : > { %8467 = vmatprep.mubr.msk.f32.mxu0 %vm661_vm2, %v12605_v10  ;;  %v1923_v10 = vrot.slane %v11291_v8, 1 }
 0x1e1   : > { %8468 = vmatmul.mubr.msk.f32.gmra.mrb[20].mxu0 %vm661_vm2, %v12606_v24  ;;  %v525_v24 = vld [vmem:[%s10599_s23 + $0x190] sm:$0x3] }
 0x1e2   : > { %8470 = vmatprep.mubr.msk.f32.mxu0 %vm661_vm2, %v12607_v23  ;;  %v12610_v23 = vld [vmem:[#allocation40_spill] sm:$0xff] }
 0x1e5   : > { %8471 = vmatmul.mubr.msk.f32.gmra.mrb[22].mxu0 %vm661_vm2, %v10902_v36  ;;  %v1926_v36 = vrot.slane %v525_v24, 1 }
 0x1e6   : > { %8473 = vmatprep.mubr.msk.f32.mxu0 %vm661_vm2, %v12608_v11  ;;  %v11366_v11 = vsel %vm578_vm1, %v1923_v10, %v1924_v40  ;;  %v12616_v10 = vld [vmem:[#allocation46_spill] sm:$0xff] }
 0x1e9   : > { %8474 = vmatmul.mubr.msk.f32.gmra.mrb[24].mxu0 %vm661_vm2, %v10924_v19 }
 0x1ea   : > { %8476 = vmatprep.mubr.msk.f32.mxu0 %vm661_vm2, %v10928_v61  ;;  %v11373_v61 = vsel %vm578_vm1, %v1924_v40, %v1926_v36  ;;  %v12612_v36 = vld [vmem:[#allocation42_spill] sm:$0xff]  ;;  %v12617_v40 = vld [vmem:[#allocation47_spill] sm:$0xff] }
 0x1ed   : > { %8477 = vmatmul.mubr.msk.f32.gmra.mrb[26].mxu0 %vm661_vm2, %v12609_v50 }
 0x1ee   : > { %8479 = vmatprep.mubr.msk.f32.mxu0 %vm661_vm2, %v12610_v23  ;;  %v2740_v23 = vld [vmem:[#allocation3 + $0x1c] sm:$0xf] }
 0x1f1   : > { %8480 = vmatmul.mubr.msk.f32.gmra.mrb[28].mxu0 %vm661_vm2, %v12611_v20 }
 0x1f2   : > { %8482 = vmatprep.mubr.msk.f32.mxu0 %vm661_vm2, %v11366_v11 }
 0x1f5   : > { %8483 = vmatmul.mubr.msk.f32.gmra.mrb[30].mxu0 %vm661_vm2, %v11373_v61 }
 0x1f6   : > { %8487 = vmatprep.mubr.msk.f32.mxu0 %vm661_vm2, %v11032_v6  ;;  %v12613_v6 = vld [vmem:[#allocation43_spill] sm:$0xff] }
 0x1f9   : > { %8488 = vmatmul.mubr.msk.f32.vlgmr.msra.gmra.mrb[0].mxu0 %vm661_vm2, %v11043_v54  ;;  %v12614_v54 = vld [vmem:[#allocation44_spill] sm:$0xff] }
 0x1fa   : > { %8536 = vmatpush3.msk.msra.mxu0 %vm726_vm0, %v2466_v34  ;;  %8490 = vmatprep.mubr.msk.f32.mxu0 %vm661_vm2, %v11047_v7  ;;  %v12615_v34 = vld [vmem:[#allocation45_spill] sm:$0xff] }
 0x1fb   : > { %8585 = vmatprep.subr.msk.mxu0 %vm726_vm0, %v2740_v23 }
 0x1fd   : > { %8491 = vmatmul.mubr.msk.f32.gmra.mrb[2].mxu0 %vm661_vm2, %v11058_v41 }
 0x1fe   : > { %8493 = vmatprep.mubr.msk.f32.mxu0 %vm661_vm2, %v12612_v36 }
 0x201   : > { %8494 = vmatmul.mubr.msk.f32.gmra.mrb[4].mxu0 %vm661_vm2, %v11071_v2 }
 0x202   : > { %8496 = vmatprep.mubr.msk.f32.mxu0 %vm661_vm2, %v12613_v6 }
 0x205   : > { %8497 = vmatmul.mubr.msk.f32.gmra.mrb[6].mxu0 %vm661_vm2, %v11084_v57 }
 0x206   : > { %8499 = vmatprep.mubr.msk.f32.mxu0 %vm661_vm2, %v12614_v54  ;;  %v12618_v54 = vld [vmem:[#allocation48_spill] sm:$0xff] }
 0x209   : > { %8500 = vmatmul.mubr.msk.f32.gmra.mrb[8].mxu0 %vm661_vm2, %v11097_v29 }
 0x20a   : > { %8502 = vmatprep.mubr.msk.f32.mxu0 %vm661_vm2, %v12615_v34  ;;  %v12619_v34 = vld [vmem:[#allocation49_spill] sm:$0xff] }
 0x20d   : > { %8503 = vmatmul.mubr.msk.f32.gmra.mrb[10].mxu0 %vm661_vm2, %v11110_v37 }
 0x20e   : > { %8505 = vmatprep.mubr.msk.f32.mxu0 %vm661_vm2, %v12616_v10  ;;  %v12620_v10 = vld [vmem:[#allocation51_spill] sm:$0xff] }
 0x211   : > { %8506 = vmatmul.mubr.msk.f32.gmra.mrb[12].mxu0 %vm661_vm2, %v11123_v45 }
 0x212   : > { %8508 = vmatprep.mubr.msk.f32.mxu0 %vm661_vm2, %v12617_v40  ;;  %v12621_v40 = vld [vmem:[#allocation52_spill] sm:$0xff] }
 0x215   : > { %8509 = vmatmul.mubr.msk.f32.gmra.mrb[14].mxu0 %vm661_vm2, %v11136_v53 }
 0x216   : > { %8511 = vmatprep.mubr.msk.f32.mxu0 %vm661_vm2, %v12618_v54  ;;  %v12622_v54 = vld [vmem:[#allocation54_spill] sm:$0xff] }
 0x219   : > { %8512 = vmatmul.mubr.msk.f32.gmra.mrb[16].mxu0 %vm661_vm2, %v11149_v62 }
 0x21a   : > { %8514 = vmatprep.mubr.msk.f32.mxu0 %vm661_vm2, %v12619_v34 }
 0x21d   : > { %8515 = vmatmul.mubr.msk.f32.gmra.mrb[18].mxu0 %vm661_vm2, %v11162_v12  ;;  %v2195_v12 = vrot.slane %v11298_v9, 2 }
 0x21e   : > { %8517 = vmatprep.mubr.msk.f32.mxu0 %vm661_vm2, %v12620_v10  ;;  %v2194_v10 = vrot.slane %v11291_v8, 2 }
 0x221   : > { %8518 = vmatmul.mubr.msk.f32.gmra.mrb[20].mxu0 %vm661_vm2, %v11175_v28 }
 0x222   : > { %8520 = vmatprep.mubr.msk.f32.mxu0 %vm661_vm2, %v12621_v40  ;;  %v11440_v40 = vsel %vm1247_vm3, %v2194_v10, %v2195_v12 }
 0x225   : > { %8521 = vmatmul.mubr.msk.f32.gmra.mrb[22].mxu0 %vm661_vm2, %v11188_v51  ;;  %v2197_v51 = vrot.slane %v525_v24, 2 }
 0x226   : > { %8523 = vmatprep.mubr.msk.f32.mxu0 %vm661_vm2, %v12622_v54 }
 0x229   : > { %8524 = vmatmul.mubr.msk.f32.gmra.mrb[24].mxu0 %vm661_vm2, %v11201_v18 }
 0x22a   : > { %8526 = vmatprep.mubr.msk.f32.mxu0 %vm661_vm2, %v11205_v59  ;;  %v11447_v59 = vsel %vm1247_vm3, %v2195_v12, %v2197_v51 }
 0x22d   : > { %8527 = vmatmul.mubr.msk.f32.gmra.mrb[26].mxu0 %vm661_vm2, %v11214_v17 }
 0x22e   : > { %8529 = vmatprep.mubr.msk.f32.mxu0 %vm661_vm2, %v11218_v48  ;;  %v3011_v48 = vld [vmem:[#allocation3 + $0x20] sm:$0xf] }
 0x231   : > { %8530 = vmatmul.mubr.msk.f32.gmra.mrb[28].mxu0 %vm661_vm2, %v11225_v1 }
 0x232   : > { %8532 = vmatprep.mubr.msk.f32.mxu0 %vm661_vm2, %v11440_v40 }
 0x235   : > { %8533 = vmatmul.mubr.msk.f32.gmra.mrb[30].mxu0 %vm661_vm2, %v11447_v59 }
 0x236   : > { %8537 = vmatprep.mubr.msk.f32.mxu0 %vm661_vm2, %v10630_v15  ;;  %v11512_v15 = vld [vmem:[%s10599_s23 + $0x198] sm:$0xff] }
 0x239   : > { %8538 = vmatmul.mubr.msk.f32.vlgmr.msra.gmra.mrb[0].mxu0 %vm661_vm2, %v10633_v16  ;;  %v11519_v16 = vld [vmem:[%s10599_s23 + $0x1a0] sm:$0xff] }
 0x23a   : > { %8586 = vmatpush3.msk.msra.mxu0 %vm726_vm0, %v2740_v23  ;;  %8540 = vmatprep.mubr.msk.f32.mxu0 %vm661_vm2, %v10643_v21  ;;  %v12623_v21 = vld [vmem:[#allocation18_spill] sm:$0xff]  ;;  %v3006_v12 = vrot.slane %v11519_v16, 2 }
 0x23b   : > { %8635 = vmatprep.subr.msk.mxu0 %vm726_vm0, %v3011_v48 }
 0x23d   : > { %8541 = vmatmul.mubr.msk.f32.gmra.mrb[2].mxu0 %vm661_vm2, %v10646_v22  ;;  %v12624_v22 = vld [vmem:[#allocation19_spill] sm:$0xff] }
 0x23e   : > { %8543 = vmatprep.mubr.msk.f32.mxu0 %vm661_vm2, %v10668_v30  ;;  %v12625_v30 = vld [vmem:[#allocation20_spill] sm:$0xff] }
 0x241   : > { %8544 = vmatmul.mubr.msk.f32.gmra.mrb[4].mxu0 %vm661_vm2, %v10671_v31  ;;  %v12626_v31 = vld [vmem:[#allocation21_spill] sm:$0xff] }
 0x242   : > { %8546 = vmatprep.mubr.msk.f32.mxu0 %vm661_vm2, %v10690_v38  ;;  %v12629_v38 = vld [vmem:[#allocation24_spill] sm:$0xff] }
 0x245   : > { %8547 = vmatmul.mubr.msk.f32.gmra.mrb[6].mxu0 %vm661_vm2, %v10693_v39  ;;  %v12630_v39 = vld [vmem:[#allocation25_spill] sm:$0xff] }
 0x246   : > { %8549 = vmatprep.mubr.msk.f32.mxu0 %vm661_vm2, %v10712_v46  ;;  %v12632_v46 = vld [vmem:[#allocation27_spill] sm:$0xff] }
 0x249   : > { %8550 = vmatmul.mubr.msk.f32.gmra.mrb[8].mxu0 %vm661_vm2, %v10715_v47  ;;  %v12633_v47 = vld [vmem:[#allocation29_spill] sm:$0xff] }
 0x24a   : > { %8552 = vmatprep.mubr.msk.f32.mxu0 %vm661_vm2, %v10736_v55  ;;  %v12634_v55 = vld [vmem:[#allocation30_spill] sm:$0xff] }
 0x24d   : > { %8553 = vmatmul.mubr.msk.f32.gmra.mrb[10].mxu0 %vm661_vm2, %v10739_v56  ;;  %v12635_v56 = vld [vmem:[#allocation31_spill] sm:$0xff] }
 0x24e   : > { %8555 = vmatprep.mubr.msk.f32.mxu0 %vm661_vm2, %v10760_v63  ;;  %v12636_v63 = vld [vmem:[#allocation32_spill] sm:$0xff] }
 0x251   : > { %8556 = vmatmul.mubr.msk.f32.gmra.mrb[12].mxu0 %vm661_vm2, %v10763_v0  ;;  %v12637_v0 = vld [vmem:[#allocation33_spill] sm:$0xff] }
 0x252   : > { %8558 = vmatprep.mubr.msk.f32.mxu0 %vm661_vm2, %v10782_v13  ;;  %v12638_v13 = vld [vmem:[#allocation34_spill] sm:$0xff] }
 0x255   : > { %8559 = vmatmul.mubr.msk.f32.gmra.mrb[14].mxu0 %vm661_vm2, %v10785_v14  ;;  %v12639_v14 = vld [vmem:[#allocation35_spill] sm:$0xff] }
 0x256   : > { %8561 = vmatprep.mubr.msk.f32.mxu0 %vm661_vm2, %v10804_v33  ;;  %v12640_v33 = vld [vmem:[#allocation36_spill] sm:$0xff] }
 0x259   : > { %8562 = vmatmul.mubr.msk.f32.gmra.mrb[16].mxu0 %vm661_vm2, %v10807_v35  ;;  %v12641_v35 = vld [vmem:[#allocation37_spill] sm:$0xff] }
 0x25a   : > { %8564 = vmatprep.mubr.msk.f32.mxu0 %vm661_vm2, %v10826_v52  ;;  %v12643_v52 = vld [vmem:[#allocation40_spill] sm:$0xff] }
 0x25d   : > { %8565 = vmatmul.mubr.msk.f32.gmra.mrb[18].mxu0 %vm661_vm2, %v10829_v58  ;;  %v2734_v58 = vrot.slane %v11512_v15, 1 }
 0x25e   : > { %8567 = vmatprep.mubr.msk.f32.mxu0 %vm661_vm2, %v10848_v25 }
 0x261   : > { %8568 = vmatmul.mubr.msk.f32.gmra.mrb[20].mxu0 %vm661_vm2, %v10851_v43  ;;  %v12642_v43 = vld [vmem:[#allocation38_spill] sm:$0xff] }
 0x262   : > { %8570 = vmatprep.mubr.msk.f32.mxu0 %vm661_vm2, %v10870_v60  ;;  %v2735_v60 = vrot.slane %v11519_v16, 1 }
 0x265   : > { %8571 = vmatmul.mubr.msk.f32.gmra.mrb[22].mxu0 %vm661_vm2, %v10873_v4  ;;  %v528_v4 = vld [vmem:[%s10599_s23 + $0x1a8] sm:$0x3] }
 0x266   : > { %8573 = vmatprep.mubr.msk.f32.mxu0 %vm661_vm2, %v10892_v27  ;;  %v2737_v25 = vrot.slane %v528_v4, 1  ;;  %v2736_v27 = vsel %vm578_vm1, %v2734_v58, %v2735_v60 }
 0x269   : > { %8574 = vmatmul.mubr.msk.f32.gmra.mrb[24].mxu0 %vm661_vm2, %v10895_v44  ;;  %v2738_v44 = vsel %vm578_vm1, %v2735_v60, %v2737_v25 }
 0x26a   : > { %8576 = vmatprep.mubr.msk.f32.mxu0 %vm661_vm2, %v10914_v42  ;;  %v12631_v42 = vld [vmem:[#allocation26_spill] sm:$0xff] }
 0x26d   : > { %8577 = vmatmul.mubr.msk.f32.gmra.mrb[26].mxu0 %vm661_vm2, %v10917_v49  ;;  %v12644_v49 = vld [vmem:[#allocation44_spill] sm:$0xff] }
 0x26e   : > { %8579 = vmatprep.mubr.msk.f32.mxu0 %vm661_vm2, %v11291_v8 }
 0x271   : > { %8580 = vmatmul.mubr.msk.f32.gmra.mrb[28].mxu0 %vm661_vm2, %v11298_v9  ;;  %v11668_v9 = vld [vmem:[#allocation10 + $0x40] sm:$0xff] }
 0x272   : > { %8582 = vmatprep.mubr.msk.f32.mxu0 %vm661_vm2, %v11512_v15 }
 0x275   : > { %8583 = vmatmul.mubr.msk.f32.gmra.mrb[30].mxu0 %vm661_vm2, %v11519_v16 }
 0x276   : > { %8587 = vmatprep.mubr.msk.f32.mxu0 %vm661_vm2, %v10660_v26  ;;  %v12627_v26 = vld [vmem:[#allocation22_spill] sm:$0xff] }
 0x279   : > { %8588 = vmatmul.mubr.msk.f32.vlgmr.msra.gmra.mrb[0].mxu0 %vm661_vm2, %v10678_v32  ;;  %v12628_v32 = vld [vmem:[#allocation23_spill] sm:$0xff] }
 0x27a   : > { %8636 = vmatpush3.msk.msra.mxu0 %vm726_vm0, %v3011_v48  ;;  %8590 = vmatprep.mubr.msk.f32.mxu0 %vm661_vm2, %v12589_v3  ;;  %v11671_v3 = vld [vmem:[#allocation5] ss:$0 sm:$0xff] }
 0x27d   : > { %8591 = vmatmul.mubr.msk.f32.gmra.mrb[2].mxu0 %vm661_vm2, %v12623_v21 }
 0x27e   : > { %8593 = vmatprep.mubr.msk.f32.mxu0 %vm661_vm2, %v12624_v22 }
 0x281   : > { %8594 = vmatmul.mubr.msk.f32.gmra.mrb[4].mxu0 %vm661_vm2, %v12625_v30 }
 0x282   : > { %8596 = vmatprep.mubr.msk.f32.mxu0 %vm661_vm2, %v12626_v31 }
 0x285   : > { %8597 = vmatmul.mubr.msk.f32.gmra.mrb[6].mxu0 %vm661_vm2, %v12627_v26 }
 0x286   : > { %8599 = vmatprep.mubr.msk.f32.mxu0 %vm661_vm2, %v12628_v32 }
 0x289   : > { %8600 = vmatmul.mubr.msk.f32.gmra.mrb[8].mxu0 %vm661_vm2, %v12629_v38 }
 0x28a   : > { %8602 = vmatprep.mubr.msk.f32.mxu0 %vm661_vm2, %v12630_v39 }
 0x28d   : > { %8603 = vmatmul.mubr.msk.f32.gmra.mrb[10].mxu0 %vm661_vm2, %v12631_v42 }
 0x28e   : > { %8605 = vmatprep.mubr.msk.f32.mxu0 %vm661_vm2, %v12632_v46 }
 0x291   : > { %8606 = vmatmul.mubr.msk.f32.gmra.mrb[12].mxu0 %vm661_vm2, %v12600_v5 }
 0x292   : > { %8608 = vmatprep.mubr.msk.f32.mxu0 %vm661_vm2, %v12633_v47 }
 0x295   : > { %8609 = vmatmul.mubr.msk.f32.gmra.mrb[14].mxu0 %vm661_vm2, %v12634_v55 }
 0x296   : > { %8611 = vmatprep.mubr.msk.f32.mxu0 %vm661_vm2, %v12635_v56 }
 0x299   : > { %8612 = vmatmul.mubr.msk.f32.gmra.mrb[16].mxu0 %vm661_vm2, %v12636_v63 }
 0x29a   : > { %8614 = vmatprep.mubr.msk.f32.mxu0 %vm661_vm2, %v12637_v0 }
 0x29d   : > { %8615 = vmatmul.mubr.msk.f32.gmra.mrb[18].mxu0 %vm661_vm2, %v12638_v13 }
 0x29e   : > { %8617 = vmatprep.mubr.msk.f32.mxu0 %vm661_vm2, %v12639_v14 }
 0x2a1   : > { %8618 = vmatmul.mubr.msk.f32.gmra.mrb[20].mxu0 %vm661_vm2, %v12640_v33 }
 0x2a2   : > { %8620 = vmatprep.mubr.msk.f32.mxu0 %vm661_vm2, %v12641_v35 }
 0x2a5   : > { %8621 = vmatmul.mubr.msk.f32.gmra.mrb[22].mxu0 %vm661_vm2, %v10924_v19  ;;  %v12645_v19 = vld [vmem:[#allocation45_spill] sm:$0xff] }
 0x2a6   : > { %8623 = vmatprep.mubr.msk.f32.mxu0 %vm661_vm2, %v12642_v43 }
 0x2a9   : > { %8624 = vmatmul.mubr.msk.f32.gmra.mrb[24].mxu0 %vm661_vm2, %v12609_v50 }
 0x2aa   : > { %8626 = vmatprep.mubr.msk.f32.mxu0 %vm661_vm2, %v12643_v52 }
 0x2ad   : > { %8627 = vmatmul.mubr.msk.f32.gmra.mrb[26].mxu0 %vm661_vm2, %v12611_v20 }
 0x2ae   : > { %8629 = vmatprep.mubr.msk.f32.mxu0 %vm661_vm2, %v11366_v11 }
 0x2b1   : > { %8630 = vmatmul.mubr.msk.f32.gmra.mrb[28].mxu0 %vm661_vm2, %v11373_v61  ;;  %v12646_v61 = vld [vmem:[#allocation46_spill] sm:$0xff] }
 0x2b2   : > { %8632 = vmatprep.mubr.msk.f32.mxu0 %vm661_vm2, %v2736_v27 }
 0x2b5   : > { %8633 = vmatmul.mubr.msk.f32.gmra.mrb[30].mxu0 %vm661_vm2, %v2738_v44 }
 0x2b6   : > { %8637 = vmatprep.mubr.msk.f32.mxu0 %vm661_vm2, %v11047_v7  ;;  %v12647_v7 = vld [vmem:[#allocation47_spill] sm:$0xff] }
 0x2b9   : > { %8638 = vmatmul.mubr.msk.f32.vlgmr.msra.gmra.mrb[0].mxu0 %vm661_vm2, %v11058_v41  ;;  %v12648_v41 = vld [vmem:[#allocation48_spill] sm:$0xff] }
 0x2ba   : > { %8640 = vmatprep.mubr.msk.f32.mxu0 %vm661_vm2, %v12612_v36 }
 0x2bd   : > { %8641 = vmatmul.mubr.msk.f32.gmra.mrb[2].mxu0 %vm661_vm2, %v11071_v2  ;;  %v12650_v2 = vld [vmem:[#allocation51_spill] sm:$0xff] }
 0x2be   : > { %8643 = vmatprep.mubr.msk.f32.mxu0 %vm661_vm2, %v12613_v6 }
 0x2c1   : > { %8644 = vmatmul.mubr.msk.f32.gmra.mrb[4].mxu0 %vm661_vm2, %v11084_v57  ;;  %v12649_v57 = vld [vmem:[#allocation50_spill] sm:$0xff] }
 0x2c2   : > { %8646 = vmatprep.mubr.msk.f32.mxu0 %vm661_vm2, %v12644_v49 }
 0x2c5   : > { %8647 = vmatmul.mubr.msk.f32.gmra.mrb[6].mxu0 %vm661_vm2, %v11097_v29  ;;  %v12651_v29 = vld [vmem:[#allocation52_spill] sm:$0xff] }
 0x2c6   : > { %8649 = vmatprep.mubr.msk.f32.mxu0 %vm661_vm2, %v12645_v19 }
 0x2c9   : > { %8650 = vmatmul.mubr.msk.f32.gmra.mrb[8].mxu0 %vm661_vm2, %v11110_v37  ;;  %v12652_v37 = vld [vmem:[#allocation53_spill] sm:$0xff] }
 0x2ca   : > { %8652 = vmatprep.mubr.msk.f32.mxu0 %vm661_vm2, %v12646_v61 }
 0x2cd   : > { %8653 = vmatmul.mubr.msk.f32.gmra.mrb[10].mxu0 %vm661_vm2, %v11123_v45  ;;  %v12653_v45 = vld [vmem:[#allocation55_spill] sm:$0xff] }
 0x2ce   : > { %8655 = vmatprep.mubr.msk.f32.mxu0 %vm661_vm2, %v12647_v7 }
 0x2d1   : > { %8656 = vmatmul.mubr.msk.f32.gmra.mrb[12].mxu0 %vm661_vm2, %v11136_v53  ;;  %v12654_v53 = vld [vmem:[#allocation56_spill] sm:$0xff] }
 0x2d2   : > { %8658 = vmatprep.mubr.msk.f32.mxu0 %vm661_vm2, %v12648_v41 }
 0x2d5   : > { %8659 = vmatmul.mubr.msk.f32.gmra.mrb[14].mxu0 %vm661_vm2, %v11149_v62  ;;  %v3005_v62 = vrot.slane %v11512_v15, 2 }
 0x2d6   : > { %8661 = vmatprep.mubr.msk.f32.mxu0 %vm661_vm2, %v12619_v34 }
 0x2d7   : > { %v3007_v51 = vsel %vm1247_vm3, %v3005_v62, %v3006_v12 }
 0x2d9   : > { %8662 = vmatmul.mubr.msk.f32.gmra.mrb[16].mxu0 %vm661_vm2, %v12649_v57 }
 0x2da   : > { %8664 = vmatprep.mubr.msk.f32.mxu0 %vm661_vm2, %v12650_v2 }
 0x2dd   : > { %8665 = vmatmul.mubr.msk.f32.gmra.mrb[18].mxu0 %vm661_vm2, %v11175_v28  ;;  %v3008_v28 = vrot.slane %v528_v4, 2 }
 0x2de   : > { %8667 = vmatprep.mubr.msk.f32.mxu0 %vm661_vm2, %v12651_v29 }
 0x2e1   : > { %8668 = vmatmul.mubr.msk.f32.gmra.mrb[20].mxu0 %vm661_vm2, %v12652_v37 }
 0x2e2   : > { %8670 = vmatprep.mubr.msk.f32.mxu0 %vm661_vm2, %v12622_v54 }
 0x2e5   : > { %8671 = vmatmul.mubr.msk.f32.gmra.mrb[22].mxu0 %vm661_vm2, %v11201_v18  ;;  %v3009_v18 = vsel %vm1247_vm3, %v3006_v12, %v3008_v28 }
 0x2e6   : > { %8673 = vmatprep.mubr.msk.f32.mxu0 %vm661_vm2, %v12653_v45 }
 0x2e9   : > { %8674 = vmatmul.mubr.msk.f32.gmra.mrb[24].mxu0 %vm661_vm2, %v11214_v17  ;;  %v10354_v17 = vmov 0.0  }
 0x2ea   : > { %8676 = vmatprep.mubr.msk.f32.mxu0 %vm661_vm2, %v12654_v53  ;;  %3348 = vst.msk [vmem:[#allocation2] sm:$0xff] %vm3347_vm4, %v10354_v17  ;;  %3349 = vst.msk [vmem:[#allocation2 + $0x8] sm:$0xff] %vm3347_vm4, %v10354_v17 }
 0x2ed   : > { %8677 = vmatmul.mubr.msk.f32.gmra.mrb[26].mxu0 %vm661_vm2, %v11225_v1 }
 0x2ee   : > { %8679 = vmatprep.mubr.msk.f32.mxu0 %vm661_vm2, %v11440_v40 }
 0x2f1   : > { %8680 = vmatmul.mubr.msk.f32.gmra.mrb[28].mxu0 %vm661_vm2, %v11447_v59  ;;  %v3386_v48 = vld [vmem:[#allocation2] sm:$0xff]  ;;  %v3387_v1 = vld [vmem:[#allocation2 + $0x8] sm:$0xff]  ;;  %v11665_v59 = vld [vmem:[#allocation10] sm:$0xff] }
 0x2f2   : > { %8682 = vmatprep.mubr.msk.f32.mxu0 %vm661_vm2, %v3007_v51  ;;  %v11659_v8 = vpack.c.bf16 %v3387_v1, %v3386_v48  ;;  %8717 = vmatprep.mubr.f32.mxu1 %v11665_v59 }
 0x2f4   : > { %9352 = vmatprep.subr.bf16.mxu1 %v11659_v8  ;;  %9384 = vmatprep.subr.bf16.mxu0 %v11659_v8 }
 0x2f5   : > { %8683 = vmatmul.mubr.msk.f32.gmra.mrb[30].mxu0 %vm661_vm2, %v3009_v18  ;;  %9354 = vmatpush3.bf16.msra.mxu1 %v11659_v8 }
 0x2f6   : > { %9386 = vmatpush3.bf16.msra.mxu0 %v11659_v8  ;;  %8761 = vmatprep.mubr.f32.mxu0 %v11668_v9 }
 0x38c   : > { %v8639_v23 = vpop.f32.mrb[0].mxu0 }
 0x38d   : > { %v3284_v24 = vadd.f32 %v8639_v23, %v11671_v3  ;;  %v3085_v5 = vpop.f32.mrb[1].mxu0 }
 0x38e   : > { %v3283_v11 = vadd.f32 %v11671_v3, %v3085_v5 }
 0x38f   : > { %v3316_v20 = vmax.f32 %v3284_v24, 0.0 }
 0x390   : > { %v3315_v50 = vmax.f32 %v3283_v11, 0.0  ;;  %v8642_v36 = vpop.f32.mrb[2].mxu0 }
 0x391   : > { %3355 = vst.msk [vmem:[#allocation2 + $0x18] sm:$0xff] %vm3347_vm4, %v3316_v20  ;;  %v3286_v6 = vadd.f32 %v8642_v36, %v11671_v3  ;;  %v3095_v54 = vpop.f32.mrb[3].mxu0 }
 0x392   : > { %3354 = vst.msk [vmem:[#allocation2 + $0x10] sm:$0xff] %vm3347_vm4, %v3315_v50  ;;  %v3285_v34 = vadd.f32 %v11671_v3, %v3095_v54 }
 0x393   : > { %v3318_v10 = vmax.f32 %v3286_v6, 0.0 }
 0x394   : > { %v3317_v40 = vmax.f32 %v3285_v34, 0.0  ;;  %v8645_v15 = vpop.f32.mrb[4].mxu0 }
 0x395   : > { %3357 = vst.msk [vmem:[#allocation2 + $0x28] sm:$0xff] %vm3347_vm4, %v3318_v10  ;;  %v3288_v16 = vadd.f32 %v8645_v15, %v11671_v3  ;;  %v3105_v21 = vpop.f32.mrb[5].mxu0 }
 0x396   : > { %3356 = vst.msk [vmem:[#allocation2 + $0x20] sm:$0xff] %vm3347_vm4, %v3317_v40  ;;  %v3287_v22 = vadd.f32 %v11671_v3, %v3105_v21 }
 0x397   : > { %v3320_v30 = vmax.f32 %v3288_v16, 0.0 }
 0x398   : > { %v3319_v31 = vmax.f32 %v3287_v22, 0.0  ;;  %v8648_v26 = vpop.f32.mrb[6].mxu0 }
 0x399   : > { %3359 = vst.msk [vmem:[#allocation2 + $0x38] sm:$0xff] %vm3347_vm4, %v3320_v30  ;;  %v3290_v32 = vadd.f32 %v8648_v26, %v11671_v3  ;;  %v3115_v38 = vpop.f32.mrb[7].mxu0 }
 0x39a   : > { %3358 = vst.msk [vmem:[#allocation2 + $0x30] sm:$0xff] %vm3347_vm4, %v3319_v31  ;;  %v3289_v39 = vadd.f32 %v11671_v3, %v3115_v38 }
 0x39b   : > { %v3322_v42 = vmax.f32 %v3290_v32, 0.0 }
 0x39c   : > { %v3391_v46 = vld [vmem:[#allocation2 + $0x28] sm:$0xff]  ;;  %v3321_v47 = vmax.f32 %v3289_v39, 0.0  ;;  %v8651_v55 = vpop.f32.mrb[8].mxu0 }
 0x39d   : > { %v3390_v56 = vld [vmem:[#allocation2 + $0x20] sm:$0xff]  ;;  %3361 = vst.msk [vmem:[#allocation2 + $0x48] sm:$0xff] %vm3347_vm4, %v3322_v42  ;;  %v3292_v63 = vadd.f32 %v8651_v55, %v11671_v3  ;;  %v3125_v0 = vpop.f32.mrb[9].mxu0 }
 0x39e   : > { %v11689_v13 = vpack.c.bf16 %v3391_v46, %v3390_v56  ;;  %3360 = vst.msk [vmem:[#allocation2 + $0x40] sm:$0xff] %vm3347_vm4, %v3321_v47  ;;  %v3291_v14 = vadd.f32 %v11671_v3, %v3125_v0 }
 0x39f   : > { %v3324_v33 = vmax.f32 %v3292_v63, 0.0 }
 0x3a0   : > { %v3323_v35 = vmax.f32 %v3291_v14, 0.0  ;;  %v8654_v43 = vpop.f32.mrb[10].mxu0  ;;  %9356 = vmatprep.subr.bf16.mxu1 %v11689_v13  ;;  %9388 = vmatprep.subr.bf16.mxu0 %v11689_v13 }
 0x3a1   : > { %3363 = vst.msk [vmem:[#allocation2 + $0x58] sm:$0xff] %vm3347_vm4, %v3324_v33  ;;  %v3294_v52 = vadd.f32 %v8654_v43, %v11671_v3  ;;  %v3135_v58 = vpop.f32.mrb[11].mxu0  ;;  %9358 = vmatpush3.bf16.msra.mxu1 %v11689_v13  ;;  %9390 = vmatpush3.bf16.msra.mxu0 %v11689_v13 }
 0x3a2   : > { %3362 = vst.msk [vmem:[#allocation2 + $0x50] sm:$0xff] %vm3347_vm4, %v3323_v35  ;;  %v3293_v60 = vadd.f32 %v11671_v3, %v3135_v58 }
 0x3a3   : > { %v3326_v4 = vmax.f32 %v3294_v52, 0.0 }
 0x3a4   : > { %v3395_v25 = vld [vmem:[#allocation2 + $0x48] sm:$0xff]  ;;  %v3325_v27 = vmax.f32 %v3293_v60, 0.0  ;;  %v8657_v44 = vpop.f32.mrb[12].mxu0 }
 0x3a5   : > { %v3394_v49 = vld [vmem:[#allocation2 + $0x40] sm:$0xff]  ;;  %3365 = vst.msk [vmem:[#allocation2 + $0x68] sm:$0xff] %vm3347_vm4, %v3326_v4  ;;  %v3296_v19 = vadd.f32 %v8657_v44, %v11671_v3  ;;  %v3145_v61 = vpop.f32.mrb[13].mxu0 }
 0x3a6   : > { %v11703_v7 = vpack.c.bf16 %v3395_v25, %v3394_v49  ;;  %3364 = vst.msk [vmem:[#allocation2 + $0x60] sm:$0xff] %vm3347_vm4, %v3325_v27  ;;  %v3295_v41 = vadd.f32 %v11671_v3, %v3145_v61 }
 0x3a7   : > { %v3328_v57 = vmax.f32 %v3296_v19, 0.0 }
 0x3a8   : > { %v3327_v2 = vmax.f32 %v3295_v41, 0.0  ;;  %v8660_v29 = vpop.f32.mrb[14].mxu0  ;;  %9360 = vmatprep.subr.bf16.mxu1 %v11703_v7  ;;  %9392 = vmatprep.subr.bf16.mxu0 %v11703_v7 }
 0x3a9   : > { %3367 = vst.msk [vmem:[#allocation2 + $0x78] sm:$0xff] %vm3347_vm4, %v3328_v57  ;;  %v3298_v37 = vadd.f32 %v8660_v29, %v11671_v3  ;;  %v3155_v45 = vpop.f32.mrb[15].mxu0  ;;  %9362 = vmatpush3.bf16.msra.mxu1 %v11703_v7  ;;  %9394 = vmatpush3.bf16.msra.mxu0 %v11703_v7 }
 0x3aa   : > { %3366 = vst.msk [vmem:[#allocation2 + $0x70] sm:$0xff] %vm3347_vm4, %v3327_v2  ;;  %v3297_v53 = vadd.f32 %v11671_v3, %v3155_v45 }
 0x3ab   : > { %v3330_v62 = vmax.f32 %v3298_v37, 0.0 }
 0x3ac   : > { %v3399_v12 = vld [vmem:[#allocation2 + $0x68] sm:$0xff]  ;;  %v3329_v28 = vmax.f32 %v3297_v53, 0.0  ;;  %v8663_v51 = vpop.f32.mrb[16].mxu0 }
 0x3ad   : > { %v3398_v18 = vld [vmem:[#allocation2 + $0x60] sm:$0xff]  ;;  %3369 = vst.msk [vmem:[#allocation2 + $0x88] sm:$0xff] %vm3347_vm4, %v3330_v62  ;;  %v3300_v17 = vadd.f32 %v8663_v51, %v11671_v3  ;;  %v3165_v48 = vpop.f32.mrb[17].mxu0 }
 0x3ae   : > { %v11717_v1 = vpack.c.bf16 %v3399_v12, %v3398_v18  ;;  %3368 = vst.msk [vmem:[#allocation2 + $0x80] sm:$0xff] %vm3347_vm4, %v3329_v28  ;;  %v3299_v23 = vadd.f32 %v11671_v3, %v3165_v48 }
 0x3af   : > { %v3332_v24 = vmax.f32 %v3300_v17, 0.0 }
 0x3b0   : > { %v3331_v5 = vmax.f32 %v3299_v23, 0.0  ;;  %v8666_v11 = vpop.f32.mrb[18].mxu0  ;;  %9364 = vmatprep.subr.bf16.mxu1 %v11717_v1  ;;  %9396 = vmatprep.subr.bf16.mxu0 %v11717_v1  ;;  %v11779_v23 = vld [vmem:[#allocation10 + $0x8] sm:$0xff] }
 0x3b1   : > { %3371 = vst.msk [vmem:[#allocation2 + $0x98] sm:$0xff] %vm3347_vm4, %v3332_v24  ;;  %v3302_v20 = vadd.f32 %v8666_v11, %v11671_v3  ;;  %v3175_v50 = vpop.f32.mrb[19].mxu0  ;;  %9366 = vmatpush3.bf16.msra.mxu1 %v11717_v1  ;;  %9398 = vmatpush3.bf16.msra.mxu0 %v11717_v1  ;;  %v11784_v24 = vld [vmem:[#allocation10 + $0x10] sm:$0xff]  ;;  %v11793_v11 = vld [vmem:[#allocation10 + $0x20] sm:$0xff] }
 0x3b2   : > { %3370 = vst.msk [vmem:[#allocation2 + $0x90] sm:$0xff] %vm3347_vm4, %v3331_v5  ;;  %v3301_v36 = vadd.f32 %v11671_v3, %v3175_v50  ;;  %v11790_v5 = vld [vmem:[#allocation10 + $0x18] sm:$0xff]  ;;  %v11801_v50 = vld [vmem:[#allocation10 + $0x30] sm:$0xff] }
 0x3b3   : > { %v3334_v6 = vmax.f32 %v3302_v20, 0.0  ;;  %v11798_v20 = vld [vmem:[#allocation10 + $0x28] sm:$0xff] }
 0x3b4   : > { %v3403_v54 = vld [vmem:[#allocation2 + $0x88] sm:$0xff]  ;;  %v3333_v34 = vmax.f32 %v3301_v36, 0.0  ;;  %v8669_v10 = vpop.f32.mrb[20].mxu0  ;;  %v11806_v36 = vld [vmem:[#allocation10 + $0x38] sm:$0xff] }
 0x3b5   : > { %v3402_v40 = vld [vmem:[#allocation2 + $0x80] sm:$0xff]  ;;  %3373 = vst.msk [vmem:[#allocation2 + $0xa8] sm:$0xff] %vm3347_vm4, %v3334_v6  ;;  %v3304_v15 = vadd.f32 %v8669_v10, %v11671_v3  ;;  %v3185_v16 = vpop.f32.mrb[21].mxu0  ;;  %v11809_v6 = vld [vmem:[#allocation10 + $0x50] sm:$0xff] }
 0x3b6   : > { %v11731_v21 = vpack.c.bf16 %v3403_v54, %v3402_v40  ;;  %3372 = vst.msk [vmem:[#allocation2 + $0xa0] sm:$0xff] %vm3347_vm4, %v3333_v34  ;;  %v3303_v22 = vadd.f32 %v11671_v3, %v3185_v16  ;;  %v11822_v54 = vld [vmem:[#allocation10 + $0x58] sm:$0xff]  ;;  %v11824_v34 = vld [vmem:[#allocation10 + $0x60] sm:$0xff]  ;;  %v11828_v10 = vld [vmem:[#allocation10 + $0x68] sm:$0xff] }
 0x3b7   : > { %v3336_v30 = vmax.f32 %v3304_v15, 0.0  ;;  %v11830_v40 = vld [vmem:[#allocation10 + $0x70] sm:$0xff]  ;;  %v11834_v15 = vld [vmem:[#allocation10 + $0x78] sm:$0xff] }
 0x3b8   : > { %v3335_v31 = vmax.f32 %v3303_v22, 0.0  ;;  %v8672_v26 = vpop.f32.mrb[22].mxu0  ;;  %9368 = vmatprep.subr.bf16.mxu1 %v11731_v21  ;;  %9400 = vmatprep.subr.bf16.mxu0 %v11731_v21  ;;  %v3650_v16 = vld [vmem:[#allocation7 + $0x10] sm:$0xff]  ;;  %v3651_v22 = vld [vmem:[#allocation7 + $0x18] sm:$0xff] }
 0x3b9   : > { %3375 = vst.msk [vmem:[#allocation2 + $0xb8] sm:$0xff] %vm3347_vm4, %v3336_v30  ;;  %v3306_v32 = vadd.f32 %v8672_v26, %v11671_v3  ;;  %v3195_v38 = vpop.f32.mrb[23].mxu0  ;;  %9370 = vmatpush3.bf16.msra.mxu1 %v11731_v21  ;;  %9402 = vmatpush3.bf16.msra.mxu0 %v11731_v21  ;;  %v9415_v30 = vpack.c.bf16 %v3651_v22, %v3650_v16  ;;  %v3534_v26 = vld [vmem:[#allocation7 + $0x8] sm:$0xff]  ;;  %v3397_v22 = vld [vmem:[#allocation2 + $0x58] sm:$0xff] }
 0x3ba   : > { %3374 = vst.msk [vmem:[#allocation2 + $0xb0] sm:$0xff] %vm3347_vm4, %v3335_v31  ;;  %v3305_v39 = vadd.f32 %v11671_v3, %v3195_v38  ;;  %v3533_v31 = vld [vmem:[#allocation7] sm:$0xff]  ;;  %v3396_v16 = vld [vmem:[#allocation2 + $0x50] sm:$0xff] }
 0x3bb   : > { %v3338_v42 = vmax.f32 %v3306_v32, 0.0  ;;  %v9419_v32 = vpack.c.bf16 %v3534_v26, %v3533_v31  ;;  %v11903_v26 = vpack.c.bf16 %v3397_v22, %v3396_v16 }
 0x3bc   : > { %v3407_v46 = vld [vmem:[#allocation2 + $0xa8] sm:$0xff]  ;;  %v3337_v47 = vmax.f32 %v3305_v39, 0.0  ;;  %v8675_v55 = vpop.f32.mrb[24].mxu0 }
 0x3bd   : > { %v3406_v56 = vld [vmem:[#allocation2 + $0xa0] sm:$0xff]  ;;  %3377 = vst.msk [vmem:[#allocation2 + $0xc8] sm:$0xff] %vm3347_vm4, %v3338_v42  ;;  %v3308_v63 = vadd.f32 %v8675_v55, %v11671_v3  ;;  %v3205_v0 = vpop.f32.mrb[25].mxu0 }
 0x3be   : > { %v11745_v14 = vpack.c.bf16 %v3407_v46, %v3406_v56  ;;  %3376 = vst.msk [vmem:[#allocation2 + $0xc0] sm:$0xff] %vm3347_vm4, %v3337_v47  ;;  %v3307_v33 = vadd.f32 %v11671_v3, %v3205_v0 }
 0x3bf   : > { %v3340_v35 = vmax.f32 %v3308_v63, 0.0 }
 0x3c0   : > { %v3339_v43 = vmax.f32 %v3307_v33, 0.0  ;;  %v8678_v52 = vpop.f32.mrb[26].mxu0  ;;  %9372 = vmatprep.subr.bf16.mxu1 %v11745_v14  ;;  %9404 = vmatprep.subr.bf16.mxu0 %v11745_v14 }
 0x3c1   : > { %3379 = vst.msk [vmem:[#allocation2 + $0xd8] sm:$0xff] %vm3347_vm4, %v3340_v35  ;;  %v3310_v58 = vadd.f32 %v8678_v52, %v11671_v3  ;;  %v3215_v60 = vpop.f32.mrb[27].mxu0  ;;  %9374 = vmatpush3.bf16.msra.mxu1 %v11745_v14  ;;  %9406 = vmatpush3.bf16.msra.mxu0 %v11745_v14 }
 0x3c2   : > { %3378 = vst.msk [vmem:[#allocation2 + $0xd0] sm:$0xff] %vm3347_vm4, %v3339_v43  ;;  %v3309_v4 = vadd.f32 %v11671_v3, %v3215_v60 }
 0x3c3   : > { %v3342_v25 = vmax.f32 %v3310_v58, 0.0 }
 0x3c4   : > { %v3411_v27 = vld [vmem:[#allocation2 + $0xc8] sm:$0xff]  ;;  %v3341_v44 = vmax.f32 %v3309_v4, 0.0  ;;  %v8681_v49 = vpop.f32.mrb[28].mxu0 }
 0x3c5   : > { %v3410_v19 = vld [vmem:[#allocation2 + $0xc0] sm:$0xff]  ;;  %3381 = vst.msk [vmem:[#allocation2 + $0xe8] sm:$0xff] %vm3347_vm4, %v3342_v25  ;;  %v3312_v61 = vadd.f32 %v8681_v49, %v11671_v3  ;;  %v3225_v41 = vpop.f32.mrb[29].mxu0 }
 0x3c6   : > { %v11759_v57 = vpack.c.bf16 %v3411_v27, %v3410_v19  ;;  %3380 = vst.msk [vmem:[#allocation2 + $0xe0] sm:$0xff] %vm3347_vm4, %v3341_v44  ;;  %v3311_v2 = vadd.f32 %v11671_v3, %v3225_v41  ;;  %v4025_v25 = vld [vmem:[#allocation7 + $0x20] sm:$0xff]  ;;  %v4026_v27 = vld [vmem:[#allocation7 + $0x28] sm:$0xff] }
 0x3c7   : > { %v3344_v29 = vmax.f32 %v3312_v61, 0.0  ;;  %v9455_v44 = vpack.c.bf16 %v4026_v27, %v4025_v25  ;;  %v11872_v49 = vld [vmem:[#allocation10 + $0x88] sm:$0xff]  ;;  %v3388_v19 = vld [vmem:[#allocation2 + $0x10] sm:$0xff]  ;;  %v3389_v61 = vld [vmem:[#allocation2 + $0x18] sm:$0xff] }
 0x3c8   : > { %v3343_v37 = vmax.f32 %v3311_v2, 0.0  ;;  %v8684_v45 = vpop.f32.mrb[30].mxu0  ;;  %9376 = vmatprep.subr.bf16.mxu1 %v11759_v57  ;;  %9408 = vmatprep.subr.bf16.mxu0 %v11759_v57  ;;  %v11874_v41 = vld [vmem:[#allocation10 + $0x90] sm:$0xff]  ;;  %v11877_v2 = vpack.c.bf16 %v3389_v61, %v3388_v19  ;;  %v4270_v27 = vld [vmem:[#allocation7 + $0x30] sm:$0xff] }
 0x3c9   : > { %3383 = vst.msk [vmem:[#allocation2 + $0xf8] sm:$0xff] %vm3347_vm4, %v3344_v29  ;;  %v3314_v53 = vadd.f32 %v8684_v45, %v11671_v3  ;;  %v3235_v62 = vpop.f32.mrb[31].mxu0  ;;  %9378 = vmatpush3.bf16.msra.mxu1 %v11759_v57  ;;  %9410 = vmatpush3.bf16.msra.mxu0 %v11759_v57  ;;  %v11880_v29 = vld [vmem:[#allocation10 + $0x98] sm:$0xff]  ;;  %v11887_v45 = vld [vmem:[#allocation10 + $0xa8] sm:$0xff] }
 0x3ca   : > { %3382 = vst.msk [vmem:[#allocation2 + $0xf0] sm:$0xff] %vm3347_vm4, %v3343_v37  ;;  %v3313_v12 = vadd.f32 %v11671_v3, %v3235_v62  ;;  %v11781_v3 = vld [vmem:[#allocation10 + $0x48] sm:$0xff]  ;;  %v11883_v37 = vld [vmem:[#allocation10 + $0xa0] sm:$0xff]  ;;  %v11893_v62 = vld [vmem:[#allocation10 + $0xb8] sm:$0xff] }
 0x3cb   : > { %v3346_v28 = vmax.f32 %v3314_v53, 0.0  ;;  %v11889_v53 = vld [vmem:[#allocation10 + $0xb0] sm:$0xff] }
 0x3cc   : > { %v3415_v51 = vld [vmem:[#allocation2 + $0xe8] sm:$0xff]  ;;  %v3345_v18 = vmax.f32 %v3313_v12, 0.0 }
 0x3cd   : > { %v3414_v17 = vld [vmem:[#allocation2 + $0xe0] sm:$0xff]  ;;  %3385 = vst.msk [vmem:[#allocation2 + $0x108] sm:$0xff] %vm3347_vm4, %v3346_v28  ;;  %v3392_v28 = vld [vmem:[#allocation2 + $0x30] sm:$0xff] }
 0x3ce   : > { %v11772_v48 = vpack.c.bf16 %v3415_v51, %v3414_v17  ;;  %3384 = vst.msk [vmem:[#allocation2 + $0x100] sm:$0xff] %vm3347_vm4, %v3345_v18  ;;  %v3393_v51 = vld [vmem:[#allocation2 + $0x38] sm:$0xff] }
 0x3cf   : > { %v11898_v17 = vpack.c.bf16 %v3393_v51, %v3392_v28 }
 0x3d0   : > { %9380 = vmatprep.subr.bf16.mxu1 %v11772_v48  ;;  %9412 = vmatprep.subr.bf16.mxu0 %v11772_v48  ;;  %v3417_v25 = vld [vmem:[#allocation2 + $0xf8] sm:$0xff] }
 0x3d1   : > { %9382 = vmatpush3.bf16.msra.mxu1 %v11772_v48  ;;  %9414 = vmatpush3.bf16.msra.mxu0 %v11772_v48 }
 0x3d2   : > { %9675 = vmatprep.subr.bf16.mxu1 %v11659_v8 }
 0x3d4   : > { %8718 = vmatmul.mubr.f32.vlgmr.msra.gmra.mrb[0].mxu1 %v11779_v23  ;;  %8762 = vmatmul.mubr.f32.vlgmr.msra.gmra.mrb[32].mxu0 %v11781_v3 }
 0x3d5   : > { %9683 = vmatpush3.bf16.msra.mxu1 %v11659_v8  ;;  %8720 = vmatprep.mubr.f32.mxu1 %v11784_v24 }
 0x3d6   : > { %9676 = vmatprep.subr.bf16.mxu1 %v11689_v13 }
 0x3d8   : > { %8721 = vmatmul.mubr.f32.gmra.mrb[2].mxu1 %v11790_v5 }
 0x3d9   : > { %9684 = vmatpush3.bf16.msra.mxu1 %v11689_v13  ;;  %8723 = vmatprep.mubr.f32.mxu1 %v11793_v11 }
 0x3da   : > { %9677 = vmatprep.subr.bf16.mxu1 %v11703_v7 }
 0x3dc   : > { %8724 = vmatmul.mubr.f32.gmra.mrb[4].mxu1 %v11798_v20 }
 0x3dd   : > { %9685 = vmatpush3.bf16.msra.mxu1 %v11703_v7  ;;  %8726 = vmatprep.mubr.f32.mxu1 %v11801_v50 }
 0x3de   : > { %9678 = vmatprep.subr.bf16.mxu1 %v11717_v1 }
 0x3e0   : > { %8727 = vmatmul.mubr.f32.gmra.mrb[6].mxu1 %v11806_v36 }
 0x3e1   : > { %9686 = vmatpush3.bf16.msra.mxu1 %v11717_v1  ;;  %8764 = vmatprep.mubr.f32.mxu1 %v11809_v6 }
 0x3e2   : > { %9679 = vmatprep.subr.bf16.mxu1 %v11731_v21 }
 0x3e5   : > { %9687 = vmatpush3.bf16.msra.mxu1 %v11731_v21 }
 0x3e6   : > { %9680 = vmatprep.subr.bf16.mxu1 %v11745_v14 }
 0x3e9   : > { %9688 = vmatpush3.bf16.msra.mxu1 %v11745_v14 }
 0x3ea   : > { %9681 = vmatprep.subr.bf16.mxu1 %v11759_v57 }
 0x3ed   : > { %9689 = vmatpush3.bf16.msra.mxu1 %v11759_v57 }
 0x3ee   : > { %9682 = vmatprep.subr.bf16.mxu1 %v11772_v48 }
 0x3f1   : > { %9690 = vmatpush3.bf16.msra.mxu1 %v11772_v48 }
 0x3f2   : > { %9416 = vmatprep.subr.bf16.mxu1 %v9415_v30 }
 0x3f4   : > { %8765 = vmatmul.mubr.f32.vlgmr.msra.gmra.mrb[8].mxu1 %v11822_v54 }
 0x3f5   : > { %8767 = vmatprep.mubr.f32.mxu1 %v11824_v34  ;;  %9418 = vmatpush3.bf16.msra.mxu1 %v9415_v30 }
 0x3f6   : > { %9420 = vmatprep.subr.bf16.mxu1 %v9419_v32 }
 0x3f8   : > { %8768 = vmatmul.mubr.f32.gmra.mrb[10].mxu1 %v11828_v10 }
 0x3f9   : > { %8770 = vmatprep.mubr.f32.mxu1 %v11830_v40 }
 0x3fc   : > { %8771 = vmatmul.mubr.f32.gmra.mrb[12].mxu1 %v11834_v15 }
 0x4a7   : > { %v8719_v38 = vpop.f32.mrb[0].mxu1  ;;  %v8763_v39 = vpop.f32.mrb[32].mxu0 }
 0x4a8   : > { %v3494_v42 = vpop.f32.mrb[1].mxu1  ;;  %v3610_v46 = vpop.f32.mrb[33].mxu0 }
 0x4a9   : > { %8777 = vmatprep.mubr.msk.f32.mxu1 %vm3347_vm4, %v3610_v46 }
 0x4aa   : > { %8778 = vmatmul.mubr.msk.f32.vlgmr.msra.gmra.mrb[14].mxu1 %vm3347_vm4, %v8763_v39 }
 0x4ab   : > { %v8722_v47 = vpop.f32.mrb[2].mxu1  ;;  %9422 = vmatpush3.bf16.msra.mxu1 %v9419_v32  ;;  %v3400_v32 = vld [vmem:[#allocation2 + $0x70] sm:$0xff] }
 0x4ac   : > { %v3504_v55 = vpop.f32.mrb[3].mxu1  ;;  %9424 = vmatprep.subr.bf16.mxu1 %v11659_v8 }
 0x4af   : > { %v8725_v56 = vpop.f32.mrb[4].mxu1 }
 0x4b0   : > { %v3514_v63 = vpop.f32.mrb[5].mxu1 }
 0x4b3   : > { %v8728_v0 = vpop.f32.mrb[6].mxu1 }
 0x4b4   : > { %v3524_v33 = vpop.f32.mrb[7].mxu1 }
 0x4c7   : > { %v8766_v35 = vpop.f32.mrb[8].mxu1 }
 0x4c8   : > { %v3620_v43 = vpop.f32.mrb[9].mxu1 }
 0x4c9   : > { %8780 = vmatprep.mubr.msk.f32.mxu1 %vm3347_vm4, %v3620_v43 }
 0x4ca   : > { %8781 = vmatmul.mubr.msk.f32.gmra.mrb[16].mxu1 %vm3347_vm4, %v8766_v35  ;;  %v3409_v35 = vld [vmem:[#allocation2 + $0xb8] sm:$0xff] }
 0x4cb   : > { %v8769_v52 = vpop.f32.mrb[10].mxu1 }
 0x4cc   : > { %v3630_v58 = vpop.f32.mrb[11].mxu1 }
 0x4cd   : > { %8783 = vmatprep.mubr.msk.f32.mxu1 %vm3347_vm4, %v3630_v58  ;;  %v3413_v58 = vld [vmem:[#allocation2 + $0xd8] sm:$0xff] }
 0x4ce   : > { %8784 = vmatmul.mubr.msk.f32.gmra.mrb[18].mxu1 %vm3347_vm4, %v8769_v52  ;;  %v3412_v52 = vld [vmem:[#allocation2 + $0xd0] sm:$0xff] }
 0x4cf   : > { %v8772_v60 = vpop.f32.mrb[12].mxu1 }
 0x4d0   : > { %v3640_v4 = vpop.f32.mrb[13].mxu1 }
 0x4d1   : > { %8786 = vmatprep.mubr.msk.f32.mxu1 %vm3347_vm4, %v3640_v4  ;;  %v3416_v4 = vld [vmem:[#allocation2 + $0xf0] sm:$0xff] }
 0x4d2   : > { %8787 = vmatmul.mubr.msk.f32.gmra.mrb[20].mxu1 %vm3347_vm4, %v8772_v60  ;;  %v11925_v60 = vpack.c.bf16 %v3413_v58, %v3412_v52  ;;  %v11929_v19 = vpack.c.bf16 %v3417_v25, %v3416_v4 }
 0x4d3   : > { %8793 = vmatprep.mubr.msk.f32.mxu1 %vm3347_vm4, %v3494_v42 }
 0x4d6   : > { %8794 = vmatmul.mubr.msk.f32.vlgmr.msra.gmra.mrb[14].mxu1 %vm3347_vm4, %v8719_v38  ;;  %v3401_v38 = vld [vmem:[#allocation2 + $0x78] sm:$0xff] }
 0x4d7   : > { %9426 = vmatpush3.bf16.msra.mxu1 %v11659_v8  ;;  %8796 = vmatprep.mubr.msk.f32.mxu1 %vm3347_vm4, %v3504_v55  ;;  %v11859_v8 = vld [vmem:[#allocation10 + $0x80] sm:$0xff]  ;;  %v11909_v46 = vpack.c.bf16 %v3401_v38, %v3400_v32  ;;  %v4515_v32 = vld [vmem:[#allocation7 + $0x40] sm:$0xff]  ;;  %v4516_v38 = vld [vmem:[#allocation7 + $0x48] sm:$0xff] }
 0x4d8   : > { %9428 = vmatprep.subr.bf16.mxu1 %v11689_v13  ;;  %v3405_v55 = vld [vmem:[#allocation2 + $0x98] sm:$0xff] }
 0x4da   : > { %8797 = vmatmul.mubr.msk.f32.gmra.mrb[16].mxu1 %vm3347_vm4, %v8722_v47  ;;  %v3404_v47 = vld [vmem:[#allocation2 + $0x90] sm:$0xff] }
 0x4db   : > { %9430 = vmatpush3.bf16.msra.mxu1 %v11689_v13  ;;  %8799 = vmatprep.mubr.msk.f32.mxu1 %vm3347_vm4, %v3514_v63 }
 0x4dc   : > { %9432 = vmatprep.subr.bf16.mxu1 %v11703_v7 }
 0x4de   : > { %8800 = vmatmul.mubr.msk.f32.gmra.mrb[18].mxu1 %vm3347_vm4, %v8725_v56 }
 0x4df   : > { %9434 = vmatpush3.bf16.msra.mxu1 %v11703_v7  ;;  %8802 = vmatprep.mubr.msk.f32.mxu1 %vm3347_vm4, %v3524_v33  ;;  %v3408_v33 = vld [vmem:[#allocation2 + $0xb0] sm:$0xff] }
 0x4e0   : > { %9436 = vmatprep.subr.bf16.mxu1 %v11717_v1  ;;  %v11921_v43 = vpack.c.bf16 %v3409_v35, %v3408_v33 }
 0x4e2   : > { %8803 = vmatmul.mubr.msk.f32.gmra.mrb[20].mxu1 %vm3347_vm4, %v8728_v0  ;;  %v11915_v0 = vpack.c.bf16 %v3405_v55, %v3404_v47 }
 0x4e3   : > { %9438 = vmatpush3.bf16.msra.mxu1 %v11717_v1  ;;  %8837 = vmatprep.mubr.f32.mxu1 %v11859_v8 }
 0x4e4   : > { %9440 = vmatprep.subr.bf16.mxu1 %v11731_v21 }
 0x4e7   : > { %9442 = vmatpush3.bf16.msra.mxu1 %v11731_v21 }
 0x4e8   : > { %9444 = vmatprep.subr.bf16.mxu1 %v11745_v14 }
 0x4eb   : > { %9446 = vmatpush3.bf16.msra.mxu1 %v11745_v14 }
 0x4ec   : > { %9448 = vmatprep.subr.bf16.mxu1 %v11759_v57 }
 0x4ef   : > { %9450 = vmatpush3.bf16.msra.mxu1 %v11759_v57 }
 0x4f0   : > { %9452 = vmatprep.subr.bf16.mxu1 %v11772_v48 }
 0x4f3   : > { %9454 = vmatpush3.bf16.msra.mxu1 %v11772_v48 }
 0x4f4   : > { %9456 = vmatprep.subr.bf16.mxu1 %v9455_v44 }
 0x4f6   : > { %8838 = vmatmul.mubr.f32.vlgmr.msra.gmra.mrb[22].mxu1 %v11872_v49 }
 0x4f7   : > { %9458 = vmatpush3.bf16.msra.mxu1 %v9455_v44  ;;  %8840 = vmatprep.mubr.f32.mxu1 %v11874_v41  ;;  %v4271_v44 = vld [vmem:[#allocation7 + $0x38] sm:$0xff] }
 0x4f8   : > { %9460 = vmatprep.subr.bf16.mxu1 %v11877_v2  ;;  %v9491_v61 = vpack.c.bf16 %v4271_v44, %v4270_v27  ;;  %v3418_v27 = vld [vmem:[#allocation2 + $0x100] sm:$0xff]  ;;  %v3419_v44 = vld [vmem:[#allocation2 + $0x108] sm:$0xff] }
 0x4fa   : > { %8841 = vmatmul.mubr.f32.gmra.mrb[24].mxu1 %v11880_v29 }
 0x4fb   : > { %8843 = vmatprep.mubr.f32.mxu1 %v11883_v37 }
 0x4fe   : > { %8844 = vmatmul.mubr.f32.gmra.mrb[26].mxu1 %v11887_v45 }
 0x4ff   : > { %8846 = vmatprep.mubr.f32.mxu1 %v11889_v53 }
 0x502   : > { %8847 = vmatmul.mubr.f32.gmra.mrb[28].mxu1 %v11893_v62 }
 0x5c9   : > { %v8839_v12 = vpop.f32.mrb[22].mxu1 }
 0x5ca   : > { %v3985_v18 = vpop.f32.mrb[23].mxu1 }
 0x5cb   : > { %8853 = vmatprep.mubr.msk.f32.mxu1 %vm3347_vm4, %v3985_v18 }
 0x5cc   : > { %8854 = vmatmul.mubr.msk.f32.vlgmr.msra.gmra.mrb[14].mxu1 %vm3347_vm4, %v8839_v12 }
 0x5cd   : > { %9462 = vmatpush3.bf16.msra.mxu1 %v11877_v2  ;;  %v8842_v30 = vpop.f32.mrb[24].mxu1 }
 0x5ce   : > { %9464 = vmatprep.subr.bf16.mxu1 %v11898_v17  ;;  %v3995_v31 = vpop.f32.mrb[25].mxu1 }
 0x5cf   : > { %8856 = vmatprep.mubr.msk.f32.mxu1 %vm3347_vm4, %v3995_v31 }
 0x5d0   : > { %8857 = vmatmul.mubr.msk.f32.gmra.mrb[16].mxu1 %vm3347_vm4, %v8842_v30 }
 0x5d1   : > { %9466 = vmatpush3.bf16.msra.mxu1 %v11898_v17  ;;  %v8845_v39 = vpop.f32.mrb[26].mxu1 }
 0x5d2   : > { %9468 = vmatprep.subr.bf16.mxu1 %v11903_v26  ;;  %v4005_v42 = vpop.f32.mrb[27].mxu1 }
 0x5d3   : > { %8859 = vmatprep.mubr.msk.f32.mxu1 %vm3347_vm4, %v4005_v42 }
 0x5d4   : > { %8860 = vmatmul.mubr.msk.f32.gmra.mrb[18].mxu1 %vm3347_vm4, %v8845_v39  ;;  %v9527_v39 = vpack.c.bf16 %v4516_v38, %v4515_v32  ;;  %v12133_v32 = vld [vmem:[%s12115_s25 + $0x18] sm:$0x3]  ;;  %v12137_v38 = vld [vmem:[%s12115_s25 + $0x20] sm:$0xff] }
 0x5d5   : > { %9470 = vmatpush3.bf16.msra.mxu1 %v11903_v26  ;;  %v8848_v56 = vpop.f32.mrb[28].mxu1 }
 0x5d6   : > { %9472 = vmatprep.subr.bf16.mxu1 %v11909_v46  ;;  %v4015_v63 = vpop.f32.mrb[29].mxu1 }
 0x5d7   : > { %8862 = vmatprep.mubr.msk.f32.mxu1 %vm3347_vm4, %v4015_v63 }
 0x5d8   : > { %8863 = vmatmul.mubr.msk.f32.gmra.mrb[20].mxu1 %vm3347_vm4, %v8848_v56 }
 0x5d9   : > { %9474 = vmatpush3.bf16.msra.mxu1 %v11909_v46  ;;  %8897 = vmatprep.mubr.f32.mxu1 %v11665_v59 }
 0x5da   : > { %9476 = vmatprep.subr.bf16.mxu1 %v11915_v0 }
 0x5dd   : > { %9478 = vmatpush3.bf16.msra.mxu1 %v11915_v0 }
 0x5de   : > { %9480 = vmatprep.subr.bf16.mxu1 %v11921_v43 }
 0x5e1   : > { %9482 = vmatpush3.bf16.msra.mxu1 %v11921_v43 }
 0x5e2   : > { %9484 = vmatprep.subr.bf16.mxu1 %v11925_v60 }
 0x5e5   : > { %9486 = vmatpush3.bf16.msra.mxu1 %v11925_v60 }
 0x5e6   : > { %9488 = vmatprep.subr.bf16.mxu1 %v11929_v19 }
 0x5e9   : > { %9490 = vmatpush3.bf16.msra.mxu1 %v11929_v19 }
 0x5ea   : > { %9492 = vmatprep.subr.bf16.mxu1 %v9491_v61 }
 0x5ec   : > { %8898 = vmatmul.mubr.f32.vlgmr.msra.gmra.mrb[30].mxu1 %v11779_v23 }
 0x5ed   : > { %9494 = vmatpush3.bf16.msra.mxu1 %v9491_v61  ;;  %8900 = vmatprep.mubr.f32.mxu1 %v11784_v24  ;;  %v5006_v61 = vld [vmem:[#allocation7 + $0x68] sm:$0xff] }
 0x5ee   : > { %9496 = vmatprep.subr.bf16.mxu1 %v11877_v2 }
 0x5f0   : > { %8901 = vmatmul.mubr.f32.gmra.mrb[32].mxu1 %v11790_v5 }
 0x5f1   : > { %8903 = vmatprep.mubr.f32.mxu1 %v11793_v11 }
 0x5f4   : > { %8904 = vmatmul.mubr.f32.gmra.mrb[34].mxu1 %v11798_v20 }
 0x5f5   : > { %8906 = vmatprep.mubr.f32.mxu1 %v11801_v50 }
 0x5f8   : > { %8907 = vmatmul.mubr.f32.gmra.mrb[36].mxu1 %v11806_v36 }
 0x6bf   : > { %v8899_v12 = vpop.f32.mrb[30].mxu1 }
 0x6c0   : > { %v4230_v28 = vpop.f32.mrb[31].mxu1 }
 0x6c1   : > { %8913 = vmatprep.mubr.msk.f32.mxu1 %vm3347_vm4, %v4230_v28 }
 0x6c2   : > { %8914 = vmatmul.mubr.msk.f32.vlgmr.msra.gmra.mrb[14].mxu1 %vm3347_vm4, %v8899_v12  ;;  %v12027_v12 = vpack.c.bf16 %v3419_v44, %v3418_v27  ;;  %v12180_v27 = vld [vmem:[%s12115_s25 + $0x60] sm:$0xff]  ;;  %v12183_v44 = vld [vmem:[%s12115_s25 + $0x68] sm:$0x3] }
 0x6c3   : > { %9498 = vmatpush3.bf16.msra.mxu1 %v11877_v2  ;;  %v8902_v51 = vpop.f32.mrb[32].mxu1 }
 0x6c4   : > { %9500 = vmatprep.subr.bf16.mxu1 %v11898_v17  ;;  %v4240_v18 = vpop.f32.mrb[33].mxu1 }
 0x6c5   : > { %8916 = vmatprep.mubr.msk.f32.mxu1 %vm3347_vm4, %v4240_v18  ;;  %v5250_v18 = vld [vmem:[#allocation7 + $0x70] sm:$0xff] }
 0x6c6   : > { %8917 = vmatmul.mubr.msk.f32.gmra.mrb[16].mxu1 %vm3347_vm4, %v8902_v51 }
 0x6c7   : > { %9502 = vmatpush3.bf16.msra.mxu1 %v11898_v17  ;;  %v8905_v16 = vpop.f32.mrb[34].mxu1 }
 0x6c8   : > { %9504 = vmatprep.subr.bf16.mxu1 %v11903_v26  ;;  %v4250_v22 = vpop.f32.mrb[35].mxu1 }
 0x6c9   : > { %8919 = vmatprep.mubr.msk.f32.mxu1 %vm3347_vm4, %v4250_v22 }
 0x6ca   : > { %8920 = vmatmul.mubr.msk.f32.gmra.mrb[18].mxu1 %vm3347_vm4, %v8905_v16  ;;  %v5251_v16 = vld [vmem:[#allocation7 + $0x78] sm:$0xff] }
 0x6cb   : > { %9506 = vmatpush3.bf16.msra.mxu1 %v11903_v26  ;;  %v8908_v30 = vpop.f32.mrb[36].mxu1  ;;  %v9635_v22 = vpack.c.bf16 %v5251_v16, %v5250_v18  ;;  %v7486_v16 = vld [vmem:[%s12455_s7 + $0xc] sm:$0xf] }
 0x6cc   : > { %9508 = vmatprep.subr.bf16.mxu1 %v11909_v46  ;;  %v4260_v31 = vpop.f32.mrb[37].mxu1 }
 0x6cd   : > { %8922 = vmatprep.mubr.msk.f32.mxu1 %vm3347_vm4, %v4260_v31 }
 0x6ce   : > { %8923 = vmatmul.mubr.msk.f32.gmra.mrb[20].mxu1 %vm3347_vm4, %v8908_v30 }
 0x6cf   : > { %9510 = vmatpush3.bf16.msra.mxu1 %v11909_v46  ;;  %8957 = vmatprep.mubr.f32.mxu1 %v11668_v9 }
 0x6d0   : > { %9512 = vmatprep.subr.bf16.mxu1 %v11915_v0 }
 0x6d3   : > { %9514 = vmatpush3.bf16.msra.mxu1 %v11915_v0 }
 0x6d4   : > { %9516 = vmatprep.subr.bf16.mxu1 %v11921_v43 }
 0x6d7   : > { %9518 = vmatpush3.bf16.msra.mxu1 %v11921_v43 }
 0x6d8   : > { %9520 = vmatprep.subr.bf16.mxu1 %v11925_v60 }
 0x6db   : > { %9522 = vmatpush3.bf16.msra.mxu1 %v11925_v60 }
 0x6dc   : > { %9524 = vmatprep.subr.bf16.mxu1 %v11929_v19 }
 0x6df   : > { %9526 = vmatpush3.bf16.msra.mxu1 %v11929_v19 }
 0x6e0   : > { %9528 = vmatprep.subr.bf16.mxu1 %v9527_v39 }
 0x6e2   : > { %8958 = vmatmul.mubr.f32.vlgmr.msra.gmra.mrb[38].mxu1 %v11781_v3 }
 0x6e3   : > { %9530 = vmatpush3.bf16.msra.mxu1 %v9527_v39  ;;  %8960 = vmatprep.mubr.f32.mxu1 %v11809_v6  ;;  %v12140_v39 = vld [vmem:[%s12115_s25 + $0x28] sm:$0x3] }
 0x6e4   : > { %9532 = vmatprep.subr.bf16.mxu1 %v11877_v2 }
 0x6e6   : > { %8961 = vmatmul.mubr.f32.gmra.mrb[40].mxu1 %v11822_v54 }
 0x6e7   : > { %8963 = vmatprep.mubr.f32.mxu1 %v11824_v34 }
 0x6ea   : > { %8964 = vmatmul.mubr.f32.gmra.mrb[42].mxu1 %v11828_v10 }
 0x6eb   : > { %8966 = vmatprep.mubr.f32.mxu1 %v11830_v40 }
 0x6ee   : > { %8967 = vmatmul.mubr.f32.gmra.mrb[44].mxu1 %v11834_v15 }
 0x7b5   : > { %v8959_v9 = vpop.f32.mrb[38].mxu1 }
 0x7b6   : > { %v4475_v42 = vpop.f32.mrb[39].mxu1 }
 0x7b7   : > { %8973 = vmatprep.mubr.msk.f32.mxu1 %vm3347_vm4, %v4475_v42 }
 0x7b8   : > { %8974 = vmatmul.mubr.msk.f32.vlgmr.msra.gmra.mrb[14].mxu1 %vm3347_vm4, %v8959_v9 }
 0x7b9   : > { %9534 = vmatpush3.bf16.msra.mxu1 %v11877_v2  ;;  %v8962_v47 = vpop.f32.mrb[40].mxu1 }
 0x7ba   : > { %9536 = vmatprep.subr.bf16.mxu1 %v11898_v17  ;;  %v4485_v55 = vpop.f32.mrb[41].mxu1 }
 0x7bb   : > { %8976 = vmatprep.mubr.msk.f32.mxu1 %vm3347_vm4, %v4485_v55 }
 0x7bc   : > { %8977 = vmatmul.mubr.msk.f32.gmra.mrb[16].mxu1 %vm3347_vm4, %v8962_v47  ;;  %v5707_v47 = vrot.slane %v12133_v32, 1 }
 0x7bd   : > { %9538 = vmatpush3.bf16.msra.mxu1 %v11898_v17  ;;  %v8965_v56 = vpop.f32.mrb[42].mxu1  ;;  %v4760_v17 = vld [vmem:[#allocation7 + $0x50] sm:$0xff] }
 0x7be   : > { %9540 = vmatprep.subr.bf16.mxu1 %v11903_v26  ;;  %v4495_v63 = vpop.f32.mrb[43].mxu1 }
 0x7bf   : > { %8979 = vmatprep.mubr.msk.f32.mxu1 %vm3347_vm4, %v4495_v63  ;;  %v5709_v63 = vrot.slane %v12137_v38, 1 }
 0x7c0   : > { %8980 = vmatmul.mubr.msk.f32.gmra.mrb[18].mxu1 %vm3347_vm4, %v8965_v56 }
 0x7c1   : > { %9542 = vmatpush3.bf16.msra.mxu1 %v11903_v26  ;;  %v8968_v2 = vpop.f32.mrb[44].mxu1  ;;  %v4761_v26 = vld [vmem:[#allocation7 + $0x58] sm:$0xff] }
 0x7c2   : > { %9544 = vmatprep.subr.bf16.mxu1 %v11909_v46  ;;  %v4505_v33 = vpop.f32.mrb[45].mxu1  ;;  %v9563_v35 = vpack.c.bf16 %v4761_v26, %v4760_v17  ;;  %v12152_v17 = vld [vmem:[%s12115_s25 + $0x38] sm:$0x3]  ;;  %v12156_v26 = vld [vmem:[%s12115_s25 + $0x40] sm:$0xff] }
 0x7c3   : > { %8982 = vmatprep.mubr.msk.f32.mxu1 %vm3347_vm4, %v4505_v33  ;;  %v12149_v33 = vld [vmem:[%s12115_s25 + $0x30] sm:$0xff] }
 0x7c4   : > { %8983 = vmatmul.mubr.msk.f32.gmra.mrb[20].mxu1 %vm3347_vm4, %v8968_v2  ;;  %v5710_v2 = vrot.slane %v12140_v39, 1 }
 0x7c5   : > { %9546 = vmatpush3.bf16.msra.mxu1 %v11909_v46  ;;  %9017 = vmatprep.mubr.f32.mxu1 %v11859_v8 }
 0x7c6   : > { %9548 = vmatprep.subr.bf16.mxu1 %v11915_v0 }
 0x7c9   : > { %9550 = vmatpush3.bf16.msra.mxu1 %v11915_v0 }
 0x7ca   : > { %9552 = vmatprep.subr.bf16.mxu1 %v11921_v43 }
 0x7cd   : > { %9554 = vmatpush3.bf16.msra.mxu1 %v11921_v43 }
 0x7ce   : > { %9556 = vmatprep.subr.bf16.mxu1 %v11925_v60 }
 0x7d1   : > { %9558 = vmatpush3.bf16.msra.mxu1 %v11925_v60 }
 0x7d2   : > { %9560 = vmatprep.subr.bf16.mxu1 %v11929_v19 }
 0x7d5   : > { %9562 = vmatpush3.bf16.msra.mxu1 %v11929_v19  ;;  %v5005_v19 = vld [vmem:[#allocation7 + $0x60] sm:$0xff] }
 0x7d6   : > { %9564 = vmatprep.subr.bf16.mxu1 %v9563_v35 }
 0x7d8   : > { %9018 = vmatmul.mubr.f32.vlgmr.msra.gmra.mrb[46].mxu1 %v11872_v49 }
 0x7d9   : > { %9566 = vmatpush3.bf16.msra.mxu1 %v9563_v35  ;;  %9020 = vmatprep.mubr.f32.mxu1 %v11874_v41  ;;  %v12159_v35 = vld [vmem:[%s12115_s25 + $0x48] sm:$0x3] }
 0x7da   : > { %9568 = vmatprep.subr.bf16.mxu1 %v11689_v13 }
 0x7dc   : > { %9021 = vmatmul.mubr.f32.gmra.mrb[48].mxu1 %v11880_v29 }
 0x7dd   : > { %9023 = vmatprep.mubr.f32.mxu1 %v11883_v37 }
 0x7e0   : > { %9024 = vmatmul.mubr.f32.gmra.mrb[50].mxu1 %v11887_v45 }
 0x7e1   : > { %9026 = vmatprep.mubr.f32.mxu1 %v11889_v53 }
 0x7e4   : > { %9027 = vmatmul.mubr.f32.gmra.mrb[52].mxu1 %v11893_v62 }
 0x8ab   : > { %v9019_v46 = vpop.f32.mrb[46].mxu1 }
 0x8ac   : > { %v4720_v0 = vpop.f32.mrb[47].mxu1 }
 0x8ad   : > { %9033 = vmatprep.mubr.msk.f32.mxu1 %vm3347_vm4, %v4720_v0  ;;  %v5712_v0 = vrot.slane %v12149_v33, 1 }
 0x8ae   : > { %9034 = vmatmul.mubr.msk.f32.vlgmr.msra.gmra.mrb[14].mxu1 %vm3347_vm4, %v9019_v46 }
 0x8af   : > { %9570 = vmatpush3.bf16.msra.mxu1 %v11689_v13  ;;  %v9022_v43 = vpop.f32.mrb[48].mxu1 }
 0x8b0   : > { %9572 = vmatprep.subr.bf16.mxu1 %v11703_v7  ;;  %v4730_v52 = vpop.f32.mrb[49].mxu1 }
 0x8b1   : > { %9036 = vmatprep.mubr.msk.f32.mxu1 %vm3347_vm4, %v4730_v52  ;;  %v12169_v52 = vsel %vm578_vm1, %v5709_v63, %v5710_v2  ;;  %v7526_v63 = vld [vmem:[%s12455_s7 + $0x1c] sm:$0xf] }
 0x8b2   : > { %9037 = vmatmul.mubr.msk.f32.gmra.mrb[16].mxu1 %vm3347_vm4, %v9022_v43  ;;  %v5713_v43 = vrot.slane %v12152_v17, 1 }
 0x8b3   : > { %9574 = vmatpush3.bf16.msra.mxu1 %v11703_v7  ;;  %v9025_v58 = vpop.f32.mrb[50].mxu1 }
 0x8b4   : > { %9576 = vmatprep.subr.bf16.mxu1 %v11717_v1  ;;  %v4740_v60 = vpop.f32.mrb[51].mxu1 }
 0x8b5   : > { %9039 = vmatprep.mubr.msk.f32.mxu1 %vm3347_vm4, %v4740_v60  ;;  %v5716_v60 = vrot.slane %v12159_v35, 1 }
 0x8b6   : > { %9040 = vmatmul.mubr.msk.f32.gmra.mrb[18].mxu1 %vm3347_vm4, %v9025_v58  ;;  %v5715_v58 = vrot.slane %v12156_v26, 1 }
 0x8b7   : > { %9578 = vmatpush3.bf16.msra.mxu1 %v11717_v1  ;;  %v9028_v4 = vpop.f32.mrb[52].mxu1 }
 0x8b8   : > { %9580 = vmatprep.subr.bf16.mxu1 %v11731_v21  ;;  %v4750_v25 = vpop.f32.mrb[53].mxu1 }
 0x8b9   : > { %9042 = vmatprep.mubr.msk.f32.mxu1 %vm3347_vm4, %v4750_v25  ;;  %v12177_v25 = vld [vmem:[%s12115_s25 + $0x58] sm:$0x3] }
 0x8ba   : > { %9043 = vmatmul.mubr.msk.f32.gmra.mrb[20].mxu1 %vm3347_vm4, %v9028_v4  ;;  %v12174_v4 = vld [vmem:[%s12115_s25 + $0x50] sm:$0xff] }
 0x8bb   : > { %9582 = vmatpush3.bf16.msra.mxu1 %v11731_v21  ;;  %9077 = vmatprep.mubr.f32.mxu1 %v11665_v59  ;;  %v9599_v59 = vpack.c.bf16 %v5006_v61, %v5005_v19  ;;  %v7476_v19 = vld [vmem:[%s12455_s7 + $0x8] sm:$0xf]  ;;  %v12194_v61 = vsel %vm578_vm1, %v5712_v0, %v5713_v43 }
 0x8bc   : > { %9584 = vmatprep.subr.bf16.mxu1 %v11745_v14 }
 0x8bf   : > { %9586 = vmatpush3.bf16.msra.mxu1 %v11745_v14 }
 0x8c0   : > { %9588 = vmatprep.subr.bf16.mxu1 %v11759_v57 }
 0x8c3   : > { %9590 = vmatpush3.bf16.msra.mxu1 %v11759_v57 }
 0x8c4   : > { %9592 = vmatprep.subr.bf16.mxu1 %v11772_v48 }
 0x8c7   : > { %9594 = vmatpush3.bf16.msra.mxu1 %v11772_v48 }
 0x8c8   : > { %9596 = vmatprep.subr.bf16.mxu1 %v12027_v12 }
 0x8cb   : > { %9598 = vmatpush3.bf16.msra.mxu1 %v12027_v12 }
 0x8cc   : > { %9600 = vmatprep.subr.bf16.mxu1 %v9599_v59 }
 0x8ce   : > { %9078 = vmatmul.mubr.f32.vlgmr.msra.gmra.mrb[54].mxu1 %v11779_v23 }
 0x8cf   : > { %9602 = vmatpush3.bf16.msra.mxu1 %v9599_v59  ;;  %9080 = vmatprep.mubr.f32.mxu1 %v11784_v24  ;;  %v5719_v59 = vrot.slane %v12177_v25, 1 }
 0x8d0   : > { %9604 = vmatprep.subr.bf16.mxu1 %v11689_v13 }
 0x8d2   : > { %9081 = vmatmul.mubr.f32.gmra.mrb[56].mxu1 %v11790_v5 }
 0x8d3   : > { %9083 = vmatprep.mubr.f32.mxu1 %v11793_v11 }
 0x8d6   : > { %9084 = vmatmul.mubr.f32.gmra.mrb[58].mxu1 %v11798_v20 }
 0x8d7   : > { %9086 = vmatprep.mubr.f32.mxu1 %v11801_v50 }
 0x8da   : > { %9087 = vmatmul.mubr.f32.gmra.mrb[60].mxu1 %v11806_v36  ;;  %v10151_v36 = vld [vmem:[#allocation10 + $0x40] sm:$0xff] }
 0x9a1   : > { %v9079_v28 = vpop.f32.mrb[54].mxu1 }
 0x9a2   : > { %v4965_v51 = vpop.f32.mrb[55].mxu1 }
 0x9a3   : > { %9093 = vmatprep.mubr.msk.f32.mxu1 %vm3347_vm4, %v4965_v51  ;;  %v5721_v51 = vrot.slane %v12180_v27, 1 }
 0x9a4   : > { %9094 = vmatmul.mubr.msk.f32.vlgmr.msra.gmra.mrb[14].mxu1 %vm3347_vm4, %v9079_v28  ;;  %v12199_v28 = vsel %vm578_vm1, %v5715_v58, %v5716_v60 }
 0x9a5   : > { %9606 = vmatpush3.bf16.msra.mxu1 %v11689_v13  ;;  %v9082_v23 = vpop.f32.mrb[56].mxu1 }
 0x9a6   : > { %9608 = vmatprep.subr.bf16.mxu1 %v11703_v7  ;;  %v4975_v24 = vpop.f32.mrb[57].mxu1 }
 0x9a7   : > { %9096 = vmatprep.mubr.msk.f32.mxu1 %vm3347_vm4, %v4975_v24  ;;  %v12204_v24 = vld [vmem:[%s12115_s25 + $0x70] sm:$0xff] }
 0x9a8   : > { %9097 = vmatmul.mubr.msk.f32.gmra.mrb[16].mxu1 %vm3347_vm4, %v9082_v23  ;;  %v5722_v23 = vrot.slane %v12183_v44, 1 }
 0x9a9   : > { %9610 = vmatpush3.bf16.msra.mxu1 %v11703_v7  ;;  %v9085_v5 = vpop.f32.mrb[58].mxu1 }
 0x9aa   : > { %9612 = vmatprep.subr.bf16.mxu1 %v11717_v1  ;;  %v4985_v11 = vpop.f32.mrb[59].mxu1 }
 0x9ab   : > { %9099 = vmatprep.mubr.msk.f32.mxu1 %vm3347_vm4, %v4985_v11 }
 0x9ac   : > { %9100 = vmatmul.mubr.msk.f32.gmra.mrb[18].mxu1 %vm3347_vm4, %v9085_v5  ;;  %v5681_v5 = vld [vmem:[%s12115_s25 + $0x78] sm:$0x3] }
 0x9ad   : > { %9614 = vmatpush3.bf16.msra.mxu1 %v11717_v1  ;;  %v9088_v20 = vpop.f32.mrb[60].mxu1 }
 0x9ae   : > { %9616 = vmatprep.subr.bf16.mxu1 %v11731_v21  ;;  %v4995_v50 = vpop.f32.mrb[61].mxu1 }
 0x9af   : > { %9102 = vmatprep.mubr.msk.f32.mxu1 %vm3347_vm4, %v4995_v50  ;;  %v5725_v50 = vrot.slane %v5681_v5, 1 }
 0x9b0   : > { %9103 = vmatmul.mubr.msk.f32.gmra.mrb[20].mxu1 %vm3347_vm4, %v9088_v20  ;;  %v5724_v20 = vrot.slane %v12204_v24, 1 }
 0x9b1   : > { %9618 = vmatpush3.bf16.msra.mxu1 %v11731_v21  ;;  %9137 = vmatprep.mubr.f32.mxu1 %v10151_v36  ;;  %v12217_v36 = vsel %vm578_vm1, %v5721_v51, %v5722_v23 }
 0x9b2   : > { %9620 = vmatprep.subr.bf16.mxu1 %v11745_v14  ;;  %v12224_v18 = vsel %vm578_vm1, %v5724_v20, %v5725_v50 }
 0x9b5   : > { %9622 = vmatpush3.bf16.msra.mxu1 %v11745_v14 }
 0x9b6   : > { %9624 = vmatprep.subr.bf16.mxu1 %v11759_v57 }
 0x9b9   : > { %9626 = vmatpush3.bf16.msra.mxu1 %v11759_v57 }
 0x9ba   : > { %9628 = vmatprep.subr.bf16.mxu1 %v11772_v48 }
 0x9bd   : > { %9630 = vmatpush3.bf16.msra.mxu1 %v11772_v48 }
 0x9be   : > { %9632 = vmatprep.subr.bf16.mxu1 %v12027_v12 }
 0x9c1   : > { %9634 = vmatpush3.bf16.msra.mxu1 %v12027_v12 }
 0x9c2   : > { %9636 = vmatprep.subr.bf16.mxu1 %v9635_v22 }
 0x9c4   : > { %9138 = vmatmul.mubr.f32.vlgmr.msra.gmra.mrb[62].mxu1 %v11781_v3 }
 0x9c5   : > { %9638 = vmatpush3.bf16.msra.mxu1 %v9635_v22  ;;  %9140 = vmatprep.mubr.f32.mxu1 %v11809_v6 }
 0x9c6   : > { %9640 = vmatprep.subr.bf16.mxu1 %v11689_v13 }
 0x9c8   : > { %9141 = vmatmul.mubr.f32.gmra.mrb[64].mxu1 %v11822_v54 }
 0x9c9   : > { %9143 = vmatprep.mubr.f32.mxu1 %v11824_v34 }
 0x9cc   : > { %9144 = vmatmul.mubr.f32.gmra.mrb[66].mxu1 %v11828_v10 }
 0x9cd   : > { %9146 = vmatprep.mubr.f32.mxu1 %v11830_v40  ;;  %v5686_v40 = vld [vmem:[%s12455_s7] sm:$0xf] }
 0x9d0   : > { %9147 = vmatmul.mubr.f32.gmra.mrb[68].mxu1 %v11834_v15 }
 0xa97   : > { %v9139_v30 = vpop.f32.mrb[62].mxu1 }
 0xa98   : > { %v5210_v31 = vpop.f32.mrb[63].mxu1 }
 0xa99   : > { %9153 = vmatprep.mubr.msk.f32.mxu1 %vm3347_vm4, %v5210_v31 }
 0xa9a   : > { %9154 = vmatmul.mubr.msk.f32.vlgmr.msra.gmra.mrb[14].mxu1 %vm3347_vm4, %v9139_v30 }
 0xa9b   : > { %9642 = vmatpush3.bf16.msra.mxu1 %v11689_v13  ;;  %v9142_v3 = vpop.f32.mrb[64].mxu1 }
 0xa9c   : > { %9644 = vmatprep.subr.bf16.mxu1 %v11703_v7  ;;  %v5220_v6 = vpop.f32.mrb[65].mxu1 }
 0xa9d   : > { %9156 = vmatprep.mubr.msk.f32.mxu1 %vm3347_vm4, %v5220_v6 }
 0xa9e   : > { %9157 = vmatmul.mubr.msk.f32.gmra.mrb[16].mxu1 %vm3347_vm4, %v9142_v3  ;;  %v5981_v3 = vrot.slane %v12133_v32, 2 }
 0xa9f   : > { %9646 = vmatpush3.bf16.msra.mxu1 %v11703_v7  ;;  %v9145_v54 = vpop.f32.mrb[66].mxu1  ;;  %v5495_v7 = vld [vmem:[#allocation7 + $0x80] sm:$0xff] }
 0xaa0   : > { %9648 = vmatprep.subr.bf16.mxu1 %v11717_v1  ;;  %v5230_v34 = vpop.f32.mrb[67].mxu1 }
 0xaa1   : > { %9159 = vmatprep.mubr.msk.f32.mxu1 %vm3347_vm4, %v5230_v34  ;;  %v5984_v34 = vrot.slane %v12140_v39, 2  ;;  %v7506_v39 = vld [vmem:[%s12455_s7 + $0x14] sm:$0xf] }
 0xaa2   : > { %9160 = vmatmul.mubr.msk.f32.gmra.mrb[18].mxu1 %vm3347_vm4, %v9145_v54  ;;  %v5983_v54 = vrot.slane %v12137_v38, 2 }
 0xaa3   : > { %9650 = vmatpush3.bf16.msra.mxu1 %v11717_v1  ;;  %v9148_v13 = vpop.f32.mrb[68].mxu1  ;;  %v5496_v1 = vld [vmem:[#allocation7 + $0x88] sm:$0xff] }
 0xaa4   : > { %9652 = vmatprep.subr.bf16.mxu1 %v11731_v21  ;;  %v5240_v10 = vpop.f32.mrb[69].mxu1 }
 0xaa5   : > { %9162 = vmatprep.mubr.msk.f32.mxu1 %vm3347_vm4, %v5240_v10  ;;  %v5986_v10 = vrot.slane %v12149_v33, 2 }
 0xaa6   : > { %9163 = vmatmul.mubr.msk.f32.gmra.mrb[20].mxu1 %vm3347_vm4, %v9148_v13 }
 0xaa7   : > { %9654 = vmatpush3.bf16.msra.mxu1 %v11731_v21  ;;  %9197 = vmatprep.mubr.f32.mxu1 %v11859_v8  ;;  %v9671_v21 = vpack.c.bf16 %v5496_v1, %v5495_v7  ;;  %v5987_v7 = vrot.slane %v12152_v17, 2  ;;  %v12261_v1 = vsel %vm1247_vm3, %v5983_v54, %v5984_v34  ;;  %v7546_v34 = vld [vmem:[#allocation11] ss:$0 sm:$0xff] }
 0xaa8   : > { %9656 = vmatprep.subr.bf16.mxu1 %v11745_v14 }
 0xaab   : > { %9658 = vmatpush3.bf16.msra.mxu1 %v11745_v14  ;;  %v7457_v14 = vld [vmem:[%s12455_s7 + $0x4] sm:$0xf] }
 0xaac   : > { %9660 = vmatprep.subr.bf16.mxu1 %v11759_v57 }
 0xaaf   : > { %9662 = vmatpush3.bf16.msra.mxu1 %v11759_v57 }
 0xab0   : > { %9664 = vmatprep.subr.bf16.mxu1 %v11772_v48 }
 0xab3   : > { %9666 = vmatpush3.bf16.msra.mxu1 %v11772_v48 }
 0xab4   : > { %9668 = vmatprep.subr.bf16.mxu1 %v12027_v12 }
 0xab7   : > { %9670 = vmatpush3.bf16.msra.mxu1 %v12027_v12  ;;  %v5718_v12 = vrot.slane %v12174_v4, 1 }
 0xab8   : > { %9672 = vmatprep.subr.bf16.mxu1 %v9671_v21 }
 0xab9   : > { %v12213_v11 = vsel %vm578_vm1, %v5718_v12, %v5719_v59 }
 0xaba   : > { %9198 = vmatmul.mubr.f32.vlgmr.msra.gmra.mrb[70].mxu1 %v11872_v49  ;;  %v12121_v49 = vld [vmem:[%s12115_s25] sm:$0xff] }
 0xabb   : > { %9200 = vmatprep.mubr.f32.mxu1 %v11874_v41  ;;  %9674 = vmatpush3.bf16.msra.mxu1 %v9671_v21  ;;  %v12124_v41 = vld [vmem:[%s12115_s25 + $0x8] sm:$0x3]  ;;  %v5977_v22 = vrot.slane %v12121_v49, 2  ;;  %v5989_v21 = vrot.slane %v12156_v26, 2 }
 0xabc   : > { %9225 = vmatprep.subr.msk.mxu1 %vm726_vm0, %v7457_v14  ;;  %v5978_v30 = vrot.slane %v12124_v41, 2 }
 0xabe   : > { %9201 = vmatmul.mubr.f32.gmra.mrb[72].mxu1 %v11880_v29  ;;  %v5979_v6 = vsel %vm1247_vm3, %v5977_v22, %v5978_v30 }
 0xabf   : > { %9203 = vmatprep.mubr.f32.mxu1 %v11883_v37 }
 0xac2   : > { %9204 = vmatmul.mubr.f32.gmra.mrb[74].mxu1 %v11887_v45  ;;  %v5703_v45 = vrot.slane %v12121_v49, 1 }
 0xac3   : > { %9206 = vmatprep.mubr.f32.mxu1 %v11889_v53  ;;  %v5704_v53 = vrot.slane %v12124_v41, 1  ;;  %v5996_v41 = vrot.slane %v12183_v44, 2 }
 0xac5   : > { %v5705_v56 = vsel %vm578_vm1, %v5703_v45, %v5704_v53  ;;  %v5999_v45 = vrot.slane %v5681_v5, 2 }
 0xac6   : > { %9207 = vmatmul.mubr.f32.gmra.mrb[76].mxu1 %v11893_v62  ;;  %v12130_v62 = vld [vmem:[%s12115_s25 + $0x10] sm:$0xff] }
 0xac7   : > { %v5706_v42 = vrot.slane %v12130_v62, 1  ;;  %v5980_v31 = vrot.slane %v12130_v62, 2 }
 0xac9   : > { %v12164_v46 = vsel %vm578_vm1, %v5706_v42, %v5707_v47  ;;  %v5982_v13 = vsel %vm1247_vm3, %v5980_v31, %v5981_v3  ;;  %v5683_v42 = vld [vmem:[%s12115_s25 + $0x88] sm:$0x3] }
 0xaca   : > { %v6381_v17 = vrot.slane %v5683_v42, 2 }
 0xb8d   : > { %v9199_v57 = vpop.f32.mrb[70].mxu1 }
 0xb8e   : > { %v5455_v48 = vpop.f32.mrb[71].mxu1 }
 0xb8f   : > { %9213 = vmatprep.mubr.msk.f32.mxu1 %vm3347_vm4, %v5455_v48  ;;  %v12273_v48 = vsel %vm1247_vm3, %v5986_v10, %v5987_v7 }
 0xb90   : > { %9214 = vmatmul.mubr.msk.f32.vlgmr.msra.gmra.mrb[14].mxu1 %vm3347_vm4, %v9199_v57  ;;  %v7496_v57 = vld [vmem:[%s12455_s7 + $0x10] sm:$0xf] }
 0xb91   : > { %9226 = vmatpush3.msk.msra.mxu1 %vm726_vm0, %v7457_v14  ;;  %v9202_v15 = vpop.f32.mrb[72].mxu1  ;;  %v5990_v14 = vrot.slane %v12159_v35, 2 }
 0xb92   : > { %v5465_v8 = vpop.f32.mrb[73].mxu1  ;;  %9239 = vmatprep.subr.msk.mxu1 %vm726_vm0, %v5686_v40 }
 0xb93   : > { %9216 = vmatprep.mubr.msk.f32.mxu1 %vm3347_vm4, %v5465_v8  ;;  %v12278_v8 = vsel %vm1247_vm3, %v5989_v21, %v5990_v14 }
 0xb94   : > { %9217 = vmatmul.mubr.msk.f32.gmra.mrb[16].mxu1 %vm3347_vm4, %v9202_v15  ;;  %v5993_v15 = vrot.slane %v12177_v25, 2 }
 0xb95   : > { %v9205_v29 = vpop.f32.mrb[74].mxu1 }
 0xb96   : > { %v5475_v37 = vpop.f32.mrb[75].mxu1 }
 0xb97   : > { %9219 = vmatprep.mubr.msk.f32.mxu1 %vm3347_vm4, %v5475_v37  ;;  %v5998_v37 = vrot.slane %v12204_v24, 2 }
 0xb98   : > { %9220 = vmatmul.mubr.msk.f32.gmra.mrb[18].mxu1 %vm3347_vm4, %v9205_v29 }
 0xb99   : > { %v9208_v9 = vpop.f32.mrb[76].mxu1  ;;  %v12299_v32 = vsel %vm1247_vm3, %v5998_v37, %v5999_v45 }
 0xb9a   : > { %v5485_v55 = vpop.f32.mrb[77].mxu1 }
 0xb9b   : > { %9222 = vmatprep.mubr.msk.f32.mxu1 %vm3347_vm4, %v5485_v55  ;;  %v6258_v55 = vrot.slane %v5683_v42, 1 }
 0xb9c   : > { %9223 = vmatmul.mubr.msk.f32.gmra.mrb[20].mxu1 %vm3347_vm4, %v9208_v9  ;;  %v7516_v9 = vld [vmem:[%s12455_s7 + $0x18] sm:$0xf] }
 0xb9d   : > { %9227 = vmatprep.mubr.msk.f32.mxu1 %vm661_vm2, %v5705_v56 }
 0xba0   : > { %9228 = vmatmul.mubr.msk.f32.vlgmr.msra.gmra.mrb[78].mxu1 %vm661_vm2, %v12164_v46 }
 0xba1   : > { %9240 = vmatpush3.msk.msra.mxu1 %vm726_vm0, %v5686_v40  ;;  %9230 = vmatprep.mubr.msk.f32.mxu1 %vm661_vm2, %v12169_v52  ;;  %v5992_v40 = vrot.slane %v12174_v4, 2 }
 0xba2   : > { %9253 = vmatprep.subr.msk.mxu1 %vm726_vm0, %v7476_v19 }
 0xba3   : > { %v12288_v29 = vsel %vm1247_vm3, %v5992_v40, %v5993_v15 }
 0xba4   : > { %9231 = vmatmul.mubr.msk.f32.gmra.mrb[80].mxu1 %vm661_vm2, %v12194_v61 }
 0xba5   : > { %9233 = vmatprep.mubr.msk.f32.mxu1 %vm661_vm2, %v12199_v28 }
 0xba8   : > { %9234 = vmatmul.mubr.msk.f32.gmra.mrb[82].mxu1 %vm661_vm2, %v12213_v11 }
 0xba9   : > { %9236 = vmatprep.mubr.msk.f32.mxu1 %vm661_vm2, %v12217_v36 }
 0xbac   : > { %9237 = vmatmul.mubr.msk.f32.gmra.mrb[84].mxu1 %vm661_vm2, %v12224_v18 }
 0xbad   : > { %9241 = vmatprep.mubr.msk.f32.mxu1 %vm661_vm2, %v12121_v49  ;;  %v5995_v49 = vrot.slane %v12180_v27, 2 }
 0xbaf   : > { %v12292_v53 = vsel %vm1247_vm3, %v5995_v49, %v5996_v41 }
 0xbb0   : > { %9242 = vmatmul.mubr.msk.f32.vlgmr.msra.gmra.mrb[78].mxu1 %vm661_vm2, %v12130_v62 }
 0xbb1   : > { %9254 = vmatpush3.msk.msra.mxu1 %vm726_vm0, %v7476_v19  ;;  %9244 = vmatprep.mubr.msk.f32.mxu1 %vm661_vm2, %v12137_v38 }
 0xbb2   : > { %9267 = vmatprep.subr.msk.mxu1 %vm726_vm0, %v7486_v16 }
 0xbb4   : > { %9245 = vmatmul.mubr.msk.f32.gmra.mrb[80].mxu1 %vm661_vm2, %v12149_v33 }
 0xbb5   : > { %9247 = vmatprep.mubr.msk.f32.mxu1 %vm661_vm2, %v12156_v26 }
 0xbb8   : > { %9248 = vmatmul.mubr.msk.f32.gmra.mrb[82].mxu1 %vm661_vm2, %v12174_v4 }
 0xbb9   : > { %9250 = vmatprep.mubr.msk.f32.mxu1 %vm661_vm2, %v12180_v27 }
 0xbbc   : > { %9251 = vmatmul.mubr.msk.f32.gmra.mrb[84].mxu1 %vm661_vm2, %v12204_v24 }
 0xbbd   : > { %9255 = vmatprep.mubr.msk.f32.mxu1 %vm661_vm2, %v5979_v6 }
 0xbc0   : > { %9256 = vmatmul.mubr.msk.f32.vlgmr.msra.gmra.mrb[78].mxu1 %vm661_vm2, %v5982_v13 }
 0xbc1   : > { %9268 = vmatpush3.msk.msra.mxu1 %vm726_vm0, %v7486_v16  ;;  %9258 = vmatprep.mubr.msk.f32.mxu1 %vm661_vm2, %v12261_v1 }
 0xbc2   : > { %9281 = vmatprep.subr.msk.mxu1 %vm726_vm0, %v7496_v57 }
 0xbc4   : > { %9259 = vmatmul.mubr.msk.f32.gmra.mrb[80].mxu1 %vm661_vm2, %v12273_v48 }
 0xbc5   : > { %9261 = vmatprep.mubr.msk.f32.mxu1 %vm661_vm2, %v12278_v8 }
 0xbc8   : > { %9262 = vmatmul.mubr.msk.f32.gmra.mrb[82].mxu1 %vm661_vm2, %v12288_v29 }
 0xbc9   : > { %9264 = vmatprep.mubr.msk.f32.mxu1 %vm661_vm2, %v12292_v53 }
 0xbcc   : > { %9265 = vmatmul.mubr.msk.f32.gmra.mrb[84].mxu1 %vm661_vm2, %v12299_v32 }
 0xbcd   : > { %9269 = vmatprep.mubr.msk.f32.mxu1 %vm661_vm2, %v12130_v62  ;;  %v5682_v62 = vld [vmem:[%s12115_s25 + $0x80] sm:$0xff] }
 0xbce   : > { %v6257_v47 = vrot.slane %v5682_v62, 1  ;;  %v6380_v2 = vrot.slane %v5682_v62, 2 }
 0xbd0   : > { %9270 = vmatmul.mubr.msk.f32.vlgmr.msra.gmra.mrb[78].mxu1 %vm661_vm2, %v12137_v38  ;;  %v6259_v56 = vsel %vm578_vm1, %v6257_v47, %v6258_v55  ;;  %v6382_v35 = vsel %vm1247_vm3, %v6380_v2, %v6381_v17 }
 0xbd1   : > { %9282 = vmatpush3.msk.msra.mxu1 %vm726_vm0, %v7496_v57  ;;  %9272 = vmatprep.mubr.msk.f32.mxu1 %vm661_vm2, %v12149_v33 }
 0xbd2   : > { %9295 = vmatprep.subr.msk.mxu1 %vm726_vm0, %v7506_v39 }
 0xbd4   : > { %9273 = vmatmul.mubr.msk.f32.gmra.mrb[80].mxu1 %vm661_vm2, %v12156_v26 }
 0xbd5   : > { %9275 = vmatprep.mubr.msk.f32.mxu1 %vm661_vm2, %v12174_v4 }
 0xbd8   : > { %9276 = vmatmul.mubr.msk.f32.gmra.mrb[82].mxu1 %vm661_vm2, %v12180_v27 }
 0xbd9   : > { %9278 = vmatprep.mubr.msk.f32.mxu1 %vm661_vm2, %v12204_v24 }
 0xbdc   : > { %9279 = vmatmul.mubr.msk.f32.gmra.mrb[84].mxu1 %vm661_vm2, %v5682_v62 }
 0xbdd   : > { %9283 = vmatprep.mubr.msk.f32.mxu1 %vm661_vm2, %v12164_v46  ;;  %v7536_v46 = vld [vmem:[%s12455_s7 + $0x20] sm:$0xf] }
 0xbe0   : > { %9284 = vmatmul.mubr.msk.f32.vlgmr.msra.gmra.mrb[78].mxu1 %vm661_vm2, %v12169_v52 }
 0xbe1   : > { %9296 = vmatpush3.msk.msra.mxu1 %vm726_vm0, %v7506_v39  ;;  %9286 = vmatprep.mubr.msk.f32.mxu1 %vm661_vm2, %v12194_v61 }
 0xbe2   : > { %9309 = vmatprep.subr.msk.mxu1 %vm726_vm0, %v7516_v9 }
 0xbe4   : > { %9287 = vmatmul.mubr.msk.f32.gmra.mrb[80].mxu1 %vm661_vm2, %v12199_v28 }
 0xbe5   : > { %9289 = vmatprep.mubr.msk.f32.mxu1 %vm661_vm2, %v12213_v11 }
 0xbe8   : > { %9290 = vmatmul.mubr.msk.f32.gmra.mrb[82].mxu1 %vm661_vm2, %v12217_v36 }
 0xbe9   : > { %9292 = vmatprep.mubr.msk.f32.mxu1 %vm661_vm2, %v12224_v18 }
 0xbec   : > { %9293 = vmatmul.mubr.msk.f32.gmra.mrb[84].mxu1 %vm661_vm2, %v6259_v56 }
 0xbed   : > { %9297 = vmatprep.mubr.msk.f32.mxu1 %vm661_vm2, %v5982_v13 }
 0xbf0   : > { %9298 = vmatmul.mubr.msk.f32.vlgmr.msra.gmra.mrb[78].mxu1 %vm661_vm2, %v12261_v1 }
 0xbf1   : > { %9310 = vmatpush3.msk.msra.mxu1 %vm726_vm0, %v7516_v9  ;;  %9300 = vmatprep.mubr.msk.f32.mxu1 %vm661_vm2, %v12273_v48 }
 0xbf2   : > { %9323 = vmatprep.subr.msk.mxu1 %vm726_vm0, %v7526_v63 }
 0xbf4   : > { %9301 = vmatmul.mubr.msk.f32.gmra.mrb[80].mxu1 %vm661_vm2, %v12278_v8 }
 0xbf5   : > { %9303 = vmatprep.mubr.msk.f32.mxu1 %vm661_vm2, %v12288_v29 }
 0xbf8   : > { %9304 = vmatmul.mubr.msk.f32.gmra.mrb[82].mxu1 %vm661_vm2, %v12292_v53 }
 0xbf9   : > { %9306 = vmatprep.mubr.msk.f32.mxu1 %vm661_vm2, %v12299_v32 }
 0xbfc   : > { %9307 = vmatmul.mubr.msk.f32.gmra.mrb[84].mxu1 %vm661_vm2, %v6382_v35 }
 0xbfd   : > { %9311 = vmatprep.mubr.msk.f32.mxu1 %vm661_vm2, %v12137_v38  ;;  %v5684_v38 = vld [vmem:[%s12115_s25 + $0x90] sm:$0xff] }
 0xc00   : > { %9312 = vmatmul.mubr.msk.f32.vlgmr.msra.gmra.mrb[78].mxu1 %vm661_vm2, %v12149_v33  ;;  %v5685_v33 = vld [vmem:[%s12115_s25 + $0x98] sm:$0x3] }
 0xc01   : > { %9324 = vmatpush3.msk.msra.mxu1 %vm726_vm0, %v7526_v63  ;;  %9314 = vmatprep.mubr.msk.f32.mxu1 %vm661_vm2, %v12156_v26  ;;  %v6625_v26 = vrot.slane %v5684_v38, 1  ;;  %v6626_v0 = vrot.slane %v5685_v33, 1  ;;  %v6749_v58 = vrot.slane %v5685_v33, 2 }
 0xc02   : > { %9337 = vmatprep.subr.msk.mxu1 %vm726_vm0, %v7536_v46 }
 0xc03   : > { %v6627_v43 = vsel %vm578_vm1, %v6625_v26, %v6626_v0 }
 0xc04   : > { %9315 = vmatmul.mubr.msk.f32.gmra.mrb[80].mxu1 %vm661_vm2, %v12174_v4  ;;  %v7456_v4 = vld [vmem:[#allocation8] ss:$0 sm:$0xff] }
 0xc05   : > { %9317 = vmatprep.mubr.msk.f32.mxu1 %vm661_vm2, %v12180_v27 }
 0xc08   : > { %9318 = vmatmul.mubr.msk.f32.gmra.mrb[82].mxu1 %vm661_vm2, %v12204_v24 }
 0xc09   : > { %9320 = vmatprep.mubr.msk.f32.mxu1 %vm661_vm2, %v5682_v62 }
 0xc0c   : > { %9321 = vmatmul.mubr.msk.f32.gmra.mrb[84].mxu1 %vm661_vm2, %v5684_v38 }
 0xc0d   : > { %9325 = vmatprep.mubr.msk.f32.mxu1 %vm661_vm2, %v12169_v52  ;;  %v6748_v52 = vrot.slane %v5684_v38, 2 }
 0xc0f   : > { %v6750_v60 = vsel %vm1247_vm3, %v6748_v52, %v6749_v58 }
 0xc10   : > { %9326 = vmatmul.mubr.msk.f32.vlgmr.msra.gmra.mrb[78].mxu1 %vm661_vm2, %v12194_v61 }
 0xc11   : > { %9338 = vmatpush3.msk.msra.mxu1 %vm726_vm0, %v7536_v46  ;;  %9328 = vmatprep.mubr.msk.f32.mxu1 %vm661_vm2, %v12199_v28 }
 0xc14   : > { %9329 = vmatmul.mubr.msk.f32.gmra.mrb[80].mxu1 %vm661_vm2, %v12213_v11 }
 0xc15   : > { %9331 = vmatprep.mubr.msk.f32.mxu1 %vm661_vm2, %v12217_v36 }
 0xc18   : > { %9332 = vmatmul.mubr.msk.f32.gmra.mrb[82].mxu1 %vm661_vm2, %v12224_v18 }
 0xc19   : > { %9334 = vmatprep.mubr.msk.f32.mxu1 %vm661_vm2, %v6259_v56 }
 0xc1c   : > { %9335 = vmatmul.mubr.msk.f32.gmra.mrb[84].mxu1 %vm661_vm2, %v6627_v43 }
 0xc1d   : > { %9339 = vmatprep.mubr.msk.f32.mxu1 %vm661_vm2, %v12261_v1 }
 0xc20   : > { %9340 = vmatmul.mubr.msk.f32.vlgmr.msra.gmra.mrb[78].mxu1 %vm661_vm2, %v12273_v48 }
 0xc21   : > { %9342 = vmatprep.mubr.msk.f32.mxu1 %vm661_vm2, %v12278_v8 }
 0xc24   : > { %9343 = vmatmul.mubr.msk.f32.gmra.mrb[80].mxu1 %vm661_vm2, %v12288_v29 }
 0xc25   : > { %9345 = vmatprep.mubr.msk.f32.mxu1 %vm661_vm2, %v12292_v53 }
 0xc28   : > { %9346 = vmatmul.mubr.msk.f32.gmra.mrb[82].mxu1 %vm661_vm2, %v12299_v32 }
 0xc29   : > { %9348 = vmatprep.mubr.msk.f32.mxu1 %vm661_vm2, %v6382_v35 }
 0xc2c   : > { %9349 = vmatmul.mubr.msk.f32.gmra.mrb[84].mxu1 %vm661_vm2, %v6750_v60 }
 0xc63   : > { %v9215_v25 = vpop.f32.mrb[14].mxu1 }
 0xc64   : > { %v5642_v27 = vadd.f32 %v9215_v25, %v7456_v4  ;;  %v5587_v44 = vpop.f32.mrb[15].mxu1 }
 0xc65   : > { %v5641_v19 = vadd.f32 %v7456_v4, %v5587_v44 }
 0xc66   : > { %v5650_v61 = vmax.f32 %v5642_v27, 0.0 }
 0xc67   : > { %v5649_v12 = vmax.f32 %v5641_v19, 0.0  ;;  %v9218_v59 = vpop.f32.mrb[16].mxu1 }
 0xc68   : > { %5659 = vst.msk [vmem:[%s469_s20 + $0x8] sm:$0xff] %vm5657_vm5, %v5650_v61  ;;  %v5644_v28 = vadd.f32 %v9218_v59, %v7456_v4  ;;  %v5597_v51 = vpop.f32.mrb[17].mxu1 }
 0xc69   : > { %5658 = vst.msk [vmem:[%s469_s20] sm:$0xff] %vm5657_vm5, %v5649_v12  ;;  %v5643_v23 = vadd.f32 %v7456_v4, %v5597_v51 }
 0xc6a   : > { %v5652_v24 = vmax.f32 %v5644_v28, 0.0 }
 0xc6b   : > { %v5651_v5 = vmax.f32 %v5643_v23, 0.0  ;;  %v9221_v11 = vpop.f32.mrb[18].mxu1 }
 0xc6c   : > { %5661 = vst.msk [vmem:[%s469_s20 + $0x18] sm:$0xff] %vm5657_vm5, %v5652_v24  ;;  %v5646_v20 = vadd.f32 %v9221_v11, %v7456_v4  ;;  %v5607_v50 = vpop.f32.mrb[19].mxu1 }
 0xc6d   : > { %5660 = vst.msk [vmem:[%s469_s20 + $0x10] sm:$0xff] %vm5657_vm5, %v5651_v5  ;;  %v5645_v36 = vadd.f32 %v7456_v4, %v5607_v50 }
 0xc6e   : > { %v5654_v18 = vmax.f32 %v5646_v20, 0.0 }
 0xc6f   : > { %v5653_v16 = vmax.f32 %v5645_v36, 0.0  ;;  %v9224_v22 = vpop.f32.mrb[20].mxu1 }
 0xc70   : > { %5663 = vst.msk [vmem:[%s469_s20 + $0x28] sm:$0xff] %vm5657_vm5, %v5654_v18  ;;  %v5648_v30 = vadd.f32 %v9224_v22, %v7456_v4  ;;  %v5617_v31 = vpop.f32.mrb[21].mxu1 }
 0xc71   : > { %5662 = vst.msk [vmem:[%s469_s20 + $0x20] sm:$0xff] %vm5657_vm5, %v5653_v16  ;;  %v5647_v3 = vadd.f32 %v7456_v4, %v5617_v31 }
 0xc72   : > { %v5656_v6 = vmax.f32 %v5648_v30, 0.0 }
 0xc73   : > { %v5655_v54 = vmax.f32 %v5647_v3, 0.0 }
 0xc74   : > { %5665 = vst.msk [vmem:[%s469_s20 + $0x38] sm:$0xff] %vm5657_vm5, %v5656_v6 }
 0xc75   : > { %5664 = vst.msk [vmem:[%s469_s20 + $0x30] sm:$0xff] %vm5657_vm5, %v5655_v54 }
 0xcf3   : > { %v9341_v13 = vpop.f32.mrb[78].mxu1 }
 0xcf4   : > { %v6879_v10 = vadd.f32 %v9341_v13, %v7546_v34  ;;  %v6824_v7 = vpop.f32.mrb[79].mxu1 }
 0xcf5   : > { %v6878_v1 = vadd.f32 %v7546_v34, %v6824_v7 }
 0xcf6   : > { %v6887_v21 = vmax.f32 %v6879_v10, 0.0 }
 0xcf7   : > { %v6886_v14 = vmax.f32 %v6878_v1, 0.0  ;;  %v9344_v57 = vpop.f32.mrb[80].mxu1 }
 0xcf8   : > { %6896 = vst.msk [vmem:[%s474_s27 + $0x8] sm:$0xff] %vm6894_vm6, %v6887_v21  ;;  %v6881_v48 = vadd.f32 %v9344_v57, %v7546_v34  ;;  %v6834_v40 = vpop.f32.mrb[81].mxu1 }
 0xcf9   : > { %6895 = vst.msk [vmem:[%s474_s27] sm:$0xff] %vm6894_vm6, %v6886_v14  ;;  %v6880_v15 = vadd.f32 %v7546_v34, %v6834_v40 }
 0xcfa   : > { %v6889_v8 = vmax.f32 %v6881_v48, 0.0 }
 0xcfb   : > { %v6888_v49 = vmax.f32 %v6880_v15, 0.0  ;;  %v9347_v41 = vpop.f32.mrb[82].mxu1 }
 0xcfc   : > { %6898 = vst.msk [vmem:[%s474_s27 + $0x18] sm:$0xff] %vm6894_vm6, %v6889_v8  ;;  %v6883_v29 = vadd.f32 %v9347_v41, %v7546_v34  ;;  %v6844_v37 = vpop.f32.mrb[83].mxu1 }
 0xcfd   : > { %6897 = vst.msk [vmem:[%s474_s27 + $0x10] sm:$0xff] %vm6894_vm6, %v6888_v49  ;;  %v6882_v45 = vadd.f32 %v7546_v34, %v6844_v37 }
 0xcfe   : > { %v6891_v53 = vmax.f32 %v6883_v29, 0.0 }
 0xcff   : > { %v6890_v32 = vmax.f32 %v6882_v45, 0.0  ;;  %v9350_v39 = vpop.f32.mrb[84].mxu1 }
 0xd00   : > { %6900 = vst.msk [vmem:[%s474_s27 + $0x28] sm:$0xff] %vm6894_vm6, %v6891_v53  ;;  %v6885_v62 = vadd.f32 %v9350_v39, %v7546_v34  ;;  %v6854_v9 = vpop.f32.mrb[85].mxu1 }
 0xd01   : > { %6899 = vst.msk [vmem:[%s474_s27 + $0x20] sm:$0xff] %vm6894_vm6, %v6890_v32  ;;  %v6884_v42 = vadd.f32 %v7546_v34, %v6854_v9 }
 0xd02   : > { %v6893_v47 = vmax.f32 %v6885_v62, 0.0 }
 0xd03   : > { %v6892_v55 = vmax.f32 %v6884_v42, 0.0 }
 0xd04   : > { %6902 = vst.msk [vmem:[%s474_s27 + $0x38] sm:$0xff] %vm6894_vm6, %v6893_v47 }
 0xd05   : > { %6901 = vst.msk [vmem:[%s474_s27 + $0x30] sm:$0xff] %vm6894_vm6, %v6892_v55 }
 0xd06 PF: > { %s25_s13 = sadd.s32 1, %s10342_s13  }
 0xd07   : > { %p22_p9 = scmp.ge.s32.totalorder %s25_s13, 4  }
 0xd09   :  { %24 = sbr.rel (!%p22_p9) target bundleno = 6 (0x6), region = 154 }
 0xd10   :  { %6940 = vsyncpa [#allocation4], 1 }
 0xd11   :  { %6942 = vsyncpa [#allocation4 + $0x1], 1 }
 0xd12   :  { %6943 = vsyncpa [#allocation6], 1 }
 0xd13   :  { %6944 = vsyncpa [#allocation9], 1 }
 0xd14   :  { %6945 = vsyncpa [#allocation12], 1 }

</bundles_post_ra>
